<compile_context>
chip_gen: v7x
topology: tpu7x:2x2x1
jax: 0.10.0
libtpu: 0.0.40
codegen_flags: <defaults>
</compile_context>

<pallas_src>
import functools

import jax
import jax.numpy as jnp
from jax.experimental import pallas as pl
from jax.experimental.pallas import tpu as pltpu


# ------------- fused (conv-as-matmul) + bias + InstanceNorm + LeakyReLU -------------
def _fused_conv_kernel(x_ref, w_ref, b_ref, o_ref, *, norm, slope, eps):
    """One sample per grid step.

    x_ref : (1, M, K)  bf16   im2col patches of this sample
    w_ref : (K, N)     bf16   conv weight as a matrix
    b_ref : (1, N)     f32    bias (zeros if the conv has no bias)
    o_ref : (1, M, N)  bf16/f32
    """
    y = jnp.dot(x_ref[0], w_ref[...], preferred_element_type=jnp.float32)  # (M, N) f32
    y = y + b_ref[...]

    if norm:  # InstanceNorm2d (no affine, biased variance) over the spatial dim M
        m = y.shape[0]
        mean = jnp.sum(y, axis=0, keepdims=True) * (1.0 / m)
        d = y - mean
        var = jnp.sum(d * d, axis=0, keepdims=True) * (1.0 / m)
        y = d * jax.lax.rsqrt(var + eps)

    if slope is not None:  # LeakyReLU
        y = jnp.where(y >= 0, y, slope * y)

    o_ref[0] = y.astype(o_ref.dtype)


def fused_conv_layer(patches, w2d, bias, *, norm, slope, out_dtype, eps=1e-5):
    """patches: (B, M, K) bf16 ; w2d: (K, N) bf16 ; bias: (1, N) f32 -> (B, M, N)."""
    B, M, K = patches.shape
    N = w2d.shape[1]
    return pl.pallas_call(
        functools.partial(_fused_conv_kernel, norm=norm, slope=slope, eps=eps),
        out_shape=jax.ShapeDtypeStruct((B, M, N), out_dtype),
        grid=(B,),
        in_specs=[
            pl.BlockSpec((1, M, K), lambda n: (n, 0, 0)),
            pl.BlockSpec((K, N), lambda n: (0, 0)),
            pl.BlockSpec((1, N), lambda n: (0, 0)),
        ],
        out_specs=pl.BlockSpec((1, M, N), lambda n: (n, 0, 0)),
        compiler_params=pltpu.CompilerParams(
            dimension_semantics=("parallel",)),
    )(patches, w2d, bias)


# ------------------------- wrapper-side layout glue (tiny, bf16) --------------------
def _im2col_4x4(x_nhwc, stride, pad):
    """4x4-kernel im2col.  pad = ((top, bottom), (left, right)).

    Returns patches (B, OH*OW, 16*C) in bf16 and the output spatial size.
    Patch column ordering is (kh, kw, c) row-major, matching w_hwio.reshape(16C, Cout).
    """
    B, H, W, C = x_nhwc.shape
    xp = jnp.pad(x_nhwc, ((0, 0), pad[0], pad[1], (0, 0)))
    Hp = H + pad[0][0] + pad[0][1]
    Wp = W + pad[1][0] + pad[1][1]
    OH = (Hp - 4) // stride + 1
    OW = (Wp - 4) // stride + 1
    cols = []
    for kh in range(4):
        for kw in range(4):
            cols.append(xp[:, kh:kh + stride * (OH - 1) + 1:stride,
                             kw:kw + stride * (OW - 1) + 1:stride, :])
    patches = jnp.concatenate(cols, axis=-1)                    # (B, OH, OW, 16C)
    return patches.reshape(B, OH * OW, 16 * C).astype(jnp.bfloat16), (OH, OW)


def _disc_block(x_nhwc, w_hwio, b, *, norm):
    """Conv2d(4x4, s=2, p=1) [+ InstanceNorm2d] + LeakyReLU(0.2)."""
    patches, (OH, OW) = _im2col_4x4(x_nhwc, stride=2, pad=((1, 1), (1, 1)))
    K = 16 * w_hwio.shape[2]
    N = w_hwio.shape[3]
    w2d = w_hwio.reshape(K, N).astype(jnp.bfloat16)
    y = fused_conv_layer(patches, w2d, b.reshape(1, N).astype(jnp.float32),
                         norm=norm, slope=0.2, out_dtype=jnp.bfloat16)
    return y.reshape(x_nhwc.shape[0], OH, OW, N)


def _final_conv(x_nhwc, w_hwio):
    """ZeroPad2d((1,0,1,0)) + Conv2d(512, 1, 4x4, padding=1, bias=False)."""
    # combined zero padding: top/left = 1+1, bottom/right = 0+1
    patches, (OH, OW) = _im2col_4x4(x_nhwc, stride=1, pad=((2, 1), (2, 1)))
    K = 16 * w_hwio.shape[2]
    # pad N=1 up to 8 zero columns for a friendlier MXU / store shape, slice after.
    w2d = jnp.pad(w_hwio.reshape(K, 1), ((0, 0), (0, 7))).astype(jnp.bfloat16)
    zero_b = jnp.zeros((1, 8), jnp.float32)
    y = fused_conv_layer(patches, w2d, zero_b, norm=False, slope=None,
                         out_dtype=jnp.float32)                 # (B, OH*OW, 8)
    return y[:, :, :1].reshape(x_nhwc.shape[0], OH, OW, 1)


# ------------------------------------ model -----------------------------------------
_CHANNELS = ((3, 32), (32, 64), (64, 128), (128, 256), (256, 512))
_NORMALIZE = (False, True, True, True, True)   # block 1 has normalization=False


def init_params(key):
    blocks = []
    for cin, cout in _CHANNELS:
        key, kw = jax.random.split(key)
        w = jax.random.normal(kw, (4, 4, cin, cout), jnp.float32) * (2.0 / (16 * cin)) ** 0.5
        blocks.append((w, jnp.zeros((cout,), jnp.float32)))
    key, kw = jax.random.split(key)
    final_w = jax.random.normal(kw, (4, 4, 512, 1), jnp.float32) * (1.0 / (16 * 512)) ** 0.5
    return {"blocks": blocks, "final_w": final_w}


def forward(params, img_nchw):
    x = jnp.transpose(img_nchw, (0, 2, 3, 1)).astype(jnp.bfloat16)   # NCHW -> NHWC
    for (w, b), norm in zip(params["blocks"], _NORMALIZE):
        x = _disc_block(x, w, b, norm=norm)
    y = _final_conv(x, params["final_w"])                             # (B, h, w, 1) f32
    return jnp.transpose(y, (0, 3, 1, 2))                             # NCHW


if __name__ == "__main__":
    key = jax.random.PRNGKey(0)
    pkey, xkey = jax.random.split(key)
    params = init_params(pkey)
    # Smallest natural input: 5 stride-2 blocks need >= 64x64 so InstanceNorm sees >1
    # spatial element (as PyTorch requires); output patch map is then 2x2.
    img = jax.random.normal(xkey, (2, 3, 64, 64), jnp.float32)

    fwd = jax.jit(forward)
    out = jax.block_until_ready(fwd(params, img))
    assert out.shape == (2, 1, 2, 2), out.shape
    assert bool(jnp.all(jnp.isfinite(out)))
    print("KERNEL_OK")
</pallas_src>

<mosaic_0001>
module attributes {stable_mosaic.version = 11 : i64} {
  func.func @_fused_conv_kernel(%arg0: i32, %arg1: memref<1x1024x48xbf16, #tpu.memory_space<vmem>>, %arg2: memref<48x32xbf16, #tpu.memory_space<vmem>>, %arg3: memref<1x32xf32, #tpu.memory_space<vmem>>, %arg4: memref<1x1024x32xbf16, #tpu.memory_space<vmem>>) attributes {dimension_semantics = [#tpu.dimension_semantics<parallel>], iteration_bounds = array<i64: 2>, scalar_prefetch = 0 : i64, scratch_operands = 0 : i64, tpu.core_type = #tpu.core_type<tc>, window_params = [{transform_indices = @transform_0, window_bounds = array<i64: 1, 1024, 48>}, {pipeline_mode = #tpu.pipeline_mode<synchronous>, transform_indices = @transform_1, window_bounds = array<i64: 48, 32>}, {pipeline_mode = #tpu.pipeline_mode<synchronous>, transform_indices = @transform_2, window_bounds = array<i64: 1, 32>}, {transform_indices = @transform_3, window_bounds = array<i64: 1, 1024, 32>}]} {
    %c0 = arith.constant 0 : index
    %c0_0 = arith.constant 0 : index
    %c0_1 = arith.constant 0 : index
    %0 = vector.load %arg1[%c0, %c0_0, %c0_1] : memref<1x1024x48xbf16, #tpu.memory_space<vmem>>, vector<1x1024x48xbf16>
    %1 = vector.shape_cast %0 : vector<1x1024x48xbf16> to vector<1024x48xbf16>
    %c0_2 = arith.constant 0 : index
    %c0_3 = arith.constant 0 : index
    %2 = vector.load %arg2[%c0_2, %c0_3] : memref<48x32xbf16, #tpu.memory_space<vmem>>, vector<48x32xbf16>
    %cst = arith.constant dense<0.000000e+00> : vector<1024x32xf32>
    %3 = tpu.matmul %1, %2, %cst {dimension_numbers = #tpu.dot_dimension_numbers<[1], [0], [0], [1], [0, 0, 1, 1], [], []>} : vector<1024x48xbf16>, vector<48x32xbf16>, vector<1024x32xf32> -> vector<1024x32xf32>
    %c0_4 = arith.constant 0 : index
    %c0_5 = arith.constant 0 : index
    %4 = vector.load %arg3[%c0_4, %c0_5] : memref<1x32xf32, #tpu.memory_space<vmem>>, vector<1x32xf32>
    %5 = vector.broadcast %4 : vector<1x32xf32> to vector<1024x32xf32>
    %6 = arith.addf %3, %5 : vector<1024x32xf32>
    %cst_6 = arith.constant 0.000000e+00 : f32
    %7 = vector.broadcast %cst_6 : f32 to vector<1024x32xf32>
    %8 = arith.cmpf oge, %6, %7 : vector<1024x32xf32>
    %cst_7 = arith.constant 2.000000e-01 : f32
    %9 = vector.broadcast %cst_7 : f32 to vector<1024x32xf32>
    %10 = arith.mulf %9, %6 : vector<1024x32xf32>
    %11 = arith.select %8, %6, %10 : vector<1024x32xi1>, vector<1024x32xf32>
    %12 = arith.truncf %11 : vector<1024x32xf32> to vector<1024x32xbf16>
    %c0_8 = arith.constant 0 : index
    %c0_9 = arith.constant 0 : index
    %c0_10 = arith.constant 0 : index
    %13 = vector.load %arg4[%c0_8, %c0_9, %c0_10] : memref<1x1024x32xbf16, #tpu.memory_space<vmem>>, vector<1x1024x32xbf16>
    %14 = vector.shape_cast %13 : vector<1x1024x32xbf16> to vector<1024x32xbf16>
    %15 = vector.shape_cast %12 : vector<1024x32xbf16> to vector<1x1024x32xbf16>
    tpu.vector_store %arg4[%c0_8, %c0_9, %c0_10], %15 {strides = array<i32>} : memref<1x1024x32xbf16, #tpu.memory_space<vmem>>, vector<1x1024x32xbf16>,
    return
  }
  func.func @transform_0(%arg0: i32) -> (i32, i32, i32) {
    %c0_i32 = arith.constant 0 : i32
    %c0_i32_0 = arith.constant 0 : i32
    %c0_i32_1 = arith.constant 0 : i32
    return %arg0, %c0_i32, %c0_i32_0 : i32, i32, i32
  }
  func.func @transform_1(%arg0: i32) -> (i32, i32) {
    %c0_i32 = arith.constant 0 : i32
    %c0_i32_0 = arith.constant 0 : i32
    %c0_i32_1 = arith.constant 0 : i32
    return %c0_i32, %c0_i32_0 : i32, i32
  }
  func.func @transform_2(%arg0: i32) -> (i32, i32) {
    %c0_i32 = arith.constant 0 : i32
    %c0_i32_0 = arith.constant 0 : i32
    %c0_i32_1 = arith.constant 0 : i32
    return %c0_i32, %c0_i32_0 : i32, i32
  }
  func.func @transform_3(%arg0: i32) -> (i32, i32, i32) {
    %c0_i32 = arith.constant 0 : i32
    %c0_i32_0 = arith.constant 0 : i32
    %c0_i32_1 = arith.constant 0 : i32
    return %arg0, %c0_i32, %c0_i32_0 : i32, i32, i32
  }
}

module attributes {stable_mosaic.version = 11 : i64} {
  func.func @_fused_conv_kernel(%arg0: i32, %arg1: memref<1x256x512xbf16, #tpu.memory_space<vmem>>, %arg2: memref<512x64xbf16, #tpu.memory_space<vmem>>, %arg3: memref<1x64xf32, #tpu.memory_space<vmem>>, %arg4: memref<1x256x64xbf16, #tpu.memory_space<vmem>>) attributes {dimension_semantics = [#tpu.dimension_semantics<parallel>], iteration_bounds = array<i64: 2>, scalar_prefetch = 0 : i64, scratch_operands = 0 : i64, tpu.core_type = #tpu.core_type<tc>, window_params = [{transform_indices = @transform_0, window_bounds = array<i64: 1, 256, 512>}, {pipeline_mode = #tpu.pipeline_mode<synchronous>, transform_indices = @transform_1, window_bounds = array<i64: 512, 64>}, {pipeline_mode = #tpu.pipeline_mode<synchronous>, transform_indices = @transform_2, window_bounds = array<i64: 1, 64>}, {transform_indices = @transform_3, window_bounds = array<i64: 1, 256, 64>}]} {
    %c0 = arith.constant 0 : index
    %c0_0 = arith.constant 0 : index
    %c0_1 = arith.constant 0 : index
    %0 = vector.load %arg1[%c0, %c0_0, %c0_1] : memref<1x256x512xbf16, #tpu.memory_space<vmem>>, vector<1x256x512xbf16>
    %1 = vector.shape_cast %0 : vector<1x256x512xbf16> to vector<256x512xbf16>
    %c0_2 = arith.constant 0 : index
    %c0_3 = arith.constant 0 : index
    %2 = vector.load %arg2[%c0_2, %c0_3] : memref<512x64xbf16, #tpu.memory_space<vmem>>, vector<512x64xbf16>
    %cst = arith.constant dense<0.000000e+00> : vector<256x64xf32>
    %3 = tpu.matmul %1, %2, %cst {dimension_numbers = #tpu.dot_dimension_numbers<[1], [0], [0], [1], [0, 0, 1, 1], [], []>} : vector<256x512xbf16>, vector<512x64xbf16>, vector<256x64xf32> -> vector<256x64xf32>
    %c0_4 = arith.constant 0 : index
    %c0_5 = arith.constant 0 : index
    %4 = vector.load %arg3[%c0_4, %c0_5] : memref<1x64xf32, #tpu.memory_space<vmem>>, vector<1x64xf32>
    %5 = vector.broadcast %4 : vector<1x64xf32> to vector<256x64xf32>
    %6 = arith.addf %3, %5 : vector<256x64xf32>
    %cst_6 = arith.constant dense<0.000000e+00> : vector<64xf32>
    %7 = vector.multi_reduction <add>, %6, %cst_6 [0] : vector<256x64xf32> to vector<64xf32>
    %8 = vector.shape_cast %7 : vector<64xf32> to vector<1x64xf32>
    %cst_7 = arith.constant 3.906250e-03 : f32
    %9 = vector.broadcast %cst_7 : f32 to vector<1x64xf32>
    %10 = arith.mulf %8, %9 : vector<1x64xf32>
    %11 = vector.broadcast %10 : vector<1x64xf32> to vector<256x64xf32>
    %12 = arith.subf %6, %11 : vector<256x64xf32>
    %13 = arith.mulf %12, %12 : vector<256x64xf32>
    %cst_8 = arith.constant dense<0.000000e+00> : vector<64xf32>
    %14 = vector.multi_reduction <add>, %13, %cst_8 [0] : vector<256x64xf32> to vector<64xf32>
    %15 = vector.shape_cast %14 : vector<64xf32> to vector<1x64xf32>
    %cst_9 = arith.constant 3.906250e-03 : f32
    %16 = vector.broadcast %cst_9 : f32 to vector<1x64xf32>
    %17 = arith.mulf %15, %16 : vector<1x64xf32>
    %cst_10 = arith.constant 9.99999974E-6 : f32
    %18 = vector.broadcast %cst_10 : f32 to vector<1x64xf32>
    %19 = arith.addf %17, %18 : vector<1x64xf32>
    %20 = math.rsqrt %19 : vector<1x64xf32>
    %21 = vector.broadcast %20 : vector<1x64xf32> to vector<256x64xf32>
    %22 = arith.mulf %12, %21 : vector<256x64xf32>
    %cst_11 = arith.constant 0.000000e+00 : f32
    %23 = vector.broadcast %cst_11 : f32 to vector<256x64xf32>
    %24 = arith.cmpf oge, %22, %23 : vector<256x64xf32>
    %cst_12 = arith.constant 2.000000e-01 : f32
    %25 = vector.broadcast %cst_12 : f32 to vector<256x64xf32>
    %26 = arith.mulf %25, %22 : vector<256x64xf32>
    %27 = arith.select %24, %22, %26 : vector<256x64xi1>, vector<256x64xf32>
    %28 = arith.truncf %27 : vector<256x64xf32> to vector<256x64xbf16>
    %c0_13 = arith.constant 0 : index
    %c0_14 = arith.constant 0 : index
    %c0_15 = arith.constant 0 : index
    %29 = vector.load %arg4[%c0_13, %c0_14, %c0_15] : memref<1x256x64xbf16, #tpu.memory_space<vmem>>, vector<1x256x64xbf16>
    %30 = vector.shape_cast %29 : vector<1x256x64xbf16> to vector<256x64xbf16>
    %31 = vector.shape_cast %28 : vector<256x64xbf16> to vector<1x256x64xbf16>
    tpu.vector_store %arg4[%c0_13, %c0_14, %c0_15], %31 {strides = array<i32>} : memref<1x256x64xbf16, #tpu.memory_space<vmem>>, vector<1x256x64xbf16>,
    return
  }
  func.func @transform_0(%arg0: i32) -> (i32, i32, i32) {
    %c0_i32 = arith.constant 0 : i32
    %c0_i32_0 = arith.constant 0 : i32
    %c0_i32_1 = arith.constant 0 : i32
    return %arg0, %c0_i32, %c0_i32_0 : i32, i32, i32
  }
  func.func @transform_1(%arg0: i32) -> (i32, i32) {
    %c0_i32 = arith.constant 0 : i32
    %c0_i32_0 = arith.constant 0 : i32
    %c0_i32_1 = arith.constant 0 : i32
    return %c0_i32, %c0_i32_0 : i32, i32
  }
  func.func @transform_2(%arg0: i32) -> (i32, i32) {
    %c0_i32 = arith.constant 0 : i32
    %c0_i32_0 = arith.constant 0 : i32
    %c0_i32_1 = arith.constant 0 : i32
    return %c0_i32, %c0_i32_0 : i32, i32
  }
  func.func @transform_3(%arg0: i32) -> (i32, i32, i32) {
    %c0_i32 = arith.constant 0 : i32
    %c0_i32_0 = arith.constant 0 : i32
    %c0_i32_1 = arith.constant 0 : i32
    return %arg0, %c0_i32, %c0_i32_0 : i32, i32, i32
  }
}

module attributes {stable_mosaic.version = 11 : i64} {
  func.func @_fused_conv_kernel(%arg0: i32, %arg1: memref<1x64x1024xbf16, #tpu.memory_space<vmem>>, %arg2: memref<1024x128xbf16, #tpu.memory_space<vmem>>, %arg3: memref<1x128xf32, #tpu.memory_space<vmem>>, %arg4: memref<1x64x128xbf16, #tpu.memory_space<vmem>>) attributes {dimension_semantics = [#tpu.dimension_semantics<parallel>], iteration_bounds = array<i64: 2>, scalar_prefetch = 0 : i64, scratch_operands = 0 : i64, tpu.core_type = #tpu.core_type<tc>, window_params = [{transform_indices = @transform_0, window_bounds = array<i64: 1, 64, 1024>}, {pipeline_mode = #tpu.pipeline_mode<synchronous>, transform_indices = @transform_1, window_bounds = array<i64: 1024, 128>}, {pipeline_mode = #tpu.pipeline_mode<synchronous>, transform_indices = @transform_2, window_bounds = array<i64: 1, 128>}, {transform_indices = @transform_3, window_bounds = array<i64: 1, 64, 128>}]} {
    %c0 = arith.constant 0 : index
    %c0_0 = arith.constant 0 : index
    %c0_1 = arith.constant 0 : index
    %0 = vector.load %arg1[%c0, %c0_0, %c0_1] : memref<1x64x1024xbf16, #tpu.memory_space<vmem>>, vector<1x64x1024xbf16>
    %1 = vector.shape_cast %0 : vector<1x64x1024xbf16> to vector<64x1024xbf16>
    %c0_2 = arith.constant 0 : index
    %c0_3 = arith.constant 0 : index
    %2 = vector.load %arg2[%c0_2, %c0_3] : memref<1024x128xbf16, #tpu.memory_space<vmem>>, vector<1024x128xbf16>
    %cst = arith.constant dense<0.000000e+00> : vector<64x128xf32>
    %3 = tpu.matmul %1, %2, %cst {dimension_numbers = #tpu.dot_dimension_numbers<[1], [0], [0], [1], [0, 0, 1, 1], [], []>} : vector<64x1024xbf16>, vector<1024x128xbf16>, vector<64x128xf32> -> vector<64x128xf32>
    %c0_4 = arith.constant 0 : index
    %c0_5 = arith.constant 0 : index
    %4 = vector.load %arg3[%c0_4, %c0_5] : memref<1x128xf32, #tpu.memory_space<vmem>>, vector<1x128xf32>
    %5 = vector.broadcast %4 : vector<1x128xf32> to vector<64x128xf32>
    %6 = arith.addf %3, %5 : vector<64x128xf32>
    %cst_6 = arith.constant dense<0.000000e+00> : vector<128xf32>
    %7 = vector.multi_reduction <add>, %6, %cst_6 [0] : vector<64x128xf32> to vector<128xf32>
    %8 = vector.shape_cast %7 : vector<128xf32> to vector<1x128xf32>
    %cst_7 = arith.constant 1.562500e-02 : f32
    %9 = vector.broadcast %cst_7 : f32 to vector<1x128xf32>
    %10 = arith.mulf %8, %9 : vector<1x128xf32>
    %11 = vector.broadcast %10 : vector<1x128xf32> to vector<64x128xf32>
    %12 = arith.subf %6, %11 : vector<64x128xf32>
    %13 = arith.mulf %12, %12 : vector<64x128xf32>
    %cst_8 = arith.constant dense<0.000000e+00> : vector<128xf32>
    %14 = vector.multi_reduction <add>, %13, %cst_8 [0] : vector<64x128xf32> to vector<128xf32>
    %15 = vector.shape_cast %14 : vector<128xf32> to vector<1x128xf32>
    %cst_9 = arith.constant 1.562500e-02 : f32
    %16 = vector.broadcast %cst_9 : f32 to vector<1x128xf32>
    %17 = arith.mulf %15, %16 : vector<1x128xf32>
    %cst_10 = arith.constant 9.99999974E-6 : f32
    %18 = vector.broadcast %cst_10 : f32 to vector<1x128xf32>
    %19 = arith.addf %17, %18 : vector<1x128xf32>
    %20 = math.rsqrt %19 : vector<1x128xf32>
    %21 = vector.broadcast %20 : vector<1x128xf32> to vector<64x128xf32>
    %22 = arith.mulf %12, %21 : vector<64x128xf32>
    %cst_11 = arith.constant 0.000000e+00 : f32
    %23 = vector.broadcast %cst_11 : f32 to vector<64x128xf32>
    %24 = arith.cmpf oge, %22, %23 : vector<64x128xf32>
    %cst_12 = arith.constant 2.000000e-01 : f32
    %25 = vector.broadcast %cst_12 : f32 to vector<64x128xf32>
    %26 = arith.mulf %25, %22 : vector<64x128xf32>
    %27 = arith.select %24, %22, %26 : vector<64x128xi1>, vector<64x128xf32>
    %28 = arith.truncf %27 : vector<64x128xf32> to vector<64x128xbf16>
    %c0_13 = arith.constant 0 : index
    %c0_14 = arith.constant 0 : index
    %c0_15 = arith.constant 0 : index
    %29 = vector.load %arg4[%c0_13, %c0_14, %c0_15] : memref<1x64x128xbf16, #tpu.memory_space<vmem>>, vector<1x64x128xbf16>
    %30 = vector.shape_cast %29 : vector<1x64x128xbf16> to vector<64x128xbf16>
    %31 = vector.shape_cast %28 : vector<64x128xbf16> to vector<1x64x128xbf16>
    tpu.vector_store %arg4[%c0_13, %c0_14, %c0_15], %31 {strides = array<i32>} : memref<1x64x128xbf16, #tpu.memory_space<vmem>>, vector<1x64x128xbf16>,
    return
  }
  func.func @transform_0(%arg0: i32) -> (i32, i32, i32) {
    %c0_i32 = arith.constant 0 : i32
    %c0_i32_0 = arith.constant 0 : i32
    %c0_i32_1 = arith.constant 0 : i32
    return %arg0, %c0_i32, %c0_i32_0 : i32, i32, i32
  }
  func.func @transform_1(%arg0: i32) -> (i32, i32) {
    %c0_i32 = arith.constant 0 : i32
    %c0_i32_0 = arith.constant 0 : i32
    %c0_i32_1 = arith.constant 0 : i32
    return %c0_i32, %c0_i32_0 : i32, i32
  }
  func.func @transform_2(%arg0: i32) -> (i32, i32) {
    %c0_i32 = arith.constant 0 : i32
    %c0_i32_0 = arith.constant 0 : i32
    %c0_i32_1 = arith.constant 0 : i32
    return %c0_i32, %c0_i32_0 : i32, i32
  }
  func.func @transform_3(%arg0: i32) -> (i32, i32, i32) {
    %c0_i32 = arith.constant 0 : i32
    %c0_i32_0 = arith.constant 0 : i32
    %c0_i32_1 = arith.constant 0 : i32
    return %arg0, %c0_i32, %c0_i32_0 : i32, i32, i32
  }
}

module attributes {stable_mosaic.version = 11 : i64} {
  func.func @_fused_conv_kernel(%arg0: i32, %arg1: memref<1x16x2048xbf16, #tpu.memory_space<vmem>>, %arg2: memref<2048x256xbf16, #tpu.memory_space<vmem>>, %arg3: memref<1x256xf32, #tpu.memory_space<vmem>>, %arg4: memref<1x16x256xbf16, #tpu.memory_space<vmem>>) attributes {dimension_semantics = [#tpu.dimension_semantics<parallel>], iteration_bounds = array<i64: 2>, scalar_prefetch = 0 : i64, scratch_operands = 0 : i64, tpu.core_type = #tpu.core_type<tc>, window_params = [{transform_indices = @transform_0, window_bounds = array<i64: 1, 16, 2048>}, {pipeline_mode = #tpu.pipeline_mode<synchronous>, transform_indices = @transform_1, window_bounds = array<i64: 2048, 256>}, {pipeline_mode = #tpu.pipeline_mode<synchronous>, transform_indices = @transform_2, window_bounds = array<i64: 1, 256>}, {transform_indices = @transform_3, window_bounds = array<i64: 1, 16, 256>}]} {
    %c0 = arith.constant 0 : index
    %c0_0 = arith.constant 0 : index
    %c0_1 = arith.constant 0 : index
    %0 = vector.load %arg1[%c0, %c0_0, %c0_1] : memref<1x16x2048xbf16, #tpu.memory_space<vmem>>, vector<1x16x2048xbf16>
    %1 = vector.shape_cast %0 : vector<1x16x2048xbf16> to vector<16x2048xbf16>
    %c0_2 = arith.constant 0 : index
    %c0_3 = arith.constant 0 : index
    %2 = vector.load %arg2[%c0_2, %c0_3] : memref<2048x256xbf16, #tpu.memory_space<vmem>>, vector<2048x256xbf16>
    %cst = arith.constant dense<0.000000e+00> : vector<16x256xf32>
    %3 = tpu.matmul %1, %2, %cst {dimension_numbers = #tpu.dot_dimension_numbers<[1], [0], [0], [1], [0, 0, 1, 1], [], []>} : vector<16x2048xbf16>, vector<2048x256xbf16>, vector<16x256xf32> -> vector<16x256xf32>
    %c0_4 = arith.constant 0 : index
    %c0_5 = arith.constant 0 : index
    %4 = vector.load %arg3[%c0_4, %c0_5] : memref<1x256xf32, #tpu.memory_space<vmem>>, vector<1x256xf32>
    %5 = vector.broadcast %4 : vector<1x256xf32> to vector<16x256xf32>
    %6 = arith.addf %3, %5 : vector<16x256xf32>
    %cst_6 = arith.constant dense<0.000000e+00> : vector<256xf32>
    %7 = vector.multi_reduction <add>, %6, %cst_6 [0] : vector<16x256xf32> to vector<256xf32>
    %8 = vector.shape_cast %7 : vector<256xf32> to vector<1x256xf32>
    %cst_7 = arith.constant 6.250000e-02 : f32
    %9 = vector.broadcast %cst_7 : f32 to vector<1x256xf32>
    %10 = arith.mulf %8, %9 : vector<1x256xf32>
    %11 = vector.broadcast %10 : vector<1x256xf32> to vector<16x256xf32>
    %12 = arith.subf %6, %11 : vector<16x256xf32>
    %13 = arith.mulf %12, %12 : vector<16x256xf32>
    %cst_8 = arith.constant dense<0.000000e+00> : vector<256xf32>
    %14 = vector.multi_reduction <add>, %13, %cst_8 [0] : vector<16x256xf32> to vector<256xf32>
    %15 = vector.shape_cast %14 : vector<256xf32> to vector<1x256xf32>
    %cst_9 = arith.constant 6.250000e-02 : f32
    %16 = vector.broadcast %cst_9 : f32 to vector<1x256xf32>
    %17 = arith.mulf %15, %16 : vector<1x256xf32>
    %cst_10 = arith.constant 9.99999974E-6 : f32
    %18 = vector.broadcast %cst_10 : f32 to vector<1x256xf32>
    %19 = arith.addf %17, %18 : vector<1x256xf32>
    %20 = math.rsqrt %19 : vector<1x256xf32>
    %21 = vector.broadcast %20 : vector<1x256xf32> to vector<16x256xf32>
    %22 = arith.mulf %12, %21 : vector<16x256xf32>
    %cst_11 = arith.constant 0.000000e+00 : f32
    %23 = vector.broadcast %cst_11 : f32 to vector<16x256xf32>
    %24 = arith.cmpf oge, %22, %23 : vector<16x256xf32>
    %cst_12 = arith.constant 2.000000e-01 : f32
    %25 = vector.broadcast %cst_12 : f32 to vector<16x256xf32>
    %26 = arith.mulf %25, %22 : vector<16x256xf32>
    %27 = arith.select %24, %22, %26 : vector<16x256xi1>, vector<16x256xf32>
    %28 = arith.truncf %27 : vector<16x256xf32> to vector<16x256xbf16>
    %c0_13 = arith.constant 0 : index
    %c0_14 = arith.constant 0 : index
    %c0_15 = arith.constant 0 : index
    %29 = vector.load %arg4[%c0_13, %c0_14, %c0_15] : memref<1x16x256xbf16, #tpu.memory_space<vmem>>, vector<1x16x256xbf16>
    %30 = vector.shape_cast %29 : vector<1x16x256xbf16> to vector<16x256xbf16>
    %31 = vector.shape_cast %28 : vector<16x256xbf16> to vector<1x16x256xbf16>
    tpu.vector_store %arg4[%c0_13, %c0_14, %c0_15], %31 {strides = array<i32>} : memref<1x16x256xbf16, #tpu.memory_space<vmem>>, vector<1x16x256xbf16>,
    return
  }
  func.func @transform_0(%arg0: i32) -> (i32, i32, i32) {
    %c0_i32 = arith.constant 0 : i32
    %c0_i32_0 = arith.constant 0 : i32
    %c0_i32_1 = arith.constant 0 : i32
    return %arg0, %c0_i32, %c0_i32_0 : i32, i32, i32
  }
  func.func @transform_1(%arg0: i32) -> (i32, i32) {
    %c0_i32 = arith.constant 0 : i32
    %c0_i32_0 = arith.constant 0 : i32
    %c0_i32_1 = arith.constant 0 : i32
    return %c0_i32, %c0_i32_0 : i32, i32
  }
  func.func @transform_2(%arg0: i32) -> (i32, i32) {
    %c0_i32 = arith.constant 0 : i32
    %c0_i32_0 = arith.constant 0 : i32
    %c0_i32_1 = arith.constant 0 : i32
    return %c0_i32, %c0_i32_0 : i32, i32
  }
  func.func @transform_3(%arg0: i32) -> (i32, i32, i32) {
    %c0_i32 = arith.constant 0 : i32
    %c0_i32_0 = arith.constant 0 : i32
    %c0_i32_1 = arith.constant 0 : i32
    return %arg0, %c0_i32, %c0_i32_0 : i32, i32, i32
  }
}

module attributes {stable_mosaic.version = 11 : i64} {
  func.func @_fused_conv_kernel(%arg0: i32, %arg1: memref<1x4x4096xbf16, #tpu.memory_space<vmem>>, %arg2: memref<4096x512xbf16, #tpu.memory_space<vmem>>, %arg3: memref<1x512xf32, #tpu.memory_space<vmem>>, %arg4: memref<1x4x512xbf16, #tpu.memory_space<vmem>>) attributes {dimension_semantics = [#tpu.dimension_semantics<parallel>], iteration_bounds = array<i64: 2>, scalar_prefetch = 0 : i64, scratch_operands = 0 : i64, tpu.core_type = #tpu.core_type<tc>, window_params = [{transform_indices = @transform_0, window_bounds = array<i64: 1, 4, 4096>}, {pipeline_mode = #tpu.pipeline_mode<synchronous>, transform_indices = @transform_1, window_bounds = array<i64: 4096, 512>}, {pipeline_mode = #tpu.pipeline_mode<synchronous>, transform_indices = @transform_2, window_bounds = array<i64: 1, 512>}, {transform_indices = @transform_3, window_bounds = array<i64: 1, 4, 512>}]} {
    %c0 = arith.constant 0 : index
    %c0_0 = arith.constant 0 : index
    %c0_1 = arith.constant 0 : index
    %0 = vector.load %arg1[%c0, %c0_0, %c0_1] : memref<1x4x4096xbf16, #tpu.memory_space<vmem>>, vector<1x4x4096xbf16>
    %1 = vector.shape_cast %0 : vector<1x4x4096xbf16> to vector<4x4096xbf16>
    %c0_2 = arith.constant 0 : index
    %c0_3 = arith.constant 0 : index
    %2 = vector.load %arg2[%c0_2, %c0_3] : memref<4096x512xbf16, #tpu.memory_space<vmem>>, vector<4096x512xbf16>
    %cst = arith.constant dense<0.000000e+00> : vector<4x512xf32>
    %3 = tpu.matmul %1, %2, %cst {dimension_numbers = #tpu.dot_dimension_numbers<[1], [0], [0], [1], [0, 0, 1, 1], [], []>} : vector<4x4096xbf16>, vector<4096x512xbf16>, vector<4x512xf32> -> vector<4x512xf32>
    %c0_4 = arith.constant 0 : index
    %c0_5 = arith.constant 0 : index
    %4 = vector.load %arg3[%c0_4, %c0_5] : memref<1x512xf32, #tpu.memory_space<vmem>>, vector<1x512xf32>
    %5 = vector.broadcast %4 : vector<1x512xf32> to vector<4x512xf32>
    %6 = arith.addf %3, %5 : vector<4x512xf32>
    %cst_6 = arith.constant dense<0.000000e+00> : vector<512xf32>
    %7 = vector.multi_reduction <add>, %6, %cst_6 [0] : vector<4x512xf32> to vector<512xf32>
    %8 = vector.shape_cast %7 : vector<512xf32> to vector<1x512xf32>
    %cst_7 = arith.constant 2.500000e-01 : f32
    %9 = vector.broadcast %cst_7 : f32 to vector<1x512xf32>
    %10 = arith.mulf %8, %9 : vector<1x512xf32>
    %11 = vector.broadcast %10 : vector<1x512xf32> to vector<4x512xf32>
    %12 = arith.subf %6, %11 : vector<4x512xf32>
    %13 = arith.mulf %12, %12 : vector<4x512xf32>
    %cst_8 = arith.constant dense<0.000000e+00> : vector<512xf32>
    %14 = vector.multi_reduction <add>, %13, %cst_8 [0] : vector<4x512xf32> to vector<512xf32>
    %15 = vector.shape_cast %14 : vector<512xf32> to vector<1x512xf32>
    %cst_9 = arith.constant 2.500000e-01 : f32
    %16 = vector.broadcast %cst_9 : f32 to vector<1x512xf32>
    %17 = arith.mulf %15, %16 : vector<1x512xf32>
    %cst_10 = arith.constant 9.99999974E-6 : f32
    %18 = vector.broadcast %cst_10 : f32 to vector<1x512xf32>
    %19 = arith.addf %17, %18 : vector<1x512xf32>
    %20 = math.rsqrt %19 : vector<1x512xf32>
    %21 = vector.broadcast %20 : vector<1x512xf32> to vector<4x512xf32>
    %22 = arith.mulf %12, %21 : vector<4x512xf32>
    %cst_11 = arith.constant 0.000000e+00 : f32
    %23 = vector.broadcast %cst_11 : f32 to vector<4x512xf32>
    %24 = arith.cmpf oge, %22, %23 : vector<4x512xf32>
    %cst_12 = arith.constant 2.000000e-01 : f32
    %25 = vector.broadcast %cst_12 : f32 to vector<4x512xf32>
    %26 = arith.mulf %25, %22 : vector<4x512xf32>
    %27 = arith.select %24, %22, %26 : vector<4x512xi1>, vector<4x512xf32>
    %28 = arith.truncf %27 : vector<4x512xf32> to vector<4x512xbf16>
    %c0_13 = arith.constant 0 : index
    %c0_14 = arith.constant 0 : index
    %c0_15 = arith.constant 0 : index
    %29 = vector.load %arg4[%c0_13, %c0_14, %c0_15] : memref<1x4x512xbf16, #tpu.memory_space<vmem>>, vector<1x4x512xbf16>
    %30 = vector.shape_cast %29 : vector<1x4x512xbf16> to vector<4x512xbf16>
    %31 = vector.shape_cast %28 : vector<4x512xbf16> to vector<1x4x512xbf16>
    tpu.vector_store %arg4[%c0_13, %c0_14, %c0_15], %31 {strides = array<i32>} : memref<1x4x512xbf16, #tpu.memory_space<vmem>>, vector<1x4x512xbf16>,
    return
  }
  func.func @transform_0(%arg0: i32) -> (i32, i32, i32) {
    %c0_i32 = arith.constant 0 : i32
    %c0_i32_0 = arith.constant 0 : i32
    %c0_i32_1 = arith.constant 0 : i32
    return %arg0, %c0_i32, %c0_i32_0 : i32, i32, i32
  }
  func.func @transform_1(%arg0: i32) -> (i32, i32) {
    %c0_i32 = arith.constant 0 : i32
    %c0_i32_0 = arith.constant 0 : i32
    %c0_i32_1 = arith.constant 0 : i32
    return %c0_i32, %c0_i32_0 : i32, i32
  }
  func.func @transform_2(%arg0: i32) -> (i32, i32) {
    %c0_i32 = arith.constant 0 : i32
    %c0_i32_0 = arith.constant 0 : i32
    %c0_i32_1 = arith.constant 0 : i32
    return %c0_i32, %c0_i32_0 : i32, i32
  }
  func.func @transform_3(%arg0: i32) -> (i32, i32, i32) {
    %c0_i32 = arith.constant 0 : i32
    %c0_i32_0 = arith.constant 0 : i32
    %c0_i32_1 = arith.constant 0 : i32
    return %arg0, %c0_i32, %c0_i32_0 : i32, i32, i32
  }
}

module attributes {stable_mosaic.version = 11 : i64} {
  func.func @_fused_conv_kernel(%arg0: i32, %arg1: memref<1x4x8192xbf16, #tpu.memory_space<vmem>>, %arg2: memref<8192x8xbf16, #tpu.memory_space<vmem>>, %arg3: memref<1x8xf32, #tpu.memory_space<vmem>>, %arg4: memref<1x4x8xf32, #tpu.memory_space<vmem>>) attributes {dimension_semantics = [#tpu.dimension_semantics<parallel>], iteration_bounds = array<i64: 2>, scalar_prefetch = 0 : i64, scratch_operands = 0 : i64, tpu.core_type = #tpu.core_type<tc>, window_params = [{transform_indices = @transform_0, window_bounds = array<i64: 1, 4, 8192>}, {pipeline_mode = #tpu.pipeline_mode<synchronous>, transform_indices = @transform_1, window_bounds = array<i64: 8192, 8>}, {pipeline_mode = #tpu.pipeline_mode<synchronous>, transform_indices = @transform_2, window_bounds = array<i64: 1, 8>}, {transform_indices = @transform_3, window_bounds = array<i64: 1, 4, 8>}]} {
    %c0 = arith.constant 0 : index
    %c0_0 = arith.constant 0 : index
    %c0_1 = arith.constant 0 : index
    %0 = vector.load %arg1[%c0, %c0_0, %c0_1] : memref<1x4x8192xbf16, #tpu.memory_space<vmem>>, vector<1x4x8192xbf16>
    %1 = vector.shape_cast %0 : vector<1x4x8192xbf16> to vector<4x8192xbf16>
    %c0_2 = arith.constant 0 : index
    %c0_3 = arith.constant 0 : index
    %2 = vector.load %arg2[%c0_2, %c0_3] : memref<8192x8xbf16, #tpu.memory_space<vmem>>, vector<8192x8xbf16>
    %cst = arith.constant dense<0.000000e+00> : vector<4x8xf32>
    %3 = tpu.matmul %1, %2, %cst {dimension_numbers = #tpu.dot_dimension_numbers<[1], [0], [0], [1], [0, 0, 1, 1], [], []>} : vector<4x8192xbf16>, vector<8192x8xbf16>, vector<4x8xf32> -> vector<4x8xf32>
    %c0_4 = arith.constant 0 : index
    %c0_5 = arith.constant 0 : index
    %4 = vector.load %arg3[%c0_4, %c0_5] : memref<1x8xf32, #tpu.memory_space<vmem>>, vector<1x8xf32>
    %5 = vector.broadcast %4 : vector<1x8xf32> to vector<4x8xf32>
    %6 = arith.addf %3, %5 : vector<4x8xf32>
    %c0_6 = arith.constant 0 : index
    %c0_7 = arith.constant 0 : index
    %c0_8 = arith.constant 0 : index
    %7 = vector.load %arg4[%c0_6, %c0_7, %c0_8] : memref<1x4x8xf32, #tpu.memory_space<vmem>>, vector<1x4x8xf32>
    %8 = vector.shape_cast %7 : vector<1x4x8xf32> to vector<4x8xf32>
    %9 = vector.shape_cast %6 : vector<4x8xf32> to vector<1x4x8xf32>
    tpu.vector_store %arg4[%c0_6, %c0_7, %c0_8], %9 {strides = array<i32>} : memref<1x4x8xf32, #tpu.memory_space<vmem>>, vector<1x4x8xf32>,
    return
  }
  func.func @transform_0(%arg0: i32) -> (i32, i32, i32) {
    %c0_i32 = arith.constant 0 : i32
    %c0_i32_0 = arith.constant 0 : i32
    %c0_i32_1 = arith.constant 0 : i32
    return %arg0, %c0_i32, %c0_i32_0 : i32, i32, i32
  }
  func.func @transform_1(%arg0: i32) -> (i32, i32) {
    %c0_i32 = arith.constant 0 : i32
    %c0_i32_0 = arith.constant 0 : i32
    %c0_i32_1 = arith.constant 0 : i32
    return %c0_i32, %c0_i32_0 : i32, i32
  }
  func.func @transform_2(%arg0: i32) -> (i32, i32) {
    %c0_i32 = arith.constant 0 : i32
    %c0_i32_0 = arith.constant 0 : i32
    %c0_i32_1 = arith.constant 0 : i32
    return %c0_i32, %c0_i32_0 : i32, i32
  }
  func.func @transform_3(%arg0: i32) -> (i32, i32, i32) {
    %c0_i32 = arith.constant 0 : i32
    %c0_i32_0 = arith.constant 0 : i32
    %c0_i32_1 = arith.constant 0 : i32
    return %arg0, %c0_i32, %c0_i32_0 : i32, i32, i32
  }
}

</mosaic_0001>

<bundles_post_ra>
// kernel: forward.6
= control target key start
LH: loop header
LB: loop body
LE: loop exit
PB: predicated region body
PF: predicated region fallthrough
CT: control target
= control target key end

     0   :  { %s3181_s12 = smov 0   ;;  %s4015_s0 = inlined_call_operand.vmem [shape: bf16[2,1024,48], index: 0, kind: input, shape index: {}]   ;;  %s4016_s1 = inlined_call_operand.vmem [shape: bf16[48,32], index: 1, kind: input, shape index: {}]   ;;  %s4017_s2 = inlined_call_operand.vmem [shape: f32[1,32], index: 2, kind: input, shape index: {}]   ;;  %s4018_s3 = inlined_call_operand.vmem [shape: bf16[2,1024,32], index: 3, kind: output, shape index: {}]  }
   0x1 LB: > { %s2469_s13 = sadd.s32 4294967295, %s3159_s12   ;;  %p2473_p0 = scmp.ge.s32.totalorder %s3159_s12, 1  ;;  %s3159_s12 = sphi %s3181_s12, %s13_s12  }
   0x2   : > { %p137_p1 = scmp.lt.s32.totalorder %s3159_s12, 3 }
   0x4   : > { %p138_p2 = pnand %p2473_p0, %p137_p1 }
   0x5   : > { %v3085_v0 = vld [vmem:[%s4016_s1] sm:$0xff] (!%p138_p2)   ;;  %p161_p3 = scmp.lt.s32.totalorder (!%p138_p2), %s2469_s13, 1  ;;  %v3086_v1 = vld [vmem:[%s4016_s1 + $0x8] sm:$0xff] (!%p138_p2)   ;;  %v3087_v2 = vld [vmem:[%s4016_s1 + $0x10] sm:$0xff] (!%p138_p2)   ;;  %vm651_vm0 = vcmask (!%p138_p2), 392192   ;;  %vm2285_vm1 = vcmask (!%p138_p2), 257024  }
   0x6   : > { %141 = sbr.rel (%p138_p2) target bundleno = 398 (0x18e), region = 32  ;;  %2937 = vmatprep.subr.bf16.mxu0 (!%p138_p2), %v3085_v0  ;;  %3071 = vmatprep.subr.bf16.mxu1 (!%p138_p2), %v3085_v0 }
   0x7   : > { %2938 = vmatpush3.bf16.msra.mxu0 (!%p138_p2), %v3085_v0  ;;  %3074 = vmatpush3.bf16.msra.mxu1 (!%p138_p2), %v3085_v0 }
   0x8   : > { %2939 = vmatprep.subr.bf16.mxu0 (!%p138_p2), %v3086_v1  ;;  %3072 = vmatprep.subr.bf16.mxu1 (!%p138_p2), %v3086_v1 }
   0xb   : > { %2940 = vmatpush3.bf16.msra.mxu0 (!%p138_p2), %v3086_v1  ;;  %3075 = vmatpush3.bf16.msra.mxu1 (!%p138_p2), %v3086_v1 }
   0xc   : > { %2941 = vmatprep.subr.bf16.mxu0 (!%p138_p2), %v3087_v2  ;;  %3073 = vmatprep.subr.bf16.mxu1 (!%p138_p2), %v3087_v2 }
   0xd   : > { %s4020_s13 = smov (!%p161_p3, %s2469_s13), 1 }
   0xe   : > { %s2740_s20 = sshll.u32 %s4020_s13, 9 }
   0xf   : > { %s3206_s23 = scalar_lea.vmem %s4015_s0, %s2740_s20  ;;  %2942 = vmatpush3.bf16.msra.mxu0 %v3087_v2  ;;  %3076 = vmatpush3.bf16.msra.mxu1 %v3087_v2  ;;  %s3350_s28 = scalar_lea.vmem %s4018_s3, %s2740_s20 }
  0x10   : > { %v3088_v3 = vld [vmem:[%s3206_s23] sm:$0xff]   ;;  %v3090_v5 = vld [vmem:[%s3206_s23 + $0x8] sm:$0xff]   ;;  %v3092_v7 = vld [vmem:[%s3206_s23 + $0x10] sm:$0xff]  }
  0x11   : > { %v3089_v4 = vld [vmem:[%s3206_s23 + $0x100] sm:$0xff]   ;;  %2943 = vmatprep.mubr.msk.bf16.mxu0 %vm651_vm0, %v3088_v3  ;;  %v3091_v6 = vld [vmem:[%s3206_s23 + $0x108] sm:$0xff]   ;;  %v3093_v8 = vld [vmem:[%s3206_s23 + $0x110] sm:$0xff]  }
  0x12   : > { %3007 = vmatprep.mubr.msk.bf16.mxu1 %vm651_vm0, %v3089_v4  ;;  %2944 = vmatmul.mubr.msk.bf16.vlgmr.msra.gmra.mrb[0].mxu0 %vm651_vm0, %v3090_v5  ;;  %v3094_v9 = vld [vmem:[%s3206_s23 + $0x18] sm:$0xff]   ;;  %v3096_v11 = vld [vmem:[%s3206_s23 + $0x20] sm:$0xff]   ;;  %v3098_v13 = vld [vmem:[%s3206_s23 + $0x28] sm:$0xff]  }
  0x13   : > { %3008 = vmatmul.mubr.msk.bf16.vlgmr.msra.gmra.mrb[0].mxu1 %vm651_vm0, %v3091_v6  ;;  %2947 = vmatprep.mubr.msk.bf16.mxu0 %vm651_vm0, %v3092_v7  ;;  %v3095_v10 = vld [vmem:[%s3206_s23 + $0x118] sm:$0xff]   ;;  %v3097_v12 = vld [vmem:[%s3206_s23 + $0x120] sm:$0xff]   ;;  %v3099_v14 = vld [vmem:[%s3206_s23 + $0x128] sm:$0xff]  }
  0x14   : > { %3011 = vmatprep.mubr.msk.bf16.mxu1 %vm651_vm0, %v3093_v8  ;;  %v3100_v15 = vld [vmem:[%s3206_s23 + $0x30] sm:$0xff]   ;;  %v3102_v17 = vld [vmem:[%s3206_s23 + $0x38] sm:$0xff]   ;;  %v3104_v19 = vld [vmem:[%s3206_s23 + $0x40] sm:$0xff]  }
  0x15   : > { %v3101_v16 = vld [vmem:[%s3206_s23 + $0x130] sm:$0xff]   ;;  %v3103_v18 = vld [vmem:[%s3206_s23 + $0x138] sm:$0xff]   ;;  %v3105_v20 = vld [vmem:[%s3206_s23 + $0x140] sm:$0xff]  }
  0x16   : > { %v3106_v21 = vld [vmem:[%s3206_s23 + $0x48] sm:$0xff]   ;;  %v3108_v23 = vld [vmem:[%s3206_s23 + $0x50] sm:$0xff]   ;;  %v3110_v25 = vld [vmem:[%s3206_s23 + $0x58] sm:$0xff]  }
  0x17   : > { %v3107_v22 = vld [vmem:[%s3206_s23 + $0x148] sm:$0xff]   ;;  %v3109_v24 = vld [vmem:[%s3206_s23 + $0x150] sm:$0xff]   ;;  %v3111_v26 = vld [vmem:[%s3206_s23 + $0x158] sm:$0xff]  }
  0x18   : > { %v3112_v27 = vld [vmem:[%s3206_s23 + $0x60] sm:$0xff]   ;;  %v3114_v29 = vld [vmem:[%s3206_s23 + $0x68] sm:$0xff]   ;;  %v3116_v31 = vld [vmem:[%s3206_s23 + $0x70] sm:$0xff]  }
  0x19   : > { %v3113_v28 = vld [vmem:[%s3206_s23 + $0x160] sm:$0xff]   ;;  %v3115_v30 = vld [vmem:[%s3206_s23 + $0x168] sm:$0xff]   ;;  %v3117_v32 = vld [vmem:[%s3206_s23 + $0x170] sm:$0xff]  }
  0x1a   : > { %2948 = vmatmul.mubr.msk.bf16.gmra.mrb[4].mxu0 %vm651_vm0, %v3094_v9  ;;  %v3118_v33 = vld [vmem:[%s3206_s23 + $0x78] sm:$0xff]   ;;  %v3120_v35 = vld [vmem:[%s3206_s23 + $0x80] sm:$0xff]   ;;  %v3122_v37 = vld [vmem:[%s3206_s23 + $0x88] sm:$0xff]  }
  0x1b   : > { %3012 = vmatmul.mubr.msk.bf16.gmra.mrb[4].mxu1 %vm651_vm0, %v3095_v10  ;;  %2951 = vmatprep.mubr.msk.bf16.mxu0 %vm651_vm0, %v3096_v11  ;;  %v3119_v34 = vld [vmem:[%s3206_s23 + $0x178] sm:$0xff]   ;;  %v3121_v36 = vld [vmem:[%s3206_s23 + $0x180] sm:$0xff]   ;;  %v3123_v38 = vld [vmem:[%s3206_s23 + $0x188] sm:$0xff]  }
  0x1c   : > { %3015 = vmatprep.mubr.msk.bf16.mxu1 %vm651_vm0, %v3097_v12  ;;  %v3124_v39 = vld [vmem:[%s3206_s23 + $0x90] sm:$0xff]   ;;  %v3126_v41 = vld [vmem:[%s3206_s23 + $0x98] sm:$0xff]   ;;  %v3128_v43 = vld [vmem:[%s3206_s23 + $0xa0] sm:$0xff]  }
  0x1d   : > { %v3125_v40 = vld [vmem:[%s3206_s23 + $0x190] sm:$0xff]   ;;  %v3127_v42 = vld [vmem:[%s3206_s23 + $0x198] sm:$0xff]   ;;  %v3129_v44 = vld [vmem:[%s3206_s23 + $0x1a0] sm:$0xff]  }
  0x1e   : > { %v3130_v45 = vld [vmem:[%s3206_s23 + $0xa8] sm:$0xff]   ;;  %v3132_v47 = vld [vmem:[%s3206_s23 + $0xb0] sm:$0xff]   ;;  %v3134_v49 = vld [vmem:[%s3206_s23 + $0xb8] sm:$0xff]  }
  0x1f   : > { %v3131_v46 = vld [vmem:[%s3206_s23 + $0x1a8] sm:$0xff]   ;;  %v3133_v48 = vld [vmem:[%s3206_s23 + $0x1b0] sm:$0xff]   ;;  %v3135_v50 = vld [vmem:[%s3206_s23 + $0x1b8] sm:$0xff]  }
  0x20   : > { %v3136_v51 = vld [vmem:[%s3206_s23 + $0xc0] sm:$0xff]   ;;  %v3138_v53 = vld [vmem:[%s3206_s23 + $0xc8] sm:$0xff]   ;;  %v3140_v55 = vld [vmem:[%s3206_s23 + $0xd0] sm:$0xff]  }
  0x21   : > { %v3137_v52 = vld [vmem:[%s3206_s23 + $0x1c0] sm:$0xff]   ;;  %v3139_v54 = vld [vmem:[%s3206_s23 + $0x1c8] sm:$0xff]   ;;  %v3141_v56 = vld [vmem:[%s3206_s23 + $0x1d0] sm:$0xff]  }
  0x22   : > { %2952 = vmatmul.mubr.msk.bf16.gmra.mrb[8].mxu0 %vm651_vm0, %v3098_v13  ;;  %v3142_v57 = vld [vmem:[%s3206_s23 + $0xd8] sm:$0xff]   ;;  %v3144_v59 = vld [vmem:[%s3206_s23 + $0xe0] sm:$0xff]   ;;  %v3146_v61 = vld [vmem:[%s3206_s23 + $0xe8] sm:$0xff]  }
  0x23   : > { %3016 = vmatmul.mubr.msk.bf16.gmra.mrb[8].mxu1 %vm651_vm0, %v3099_v14  ;;  %2955 = vmatprep.mubr.msk.bf16.mxu0 %vm651_vm0, %v3100_v15  ;;  %v3143_v58 = vld [vmem:[%s3206_s23 + $0x1d8] sm:$0xff]   ;;  %v3145_v60 = vld [vmem:[%s3206_s23 + $0x1e0] sm:$0xff]   ;;  %v3147_v62 = vld [vmem:[%s3206_s23 + $0x1e8] sm:$0xff]  }
  0x24   : > { %3019 = vmatprep.mubr.msk.bf16.mxu1 %vm651_vm0, %v3101_v16  ;;  %v3148_v63 = vld [vmem:[%s3206_s23 + $0xf0] sm:$0xff]   ;;  %v3150_v1 = vld [vmem:[%s3206_s23 + $0xf8] sm:$0xff]   ;;  %v3339_v3 = vld [vmem:[%s4017_s2] ss:$0 sm:$0xff] }
  0x25   : > { %v3149_v0 = vld [vmem:[%s3206_s23 + $0x1f0] sm:$0xff]   ;;  %v3151_v2 = vld [vmem:[%s3206_s23 + $0x1f8] sm:$0xff]  }
  0x2a   : > { %2956 = vmatmul.mubr.msk.bf16.gmra.mrb[12].mxu0 %vm651_vm0, %v3102_v17 }
  0x2b   : > { %3020 = vmatmul.mubr.msk.bf16.gmra.mrb[12].mxu1 %vm651_vm0, %v3103_v18  ;;  %2959 = vmatprep.mubr.msk.bf16.mxu0 %vm651_vm0, %v3104_v19 }
  0x2c   : > { %3023 = vmatprep.mubr.msk.bf16.mxu1 %vm651_vm0, %v3105_v20 }
  0x32   : > { %2960 = vmatmul.mubr.msk.bf16.gmra.mrb[16].mxu0 %vm651_vm0, %v3106_v21 }
  0x33   : > { %3024 = vmatmul.mubr.msk.bf16.gmra.mrb[16].mxu1 %vm651_vm0, %v3107_v22  ;;  %2963 = vmatprep.mubr.msk.bf16.mxu0 %vm651_vm0, %v3108_v23 }
  0x34   : > { %3027 = vmatprep.mubr.msk.bf16.mxu1 %vm651_vm0, %v3109_v24 }
  0x3a   : > { %2964 = vmatmul.mubr.msk.bf16.gmra.mrb[20].mxu0 %vm651_vm0, %v3110_v25 }
  0x3b   : > { %3028 = vmatmul.mubr.msk.bf16.gmra.mrb[20].mxu1 %vm651_vm0, %v3111_v26  ;;  %2967 = vmatprep.mubr.msk.bf16.mxu0 %vm651_vm0, %v3112_v27 }
  0x3c   : > { %3031 = vmatprep.mubr.msk.bf16.mxu1 %vm651_vm0, %v3113_v28 }
  0x42   : > { %2968 = vmatmul.mubr.msk.bf16.gmra.mrb[24].mxu0 %vm651_vm0, %v3114_v29 }
  0x43   : > { %3032 = vmatmul.mubr.msk.bf16.gmra.mrb[24].mxu1 %vm651_vm0, %v3115_v30  ;;  %2971 = vmatprep.mubr.msk.bf16.mxu0 %vm651_vm0, %v3116_v31 }
  0x44   : > { %3035 = vmatprep.mubr.msk.bf16.mxu1 %vm651_vm0, %v3117_v32 }
  0x4a   : > { %2972 = vmatmul.mubr.msk.bf16.gmra.mrb[28].mxu0 %vm651_vm0, %v3118_v33 }
  0x4b   : > { %3036 = vmatmul.mubr.msk.bf16.gmra.mrb[28].mxu1 %vm651_vm0, %v3119_v34  ;;  %2975 = vmatprep.mubr.msk.bf16.mxu0 %vm651_vm0, %v3120_v35 }
  0x4c   : > { %3039 = vmatprep.mubr.msk.bf16.mxu1 %vm651_vm0, %v3121_v36 }
  0x52   : > { %2976 = vmatmul.mubr.msk.bf16.gmra.mrb[32].mxu0 %vm651_vm0, %v3122_v37 }
  0x53   : > { %3040 = vmatmul.mubr.msk.bf16.gmra.mrb[32].mxu1 %vm651_vm0, %v3123_v38  ;;  %2979 = vmatprep.mubr.msk.bf16.mxu0 %vm651_vm0, %v3124_v39 }
  0x54   : > { %3043 = vmatprep.mubr.msk.bf16.mxu1 %vm651_vm0, %v3125_v40 }
  0x5a   : > { %2980 = vmatmul.mubr.msk.bf16.gmra.mrb[36].mxu0 %vm651_vm0, %v3126_v41 }
  0x5b   : > { %3044 = vmatmul.mubr.msk.bf16.gmra.mrb[36].mxu1 %vm651_vm0, %v3127_v42  ;;  %2983 = vmatprep.mubr.msk.bf16.mxu0 %vm651_vm0, %v3128_v43 }
  0x5c   : > { %3047 = vmatprep.mubr.msk.bf16.mxu1 %vm651_vm0, %v3129_v44 }
  0x62   : > { %2984 = vmatmul.mubr.msk.bf16.gmra.mrb[40].mxu0 %vm651_vm0, %v3130_v45 }
  0x63   : > { %3048 = vmatmul.mubr.msk.bf16.gmra.mrb[40].mxu1 %vm651_vm0, %v3131_v46  ;;  %2987 = vmatprep.mubr.msk.bf16.mxu0 %vm651_vm0, %v3132_v47 }
  0x64   : > { %3051 = vmatprep.mubr.msk.bf16.mxu1 %vm651_vm0, %v3133_v48 }
  0x6a   : > { %2988 = vmatmul.mubr.msk.bf16.gmra.mrb[44].mxu0 %vm651_vm0, %v3134_v49 }
  0x6b   : > { %3052 = vmatmul.mubr.msk.bf16.gmra.mrb[44].mxu1 %vm651_vm0, %v3135_v50  ;;  %2991 = vmatprep.mubr.msk.bf16.mxu0 %vm651_vm0, %v3136_v51 }
  0x6c   : > { %3055 = vmatprep.mubr.msk.bf16.mxu1 %vm651_vm0, %v3137_v52 }
  0x72   : > { %2992 = vmatmul.mubr.msk.bf16.gmra.mrb[48].mxu0 %vm651_vm0, %v3138_v53 }
  0x73   : > { %3056 = vmatmul.mubr.msk.bf16.gmra.mrb[48].mxu1 %vm651_vm0, %v3139_v54  ;;  %2995 = vmatprep.mubr.msk.bf16.mxu0 %vm651_vm0, %v3140_v55 }
  0x74   : > { %3059 = vmatprep.mubr.msk.bf16.mxu1 %vm651_vm0, %v3141_v56 }
  0x7a   : > { %2996 = vmatmul.mubr.msk.bf16.gmra.mrb[52].mxu0 %vm651_vm0, %v3142_v57 }
  0x7b   : > { %3060 = vmatmul.mubr.msk.bf16.gmra.mrb[52].mxu1 %vm651_vm0, %v3143_v58  ;;  %2999 = vmatprep.mubr.msk.bf16.mxu0 %vm651_vm0, %v3144_v59 }
  0x7c   : > { %3063 = vmatprep.mubr.msk.bf16.mxu1 %vm651_vm0, %v3145_v60 }
  0x82   : > { %3000 = vmatmul.mubr.msk.bf16.gmra.mrb[56].mxu0 %vm651_vm0, %v3146_v61 }
  0x83   : > { %3064 = vmatmul.mubr.msk.bf16.gmra.mrb[56].mxu1 %vm651_vm0, %v3147_v62  ;;  %3003 = vmatprep.mubr.msk.bf16.mxu0 %vm651_vm0, %v3148_v63 }
  0x84   : > { %3067 = vmatprep.mubr.msk.bf16.mxu1 %vm651_vm0, %v3149_v0 }
  0x8a   : > { %3004 = vmatmul.mubr.msk.bf16.gmra.mrb[60].mxu0 %vm651_vm0, %v3150_v1 }
  0x8b   : > { %3068 = vmatmul.mubr.msk.bf16.gmra.mrb[60].mxu1 %vm651_vm0, %v3151_v2 }
  0xe5   : > { %v2945_v4 = vpop.f32.mrb[0].mxu0 }
  0xe6   : > { %v3009_v5 = vpop.f32.mrb[0].mxu1  ;;  %v887_v6 = vadd.f32 %v2945_v4, %v3339_v3  ;;  %v878_v8 = vpop.f32.mrb[1].mxu0 }
  0xe7   : > { %v1143_v7 = vadd.f32 %v3009_v5, %v3339_v3  ;;  %v1134_v9 = vpop.f32.mrb[1].mxu1  ;;  %v879_v10 = vadd.f32 %v3339_v3, %v878_v8  ;;  %v2946_v12 = vpop.f32.mrb[2].mxu0 }
  0xe8   : > { %v1135_v11 = vadd.f32 %v3339_v3, %v1134_v9  ;;  %v3010_v13 = vpop.f32.mrb[2].mxu1  ;;  %vm1391_vm2 = vcmp.ge.f32.partialorder %v887_v6, 0.0  ;;  %v1519_v14 = vmul.f32 0.2, %v887_v6  ;;  %v890_v20 = vadd.f32 %v2946_v12, %v3339_v3  ;;  %v881_v22 = vpop.f32.mrb[3].mxu0 }
  0xe9   : > { %vm1455_vm3 = vcmp.ge.f32.partialorder %v1143_v7, 0.0  ;;  %v1583_v15 = vmul.f32 0.2, %v1143_v7  ;;  %vm1389_vm4 = vcmp.ge.f32.partialorder %v879_v10, 0.0  ;;  %v1517_v16 = vmul.f32 0.2, %v879_v10 }
  0xea   : > { %vm1453_vm5 = vcmp.ge.f32.partialorder %v1135_v11, 0.0  ;;  %v1581_v17 = vmul.f32 0.2, %v1135_v11  ;;  %v1647_v18 = vsel %vm1391_vm2, %v887_v6, %v1519_v14  ;;  %v1146_v21 = vadd.f32 %v3010_v13, %v3339_v3  ;;  %v1137_v23 = vpop.f32.mrb[3].mxu1 }
  0xeb   : > { %v1711_v19 = vsel %vm1455_vm3, %v1143_v7, %v1583_v15  ;;  %v2744_v24 = vpack.c.bf16 %v1647_v18, %v1647_v18  ;;  %v1645_v26 = vsel %vm1389_vm4, %v879_v10, %v1517_v16  ;;  %vm1392_vm6 = vcmp.ge.f32.partialorder %v890_v20, 0.0 }
  0xec   : > { %v2808_v25 = vpack.c.bf16 %v1711_v19, %v1711_v19  ;;  %v1709_v27 = vsel %vm1453_vm5, %v1135_v11, %v1581_v17  ;;  %v2742_v28 = vpack.c.bf16 %v1645_v26, %v1645_v26  ;;  %v1520_v30 = vmul.f32 0.2, %v890_v20 }
  0xed   : > { %v2806_v29 = vpack.c.bf16 %v1709_v27, %v1709_v27  ;;  %2288 = vst.msk [vmem:[%s3350_s28 + $0x8] sm:$0xf] %vm2285_vm1, %v2744_v24  ;;  %vm1456_vm7 = vcmp.ge.f32.partialorder %v1146_v21, 0.0  ;;  %v1584_v31 = vmul.f32 0.2, %v1146_v21  ;;  %v882_v32 = vadd.f32 %v3339_v3, %v881_v22  ;;  %v2949_v34 = vpop.f32.mrb[4].mxu0 }
  0xee   : > { %2352 = vst.msk [vmem:[%s3350_s28 + $0x108] sm:$0xf] %vm2285_vm1, %v2808_v25  ;;  %v1138_v33 = vadd.f32 %v3339_v3, %v1137_v23  ;;  %v3013_v35 = vpop.f32.mrb[4].mxu1  ;;  %2286 = vst.msk [vmem:[%s3350_s28] sm:$0xf] %vm2285_vm1, %v2742_v28  ;;  %v1648_v36 = vsel %vm1392_vm6, %v890_v20, %v1520_v30  ;;  %v903_v37 = vadd.f32 %v2949_v34, %v3339_v3  ;;  %v894_v39 = vpop.f32.mrb[5].mxu0 }
  0xef   : > { %2350 = vst.msk [vmem:[%s3350_s28 + $0x100] sm:$0xf] %vm2285_vm1, %v2806_v29  ;;  %v1159_v38 = vadd.f32 %v3013_v35, %v3339_v3  ;;  %v1150_v40 = vpop.f32.mrb[5].mxu1  ;;  %v2745_v41 = vpack.c.bf16 %v1648_v36, %v1648_v36  ;;  %v1712_v42 = vsel %vm1456_vm7, %v1146_v21, %v1584_v31  ;;  %vm1390_vm8 = vcmp.ge.f32.partialorder %v882_v32, 0.0  ;;  %v2950_v44 = vpop.f32.mrb[6].mxu0 }
  0xf0   : > { %v1518_v43 = vmul.f32 0.2, %v882_v32  ;;  %v3014_v45 = vpop.f32.mrb[6].mxu1  ;;  %v2809_v46 = vpack.c.bf16 %v1712_v42, %v1712_v42  ;;  %vm1454_vm9 = vcmp.ge.f32.partialorder %v1138_v33, 0.0  ;;  %v1582_v47 = vmul.f32 0.2, %v1138_v33 }
  0xf1   : > { %vm1395_vm10 = vcmp.ge.f32.partialorder %v903_v37, 0.0  ;;  %v897_v48 = vpop.f32.mrb[7].mxu0  ;;  %v1153_v49 = vpop.f32.mrb[7].mxu1  ;;  %2289 = vst.msk [vmem:[%s3350_s28 + $0xc] sm:$0xf] %vm2285_vm1, %v2745_v41  ;;  %vm1459_vm11 = vcmp.ge.f32.partialorder %v1159_v38, 0.0  ;;  %v895_v55 = vadd.f32 %v3339_v3, %v894_v39  ;;  %v1151_v56 = vadd.f32 %v3339_v3, %v1150_v40 }
  0xf2   : > { %v1646_v50 = vsel %vm1390_vm8, %v882_v32, %v1518_v43  ;;  %v1523_v51 = vmul.f32 0.2, %v903_v37  ;;  %v1587_v52 = vmul.f32 0.2, %v1159_v38  ;;  %2353 = vst.msk [vmem:[%s3350_s28 + $0x10c] sm:$0xf] %vm2285_vm1, %v2809_v46  ;;  %v1710_v54 = vsel %vm1454_vm9, %v1138_v33, %v1582_v47 }
  0xf3   : > { %v2743_v53 = vpack.c.bf16 %v1646_v50, %v1646_v50  ;;  %v2807_v57 = vpack.c.bf16 %v1710_v54, %v1710_v54  ;;  %v906_v60 = vadd.f32 %v2950_v44, %v3339_v3  ;;  %vm1393_vm12 = vcmp.ge.f32.partialorder %v895_v55, 0.0 }
  0xf4   : > { %v1651_v58 = vsel %vm1395_vm10, %v903_v37, %v1523_v51  ;;  %v1715_v59 = vsel %vm1459_vm11, %v1159_v38, %v1587_v52  ;;  %v1521_v63 = vmul.f32 0.2, %v895_v55  ;;  %vm1457_vm13 = vcmp.ge.f32.partialorder %v1151_v56, 0.0 }
  0xf5   : > { %2287 = vst.msk [vmem:[%s3350_s28 + $0x4] sm:$0xf] %vm2285_vm1, %v2743_v53  ;;  %v2748_v61 = vpack.c.bf16 %v1651_v58, %v1651_v58  ;;  %v2812_v62 = vpack.c.bf16 %v1715_v59, %v1715_v59  ;;  %2351 = vst.msk [vmem:[%s3350_s28 + $0x104] sm:$0xf] %vm2285_vm1, %v2807_v57  ;;  %v1585_v0 = vmul.f32 0.2, %v1151_v56  ;;  %v1162_v4 = vadd.f32 %v3014_v45, %v3339_v3 }
  0xf6   : > { %vm1396_vm14 = vcmp.ge.f32.partialorder %v906_v60, 0.0  ;;  %v1524_v1 = vmul.f32 0.2, %v906_v60  ;;  %v1649_v2 = vsel %vm1393_vm12, %v895_v55, %v1521_v63  ;;  %v898_v5 = vadd.f32 %v3339_v3, %v897_v48  ;;  %v2953_v7 = vpop.f32.mrb[8].mxu0  ;;  %v3017_v8 = vpop.f32.mrb[8].mxu1 }
  0xf7   : > { %2292 = vst.msk [vmem:[%s3350_s28 + $0x18] sm:$0xf] %vm2285_vm1, %v2748_v61  ;;  %2356 = vst.msk [vmem:[%s3350_s28 + $0x118] sm:$0xf] %vm2285_vm1, %v2812_v62  ;;  %v1154_v6 = vadd.f32 %v3339_v3, %v1153_v49  ;;  %v2746_v9 = vpack.c.bf16 %v1649_v2, %v1649_v2  ;;  %v1713_v10 = vsel %vm1457_vm13, %v1151_v56, %v1585_v0  ;;  %v910_v13 = vpop.f32.mrb[9].mxu0  ;;  %v1166_v14 = vpop.f32.mrb[9].mxu1 }
  0xf8   : > { %v1652_v11 = vsel %vm1396_vm14, %v906_v60, %v1524_v1  ;;  %v919_v12 = vadd.f32 %v2953_v7, %v3339_v3  ;;  %v2810_v15 = vpack.c.bf16 %v1713_v10, %v1713_v10  ;;  %vm1460_vm15 = vcmp.ge.f32.partialorder %v1162_v4, 0.0  ;;  %v2954_v18 = vpop.f32.mrb[10].mxu0  ;;  %v3018_v19 = vpop.f32.mrb[10].mxu1 }
  0xf9   : > { %v2749_v16 = vpack.c.bf16 %v1652_v11, %v1652_v11  ;;  %v1588_v17 = vmul.f32 0.2, %v1162_v4  ;;  %2290 = vst.msk [vmem:[%s3350_s28 + $0x10] sm:$0xf] %vm2285_vm1, %v2746_v9  ;;  %vm1394_vm0 = vcmp.ge.f32.partialorder %v898_v5, 0.0  ;;  %vm1458_vm2 = vcmp.ge.f32.partialorder %v1154_v6, 0.0 }
  0xfa   : > { %v1522_v20 = vmul.f32 0.2, %v898_v5  ;;  %v1586_v21 = vmul.f32 0.2, %v1154_v6  ;;  %2354 = vst.msk [vmem:[%s3350_s28 + $0x110] sm:$0xf] %vm2285_vm1, %v2810_v15  ;;  %v1175_v24 = vadd.f32 %v3017_v8, %v3339_v3  ;;  %v911_v30 = vadd.f32 %v3339_v3, %v910_v13 }
  0xfb   : > { %2293 = vst.msk [vmem:[%s3350_s28 + $0x1c] sm:$0xf] %vm2285_vm1, %v2749_v16  ;;  %v1716_v22 = vsel %vm1460_vm15, %v1162_v4, %v1588_v17  ;;  %vm1399_vm3 = vcmp.ge.f32.partialorder %v919_v12, 0.0  ;;  %v1527_v23 = vmul.f32 0.2, %v919_v12  ;;  %v913_v25 = vpop.f32.mrb[11].mxu0  ;;  %v1167_v38 = vadd.f32 %v3339_v3, %v1166_v14 }
  0xfc   : > { %v1169_v26 = vpop.f32.mrb[11].mxu1  ;;  %v2813_v27 = vpack.c.bf16 %v1716_v22, %v1716_v22  ;;  %v1650_v28 = vsel %vm1394_vm0, %v898_v5, %v1522_v20  ;;  %v1714_v29 = vsel %vm1458_vm2, %v1154_v6, %v1586_v21  ;;  %vm1463_vm4 = vcmp.ge.f32.partialorder %v1175_v24, 0.0 }
  0xfd   : > { %v2747_v31 = vpack.c.bf16 %v1650_v28, %v1650_v28  ;;  %v2811_v32 = vpack.c.bf16 %v1714_v29, %v1714_v29  ;;  %v1655_v33 = vsel %vm1399_vm3, %v919_v12, %v1527_v23  ;;  %v1591_v35 = vmul.f32 0.2, %v1175_v24  ;;  %v2957_v37 = vpop.f32.mrb[12].mxu0 }
  0xfe   : > { %2357 = vst.msk [vmem:[%s3350_s28 + $0x11c] sm:$0xf] %vm2285_vm1, %v2813_v27  ;;  %v2752_v34 = vpack.c.bf16 %v1655_v33, %v1655_v33  ;;  %vm1397_vm5 = vcmp.ge.f32.partialorder %v911_v30, 0.0  ;;  %v1525_v36 = vmul.f32 0.2, %v911_v30  ;;  %v922_v39 = vadd.f32 %v2954_v18, %v3339_v3  ;;  %v3021_v42 = vpop.f32.mrb[12].mxu1 }
  0xff   : > { %2291 = vst.msk [vmem:[%s3350_s28 + $0x14] sm:$0xf] %vm2285_vm1, %v2747_v31  ;;  %2355 = vst.msk [vmem:[%s3350_s28 + $0x114] sm:$0xf] %vm2285_vm1, %v2811_v32  ;;  %v1178_v40 = vadd.f32 %v3018_v19, %v3339_v3  ;;  %v914_v41 = vadd.f32 %v3339_v3, %v913_v25  ;;  %v926_v43 = vpop.f32.mrb[13].mxu0  ;;  %v1719_v44 = vsel %vm1463_vm4, %v1175_v24, %v1591_v35  ;;  %v1182_v48 = vpop.f32.mrb[13].mxu1 }
 0x100   : > { %2296 = vst.msk [vmem:[%s3350_s28 + $0x28] sm:$0xf] %vm2285_vm1, %v2752_v34  ;;  %v1653_v45 = vsel %vm1397_vm5, %v911_v30, %v1525_v36  ;;  %v1170_v46 = vadd.f32 %v3339_v3, %v1169_v26  ;;  %v935_v47 = vadd.f32 %v2957_v37, %v3339_v3  ;;  %v2958_v49 = vpop.f32.mrb[14].mxu0  ;;  %v2816_v50 = vpack.c.bf16 %v1719_v44, %v1719_v44  ;;  %v3022_v53 = vpop.f32.mrb[14].mxu1 }
 0x101   : > { %v2750_v51 = vpack.c.bf16 %v1653_v45, %v1653_v45  ;;  %vm1461_vm6 = vcmp.ge.f32.partialorder %v1167_v38, 0.0  ;;  %v1589_v52 = vmul.f32 0.2, %v1167_v38  ;;  %v929_v54 = vpop.f32.mrb[15].mxu0  ;;  %vm1400_vm7 = vcmp.ge.f32.partialorder %v922_v39, 0.0  ;;  %v1185_v59 = vpop.f32.mrb[15].mxu1 }
 0x102   : > { %v1528_v55 = vmul.f32 0.2, %v922_v39  ;;  %vm1464_vm8 = vcmp.ge.f32.partialorder %v1178_v40, 0.0  ;;  %v1592_v56 = vmul.f32 0.2, %v1178_v40  ;;  %vm1398_vm9 = vcmp.ge.f32.partialorder %v914_v41, 0.0 }
 0x103   : > { %2360 = vst.msk [vmem:[%s3350_s28 + $0x128] sm:$0xf] %vm2285_vm1, %v2816_v50  ;;  %2294 = vst.msk [vmem:[%s3350_s28 + $0x20] sm:$0xf] %vm2285_vm1, %v2750_v51  ;;  %v1717_v57 = vsel %vm1461_vm6, %v1167_v38, %v1589_v52  ;;  %v1526_v58 = vmul.f32 0.2, %v914_v41  ;;  %v1191_v7 = vadd.f32 %v3021_v42, %v3339_v3  ;;  %v927_v11 = vadd.f32 %v3339_v3, %v926_v43 }
 0x104   : > { %vm1462_vm10 = vcmp.ge.f32.partialorder %v1170_v46, 0.0  ;;  %v2814_v60 = vpack.c.bf16 %v1717_v57, %v1717_v57  ;;  %v1656_v61 = vsel %vm1400_vm7, %v922_v39, %v1528_v55  ;;  %v1720_v62 = vsel %vm1464_vm8, %v1178_v40, %v1592_v56 }
 0x105   : > { %v1590_v63 = vmul.f32 0.2, %v1170_v46  ;;  %v2753_v0 = vpack.c.bf16 %v1656_v61, %v1656_v61  ;;  %v2817_v1 = vpack.c.bf16 %v1720_v62, %v1720_v62  ;;  %v1654_v2 = vsel %vm1398_vm9, %v914_v41, %v1526_v58  ;;  %v2961_v8 = vpop.f32.mrb[16].mxu0 }
 0x106   : > { %vm1403_vm11 = vcmp.ge.f32.partialorder %v935_v47, 0.0  ;;  %2358 = vst.msk [vmem:[%s3350_s28 + $0x120] sm:$0xf] %vm2285_vm1, %v2814_v60  ;;  %v2751_v4 = vpack.c.bf16 %v1654_v2, %v1654_v2  ;;  %v1531_v6 = vmul.f32 0.2, %v935_v47  ;;  %v3025_v9 = vpop.f32.mrb[16].mxu1  ;;  %v1183_v12 = vadd.f32 %v3339_v3, %v1182_v48 }
 0x107   : > { %v1718_v5 = vsel %vm1462_vm10, %v1170_v46, %v1590_v63  ;;  %2297 = vst.msk [vmem:[%s3350_s28 + $0x2c] sm:$0xf] %vm2285_vm1, %v2753_v0  ;;  %2361 = vst.msk [vmem:[%s3350_s28 + $0x12c] sm:$0xf] %vm2285_vm1, %v2817_v1  ;;  %v938_v13 = vadd.f32 %v2958_v49, %v3339_v3  ;;  %v942_v14 = vpop.f32.mrb[17].mxu0  ;;  %v1198_v15 = vpop.f32.mrb[17].mxu1  ;;  %v1194_v18 = vadd.f32 %v3022_v53, %v3339_v3 }
 0x108   : > { %v2815_v10 = vpack.c.bf16 %v1718_v5, %v1718_v5  ;;  %2295 = vst.msk [vmem:[%s3350_s28 + $0x24] sm:$0xf] %vm2285_vm1, %v2751_v4  ;;  %v1659_v16 = vsel %vm1403_vm11, %v935_v47, %v1531_v6  ;;  %vm1467_vm12 = vcmp.ge.f32.partialorder %v1191_v7, 0.0  ;;  %v1595_v17 = vmul.f32 0.2, %v1191_v7  ;;  %v3426_v19 = vpop.f32.mrb[18].mxu0 }
 0x109   : > { %v3428_v20 = vpop.f32.mrb[18].mxu1  ;;  %v2756_v21 = vpack.c.bf16 %v1659_v16, %v1659_v16  ;;  %vm1401_vm13 = vcmp.ge.f32.partialorder %v927_v11, 0.0  ;;  %v1529_v22 = vmul.f32 0.2, %v927_v11  ;;  %vm1465_vm14 = vcmp.ge.f32.partialorder %v1183_v12, 0.0  ;;  %v3432_v23 = vpop.f32.mrb[19].mxu0 }
 0x10a   : > { %2359 = vst.msk [vmem:[%s3350_s28 + $0x124] sm:$0xf] %vm2285_vm1, %v2815_v10  ;;  %v3434_v24 = vpop.f32.mrb[19].mxu1  ;;  %v1723_v25 = vsel %vm1467_vm12, %v1191_v7, %v1595_v17  ;;  %v1593_v26 = vmul.f32 0.2, %v1183_v12  ;;  %vm1404_vm15 = vcmp.ge.f32.partialorder %v938_v13, 0.0  ;;  %v930_v34 = vadd.f32 %v3339_v3, %v929_v54 }
 0x10b   : > { %v1532_v27 = vmul.f32 0.2, %v938_v13  ;;  %2300 = vst.msk [vmem:[%s3350_s28 + $0x38] sm:$0xf] %vm2285_vm1, %v2756_v21  ;;  %v2820_v28 = vpack.c.bf16 %v1723_v25, %v1723_v25  ;;  %v1657_v29 = vsel %vm1401_vm13, %v927_v11, %v1529_v22  ;;  %vm1468_vm0 = vcmp.ge.f32.partialorder %v1194_v18, 0.0 }
 0x10c   : > { %v1596_v30 = vmul.f32 0.2, %v1194_v18  ;;  %v2754_v31 = vpack.c.bf16 %v1657_v29, %v1657_v29  ;;  %v1721_v32 = vsel %vm1465_vm14, %v1183_v12, %v1593_v26  ;;  %v1186_v38 = vadd.f32 %v3339_v3, %v1185_v59 }
 0x10d   : > { %v1660_v33 = vsel %vm1404_vm15, %v938_v13, %v1532_v27  ;;  %2364 = vst.msk [vmem:[%s3350_s28 + $0x138] sm:$0xf] %vm2285_vm1, %v2820_v28  ;;  %v2818_v35 = vpack.c.bf16 %v1721_v32, %v1721_v32  ;;  %vm1402_vm2 = vcmp.ge.f32.partialorder %v930_v34, 0.0  ;;  %v1530_v40 = vmul.f32 0.2, %v930_v34  ;;  %v2965_v42 = vpop.f32.mrb[20].mxu0 }
 0x10e   : > { %v2757_v36 = vpack.c.bf16 %v1660_v33, %v1660_v33  ;;  %v1724_v37 = vsel %vm1468_vm0, %v1194_v18, %v1596_v30  ;;  %2298 = vst.msk [vmem:[%s3350_s28 + $0x30] sm:$0xf] %vm2285_vm1, %v2754_v31  ;;  %v951_v41 = vadd.f32 %v2961_v8, %v3339_v3  ;;  %v3029_v43 = vpop.f32.mrb[20].mxu1  ;;  %vm1466_vm3 = vcmp.ge.f32.partialorder %v1186_v38, 0.0  ;;  %v958_v47 = vpop.f32.mrb[21].mxu0 }
 0x10f   : > { %v2821_v39 = vpack.c.bf16 %v1724_v37, %v1724_v37  ;;  %2362 = vst.msk [vmem:[%s3350_s28 + $0x130] sm:$0xf] %vm2285_vm1, %v2818_v35  ;;  %v1594_v44 = vmul.f32 0.2, %v1186_v38  ;;  %v1207_v45 = vadd.f32 %v3025_v9, %v3339_v3  ;;  %v943_v46 = vadd.f32 %v3339_v3, %v942_v14  ;;  %v3451_v48 = vpop.f32.mrb[21].mxu1  ;;  %v3456_v52 = vpop.f32.mrb[22].mxu0 }
 0x110   : > { %2301 = vst.msk [vmem:[%s3350_s28 + $0x3c] sm:$0xf] %vm2285_vm1, %v2757_v36  ;;  %v1658_v49 = vsel %vm1402_vm2, %v930_v34, %v1530_v40  ;;  %vm1407_vm4 = vcmp.ge.f32.partialorder %v951_v41, 0.0  ;;  %v1535_v50 = vmul.f32 0.2, %v951_v41  ;;  %v1199_v51 = vadd.f32 %v3339_v3, %v1198_v15  ;;  %v3458_v53 = vpop.f32.mrb[22].mxu1 }
 0x111   : > { %2365 = vst.msk [vmem:[%s3350_s28 + $0x13c] sm:$0xf] %vm2285_vm1, %v2821_v39  ;;  %v2755_v54 = vpack.c.bf16 %v1658_v49, %v1658_v49  ;;  %v1722_v55 = vsel %vm1466_vm3, %v1186_v38, %v1594_v44  ;;  %vm1471_vm5 = vcmp.ge.f32.partialorder %v1207_v45, 0.0  ;;  %v1599_v56 = vmul.f32 0.2, %v1207_v45  ;;  %v3460_v57 = vpop.f32.mrb[23].mxu0 }
 0x112   : > { %v3462_v58 = vpop.f32.mrb[23].mxu1  ;;  %v2819_v59 = vpack.c.bf16 %v1722_v55, %v1722_v55  ;;  %v1663_v60 = vsel %vm1407_vm4, %v951_v41, %v1535_v50  ;;  %vm1405_vm6 = vcmp.ge.f32.partialorder %v943_v46, 0.0  ;;  %v1533_v61 = vmul.f32 0.2, %v943_v46 }
 0x113   : > { %2299 = vst.msk [vmem:[%s3350_s28 + $0x34] sm:$0xf] %vm2285_vm1, %v2755_v54  ;;  %v2760_v62 = vpack.c.bf16 %v1663_v60, %v1663_v60  ;;  %v1727_v63 = vsel %vm1471_vm5, %v1207_v45, %v1599_v56  ;;  %vm1469_vm7 = vcmp.ge.f32.partialorder %v1199_v51, 0.0  ;;  %v1597_v0 = vmul.f32 0.2, %v1199_v51 }
 0x114   : > { %2363 = vst.msk [vmem:[%s3350_s28 + $0x134] sm:$0xf] %vm2285_vm1, %v2819_v59  ;;  %v2824_v1 = vpack.c.bf16 %v1727_v63, %v1727_v63  ;;  %v1661_v2 = vsel %vm1405_vm6, %v943_v46, %v1533_v61  ;;  %v954_v4 = vadd.f32 %v3426_v19, %v3339_v3  ;;  %v1210_v5 = vadd.f32 %v3428_v20, %v3339_v3 }
 0x115   : > { %2304 = vst.msk [vmem:[%s3350_s28 + $0x48] sm:$0xf] %vm2285_vm1, %v2760_v62  ;;  %v2758_v6 = vpack.c.bf16 %v1661_v2, %v1661_v2  ;;  %v1725_v7 = vsel %vm1469_vm7, %v1199_v51, %v1597_v0  ;;  %v946_v8 = vadd.f32 %v3339_v3, %v3432_v23  ;;  %v1202_v9 = vadd.f32 %v3339_v3, %v3434_v24  ;;  %v3480_v12 = vpop.f32.mrb[24].mxu0 }
 0x116   : > { %2368 = vst.msk [vmem:[%s3350_s28 + $0x148] sm:$0xf] %vm2285_vm1, %v2824_v1  ;;  %v2822_v10 = vpack.c.bf16 %v1725_v7, %v1725_v7  ;;  %vm1408_vm8 = vcmp.ge.f32.partialorder %v954_v4, 0.0  ;;  %v1536_v11 = vmul.f32 0.2, %v954_v4  ;;  %vm1472_vm9 = vcmp.ge.f32.partialorder %v1210_v5, 0.0 }
 0x117   : > { %v3482_v13 = vpop.f32.mrb[24].mxu1  ;;  %2302 = vst.msk [vmem:[%s3350_s28 + $0x40] sm:$0xf] %vm2285_vm1, %v2758_v6  ;;  %v1600_v14 = vmul.f32 0.2, %v1210_v5  ;;  %vm1406_vm10 = vcmp.ge.f32.partialorder %v946_v8, 0.0  ;;  %v967_v18 = vadd.f32 %v2965_v42, %v3339_v3  ;;  %v1223_v19 = vadd.f32 %v3029_v43, %v3339_v3 }
 0x118   : > { %v1534_v15 = vmul.f32 0.2, %v946_v8  ;;  %vm1470_vm11 = vcmp.ge.f32.partialorder %v1202_v9, 0.0  ;;  %2366 = vst.msk [vmem:[%s3350_s28 + $0x140] sm:$0xf] %vm2285_vm1, %v2822_v10  ;;  %v1664_v16 = vsel %vm1408_vm8, %v954_v4, %v1536_v11  ;;  %v3490_v20 = vpop.f32.mrb[25].mxu0  ;;  %v959_v25 = vadd.f32 %v3339_v3, %v958_v47 }
 0x119   : > { %v1598_v17 = vmul.f32 0.2, %v1202_v9  ;;  %v3492_v21 = vpop.f32.mrb[25].mxu1  ;;  %v2761_v22 = vpack.c.bf16 %v1664_v16, %v1664_v16  ;;  %v1728_v23 = vsel %vm1472_vm9, %v1210_v5, %v1600_v14  ;;  %v3496_v26 = vpop.f32.mrb[26].mxu0  ;;  %vm1411_vm12 = vcmp.ge.f32.partialorder %v967_v18, 0.0 }
 0x11a   : > { %v1662_v24 = vsel %vm1406_vm10, %v946_v8, %v1534_v15  ;;  %v3498_v27 = vpop.f32.mrb[26].mxu1  ;;  %v2825_v28 = vpack.c.bf16 %v1728_v23, %v1728_v23  ;;  %v3501_v31 = vpop.f32.mrb[27].mxu0  ;;  %v1539_v34 = vmul.f32 0.2, %v967_v18  ;;  %vm1475_vm13 = vcmp.ge.f32.partialorder %v1223_v19, 0.0 }
 0x11b   : > { %v2759_v29 = vpack.c.bf16 %v1662_v24, %v1662_v24  ;;  %v1726_v30 = vsel %vm1470_vm11, %v1202_v9, %v1598_v17  ;;  %v3503_v32 = vpop.f32.mrb[27].mxu1  ;;  %2305 = vst.msk [vmem:[%s3350_s28 + $0x4c] sm:$0xf] %vm2285_vm1, %v2761_v22  ;;  %v1603_v35 = vmul.f32 0.2, %v1223_v19  ;;  %vm1409_vm14 = vcmp.ge.f32.partialorder %v959_v25, 0.0 }
 0x11c   : > { %v2823_v33 = vpack.c.bf16 %v1726_v30, %v1726_v30  ;;  %2369 = vst.msk [vmem:[%s3350_s28 + $0x14c] sm:$0xf] %vm2285_vm1, %v2825_v28  ;;  %v1537_v36 = vmul.f32 0.2, %v959_v25  ;;  %v1215_v37 = vadd.f32 %v3339_v3, %v3451_v48  ;;  %v970_v38 = vadd.f32 %v3456_v52, %v3339_v3 }
 0x11d   : > { %2303 = vst.msk [vmem:[%s3350_s28 + $0x44] sm:$0xf] %vm2285_vm1, %v2759_v29  ;;  %v1667_v39 = vsel %vm1411_vm12, %v967_v18, %v1539_v34  ;;  %v1731_v40 = vsel %vm1475_vm13, %v1223_v19, %v1603_v35  ;;  %v1226_v41 = vadd.f32 %v3458_v53, %v3339_v3  ;;  %v962_v42 = vadd.f32 %v3339_v3, %v3460_v57  ;;  %v3521_v46 = vpop.f32.mrb[28].mxu0 }
 0x11e   : > { %2367 = vst.msk [vmem:[%s3350_s28 + $0x144] sm:$0xf] %vm2285_vm1, %v2823_v33  ;;  %v2764_v43 = vpack.c.bf16 %v1667_v39, %v1667_v39  ;;  %v2828_v44 = vpack.c.bf16 %v1731_v40, %v1731_v40  ;;  %v1665_v45 = vsel %vm1409_vm14, %v959_v25, %v1537_v36  ;;  %vm1473_vm15 = vcmp.ge.f32.partialorder %v1215_v37, 0.0  ;;  %v3523_v47 = vpop.f32.mrb[28].mxu1  ;;  %v3525_v51 = vpop.f32.mrb[29].mxu0 }
 0x11f   : > { %v2762_v48 = vpack.c.bf16 %v1665_v45, %v1665_v45  ;;  %v1601_v49 = vmul.f32 0.2, %v1215_v37  ;;  %vm1412_vm0 = vcmp.ge.f32.partialorder %v970_v38, 0.0  ;;  %v1540_v50 = vmul.f32 0.2, %v970_v38  ;;  %v3537_v59 = vpop.f32.mrb[29].mxu1 }
 0x120   : > { %2308 = vst.msk [vmem:[%s3350_s28 + $0x58] sm:$0xf] %vm2285_vm1, %v2764_v43  ;;  %2372 = vst.msk [vmem:[%s3350_s28 + $0x158] sm:$0xf] %vm2285_vm1, %v2828_v44  ;;  %vm1476_vm2 = vcmp.ge.f32.partialorder %v1226_v41, 0.0  ;;  %vm1410_vm3 = vcmp.ge.f32.partialorder %v962_v42, 0.0  ;;  %v1218_v56 = vadd.f32 %v3339_v3, %v3462_v58  ;;  %v983_v57 = vadd.f32 %v3480_v12, %v3339_v3 }
 0x121   : > { %v1604_v52 = vmul.f32 0.2, %v1226_v41  ;;  %v1538_v53 = vmul.f32 0.2, %v962_v42  ;;  %2306 = vst.msk [vmem:[%s3350_s28 + $0x50] sm:$0xf] %vm2285_vm1, %v2762_v48  ;;  %v1729_v54 = vsel %vm1473_vm15, %v1215_v37, %v1601_v49  ;;  %v1668_v55 = vsel %vm1412_vm0, %v970_v38, %v1540_v50 }
 0x122   : > { %v3539_v60 = vpop.f32.mrb[30].mxu0  ;;  %v2826_v61 = vpack.c.bf16 %v1729_v54, %v1729_v54  ;;  %v2765_v62 = vpack.c.bf16 %v1668_v55, %v1668_v55  ;;  %v3541_v1 = vpop.f32.mrb[30].mxu1  ;;  %vm1474_vm4 = vcmp.ge.f32.partialorder %v1218_v56, 0.0  ;;  %v1602_v5 = vmul.f32 0.2, %v1218_v56 }
 0x123   : > { %v1732_v63 = vsel %vm1476_vm2, %v1226_v41, %v1604_v52  ;;  %v1666_v0 = vsel %vm1410_vm3, %v962_v42, %v1538_v53  ;;  %v3543_v2 = vpop.f32.mrb[31].mxu0  ;;  %v3545_v6 = vpop.f32.mrb[31].mxu1  ;;  %vm1415_vm5 = vcmp.ge.f32.partialorder %v983_v57, 0.0  ;;  %v1543_v7 = vmul.f32 0.2, %v983_v57 }
 0x124   : > { %v2829_v4 = vpack.c.bf16 %v1732_v63, %v1732_v63  ;;  %v2763_v58 = vpack.c.bf16 %v1666_v0, %v1666_v0  ;;  %2370 = vst.msk [vmem:[%s3350_s28 + $0x150] sm:$0xf] %vm2285_vm1, %v2826_v61  ;;  %2309 = vst.msk [vmem:[%s3350_s28 + $0x5c] sm:$0xf] %vm2285_vm1, %v2765_v62  ;;  %v1239_v8 = vadd.f32 %v3482_v13, %v3339_v3 }
 0x125   : > { %v975_v9 = vadd.f32 %v3339_v3, %v3490_v20  ;;  %v1730_v10 = vsel %vm1474_vm4, %v1218_v56, %v1602_v5  ;;  %v1231_v11 = vadd.f32 %v3339_v3, %v3492_v21  ;;  %v986_v12 = vadd.f32 %v3496_v26, %v3339_v3  ;;  %v3565_v17 = vpop.f32.mrb[32].mxu0 }
 0x126   : > { %2373 = vst.msk [vmem:[%s3350_s28 + $0x15c] sm:$0xf] %vm2285_vm1, %v2829_v4  ;;  %2307 = vst.msk [vmem:[%s3350_s28 + $0x54] sm:$0xf] %vm2285_vm1, %v2763_v58  ;;  %v1242_v14 = vadd.f32 %v3498_v27, %v3339_v3  ;;  %v2827_v15 = vpack.c.bf16 %v1730_v10, %v1730_v10  ;;  %v1671_v13 = vsel %vm1415_vm5, %v983_v57, %v1543_v7  ;;  %vm1479_vm6 = vcmp.ge.f32.partialorder %v1239_v8, 0.0  ;;  %v3567_v18 = vpop.f32.mrb[32].mxu1 }
 0x127   : > { %v1607_v16 = vmul.f32 0.2, %v1239_v8  ;;  %v2768_v19 = vpack.c.bf16 %v1671_v13, %v1671_v13  ;;  %vm1413_vm7 = vcmp.ge.f32.partialorder %v975_v9, 0.0  ;;  %v1541_v20 = vmul.f32 0.2, %v975_v9  ;;  %v3569_v21 = vpop.f32.mrb[33].mxu0 }
 0x128   : > { %vm1477_vm8 = vcmp.ge.f32.partialorder %v1231_v11, 0.0  ;;  %v3571_v22 = vpop.f32.mrb[33].mxu1  ;;  %2371 = vst.msk [vmem:[%s3350_s28 + $0x154] sm:$0xf] %vm2285_vm1, %v2827_v15  ;;  %v1605_v24 = vmul.f32 0.2, %v1231_v11  ;;  %v978_v37 = vadd.f32 %v3339_v3, %v3501_v31  ;;  %v1234_v42 = vadd.f32 %v3339_v3, %v3503_v32 }
 0x129   : > { %v1735_v23 = vsel %vm1479_vm6, %v1239_v8, %v1607_v16  ;;  %vm1416_vm9 = vcmp.ge.f32.partialorder %v986_v12, 0.0  ;;  %v1544_v25 = vmul.f32 0.2, %v986_v12  ;;  %v3575_v26 = vpop.f32.mrb[34].mxu0  ;;  %2312 = vst.msk [vmem:[%s3350_s28 + $0x68] sm:$0xf] %vm2285_vm1, %v2768_v19  ;;  %v1669_v28 = vsel %vm1413_vm7, %v975_v9, %v1541_v20 }
 0x12a   : > { %v2832_v27 = vpack.c.bf16 %v1735_v23, %v1735_v23  ;;  %vm1480_vm10 = vcmp.ge.f32.partialorder %v1242_v14, 0.0  ;;  %v1608_v29 = vmul.f32 0.2, %v1242_v14  ;;  %v3579_v30 = vpop.f32.mrb[34].mxu1  ;;  %v3581_v33 = vpop.f32.mrb[35].mxu0  ;;  %v2766_v34 = vpack.c.bf16 %v1669_v28, %v1669_v28 }
 0x12b   : > { %v1733_v35 = vsel %vm1477_vm8, %v1231_v11, %v1605_v24  ;;  %v1672_v36 = vsel %vm1416_vm9, %v986_v12, %v1544_v25  ;;  %v3586_v38 = vpop.f32.mrb[35].mxu1  ;;  %vm1414_vm11 = vcmp.ge.f32.partialorder %v978_v37, 0.0  ;;  %v1542_v44 = vmul.f32 0.2, %v978_v37 }
 0x12c   : > { %2376 = vst.msk [vmem:[%s3350_s28 + $0x168] sm:$0xf] %vm2285_vm1, %v2832_v27  ;;  %v2830_v39 = vpack.c.bf16 %v1733_v35, %v1733_v35  ;;  %v2769_v40 = vpack.c.bf16 %v1672_v36, %v1672_v36  ;;  %v1736_v41 = vsel %vm1480_vm10, %v1242_v14, %v1608_v29  ;;  %2310 = vst.msk [vmem:[%s3350_s28 + $0x60] sm:$0xf] %vm2285_vm1, %v2766_v34  ;;  %vm1478_vm12 = vcmp.ge.f32.partialorder %v1234_v42, 0.0 }
 0x12d   : > { %v2833_v43 = vpack.c.bf16 %v1736_v41, %v1736_v41  ;;  %v999_v45 = vadd.f32 %v3521_v46, %v3339_v3  ;;  %v1606_v31 = vmul.f32 0.2, %v1234_v42  ;;  %v1255_v48 = vadd.f32 %v3523_v47, %v3339_v3  ;;  %v3608_v52 = vpop.f32.mrb[36].mxu0 }
 0x12e   : > { %2374 = vst.msk [vmem:[%s3350_s28 + $0x160] sm:$0xf] %vm2285_vm1, %v2830_v39  ;;  %2313 = vst.msk [vmem:[%s3350_s28 + $0x6c] sm:$0xf] %vm2285_vm1, %v2769_v40  ;;  %v991_v32 = vadd.f32 %v3339_v3, %v3525_v51  ;;  %v1670_v49 = vsel %vm1414_vm11, %v978_v37, %v1542_v44  ;;  %v1247_v46 = vadd.f32 %v3339_v3, %v3537_v59  ;;  %v3610_v53 = vpop.f32.mrb[36].mxu1  ;;  %v3612_v56 = vpop.f32.mrb[37].mxu0 }
 0x12f   : > { %2377 = vst.msk [vmem:[%s3350_s28 + $0x16c] sm:$0xf] %vm2285_vm1, %v2833_v43  ;;  %vm1419_vm13 = vcmp.ge.f32.partialorder %v999_v45, 0.0  ;;  %v1547_v50 = vmul.f32 0.2, %v999_v45  ;;  %v2767_v54 = vpack.c.bf16 %v1670_v49, %v1670_v49  ;;  %v1734_v55 = vsel %vm1478_vm12, %v1234_v42, %v1606_v31  ;;  %v3614_v51 = vpop.f32.mrb[37].mxu1 }
 0x130   : > { %vm1483_vm14 = vcmp.ge.f32.partialorder %v1255_v48, 0.0  ;;  %v1611_v47 = vmul.f32 0.2, %v1255_v48  ;;  %v2831_v57 = vpack.c.bf16 %v1734_v55, %v1734_v55  ;;  %vm1417_vm15 = vcmp.ge.f32.partialorder %v991_v32, 0.0  ;;  %v3616_v63 = vpop.f32.mrb[38].mxu0  ;;  %v3618_v59 = vpop.f32.mrb[38].mxu1 }
 0x131   : > { %v1675_v61 = vsel %vm1419_vm13, %v999_v45, %v1547_v50  ;;  %v1545_v62 = vmul.f32 0.2, %v991_v32  ;;  %2311 = vst.msk [vmem:[%s3350_s28 + $0x64] sm:$0xf] %vm2285_vm1, %v2767_v54  ;;  %vm1481_vm0 = vcmp.ge.f32.partialorder %v1247_v46, 0.0  ;;  %v3622_v5 = vpop.f32.mrb[39].mxu0  ;;  %v1002_v10 = vadd.f32 %v3539_v60, %v3339_v3 }
 0x132   : > { %v2772_v0 = vpack.c.bf16 %v1675_v61, %v1675_v61  ;;  %v1739_v4 = vsel %vm1483_vm14, %v1255_v48, %v1611_v47  ;;  %v1609_v58 = vmul.f32 0.2, %v1247_v46  ;;  %v3624_v7 = vpop.f32.mrb[39].mxu1  ;;  %2375 = vst.msk [vmem:[%s3350_s28 + $0x164] sm:$0xf] %vm2285_vm1, %v2831_v57  ;;  %v1258_v11 = vadd.f32 %v3541_v1, %v3339_v3 }
 0x133   : > { %v2836_v8 = vpack.c.bf16 %v1739_v4, %v1739_v4  ;;  %v1673_v9 = vsel %vm1417_vm15, %v991_v32, %v1545_v62  ;;  %v994_v15 = vadd.f32 %v3339_v3, %v3543_v2  ;;  %v1250_v13 = vadd.f32 %v3339_v3, %v3545_v6 }
 0x134   : > { %2316 = vst.msk [vmem:[%s3350_s28 + $0x78] sm:$0xf] %vm2285_vm1, %v2772_v0  ;;  %v2770_v12 = vpack.c.bf16 %v1673_v9, %v1673_v9  ;;  %v1737_v14 = vsel %vm1481_vm0, %v1247_v46, %v1609_v58  ;;  %vm1420_vm2 = vcmp.ge.f32.partialorder %v1002_v10, 0.0  ;;  %v1548_v19 = vmul.f32 0.2, %v1002_v10 }
 0x135   : > { %2380 = vst.msk [vmem:[%s3350_s28 + $0x178] sm:$0xf] %vm2285_vm1, %v2836_v8  ;;  %v2834_v16 = vpack.c.bf16 %v1737_v14, %v1737_v14  ;;  %vm1484_vm3 = vcmp.ge.f32.partialorder %v1258_v11, 0.0  ;;  %v1612_v60 = vmul.f32 0.2, %v1258_v11  ;;  %vm1418_vm4 = vcmp.ge.f32.partialorder %v994_v15, 0.0 }
 0x136   : > { %2314 = vst.msk [vmem:[%s3350_s28 + $0x70] sm:$0xf] %vm2285_vm1, %v2770_v12  ;;  %v1546_v1 = vmul.f32 0.2, %v994_v15  ;;  %vm1482_vm5 = vcmp.ge.f32.partialorder %v1250_v13, 0.0  ;;  %v1676_v20 = vsel %vm1420_vm2, %v1002_v10, %v1548_v19  ;;  %v1015_v2 = vadd.f32 %v3565_v17, %v3339_v3  ;;  %v3648_v24 = vpop.f32.mrb[40].mxu0 }
 0x137   : > { %2378 = vst.msk [vmem:[%s3350_s28 + $0x170] sm:$0xf] %vm2285_vm1, %v2834_v16  ;;  %v1610_v23 = vmul.f32 0.2, %v1250_v13  ;;  %v1271_v6 = vadd.f32 %v3567_v18, %v3339_v3  ;;  %v3650_v25 = vpop.f32.mrb[40].mxu1  ;;  %v2773_v27 = vpack.c.bf16 %v1676_v20, %v1676_v20  ;;  %v1740_v28 = vsel %vm1484_vm3, %v1258_v11, %v1612_v60  ;;  %v3654_v35 = vpop.f32.mrb[41].mxu0 }
 0x138   : > { %v1674_v29 = vsel %vm1418_vm4, %v994_v15, %v1546_v1  ;;  %v1007_v34 = vadd.f32 %v3339_v3, %v3569_v21  ;;  %v3656_v36 = vpop.f32.mrb[41].mxu1  ;;  %v2837_v17 = vpack.c.bf16 %v1740_v28, %v1740_v28  ;;  %vm1423_vm6 = vcmp.ge.f32.partialorder %v1015_v2, 0.0  ;;  %v3659_v39 = vpop.f32.mrb[42].mxu0  ;;  %v3713_v60 = vld [vmem:[%s4017_s2] ss:$0 sm:$0xff] }
 0x139   : > { %v2771_v37 = vpack.c.bf16 %v1674_v29, %v1674_v29  ;;  %v1738_v18 = vsel %vm1482_vm5, %v1250_v13, %v1610_v23  ;;  %v3661_v40 = vpop.f32.mrb[42].mxu1  ;;  %2317 = vst.msk [vmem:[%s3350_s28 + $0x7c] sm:$0xf] %vm2285_vm1, %v2773_v27  ;;  %v1551_v42 = vmul.f32 0.2, %v1015_v2  ;;  %vm1487_vm7 = vcmp.ge.f32.partialorder %v1271_v6, 0.0 }
 0x13a   : > { %v2835_v41 = vpack.c.bf16 %v1738_v18, %v1738_v18  ;;  %v1615_v21 = vmul.f32 0.2, %v1271_v6  ;;  %v3665_v43 = vpop.f32.mrb[43].mxu0  ;;  %2381 = vst.msk [vmem:[%s3350_s28 + $0x17c] sm:$0xf] %vm2285_vm1, %v2837_v17  ;;  %vm1421_vm8 = vcmp.ge.f32.partialorder %v1007_v34, 0.0  ;;  %v1263_v45 = vadd.f32 %v3339_v3, %v3571_v22 }
 0x13b   : > { %2315 = vst.msk [vmem:[%s3350_s28 + $0x74] sm:$0xf] %vm2285_vm1, %v2771_v37  ;;  %v1549_v44 = vmul.f32 0.2, %v1007_v34  ;;  %v1018_v31 = vadd.f32 %v3575_v26, %v3339_v3  ;;  %v3675_v48 = vpop.f32.mrb[43].mxu1  ;;  %v1679_v32 = vsel %vm1423_vm6, %v1015_v2, %v1551_v42  ;;  %v1274_v50 = vadd.f32 %v3579_v30, %v3339_v3 }
 0x13c   : > { %2379 = vst.msk [vmem:[%s3350_s28 + $0x174] sm:$0xf] %vm2285_vm1, %v2835_v41  ;;  %v1743_v49 = vsel %vm1487_vm7, %v1271_v6, %v1615_v21  ;;  %v1010_v46 = vadd.f32 %v3339_v3, %v3581_v33  ;;  %v2776_v22 = vpack.c.bf16 %v1679_v32, %v1679_v32  ;;  %vm1485_vm9 = vcmp.ge.f32.partialorder %v1263_v45, 0.0 }
 0x13d   : > { %v2840_v54 = vpack.c.bf16 %v1743_v49, %v1743_v49  ;;  %v1677_v55 = vsel %vm1421_vm8, %v1007_v34, %v1549_v44  ;;  %v1613_v47 = vmul.f32 0.2, %v1263_v45  ;;  %vm1424_vm10 = vcmp.ge.f32.partialorder %v1018_v31, 0.0  ;;  %v3694_v58 = vpop.f32.mrb[44].mxu0 }
 0x13e   : > { %v2774_v26 = vpack.c.bf16 %v1677_v55, %v1677_v55  ;;  %v1552_v57 = vmul.f32 0.2, %v1018_v31  ;;  %2320 = vst.msk [vmem:[%s3350_s28 + $0x88] sm:$0xf] %vm2285_vm1, %v2776_v22  ;;  %vm1488_vm11 = vcmp.ge.f32.partialorder %v1274_v50, 0.0  ;;  %vm1422_vm12 = vcmp.ge.f32.partialorder %v1010_v46, 0.0 }
 0x13f   : > { %2384 = vst.msk [vmem:[%s3350_s28 + $0x188] sm:$0xf] %vm2285_vm1, %v2840_v54  ;;  %v1616_v61 = vmul.f32 0.2, %v1274_v50  ;;  %v1550_v30 = vmul.f32 0.2, %v1010_v46  ;;  %v1741_v62 = vsel %vm1485_vm9, %v1263_v45, %v1613_v47  ;;  %v1266_v0 = vadd.f32 %v3339_v3, %v3586_v38 }
 0x140   : > { %2318 = vst.msk [vmem:[%s3350_s28 + $0x80] sm:$0xf] %vm2285_vm1, %v2774_v26  ;;  %v1680_v33 = vsel %vm1424_vm10, %v1018_v31, %v1552_v57  ;;  %v1031_v4 = vadd.f32 %v3608_v52, %v3339_v3  ;;  %v3696_v8 = vpop.f32.mrb[44].mxu1  ;;  %v2838_v9 = vpack.c.bf16 %v1741_v62, %v1741_v62  ;;  %v3698_v14 = vpop.f32.mrb[45].mxu0  ;;  %v1287_v1 = vadd.f32 %v3713_v60, %v3610_v53 }
 0x141   : > { %v2777_v10 = vpack.c.bf16 %v1680_v33, %v1680_v33  ;;  %v1744_v11 = vsel %vm1488_vm11, %v1274_v50, %v1616_v61  ;;  %v1678_v12 = vsel %vm1422_vm12, %v1010_v46, %v1550_v30  ;;  %v3700_v15 = vpop.f32.mrb[45].mxu1  ;;  %vm1486_vm13 = vcmp.ge.f32.partialorder %v1266_v0, 0.0  ;;  %v3702_v3 = vpop.f32.mrb[46].mxu0 }
 0x142   : > { %v2841_v13 = vpack.c.bf16 %v1744_v11, %v1744_v11  ;;  %v2775_v38 = vpack.c.bf16 %v1678_v12, %v1678_v12  ;;  %v1614_v16 = vmul.f32 0.2, %v1266_v0  ;;  %v3704_v52 = vpop.f32.mrb[46].mxu1  ;;  %2382 = vst.msk [vmem:[%s3350_s28 + $0x180] sm:$0xf] %vm2285_vm1, %v2838_v9  ;;  %vm1427_vm14 = vcmp.ge.f32.partialorder %v1031_v4, 0.0 }
 0x143   : > { %2321 = vst.msk [vmem:[%s3350_s28 + $0x8c] sm:$0xf] %vm2285_vm1, %v2777_v10  ;;  %v1555_v19 = vmul.f32 0.2, %v1031_v4  ;;  %v1023_v20 = vadd.f32 %v3713_v60, %v3612_v56  ;;  %v3719_v23 = vpop.f32.mrb[47].mxu0  ;;  %v3721_v2 = vpop.f32.mrb[47].mxu1  ;;  %v1279_v27 = vadd.f32 %v3713_v60, %v3614_v51  ;;  %v1034_v28 = vadd.f32 %v3713_v60, %v3616_v63 }
 0x144   : > { %2385 = vst.msk [vmem:[%s3350_s28 + $0x18c] sm:$0xf] %vm2285_vm1, %v2841_v13  ;;  %2319 = vst.msk [vmem:[%s3350_s28 + $0x84] sm:$0xf] %vm2285_vm1, %v2775_v38  ;;  %v1742_v6 = vsel %vm1486_vm13, %v1266_v0, %v1614_v16  ;;  %v1290_v53 = vadd.f32 %v3713_v60, %v3618_v59  ;;  %vm1491_vm15 = vcmp.ge.f32.partialorder %v1287_v1, 0.0  ;;  %v1026_v50 = vadd.f32 %v3713_v60, %v3622_v5 }
 0x145   : > { %v2839_v56 = vpack.c.bf16 %v1742_v6, %v1742_v6  ;;  %v1683_v29 = vsel %vm1427_vm14, %v1031_v4, %v1555_v19  ;;  %v1619_v34 = vmul.f32 0.2, %v1287_v1  ;;  %vm1425_vm0 = vcmp.ge.f32.partialorder %v1023_v20, 0.0  ;;  %v3735_v63 = vpop.f32.mrb[48].mxu0 }
 0x146   : > { %v2780_v17 = vpack.c.bf16 %v1683_v29, %v1683_v29  ;;  %v1553_v37 = vmul.f32 0.2, %v1023_v20  ;;  %vm1489_vm2 = vcmp.ge.f32.partialorder %v1279_v27, 0.0  ;;  %v1617_v41 = vmul.f32 0.2, %v1279_v27  ;;  %v3739_v44 = vpop.f32.mrb[48].mxu1 }
 0x147   : > { %2383 = vst.msk [vmem:[%s3350_s28 + $0x184] sm:$0xf] %vm2285_vm1, %v2839_v56  ;;  %v1747_v18 = vsel %vm1491_vm15, %v1287_v1, %v1619_v34  ;;  %vm1428_vm3 = vcmp.ge.f32.partialorder %v1034_v28, 0.0  ;;  %v1556_v51 = vmul.f32 0.2, %v1034_v28  ;;  %vm1492_vm4 = vcmp.ge.f32.partialorder %v1290_v53, 0.0 }
 0x148   : > { %2324 = vst.msk [vmem:[%s3350_s28 + $0x98] sm:$0xf] %vm2285_vm1, %v2780_v17  ;;  %v2844_v59 = vpack.c.bf16 %v1747_v18, %v1747_v18  ;;  %v1681_v42 = vsel %vm1425_vm0, %v1023_v20, %v1553_v37  ;;  %v1620_v21 = vmul.f32 0.2, %v1290_v53  ;;  %v3741_v45 = vpop.f32.mrb[49].mxu0  ;;  %v1745_v32 = vsel %vm1489_vm2, %v1279_v27, %v1617_v41  ;;  %v3745_v46 = vpop.f32.mrb[49].mxu1 }
 0x149   : > { %v2778_v31 = vpack.c.bf16 %v1681_v42, %v1681_v42  ;;  %v1684_v49 = vsel %vm1428_vm3, %v1034_v28, %v1556_v51  ;;  %v3747_v22 = vpop.f32.mrb[50].mxu0  ;;  %v2842_v54 = vpack.c.bf16 %v1745_v32, %v1745_v32  ;;  %v1282_v47 = vadd.f32 %v3713_v60, %v3624_v7  ;;  %v3753_v57 = vpop.f32.mrb[50].mxu1 }
 0x14a   : > { %2388 = vst.msk [vmem:[%s3350_s28 + $0x198] sm:$0xf] %vm2285_vm1, %v2844_v59  ;;  %v2781_v55 = vpack.c.bf16 %v1684_v49, %v1684_v49  ;;  %v1748_v26 = vsel %vm1492_vm4, %v1290_v53, %v1620_v21  ;;  %v3755_v61 = vpop.f32.mrb[51].mxu0  ;;  %vm1426_vm5 = vcmp.ge.f32.partialorder %v1026_v50, 0.0  ;;  %v1554_v30 = vmul.f32 0.2, %v1026_v50 }
 0x14b   : > { %2322 = vst.msk [vmem:[%s3350_s28 + $0x90] sm:$0xf] %vm2285_vm1, %v2778_v31  ;;  %v2845_v5 = vpack.c.bf16 %v1748_v26, %v1748_v26  ;;  %v1047_v62 = vadd.f32 %v3713_v60, %v3648_v24  ;;  %v3761_v33 = vpop.f32.mrb[51].mxu1  ;;  %2386 = vst.msk [vmem:[%s3350_s28 + $0x190] sm:$0xf] %vm2285_vm1, %v2842_v54  ;;  %vm1490_vm6 = vcmp.ge.f32.partialorder %v1282_v47, 0.0  ;;  %v1303_v0 = vadd.f32 %v3713_v60, %v3650_v25 }
 0x14c   : > { %2325 = vst.msk [vmem:[%s3350_s28 + $0x9c] sm:$0xf] %vm2285_vm1, %v2781_v55  ;;  %v1618_v7 = vmul.f32 0.2, %v1282_v47  ;;  %v1039_v4 = vadd.f32 %v3713_v60, %v3654_v35  ;;  %v1682_v9 = vsel %vm1426_vm5, %v1026_v50, %v1554_v30  ;;  %v1295_v10 = vadd.f32 %v3713_v60, %v3656_v36 }
 0x14d   : > { %2389 = vst.msk [vmem:[%s3350_s28 + $0x19c] sm:$0xf] %vm2285_vm1, %v2845_v5  ;;  %vm1431_vm7 = vcmp.ge.f32.partialorder %v1047_v62, 0.0  ;;  %v1559_v24 = vmul.f32 0.2, %v1047_v62  ;;  %v2779_v11 = vpack.c.bf16 %v1682_v9, %v1682_v9  ;;  %vm1495_vm8 = vcmp.ge.f32.partialorder %v1303_v0, 0.0 }
 0x14e   : > { %v1746_v12 = vsel %vm1490_vm6, %v1282_v47, %v1618_v7  ;;  %v1623_v13 = vmul.f32 0.2, %v1303_v0  ;;  %vm1429_vm9 = vcmp.ge.f32.partialorder %v1039_v4, 0.0  ;;  %v1557_v25 = vmul.f32 0.2, %v1039_v4  ;;  %v3775_v19 = vpop.f32.mrb[52].mxu0 }
 0x14f   : > { %v2843_v38 = vpack.c.bf16 %v1746_v12, %v1746_v12  ;;  %v1687_v16 = vsel %vm1431_vm7, %v1047_v62, %v1559_v24  ;;  %v3777_v35 = vpop.f32.mrb[52].mxu1  ;;  %2323 = vst.msk [vmem:[%s3350_s28 + $0x94] sm:$0xf] %vm2285_vm1, %v2779_v11  ;;  %vm1493_vm10 = vcmp.ge.f32.partialorder %v1295_v10, 0.0  ;;  %v1621_v36 = vmul.f32 0.2, %v1295_v10 }
 0x150   : > { %v2784_v1 = vpack.c.bf16 %v1687_v16, %v1687_v16  ;;  %v1751_v20 = vsel %vm1495_vm8, %v1303_v0, %v1623_v13  ;;  %v3781_v6 = vpop.f32.mrb[53].mxu0  ;;  %v3783_v27 = vpop.f32.mrb[53].mxu1  ;;  %v1685_v53 = vsel %vm1429_vm9, %v1039_v4, %v1557_v25  ;;  %v1050_v56 = vadd.f32 %v3713_v60, %v3659_v39 }
 0x151   : > { %2387 = vst.msk [vmem:[%s3350_s28 + $0x194] sm:$0xf] %vm2285_vm1, %v2843_v38  ;;  %v2848_v28 = vpack.c.bf16 %v1751_v20, %v1751_v20  ;;  %v1306_v29 = vadd.f32 %v3713_v60, %v3661_v40  ;;  %v3791_v34 = vpop.f32.mrb[54].mxu0  ;;  %v3793_v17 = vpop.f32.mrb[54].mxu1  ;;  %v2782_v37 = vpack.c.bf16 %v1685_v53, %v1685_v53  ;;  %v1749_v18 = vsel %vm1493_vm10, %v1295_v10, %v1621_v36 }
 0x152   : > { %2328 = vst.msk [vmem:[%s3350_s28 + $0xa8] sm:$0xf] %vm2285_vm1, %v2784_v1  ;;  %v1042_v41 = vadd.f32 %v3713_v60, %v3665_v43  ;;  %v1298_v51 = vadd.f32 %v3713_v60, %v3675_v48  ;;  %v3801_v39 = vpop.f32.mrb[55].mxu0  ;;  %v3803_v59 = vpop.f32.mrb[55].mxu1  ;;  %v2846_v40 = vpack.c.bf16 %v1749_v18, %v1749_v18  ;;  %vm1432_vm11 = vcmp.ge.f32.partialorder %v1050_v56, 0.0 }
 0x153   : > { %2392 = vst.msk [vmem:[%s3350_s28 + $0x1a8] sm:$0xf] %vm2285_vm1, %v2848_v28  ;;  %v1560_v42 = vmul.f32 0.2, %v1050_v56  ;;  %vm1496_vm12 = vcmp.ge.f32.partialorder %v1306_v29, 0.0  ;;  %v1063_v32 = vadd.f32 %v3713_v60, %v3694_v58  ;;  %v1319_v49 = vadd.f32 %v3713_v60, %v3696_v8 }
 0x154   : > { %2326 = vst.msk [vmem:[%s3350_s28 + $0xa0] sm:$0xf] %vm2285_vm1, %v2782_v37  ;;  %v1624_v21 = vmul.f32 0.2, %v1306_v29  ;;  %vm1430_vm13 = vcmp.ge.f32.partialorder %v1042_v41, 0.0  ;;  %vm1494_vm14 = vcmp.ge.f32.partialorder %v1298_v51, 0.0  ;;  %v1055_v26 = vadd.f32 %v3713_v60, %v3698_v14 }
 0x155   : > { %v1558_v31 = vmul.f32 0.2, %v1042_v41  ;;  %2390 = vst.msk [vmem:[%s3350_s28 + $0x1a0] sm:$0xf] %vm2285_vm1, %v2846_v40  ;;  %v1688_v43 = vsel %vm1432_vm11, %v1050_v56, %v1560_v42  ;;  %v1622_v48 = vmul.f32 0.2, %v1298_v51  ;;  %v1311_v9 = vadd.f32 %v3713_v60, %v3700_v15 }
 0x156   : > { %v2785_v50 = vpack.c.bf16 %v1688_v43, %v1688_v43  ;;  %v1752_v54 = vsel %vm1496_vm12, %v1306_v29, %v1624_v21  ;;  %vm1435_vm15 = vcmp.ge.f32.partialorder %v1063_v32, 0.0  ;;  %v3817_v62 = vpop.f32.mrb[56].mxu0  ;;  %v3819_v7 = vpop.f32.mrb[56].mxu1  ;;  %v1563_v8 = vmul.f32 0.2, %v1063_v32 }
 0x157   : > { %v1686_v55 = vsel %vm1430_vm13, %v1042_v41, %v1558_v31  ;;  %v2849_v47 = vpack.c.bf16 %v1752_v54, %v1752_v54  ;;  %v1750_v30 = vsel %vm1494_vm14, %v1298_v51, %v1622_v48  ;;  %vm1499_vm0 = vcmp.ge.f32.partialorder %v1319_v49, 0.0  ;;  %v3823_v4 = vpop.f32.mrb[57].mxu0  ;;  %v3833_v10 = vpop.f32.mrb[57].mxu1 }
 0x158   : > { %v2783_v5 = vpack.c.bf16 %v1686_v55, %v1686_v55  ;;  %2329 = vst.msk [vmem:[%s3350_s28 + $0xac] sm:$0xf] %vm2285_vm1, %v2785_v50  ;;  %v2847_v58 = vpack.c.bf16 %v1750_v30, %v1750_v30  ;;  %v1627_v0 = vmul.f32 0.2, %v1319_v49  ;;  %vm1433_vm2 = vcmp.ge.f32.partialorder %v1055_v26, 0.0  ;;  %v3835_v11 = vpop.f32.mrb[58].mxu0 }
 0x159   : > { %2393 = vst.msk [vmem:[%s3350_s28 + $0x1ac] sm:$0xf] %vm2285_vm1, %v2849_v47  ;;  %v1561_v14 = vmul.f32 0.2, %v1055_v26  ;;  %v1066_v24 = vadd.f32 %v3713_v60, %v3702_v3  ;;  %v1691_v12 = vsel %vm1435_vm15, %v1063_v32, %v1563_v8  ;;  %v1322_v38 = vadd.f32 %v3713_v60, %v3704_v52  ;;  %v3844_v16 = vpop.f32.mrb[58].mxu1  ;;  %v3846_v3 = vpop.f32.mrb[59].mxu0 }
 0x15a   : > { %2327 = vst.msk [vmem:[%s3350_s28 + $0xa4] sm:$0xf] %vm2285_vm1, %v2783_v5  ;;  %2391 = vst.msk [vmem:[%s3350_s28 + $0x1a4] sm:$0xf] %vm2285_vm1, %v2847_v58  ;;  %v1755_v13 = vsel %vm1499_vm0, %v1319_v49, %v1627_v0  ;;  %v1058_v15 = vadd.f32 %v3713_v60, %v3719_v23  ;;  %v2788_v25 = vpack.c.bf16 %v1691_v12, %v1691_v12  ;;  %vm1497_vm3 = vcmp.ge.f32.partialorder %v1311_v9, 0.0  ;;  %v3848_v36 = vpop.f32.mrb[59].mxu1 }
 0x15b   : > { %v2852_v1 = vpack.c.bf16 %v1755_v13, %v1755_v13  ;;  %v1689_v20 = vsel %vm1433_vm2, %v1055_v26, %v1561_v14  ;;  %v1625_v53 = vmul.f32 0.2, %v1311_v9  ;;  %vm1436_vm4 = vcmp.ge.f32.partialorder %v1066_v24, 0.0 }
 0x15c   : > { %v2786_v28 = vpack.c.bf16 %v1689_v20, %v1689_v20  ;;  %v1564_v56 = vmul.f32 0.2, %v1066_v24  ;;  %2332 = vst.msk [vmem:[%s3350_s28 + $0xb8] sm:$0xf] %vm2285_vm1, %v2788_v25  ;;  %vm1500_vm5 = vcmp.ge.f32.partialorder %v1322_v38, 0.0  ;;  %vm1434_vm6 = vcmp.ge.f32.partialorder %v1058_v15, 0.0 }
 0x15d   : > { %2396 = vst.msk [vmem:[%s3350_s28 + $0x1b8] sm:$0xf] %vm2285_vm1, %v2852_v1  ;;  %v1628_v52 = vmul.f32 0.2, %v1322_v38  ;;  %v1562_v23 = vmul.f32 0.2, %v1058_v15  ;;  %v1753_v29 = vsel %vm1497_vm3, %v1311_v9, %v1625_v53  ;;  %v1314_v18 = vadd.f32 %v3713_v60, %v3721_v2 }
 0x15e   : > { %2330 = vst.msk [vmem:[%s3350_s28 + $0xb0] sm:$0xf] %vm2285_vm1, %v2786_v28  ;;  %v1692_v37 = vsel %vm1436_vm4, %v1066_v24, %v1564_v56  ;;  %v1079_v41 = vadd.f32 %v3713_v60, %v3735_v63  ;;  %v2850_v51 = vpack.c.bf16 %v1753_v29, %v1753_v29  ;;  %v3860_v31 = vpop.f32.mrb[60].mxu0  ;;  %v3862_v43 = vpop.f32.mrb[60].mxu1  ;;  %v1335_v54 = vadd.f32 %v3713_v60, %v3739_v44 }
 0x15f   : > { %v2789_v40 = vpack.c.bf16 %v1692_v37, %v1692_v37  ;;  %v1756_v42 = vsel %vm1500_vm5, %v1322_v38, %v1628_v52  ;;  %v1690_v21 = vsel %vm1434_vm6, %v1058_v15, %v1562_v23  ;;  %vm1498_vm7 = vcmp.ge.f32.partialorder %v1314_v18, 0.0  ;;  %v3864_v50 = vpop.f32.mrb[61].mxu0  ;;  %v3866_v2 = vpop.f32.mrb[61].mxu1 }
 0x160   : > { %v2853_v48 = vpack.c.bf16 %v1756_v42, %v1756_v42  ;;  %v2787_v32 = vpack.c.bf16 %v1690_v21, %v1690_v21  ;;  %v1626_v49 = vmul.f32 0.2, %v1314_v18  ;;  %2394 = vst.msk [vmem:[%s3350_s28 + $0x1b0] sm:$0xf] %vm2285_vm1, %v2850_v51  ;;  %vm1439_vm8 = vcmp.ge.f32.partialorder %v1079_v41, 0.0  ;;  %v3876_v26 = vpop.f32.mrb[62].mxu0 }
 0x161   : > { %2333 = vst.msk [vmem:[%s3350_s28 + $0xbc] sm:$0xf] %vm2285_vm1, %v2789_v40  ;;  %v1567_v63 = vmul.f32 0.2, %v1079_v41  ;;  %v1071_v55 = vadd.f32 %v3713_v60, %v3741_v45  ;;  %v3878_v47 = vpop.f32.mrb[62].mxu1  ;;  %v1327_v30 = vadd.f32 %v3713_v60, %v3745_v46  ;;  %v1082_v58 = vadd.f32 %v3713_v60, %v3747_v22  ;;  %v3890_v45 = vpop.f32.mrb[63].mxu0 }
 0x162   : > { %2397 = vst.msk [vmem:[%s3350_s28 + $0x1bc] sm:$0xf] %vm2285_vm1, %v2853_v48  ;;  %2331 = vst.msk [vmem:[%s3350_s28 + $0xb4] sm:$0xf] %vm2285_vm1, %v2787_v32  ;;  %v1754_v5 = vsel %vm1498_vm7, %v1314_v18, %v1626_v49  ;;  %v1338_v44 = vadd.f32 %v3713_v60, %v3753_v57  ;;  %v3892_v8 = vpop.f32.mrb[63].mxu1  ;;  %vm1503_vm9 = vcmp.ge.f32.partialorder %v1335_v54, 0.0  ;;  %v1074_v28 = vadd.f32 %v3713_v60, %v3755_v61 }
 0x163   : > { %v2851_v0 = vpack.c.bf16 %v1754_v5, %v1754_v5  ;;  %v1695_v14 = vsel %vm1439_vm8, %v1079_v41, %v1567_v63  ;;  %v1631_v9 = vmul.f32 0.2, %v1335_v54  ;;  %vm1437_vm10 = vcmp.ge.f32.partialorder %v1071_v55, 0.0 }
 0x164   : > { %v2792_v24 = vpack.c.bf16 %v1695_v14, %v1695_v14  ;;  %v1565_v12 = vmul.f32 0.2, %v1071_v55  ;;  %vm1501_vm11 = vcmp.ge.f32.partialorder %v1327_v30, 0.0  ;;  %v1629_v22 = vmul.f32 0.2, %v1327_v30 }
 0x165   : > { %2395 = vst.msk [vmem:[%s3350_s28 + $0x1b4] sm:$0xf] %vm2285_vm1, %v2851_v0  ;;  %v1759_v46 = vsel %vm1503_vm9, %v1335_v54, %v1631_v9  ;;  %vm1440_vm12 = vcmp.ge.f32.partialorder %v1082_v58, 0.0  ;;  %v1568_v57 = vmul.f32 0.2, %v1082_v58  ;;  %vm1504_vm13 = vcmp.ge.f32.partialorder %v1338_v44, 0.0 }
 0x166   : > { %2336 = vst.msk [vmem:[%s3350_s28 + $0xc8] sm:$0xf] %vm2285_vm1, %v2792_v24  ;;  %v2856_v13 = vpack.c.bf16 %v1759_v46, %v1759_v46  ;;  %v1693_v38 = vsel %vm1437_vm10, %v1071_v55, %v1565_v12  ;;  %v1632_v15 = vmul.f32 0.2, %v1338_v44  ;;  %v1757_v1 = vsel %vm1501_vm11, %v1327_v30, %v1629_v22 }
 0x167   : > { %v2790_v25 = vpack.c.bf16 %v1693_v38, %v1693_v38  ;;  %v1696_v20 = vsel %vm1440_vm12, %v1082_v58, %v1568_v57  ;;  %v2854_v53 = vpack.c.bf16 %v1757_v1, %v1757_v1  ;;  %v1330_v23 = vadd.f32 %v3713_v60, %v3761_v33 }
 0x168   : > { %2400 = vst.msk [vmem:[%s3350_s28 + $0x1c8] sm:$0xf] %vm2285_vm1, %v2856_v13  ;;  %v2793_v56 = vpack.c.bf16 %v1696_v20, %v1696_v20  ;;  %v1760_v52 = vsel %vm1504_vm13, %v1338_v44, %v1632_v15  ;;  %vm1438_vm14 = vcmp.ge.f32.partialorder %v1074_v28, 0.0  ;;  %v1566_v37 = vmul.f32 0.2, %v1074_v28 }
 0x169   : > { %2334 = vst.msk [vmem:[%s3350_s28 + $0xc0] sm:$0xf] %vm2285_vm1, %v2790_v25  ;;  %v2857_v29 = vpack.c.bf16 %v1760_v52, %v1760_v52  ;;  %v1095_v18 = vadd.f32 %v3713_v60, %v3775_v19  ;;  %2398 = vst.msk [vmem:[%s3350_s28 + $0x1c0] sm:$0xf] %vm2285_vm1, %v2854_v53  ;;  %vm1502_vm15 = vcmp.ge.f32.partialorder %v1330_v23, 0.0  ;;  %v1351_v41 = vadd.f32 %v3713_v60, %v3777_v35 }
 0x16a   : > { %2337 = vst.msk [vmem:[%s3350_s28 + $0xcc] sm:$0xf] %vm2285_vm1, %v2793_v56  ;;  %v1630_v61 = vmul.f32 0.2, %v1330_v23  ;;  %v1087_v33 = vadd.f32 %v3713_v60, %v3781_v6  ;;  %v1694_v51 = vsel %vm1438_vm14, %v1074_v28, %v1566_v37  ;;  %v1343_v19 = vadd.f32 %v3713_v60, %v3783_v27 }
 0x16b   : > { %2401 = vst.msk [vmem:[%s3350_s28 + $0x1cc] sm:$0xf] %vm2285_vm1, %v2857_v29  ;;  %vm1443_vm0 = vcmp.ge.f32.partialorder %v1095_v18, 0.0  ;;  %v1571_v40 = vmul.f32 0.2, %v1095_v18  ;;  %v2791_v42 = vpack.c.bf16 %v1694_v51, %v1694_v51  ;;  %vm1507_vm2 = vcmp.ge.f32.partialorder %v1351_v41, 0.0 }
 0x16c   : > { %v1758_v21 = vsel %vm1502_vm15, %v1330_v23, %v1630_v61  ;;  %v1635_v48 = vmul.f32 0.2, %v1351_v41  ;;  %vm1441_vm3 = vcmp.ge.f32.partialorder %v1087_v33, 0.0  ;;  %v1569_v35 = vmul.f32 0.2, %v1087_v33 }
 0x16d   : > { %v2855_v32 = vpack.c.bf16 %v1758_v21, %v1758_v21  ;;  %v1699_v49 = vsel %vm1443_vm0, %v1095_v18, %v1571_v40  ;;  %2335 = vst.msk [vmem:[%s3350_s28 + $0xc4] sm:$0xf] %vm2285_vm1, %v2791_v42  ;;  %vm1505_vm4 = vcmp.ge.f32.partialorder %v1343_v19, 0.0  ;;  %v1633_v54 = vmul.f32 0.2, %v1343_v19 }
 0x16e   : > { %v2796_v6 = vpack.c.bf16 %v1699_v49, %v1699_v49  ;;  %v1763_v63 = vsel %vm1507_vm2, %v1351_v41, %v1635_v48  ;;  %v1697_v55 = vsel %vm1441_vm3, %v1087_v33, %v1569_v35  ;;  %v1098_v5 = vadd.f32 %v3713_v60, %v3791_v34 }
 0x16f   : > { %2399 = vst.msk [vmem:[%s3350_s28 + $0x1c4] sm:$0xf] %vm2285_vm1, %v2855_v32  ;;  %v2860_v27 = vpack.c.bf16 %v1763_v63, %v1763_v63  ;;  %v1354_v30 = vadd.f32 %v3713_v60, %v3793_v17  ;;  %v2794_v58 = vpack.c.bf16 %v1697_v55, %v1697_v55  ;;  %v1761_v44 = vsel %vm1505_vm4, %v1343_v19, %v1633_v54 }
 0x170   : > { %2340 = vst.msk [vmem:[%s3350_s28 + $0xd8] sm:$0xf] %vm2285_vm1, %v2796_v6  ;;  %v1090_v0 = vadd.f32 %v3713_v60, %v3801_v39  ;;  %v1346_v14 = vadd.f32 %v3713_v60, %v3803_v59  ;;  %v2858_v9 = vpack.c.bf16 %v1761_v44, %v1761_v44  ;;  %vm1444_vm5 = vcmp.ge.f32.partialorder %v1098_v5, 0.0 }
 0x171   : > { %2404 = vst.msk [vmem:[%s3350_s28 + $0x1d8] sm:$0xf] %vm2285_vm1, %v2860_v27  ;;  %v1572_v24 = vmul.f32 0.2, %v1098_v5  ;;  %vm1508_vm6 = vcmp.ge.f32.partialorder %v1354_v30, 0.0  ;;  %v1111_v59 = vadd.f32 %v3713_v60, %v3817_v62  ;;  %v1367_v46 = vadd.f32 %v3713_v60, %v3819_v7 }
 0x172   : > { %2338 = vst.msk [vmem:[%s3350_s28 + $0xd0] sm:$0xf] %vm2285_vm1, %v2794_v58  ;;  %v1636_v34 = vmul.f32 0.2, %v1354_v30  ;;  %vm1442_vm7 = vcmp.ge.f32.partialorder %v1090_v0, 0.0  ;;  %vm1506_vm8 = vcmp.ge.f32.partialorder %v1346_v14, 0.0  ;;  %v1103_v38 = vadd.f32 %v3713_v60, %v3823_v4 }
 0x173   : > { %v1570_v17 = vmul.f32 0.2, %v1090_v0  ;;  %2402 = vst.msk [vmem:[%s3350_s28 + $0x1d0] sm:$0xf] %vm2285_vm1, %v2858_v9  ;;  %v1700_v12 = vsel %vm1444_vm5, %v1098_v5, %v1572_v24  ;;  %v1634_v39 = vmul.f32 0.2, %v1346_v14  ;;  %v1359_v4 = vadd.f32 %v3713_v60, %v3833_v10 }
 0x174   : > { %v2797_v22 = vpack.c.bf16 %v1700_v12, %v1700_v12  ;;  %v1764_v57 = vsel %vm1508_vm6, %v1354_v30, %v1636_v34  ;;  %vm1447_vm9 = vcmp.ge.f32.partialorder %v1111_v59, 0.0  ;;  %v1575_v28 = vmul.f32 0.2, %v1111_v59 }
 0x175   : > { %v1698_v13 = vsel %vm1442_vm7, %v1090_v0, %v1570_v17  ;;  %v2861_v15 = vpack.c.bf16 %v1764_v57, %v1764_v57  ;;  %v1762_v1 = vsel %vm1506_vm8, %v1346_v14, %v1634_v39  ;;  %vm1511_vm10 = vcmp.ge.f32.partialorder %v1367_v46, 0.0 }
 0x176   : > { %v2795_v25 = vpack.c.bf16 %v1698_v13, %v1698_v13  ;;  %2341 = vst.msk [vmem:[%s3350_s28 + $0xdc] sm:$0xf] %vm2285_vm1, %v2797_v22  ;;  %v2859_v20 = vpack.c.bf16 %v1762_v1, %v1762_v1  ;;  %v1639_v62 = vmul.f32 0.2, %v1367_v46  ;;  %vm1445_vm11 = vcmp.ge.f32.partialorder %v1103_v38, 0.0 }
 0x177   : > { %2405 = vst.msk [vmem:[%s3350_s28 + $0x1dc] sm:$0xf] %vm2285_vm1, %v2861_v15  ;;  %v1573_v7 = vmul.f32 0.2, %v1103_v38  ;;  %v1114_v53 = vadd.f32 %v3713_v60, %v3835_v11  ;;  %v1703_v56 = vsel %vm1447_vm9, %v1111_v59, %v1575_v28  ;;  %v1370_v23 = vadd.f32 %v3713_v60, %v3844_v16 }
 0x178   : > { %2339 = vst.msk [vmem:[%s3350_s28 + $0xd4] sm:$0xf] %vm2285_vm1, %v2795_v25  ;;  %2403 = vst.msk [vmem:[%s3350_s28 + $0x1d4] sm:$0xf] %vm2285_vm1, %v2859_v20  ;;  %v1767_v52 = vsel %vm1511_vm10, %v1367_v46, %v1639_v62  ;;  %v1106_v29 = vadd.f32 %v3713_v60, %v3846_v3  ;;  %v2800_v37 = vpack.c.bf16 %v1703_v56, %v1703_v56  ;;  %vm1509_vm12 = vcmp.ge.f32.partialorder %v1359_v4, 0.0 }
 0x179   : > { %v2864_v18 = vpack.c.bf16 %v1767_v52, %v1767_v52  ;;  %v1701_v61 = vsel %vm1445_vm11, %v1103_v38, %v1573_v7  ;;  %v1637_v41 = vmul.f32 0.2, %v1359_v4  ;;  %vm1448_vm13 = vcmp.ge.f32.partialorder %v1114_v53, 0.0 }
 0x17a   : > { %v2798_v10 = vpack.c.bf16 %v1701_v61, %v1701_v61  ;;  %v1576_v33 = vmul.f32 0.2, %v1114_v53  ;;  %2344 = vst.msk [vmem:[%s3350_s28 + $0xe8] sm:$0xf] %vm2285_vm1, %v2800_v37  ;;  %vm1512_vm14 = vcmp.ge.f32.partialorder %v1370_v23, 0.0  ;;  %vm1446_vm15 = vcmp.ge.f32.partialorder %v1106_v29, 0.0 }
 0x17b   : > { %2408 = vst.msk [vmem:[%s3350_s28 + $0x1e8] sm:$0xf] %vm2285_vm1, %v2864_v18  ;;  %v1640_v11 = vmul.f32 0.2, %v1370_v23  ;;  %v1574_v16 = vmul.f32 0.2, %v1106_v29  ;;  %v1765_v3 = vsel %vm1509_vm12, %v1359_v4, %v1637_v41  ;;  %v1362_v40 = vadd.f32 %v3713_v60, %v3848_v36 }
 0x17c   : > { %2342 = vst.msk [vmem:[%s3350_s28 + $0xe0] sm:$0xf] %vm2285_vm1, %v2798_v10  ;;  %v1704_v51 = vsel %vm1448_vm13, %v1114_v53, %v1576_v33  ;;  %v1127_v19 = vadd.f32 %v3713_v60, %v3860_v31  ;;  %v2862_v42 = vpack.c.bf16 %v1765_v3, %v1765_v3  ;;  %v1383_v36 = vadd.f32 %v3713_v60, %v3862_v43 }
 0x17d   : > { %v2801_v21 = vpack.c.bf16 %v1704_v51, %v1704_v51  ;;  %v1768_v48 = vsel %vm1512_vm14, %v1370_v23, %v1640_v11  ;;  %v1702_v32 = vsel %vm1446_vm15, %v1106_v29, %v1574_v16  ;;  %vm1510_vm0 = vcmp.ge.f32.partialorder %v1362_v40, 0.0 }
 0x17e   : > { %v2865_v49 = vpack.c.bf16 %v1768_v48, %v1768_v48  ;;  %v2799_v35 = vpack.c.bf16 %v1702_v32, %v1702_v32  ;;  %v1638_v6 = vmul.f32 0.2, %v1362_v40  ;;  %2406 = vst.msk [vmem:[%s3350_s28 + $0x1e0] sm:$0xf] %vm2285_vm1, %v2862_v42  ;;  %vm1451_vm2 = vcmp.ge.f32.partialorder %v1127_v19, 0.0 }
 0x17f   : > { %2345 = vst.msk [vmem:[%s3350_s28 + $0xec] sm:$0xf] %vm2285_vm1, %v2801_v21  ;;  %v1579_v63 = vmul.f32 0.2, %v1127_v19  ;;  %v1119_v31 = vadd.f32 %v3713_v60, %v3864_v50  ;;  %v1375_v27 = vadd.f32 %v3713_v60, %v3866_v2  ;;  %v1130_v55 = vadd.f32 %v3713_v60, %v3876_v26 }
 0x180   : > { %2409 = vst.msk [vmem:[%s3350_s28 + $0x1ec] sm:$0xf] %vm2285_vm1, %v2865_v49  ;;  %2343 = vst.msk [vmem:[%s3350_s28 + $0xe4] sm:$0xf] %vm2285_vm1, %v2799_v35  ;;  %v1766_v54 = vsel %vm1510_vm0, %v1362_v40, %v1638_v6  ;;  %v1386_v5 = vadd.f32 %v3713_v60, %v3878_v47  ;;  %vm1515_vm3 = vcmp.ge.f32.partialorder %v1383_v36, 0.0  ;;  %v1122_v12 = vadd.f32 %v3713_v60, %v3890_v45 }
 0x181   : > { %v2863_v43 = vpack.c.bf16 %v1766_v54, %v1766_v54  ;;  %v1707_v30 = vsel %vm1451_vm2, %v1127_v19, %v1579_v63  ;;  %v1643_v58 = vmul.f32 0.2, %v1383_v36  ;;  %vm1449_vm4 = vcmp.ge.f32.partialorder %v1119_v31, 0.0 }
 0x182   : > { %v2804_v50 = vpack.c.bf16 %v1707_v30, %v1707_v30  ;;  %v1577_v44 = vmul.f32 0.2, %v1119_v31  ;;  %vm1513_vm5 = vcmp.ge.f32.partialorder %v1375_v27, 0.0  ;;  %v1641_v2 = vmul.f32 0.2, %v1375_v27 }
 0x183   : > { %2407 = vst.msk [vmem:[%s3350_s28 + $0x1e4] sm:$0xf] %vm2285_vm1, %v2863_v43  ;;  %v1771_v0 = vsel %vm1515_vm3, %v1383_v36, %v1643_v58  ;;  %vm1452_vm6 = vcmp.ge.f32.partialorder %v1130_v55, 0.0  ;;  %v1580_v14 = vmul.f32 0.2, %v1130_v55  ;;  %vm1516_vm7 = vcmp.ge.f32.partialorder %v1386_v5, 0.0 }
 0x184   : > { %2348 = vst.msk [vmem:[%s3350_s28 + $0xf8] sm:$0xf] %vm2285_vm1, %v2804_v50  ;;  %v2868_v26 = vpack.c.bf16 %v1771_v0, %v1771_v0  ;;  %v1705_v47 = vsel %vm1449_vm4, %v1119_v31, %v1577_v44  ;;  %v1644_v9 = vmul.f32 0.2, %v1386_v5  ;;  %v1769_v34 = vsel %vm1513_vm5, %v1375_v27, %v1641_v2 }
 0x185   : > { %v2802_v24 = vpack.c.bf16 %v1705_v47, %v1705_v47  ;;  %v1708_v17 = vsel %vm1452_vm6, %v1130_v55, %v1580_v14  ;;  %v2866_v39 = vpack.c.bf16 %v1769_v34, %v1769_v34  ;;  %v1378_v22 = vadd.f32 %v3713_v60, %v3892_v8 }
 0x186   : > { %2412 = vst.msk [vmem:[%s3350_s28 + $0x1f8] sm:$0xf] %vm2285_vm1, %v2868_v26  ;;  %v2805_v59 = vpack.c.bf16 %v1708_v17, %v1708_v17  ;;  %v1772_v46 = vsel %vm1516_vm7, %v1386_v5, %v1644_v9  ;;  %vm1450_vm8 = vcmp.ge.f32.partialorder %v1122_v12, 0.0  ;;  %v1578_v13 = vmul.f32 0.2, %v1122_v12 }
 0x187   : > { %2346 = vst.msk [vmem:[%s3350_s28 + $0xf0] sm:$0xf] %vm2285_vm1, %v2802_v24  ;;  %v2869_v57 = vpack.c.bf16 %v1772_v46, %v1772_v46  ;;  %2410 = vst.msk [vmem:[%s3350_s28 + $0x1f0] sm:$0xf] %vm2285_vm1, %v2866_v39  ;;  %vm1514_vm9 = vcmp.ge.f32.partialorder %v1378_v22, 0.0 }
 0x188   : > { %2349 = vst.msk [vmem:[%s3350_s28 + $0xfc] sm:$0xf] %vm2285_vm1, %v2805_v59  ;;  %v1642_v45 = vmul.f32 0.2, %v1378_v22  ;;  %v1706_v38 = vsel %vm1450_vm8, %v1122_v12, %v1578_v13 }
 0x189   : > { %2413 = vst.msk [vmem:[%s3350_s28 + $0x1fc] sm:$0xf] %vm2285_vm1, %v2869_v57  ;;  %v2803_v15 = vpack.c.bf16 %v1706_v38, %v1706_v38 }
 0x18a   : > { %v1770_v25 = vsel %vm1514_vm9, %v1378_v22, %v1642_v45 }
 0x18b   : > { %v2867_v1 = vpack.c.bf16 %v1770_v25, %v1770_v25  ;;  %2347 = vst.msk [vmem:[%s3350_s28 + $0xf4] sm:$0xf] %vm2285_vm1, %v2803_v15 }
 0x18d   : > { %2411 = vst.msk [vmem:[%s3350_s28 + $0x1f4] sm:$0xf] %vm2285_vm1, %v2867_v1 }
 0x18e PF: > { %s13_s12 = sadd.s32 1, %s3159_s12  }
 0x18f   : > { %p10_p4 = scmp.ge.s32.totalorder %s13_s12, 4  }
 0x191   :  { %12 = sbr.rel (!%p10_p4) target bundleno = 1 (0x1), region = 62 }

// kernel: forward.7
= control target key start
LH: loop header
LB: loop body
LE: loop exit
PB: predicated region body
PF: predicated region fallthrough
CT: control target
= control target key end

     0   :  { %s2256_s12 = smov 0   ;;  %s3187_s0 = inlined_call_operand.vmem [shape: bf16[2,256,512], index: 0, kind: input, shape index: {}]   ;;  %s3188_s1 = inlined_call_operand.vmem [shape: bf16[512,64], index: 1, kind: input, shape index: {}]   ;;  %s3189_s2 = inlined_call_operand.vmem [shape: f32[1,64], index: 2, kind: input, shape index: {}]   ;;  %s3190_s3 = inlined_call_operand.vmem [shape: bf16[2,256,64], index: 3, kind: output, shape index: {}]  }
   0x1 LB: > { %s1692_s13 = sadd.s32 4294967295, %s2234_s12   ;;  %p1696_p0 = scmp.ge.s32.totalorder %s2234_s12, 1  ;;  %s2234_s12 = sphi %s2256_s12, %s13_s12  }
   0x2   : > { %p137_p1 = scmp.lt.s32.totalorder %s2234_s12, 3 }
   0x4   : > { %p138_p2 = pnand %p1696_p0, %p137_p1 }
   0x5   : > { %v2098_v0 = vld [vmem:[%s3188_s1 + $0x40] sm:$0xff] (!%p138_p2)   ;;  %v2102_v4 = vld [vmem:[%s3188_s1 + $0x48] sm:$0xff] (!%p138_p2)   ;;  %v2106_v8 = vld [vmem:[%s3188_s1 + $0x50] sm:$0xff] (!%p138_p2)   ;;  %p161_p3 = scmp.lt.s32.totalorder (!%p138_p2), %s1692_s13, 1  ;;  %vm1141_vm0 = vcmask (!%p138_p2), 523264  }
   0x6   : > { %141 = sbr.rel (%p138_p2) target bundleno = 545 (0x221), region = 32  ;;  %v2099_v1 = vld [vmem:[%s3188_s1 + $0xc0] sm:$0xff] (!%p138_p2)   ;;  %1866 = vmatprep.subr.bf16.mxu0 (!%p138_p2), %v2098_v0  ;;  %v2103_v5 = vld [vmem:[%s3188_s1 + $0xc8] sm:$0xff] (!%p138_p2)   ;;  %v2107_v9 = vld [vmem:[%s3188_s1 + $0xd0] sm:$0xff] (!%p138_p2)  }
   0x7   : > { %v2100_v2 = vld [vmem:[%s3188_s1] sm:$0xff] (!%p138_p2)   ;;  %1978 = vmatprep.subr.bf16.mxu1 (!%p138_p2), %v2099_v1  ;;  %v2104_v6 = vld [vmem:[%s3188_s1 + $0x8] sm:$0xff] (!%p138_p2)   ;;  %v2108_v10 = vld [vmem:[%s3188_s1 + $0x10] sm:$0xff] (!%p138_p2)  }
   0x8   : > { %v2101_v3 = vld [vmem:[%s3188_s1 + $0x80] sm:$0xff] (!%p138_p2)   ;;  %1867 = vmatpush3.bf16.msra.mxu0 (!%p138_p2), %v2100_v2  ;;  %v2105_v7 = vld [vmem:[%s3188_s1 + $0x88] sm:$0xff] (!%p138_p2)   ;;  %v2109_v11 = vld [vmem:[%s3188_s1 + $0x90] sm:$0xff] (!%p138_p2)  }
   0x9   : > { %1979 = vmatpush3.bf16.msra.mxu1 (!%p138_p2), %v2101_v3  ;;  %1868 = vmatprep.subr.bf16.mxu0 (!%p138_p2), %v2102_v4  ;;  %v2110_v12 = vld [vmem:[%s3188_s1 + $0x58] sm:$0xff] (!%p138_p2)   ;;  %v2114_v16 = vld [vmem:[%s3188_s1 + $0x60] sm:$0xff] (!%p138_p2)   ;;  %v2118_v20 = vld [vmem:[%s3188_s1 + $0x68] sm:$0xff] (!%p138_p2)  }
   0xa   : > { %1980 = vmatprep.subr.bf16.mxu1 (!%p138_p2), %v2103_v5  ;;  %v2111_v13 = vld [vmem:[%s3188_s1 + $0xd8] sm:$0xff] (!%p138_p2)   ;;  %v2115_v17 = vld [vmem:[%s3188_s1 + $0xe0] sm:$0xff] (!%p138_p2)   ;;  %v2119_v21 = vld [vmem:[%s3188_s1 + $0xe8] sm:$0xff] (!%p138_p2)  }
   0xb   : > { %v2112_v14 = vld [vmem:[%s3188_s1 + $0x18] sm:$0xff] (!%p138_p2)   ;;  %v2116_v18 = vld [vmem:[%s3188_s1 + $0x20] sm:$0xff] (!%p138_p2)   ;;  %v2120_v22 = vld [vmem:[%s3188_s1 + $0x28] sm:$0xff] (!%p138_p2)  }
   0xc   : > { %1869 = vmatpush3.bf16.msra.mxu0 (!%p138_p2), %v2104_v6  ;;  %v2113_v15 = vld [vmem:[%s3188_s1 + $0x98] sm:$0xff] (!%p138_p2)   ;;  %v2117_v19 = vld [vmem:[%s3188_s1 + $0xa0] sm:$0xff] (!%p138_p2)   ;;  %v2121_v23 = vld [vmem:[%s3188_s1 + $0xa8] sm:$0xff] (!%p138_p2)  }
   0xd   : > { %1981 = vmatpush3.bf16.msra.mxu1 %v2105_v7  ;;  %1870 = vmatprep.subr.bf16.mxu0 %v2106_v8  ;;  %s3206_s13 = smov (!%p161_p3, %s1692_s13), 1  ;;  %v2122_v24 = vld [vmem:[%s3188_s1 + $0x70] sm:$0xff]   ;;  %v2126_v28 = vld [vmem:[%s3188_s1 + $0x78] sm:$0xff]  }
   0xe   : > { %1982 = vmatprep.subr.bf16.mxu1 %v2107_v9  ;;  %v2123_v25 = vld [vmem:[%s3188_s1 + $0xf0] sm:$0xff]   ;;  %s1832_s18 = sshll.u32 %s3206_s13, 9  ;;  %v2127_v29 = vld [vmem:[%s3188_s1 + $0xf8] sm:$0xff]   ;;  %s1833_s7 = sshll.u32 %s3206_s13, 7 }
   0xf   : > { %v2124_v26 = vld [vmem:[%s3188_s1 + $0x30] sm:$0xff]   ;;  %s2364_s27 = scalar_lea.vmem %s3187_s0, %s1832_s18  ;;  %v2128_v30 = vld [vmem:[%s3188_s1 + $0x38] sm:$0xff]   ;;  %s3052_s9 = scalar_lea.vmem %s3190_s3, %s1833_s7 }
  0x10   : > { %1871 = vmatpush3.bf16.msra.mxu0 %v2108_v10  ;;  %v2125_v27 = vld [vmem:[%s3188_s1 + $0xb0] sm:$0xff]   ;;  %v2129_v31 = vld [vmem:[%s3188_s1 + $0xb8] sm:$0xff]  }
  0x11   : > { %1983 = vmatpush3.bf16.msra.mxu1 %v2109_v11  ;;  %1872 = vmatprep.subr.bf16.mxu0 %v2110_v12  ;;  %v2130_v32 = vld [vmem:[%s2364_s27] ss:$16 sps:$4 sm:$0xff]   ;;  %v2132_v33 = vld [vmem:[%s2364_s27 + $0x4] ss:$16 sps:$4 sm:$0xff]   ;;  %v2133_v34 = vld [vmem:[%s2364_s27 + $0x8] ss:$16 sps:$4 sm:$0xff]  }
  0x12   : > { %1984 = vmatprep.subr.bf16.mxu1 %v2111_v13  ;;  %v2135_v35 = vld [vmem:[%s2364_s27 + $0xc] ss:$16 sps:$4 sm:$0xff]   ;;  %851 = vmatprep.mubr.bf16.mxu0 %v2132_v33  ;;  %v2136_v36 = vld [vmem:[%s2364_s27 + $0x24] ss:$16 sps:$4 sm:$0xff]   ;;  %v2140_v38 = vld [vmem:[%s2364_s27 + $0x20] ss:$16 sps:$4 sm:$0xff]  }
  0x13   : > { %1012 = vmatprep.mubr.bf16.mxu1 %v2135_v35  ;;  %v2138_v37 = vld [vmem:[%s2364_s27 + $0x2c] ss:$16 sps:$4 sm:$0xff]   ;;  %v2141_v39 = vld [vmem:[%s2364_s27 + $0x28] ss:$16 sps:$4 sm:$0xff]   ;;  %v2142_v40 = vld [vmem:[%s2364_s27 + $0x44] ss:$16 sps:$4 sm:$0xff]  }
  0x14   : > { %1873 = vmatpush3.bf16.msra.mxu0 %v2112_v14  ;;  %v2144_v41 = vld [vmem:[%s2364_s27 + $0x4c] ss:$16 sps:$4 sm:$0xff]   ;;  %v2146_v42 = vld [vmem:[%s2364_s27 + $0x40] ss:$16 sps:$4 sm:$0xff]   ;;  %v2147_v43 = vld [vmem:[%s2364_s27 + $0x48] ss:$16 sps:$4 sm:$0xff]  }
  0x15   : > { %1985 = vmatpush3.bf16.msra.mxu1 %v2113_v15  ;;  %1874 = vmatprep.subr.bf16.mxu0 %v2114_v16  ;;  %v2148_v44 = vld [vmem:[%s2364_s27 + $0x64] ss:$16 sps:$4 sm:$0xff]   ;;  %v2150_v45 = vld [vmem:[%s2364_s27 + $0x6c] ss:$16 sps:$4 sm:$0xff]   ;;  %v2152_v46 = vld [vmem:[%s2364_s27 + $0x60] ss:$16 sps:$4 sm:$0xff]  }
  0x16   : > { %1986 = vmatprep.subr.bf16.mxu1 %v2115_v17  ;;  %v2153_v47 = vld [vmem:[%s2364_s27 + $0x68] ss:$16 sps:$4 sm:$0xff]   ;;  %v2154_v48 = vld [vmem:[%s2364_s27 + $0x84] ss:$16 sps:$4 sm:$0xff]   ;;  %v2156_v49 = vld [vmem:[%s2364_s27 + $0x8c] ss:$16 sps:$4 sm:$0xff]  }
  0x17   : > { %v2158_v50 = vld [vmem:[%s2364_s27 + $0x80] ss:$16 sps:$4 sm:$0xff]   ;;  %v2159_v51 = vld [vmem:[%s2364_s27 + $0x88] ss:$16 sps:$4 sm:$0xff]   ;;  %v2160_v52 = vld [vmem:[%s2364_s27 + $0xa4] ss:$16 sps:$4 sm:$0xff]  }
  0x18   : > { %1875 = vmatpush3.bf16.msra.mxu0 %v2116_v18  ;;  %v2162_v53 = vld [vmem:[%s2364_s27 + $0xac] ss:$16 sps:$4 sm:$0xff]   ;;  %v2164_v54 = vld [vmem:[%s2364_s27 + $0xa0] ss:$16 sps:$4 sm:$0xff]   ;;  %v2165_v55 = vld [vmem:[%s2364_s27 + $0xa8] ss:$16 sps:$4 sm:$0xff]  }
  0x19   : > { %1987 = vmatpush3.bf16.msra.mxu1 %v2117_v19  ;;  %1876 = vmatprep.subr.bf16.mxu0 %v2118_v20  ;;  %v2166_v56 = vld [vmem:[%s2364_s27 + $0xc4] ss:$16 sps:$4 sm:$0xff]   ;;  %v2168_v57 = vld [vmem:[%s2364_s27 + $0xcc] ss:$16 sps:$4 sm:$0xff]   ;;  %v2170_v58 = vld [vmem:[%s2364_s27 + $0xc0] ss:$16 sps:$4 sm:$0xff]  }
  0x1a   : > { %1988 = vmatprep.subr.bf16.mxu1 %v2119_v21  ;;  %v2171_v59 = vld [vmem:[%s2364_s27 + $0xc8] ss:$16 sps:$4 sm:$0xff]   ;;  %v2172_v60 = vld [vmem:[%s2364_s27 + $0xe4] ss:$16 sps:$4 sm:$0xff]   ;;  %v2174_v61 = vld [vmem:[%s2364_s27 + $0xec] ss:$16 sps:$4 sm:$0xff]  }
  0x1b   : > { %v2176_v62 = vld [vmem:[%s2364_s27 + $0xe0] ss:$16 sps:$4 sm:$0xff]   ;;  %v2177_v63 = vld [vmem:[%s2364_s27 + $0xe8] ss:$16 sps:$4 sm:$0xff]   ;;  %v2178_v0 = vld [vmem:[%s2364_s27 + $0x104] ss:$16 sps:$4 sm:$0xff]  }
  0x1c   : > { %1877 = vmatpush3.bf16.msra.mxu0 %v2120_v22  ;;  %v2180_v1 = vld [vmem:[%s2364_s27 + $0x10c] ss:$16 sps:$4 sm:$0xff]   ;;  %v2182_v2 = vld [vmem:[%s2364_s27 + $0x100] ss:$16 sps:$4 sm:$0xff]   ;;  %v2183_v3 = vld [vmem:[%s2364_s27 + $0x108] ss:$16 sps:$4 sm:$0xff]  }
  0x1d   : > { %1989 = vmatpush3.bf16.msra.mxu1 %v2121_v23  ;;  %1878 = vmatprep.subr.bf16.mxu0 %v2122_v24  ;;  %v2184_v4 = vld [vmem:[%s2364_s27 + $0x124] ss:$16 sps:$4 sm:$0xff]   ;;  %v2186_v5 = vld [vmem:[%s2364_s27 + $0x12c] ss:$16 sps:$4 sm:$0xff]   ;;  %v2188_v6 = vld [vmem:[%s2364_s27 + $0x120] ss:$16 sps:$4 sm:$0xff]  }
  0x1e   : > { %1990 = vmatprep.subr.bf16.mxu1 %v2123_v25  ;;  %v2189_v7 = vld [vmem:[%s2364_s27 + $0x128] ss:$16 sps:$4 sm:$0xff]   ;;  %v2190_v8 = vld [vmem:[%s2364_s27 + $0x144] ss:$16 sps:$4 sm:$0xff]   ;;  %v2192_v9 = vld [vmem:[%s2364_s27 + $0x14c] ss:$16 sps:$4 sm:$0xff]  }
  0x1f   : > { %v2194_v10 = vld [vmem:[%s2364_s27 + $0x140] ss:$16 sps:$4 sm:$0xff]   ;;  %v2195_v11 = vld [vmem:[%s2364_s27 + $0x148] ss:$16 sps:$4 sm:$0xff]   ;;  %v2196_v12 = vld [vmem:[%s2364_s27 + $0x164] ss:$16 sps:$4 sm:$0xff]  }
  0x20   : > { %1879 = vmatpush3.bf16.msra.mxu0 %v2124_v26  ;;  %v2198_v13 = vld [vmem:[%s2364_s27 + $0x16c] ss:$16 sps:$4 sm:$0xff]   ;;  %v2200_v14 = vld [vmem:[%s2364_s27 + $0x160] ss:$16 sps:$4 sm:$0xff]   ;;  %v2201_v15 = vld [vmem:[%s2364_s27 + $0x168] ss:$16 sps:$4 sm:$0xff]  }
  0x21   : > { %1991 = vmatpush3.bf16.msra.mxu1 %v2125_v27  ;;  %1880 = vmatprep.subr.bf16.mxu0 %v2126_v28  ;;  %v2202_v16 = vld [vmem:[%s2364_s27 + $0x184] ss:$16 sps:$4 sm:$0xff]   ;;  %v2204_v17 = vld [vmem:[%s2364_s27 + $0x18c] ss:$16 sps:$4 sm:$0xff]   ;;  %v2206_v18 = vld [vmem:[%s2364_s27 + $0x180] ss:$16 sps:$4 sm:$0xff]  }
  0x22   : > { %1992 = vmatprep.subr.bf16.mxu1 %v2127_v29  ;;  %v2207_v19 = vld [vmem:[%s2364_s27 + $0x188] ss:$16 sps:$4 sm:$0xff]   ;;  %v2208_v20 = vld [vmem:[%s2364_s27 + $0x1a4] ss:$16 sps:$4 sm:$0xff]   ;;  %v2210_v21 = vld [vmem:[%s2364_s27 + $0x1ac] ss:$16 sps:$4 sm:$0xff]  }
  0x23   : > { %v2212_v22 = vld [vmem:[%s2364_s27 + $0x1a0] ss:$16 sps:$4 sm:$0xff]   ;;  %v2213_v23 = vld [vmem:[%s2364_s27 + $0x1a8] ss:$16 sps:$4 sm:$0xff]   ;;  %v2214_v24 = vld [vmem:[%s2364_s27 + $0x1c4] ss:$16 sps:$4 sm:$0xff]  }
  0x24   : > { %1881 = vmatpush3.bf16.msra.mxu0 %v2128_v30  ;;  %v2216_v25 = vld [vmem:[%s2364_s27 + $0x1cc] ss:$16 sps:$4 sm:$0xff]   ;;  %v2218_v26 = vld [vmem:[%s2364_s27 + $0x1c0] ss:$16 sps:$4 sm:$0xff]   ;;  %v2219_v27 = vld [vmem:[%s2364_s27 + $0x1c8] ss:$16 sps:$4 sm:$0xff]  }
  0x25   : > { %1993 = vmatpush3.bf16.msra.mxu1 %v2129_v31  ;;  %v2220_v28 = vld [vmem:[%s2364_s27 + $0x1e4] ss:$16 sps:$4 sm:$0xff]   ;;  %v2222_v29 = vld [vmem:[%s2364_s27 + $0x1ec] ss:$16 sps:$4 sm:$0xff]   ;;  %v2224_v30 = vld [vmem:[%s2364_s27 + $0x1e0] ss:$16 sps:$4 sm:$0xff]  }
  0x26   : > { %v2225_v31 = vld [vmem:[%s2364_s27 + $0x1e8] ss:$16 sps:$4 sm:$0xff]  }
  0x27   : > { %852 = vmatmul.mubr.bf16.vlgmr.msra.gmra.mrb[0].mxu0 %v2130_v32 }
  0x28   : > { %1013 = vmatmul.mubr.bf16.vlgmr.msra.gmra.mrb[0].mxu1 %v2133_v34  ;;  %859 = vmatprep.mubr.bf16.mxu0 %v2136_v36  ;;  %v2439_v34 = vld [vmem:[%s3189_s2] ss:$0 sm:$0xff] }
  0x29   : > { %1020 = vmatprep.mubr.bf16.mxu1 %v2138_v37 }
  0x2f   : > { %860 = vmatmul.mubr.bf16.gmra.mrb[4].mxu0 %v2140_v38 }
  0x30   : > { %1021 = vmatmul.mubr.bf16.gmra.mrb[4].mxu1 %v2141_v39  ;;  %867 = vmatprep.mubr.bf16.mxu0 %v2142_v40 }
  0x31   : > { %1028 = vmatprep.mubr.bf16.mxu1 %v2144_v41 }
  0x37   : > { %868 = vmatmul.mubr.bf16.gmra.mrb[8].mxu0 %v2146_v42 }
  0x38   : > { %1029 = vmatmul.mubr.bf16.gmra.mrb[8].mxu1 %v2147_v43  ;;  %875 = vmatprep.mubr.bf16.mxu0 %v2148_v44 }
  0x39   : > { %1036 = vmatprep.mubr.bf16.mxu1 %v2150_v45 }
  0x3f   : > { %876 = vmatmul.mubr.bf16.gmra.mrb[12].mxu0 %v2152_v46 }
  0x40   : > { %1037 = vmatmul.mubr.bf16.gmra.mrb[12].mxu1 %v2153_v47  ;;  %883 = vmatprep.mubr.bf16.mxu0 %v2154_v48 }
  0x41   : > { %1044 = vmatprep.mubr.bf16.mxu1 %v2156_v49 }
  0x47   : > { %884 = vmatmul.mubr.bf16.gmra.mrb[16].mxu0 %v2158_v50 }
  0x48   : > { %1045 = vmatmul.mubr.bf16.gmra.mrb[16].mxu1 %v2159_v51  ;;  %891 = vmatprep.mubr.bf16.mxu0 %v2160_v52 }
  0x49   : > { %1052 = vmatprep.mubr.bf16.mxu1 %v2162_v53 }
  0x4f   : > { %892 = vmatmul.mubr.bf16.gmra.mrb[20].mxu0 %v2164_v54 }
  0x50   : > { %1053 = vmatmul.mubr.bf16.gmra.mrb[20].mxu1 %v2165_v55  ;;  %899 = vmatprep.mubr.bf16.mxu0 %v2166_v56 }
  0x51   : > { %1060 = vmatprep.mubr.bf16.mxu1 %v2168_v57 }
  0x57   : > { %900 = vmatmul.mubr.bf16.gmra.mrb[24].mxu0 %v2170_v58 }
  0x58   : > { %1061 = vmatmul.mubr.bf16.gmra.mrb[24].mxu1 %v2171_v59  ;;  %907 = vmatprep.mubr.bf16.mxu0 %v2172_v60 }
  0x59   : > { %1068 = vmatprep.mubr.bf16.mxu1 %v2174_v61 }
  0x5f   : > { %908 = vmatmul.mubr.bf16.gmra.mrb[28].mxu0 %v2176_v62 }
  0x60   : > { %1069 = vmatmul.mubr.bf16.gmra.mrb[28].mxu1 %v2177_v63  ;;  %915 = vmatprep.mubr.bf16.mxu0 %v2178_v0 }
  0x61   : > { %1076 = vmatprep.mubr.bf16.mxu1 %v2180_v1 }
  0x67   : > { %916 = vmatmul.mubr.bf16.gmra.mrb[32].mxu0 %v2182_v2 }
  0x68   : > { %1077 = vmatmul.mubr.bf16.gmra.mrb[32].mxu1 %v2183_v3  ;;  %923 = vmatprep.mubr.bf16.mxu0 %v2184_v4 }
  0x69   : > { %1084 = vmatprep.mubr.bf16.mxu1 %v2186_v5 }
  0x6f   : > { %924 = vmatmul.mubr.bf16.gmra.mrb[36].mxu0 %v2188_v6 }
  0x70   : > { %1085 = vmatmul.mubr.bf16.gmra.mrb[36].mxu1 %v2189_v7  ;;  %931 = vmatprep.mubr.bf16.mxu0 %v2190_v8 }
  0x71   : > { %1092 = vmatprep.mubr.bf16.mxu1 %v2192_v9 }
  0x77   : > { %932 = vmatmul.mubr.bf16.gmra.mrb[40].mxu0 %v2194_v10 }
  0x78   : > { %1093 = vmatmul.mubr.bf16.gmra.mrb[40].mxu1 %v2195_v11  ;;  %939 = vmatprep.mubr.bf16.mxu0 %v2196_v12 }
  0x79   : > { %1100 = vmatprep.mubr.bf16.mxu1 %v2198_v13 }
  0x7f   : > { %940 = vmatmul.mubr.bf16.gmra.mrb[44].mxu0 %v2200_v14 }
  0x80   : > { %1101 = vmatmul.mubr.bf16.gmra.mrb[44].mxu1 %v2201_v15  ;;  %947 = vmatprep.mubr.bf16.mxu0 %v2202_v16 }
  0x81   : > { %1108 = vmatprep.mubr.bf16.mxu1 %v2204_v17 }
  0x87   : > { %948 = vmatmul.mubr.bf16.gmra.mrb[48].mxu0 %v2206_v18 }
  0x88   : > { %1109 = vmatmul.mubr.bf16.gmra.mrb[48].mxu1 %v2207_v19  ;;  %955 = vmatprep.mubr.bf16.mxu0 %v2208_v20 }
  0x89   : > { %1116 = vmatprep.mubr.bf16.mxu1 %v2210_v21 }
  0x8f   : > { %956 = vmatmul.mubr.bf16.gmra.mrb[52].mxu0 %v2212_v22 }
  0x90   : > { %1117 = vmatmul.mubr.bf16.gmra.mrb[52].mxu1 %v2213_v23  ;;  %963 = vmatprep.mubr.bf16.mxu0 %v2214_v24 }
  0x91   : > { %1124 = vmatprep.mubr.bf16.mxu1 %v2216_v25 }
  0x97   : > { %964 = vmatmul.mubr.bf16.gmra.mrb[56].mxu0 %v2218_v26 }
  0x98   : > { %1125 = vmatmul.mubr.bf16.gmra.mrb[56].mxu1 %v2219_v27  ;;  %971 = vmatprep.mubr.bf16.mxu0 %v2220_v28 }
  0x99   : > { %1132 = vmatprep.mubr.bf16.mxu1 %v2222_v29 }
  0x9f   : > { %972 = vmatmul.mubr.bf16.gmra.mrb[60].mxu0 %v2224_v30 }
  0xa0   : > { %1133 = vmatmul.mubr.bf16.gmra.mrb[60].mxu1 %v2225_v31 }
  0xfa   : > { %v1882_v32 = vpop.f32.mrb[0].mxu0 }
  0xfb   : > { %v1994_v33 = vpop.f32.mrb[0].mxu1  ;;  %v1883_v35 = vpop.f32.mrb[1].mxu0 }
  0xfc   : > { %v1884_v36 = vadd.f32 %v1883_v35, %v1882_v32  ;;  %v1995_v37 = vpop.f32.mrb[1].mxu1  ;;  %v1885_v38 = vpop.f32.mrb[2].mxu0 }
  0xfd   : > { %v1996_v39 = vadd.f32 %v1995_v37, %v1994_v33  ;;  %v1997_v40 = vpop.f32.mrb[2].mxu1  ;;  %v1886_v41 = vpop.f32.mrb[3].mxu0 }
  0xfe   : > { %v854_v42 = vadd.f32 %v1884_v36, %v2439_v34  ;;  %v1887_v43 = vadd.f32 %v1886_v41, %v1885_v38  ;;  %v1998_v44 = vpop.f32.mrb[3].mxu1 }
  0xff   : > { %v1999_v45 = vadd.f32 %v1998_v44, %v1997_v40 }
 0x100   : > { %v2442_v46 = vadd.f32 %v1996_v39, %v854_v42  ;;  %v857_v47 = vadd.f32 %v1887_v43, %v2439_v34 }
 0x102   : > { %v2445_v48 = vadd.f32 %v1999_v45, %v857_v47  ;;  %v1888_v49 = vpop.f32.mrb[4].mxu0  ;;  %v1142_v33 = vsel %vm1141_vm0, %v2442_v46, 0.0 }
 0x103   : > { %v2000_v50 = vpop.f32.mrb[4].mxu1  ;;  %v1889_v51 = vpop.f32.mrb[5].mxu0 }
 0x104   : > { %v1890_v52 = vadd.f32 %v1889_v51, %v1888_v49  ;;  %v2001_v53 = vpop.f32.mrb[5].mxu1  ;;  %v1891_v54 = vpop.f32.mrb[6].mxu0  ;;  %v1143_v30 = vsel %vm1141_vm0, %v2445_v48, 0.0 }
 0x105   : > { %v2002_v55 = vadd.f32 %v2001_v53, %v2000_v50  ;;  %v2003_v56 = vpop.f32.mrb[6].mxu1  ;;  %v1892_v57 = vpop.f32.mrb[7].mxu0  ;;  %v1144_v38 = vadd.f32 %v1143_v30, %v1142_v33 }
 0x106   : > { %v862_v58 = vadd.f32 %v1890_v52, %v2439_v34  ;;  %v1893_v59 = vadd.f32 %v1892_v57, %v1891_v54  ;;  %v2004_v60 = vpop.f32.mrb[7].mxu1 }
 0x107   : > { %v2005_v61 = vadd.f32 %v2004_v60, %v2003_v56 }
 0x108   : > { %v2448_v62 = vadd.f32 %v2002_v55, %v862_v58  ;;  %v865_v63 = vadd.f32 %v1893_v59, %v2439_v34 }
 0x10a   : > { %v2451_v0 = vadd.f32 %v2005_v61, %v865_v63  ;;  %v1894_v1 = vpop.f32.mrb[8].mxu0  ;;  %v1145_v35 = vsel %vm1141_vm0, %v2448_v62, 0.0 }
 0x10b   : > { %v2006_v2 = vpop.f32.mrb[8].mxu1  ;;  %v1895_v3 = vpop.f32.mrb[9].mxu0  ;;  %v1146_v44 = vadd.f32 %v1145_v35, %v1144_v38 }
 0x10c   : > { %v1896_v4 = vadd.f32 %v1895_v3, %v1894_v1  ;;  %v2007_v5 = vpop.f32.mrb[9].mxu1  ;;  %v1897_v6 = vpop.f32.mrb[10].mxu0  ;;  %v1147_v50 = vsel %vm1141_vm0, %v2451_v0, 0.0 }
 0x10d   : > { %v2008_v7 = vadd.f32 %v2007_v5, %v2006_v2  ;;  %v2009_v8 = vpop.f32.mrb[10].mxu1  ;;  %v1898_v9 = vpop.f32.mrb[11].mxu0  ;;  %v1148_v58 = vadd.f32 %v1147_v50, %v1146_v44 }
 0x10e   : > { %v870_v10 = vadd.f32 %v1896_v4, %v2439_v34  ;;  %v1899_v11 = vadd.f32 %v1898_v9, %v1897_v6  ;;  %v2010_v12 = vpop.f32.mrb[11].mxu1 }
 0x10f   : > { %v2011_v13 = vadd.f32 %v2010_v12, %v2009_v8 }
 0x110   : > { %v2454_v14 = vadd.f32 %v2008_v7, %v870_v10  ;;  %v873_v15 = vadd.f32 %v1899_v11, %v2439_v34 }
 0x112   : > { %v2457_v16 = vadd.f32 %v2011_v13, %v873_v15  ;;  %v1900_v17 = vpop.f32.mrb[12].mxu0  ;;  %v1149_v55 = vsel %vm1141_vm0, %v2454_v14, 0.0 }
 0x113   : > { %v2012_v18 = vpop.f32.mrb[12].mxu1  ;;  %v1901_v19 = vpop.f32.mrb[13].mxu0  ;;  %v1150_v61 = vadd.f32 %v1149_v55, %v1148_v58 }
 0x114   : > { %v1902_v20 = vadd.f32 %v1901_v19, %v1900_v17  ;;  %v2013_v21 = vpop.f32.mrb[13].mxu1  ;;  %v1903_v22 = vpop.f32.mrb[14].mxu0  ;;  %v1151_v2 = vsel %vm1141_vm0, %v2457_v16, 0.0 }
 0x115   : > { %v2014_v23 = vadd.f32 %v2013_v21, %v2012_v18  ;;  %v2015_v24 = vpop.f32.mrb[14].mxu1  ;;  %v1904_v25 = vpop.f32.mrb[15].mxu0  ;;  %v1152_v13 = vadd.f32 %v1151_v2, %v1150_v61 }
 0x116   : > { %v878_v26 = vadd.f32 %v1902_v20, %v2439_v34  ;;  %v1905_v27 = vadd.f32 %v1904_v25, %v1903_v22  ;;  %v2016_v28 = vpop.f32.mrb[15].mxu1 }
 0x117   : > { %v2017_v29 = vadd.f32 %v2016_v28, %v2015_v24 }
 0x118   : > { %v2462_v31 = vadd.f32 %v2014_v23, %v878_v26  ;;  %v881_v32 = vadd.f32 %v1905_v27, %v2439_v34 }
 0x11a   : > { %v2469_v36 = vadd.f32 %v2017_v29, %v881_v32  ;;  %v1906_v37 = vpop.f32.mrb[16].mxu0  ;;  %v1153_v9 = vsel %vm1141_vm0, %v2462_v31, 0.0 }
 0x11b   : > { %v2018_v39 = vpop.f32.mrb[16].mxu1  ;;  %v1907_v40 = vpop.f32.mrb[17].mxu0  ;;  %v1154_v19 = vadd.f32 %v1153_v9, %v1152_v13 }
 0x11c   : > { %v1908_v41 = vadd.f32 %v1907_v40, %v1906_v37  ;;  %v2019_v42 = vpop.f32.mrb[17].mxu1  ;;  %v1909_v43 = vpop.f32.mrb[18].mxu0  ;;  %v1155_v20 = vsel %vm1141_vm0, %v2469_v36, 0.0 }
 0x11d   : > { %v2020_v45 = vadd.f32 %v2019_v42, %v2018_v39  ;;  %v2021_v47 = vpop.f32.mrb[18].mxu1  ;;  %v1910_v49 = vpop.f32.mrb[19].mxu0  ;;  %v1156_v29 = vadd.f32 %v1155_v20, %v1154_v19 }
 0x11e   : > { %v886_v51 = vadd.f32 %v1908_v41, %v2439_v34  ;;  %v1911_v52 = vadd.f32 %v1910_v49, %v1909_v43  ;;  %v2022_v53 = vpop.f32.mrb[19].mxu1 }
 0x11f   : > { %v2023_v54 = vadd.f32 %v2022_v53, %v2021_v47 }
 0x120   : > { %v2476_v56 = vadd.f32 %v2020_v45, %v886_v51  ;;  %v889_v57 = vadd.f32 %v1911_v52, %v2439_v34 }
 0x122   : > { %v2479_v59 = vadd.f32 %v2023_v54, %v889_v57  ;;  %v1912_v60 = vpop.f32.mrb[20].mxu0  ;;  %v1157_v25 = vsel %vm1141_vm0, %v2476_v56, 0.0 }
 0x123   : > { %v2024_v63 = vpop.f32.mrb[20].mxu1  ;;  %v1913_v1 = vpop.f32.mrb[21].mxu0  ;;  %v1158_v39 = vadd.f32 %v1157_v25, %v1156_v29 }
 0x124   : > { %v1914_v3 = vadd.f32 %v1913_v1, %v1912_v60  ;;  %v2025_v4 = vpop.f32.mrb[21].mxu1  ;;  %v1915_v5 = vpop.f32.mrb[22].mxu0  ;;  %v1159_v41 = vsel %vm1141_vm0, %v2479_v59, 0.0 }
 0x125   : > { %v2026_v6 = vadd.f32 %v2025_v4, %v2024_v63  ;;  %v2027_v7 = vpop.f32.mrb[22].mxu1  ;;  %v1916_v8 = vpop.f32.mrb[23].mxu0  ;;  %v1160_v49 = vadd.f32 %v1159_v41, %v1158_v39 }
 0x126   : > { %v894_v10 = vadd.f32 %v1914_v3, %v2439_v34  ;;  %v1917_v11 = vadd.f32 %v1916_v8, %v1915_v5  ;;  %v2028_v12 = vpop.f32.mrb[23].mxu1 }
 0x127   : > { %v2029_v15 = vadd.f32 %v2028_v12, %v2027_v7 }
 0x128   : > { %v2486_v17 = vadd.f32 %v2026_v6, %v894_v10  ;;  %v897_v18 = vadd.f32 %v1917_v11, %v2439_v34 }
 0x12a   : > { %v2491_v21 = vadd.f32 %v2029_v15, %v897_v18  ;;  %v1918_v22 = vpop.f32.mrb[24].mxu0  ;;  %v1161_v44 = vsel %vm1141_vm0, %v2486_v17, 0.0 }
 0x12b   : > { %v2030_v23 = vpop.f32.mrb[24].mxu1  ;;  %v1919_v24 = vpop.f32.mrb[25].mxu0  ;;  %v1162_v55 = vadd.f32 %v1161_v44, %v1160_v49 }
 0x12c   : > { %v1920_v26 = vadd.f32 %v1919_v24, %v1918_v22  ;;  %v2031_v27 = vpop.f32.mrb[25].mxu1  ;;  %v1921_v28 = vpop.f32.mrb[26].mxu0  ;;  %v1163_v61 = vsel %vm1141_vm0, %v2491_v21, 0.0 }
 0x12d   : > { %v2032_v30 = vadd.f32 %v2031_v27, %v2030_v23  ;;  %v2033_v32 = vpop.f32.mrb[26].mxu1  ;;  %v1922_v33 = vpop.f32.mrb[27].mxu0  ;;  %v1164_v7 = vadd.f32 %v1163_v61, %v1162_v55 }
 0x12e   : > { %v902_v35 = vadd.f32 %v1920_v26, %v2439_v34  ;;  %v1923_v37 = vadd.f32 %v1922_v33, %v1921_v28  ;;  %v2034_v38 = vpop.f32.mrb[27].mxu1 }
 0x12f   : > { %v2035_v40 = vadd.f32 %v2034_v38, %v2033_v32 }
 0x130   : > { %v2498_v42 = vadd.f32 %v2032_v30, %v902_v35  ;;  %v905_v43 = vadd.f32 %v1923_v37, %v2439_v34 }
 0x132   : > { %v2503_v45 = vadd.f32 %v2035_v40, %v905_v43  ;;  %v1924_v47 = vpop.f32.mrb[28].mxu0  ;;  %v1165_v4 = vsel %vm1141_vm0, %v2498_v42, 0.0 }
 0x133   : > { %v2036_v50 = vpop.f32.mrb[28].mxu1  ;;  %v1925_v51 = vpop.f32.mrb[29].mxu0  ;;  %v1166_v10 = vadd.f32 %v1165_v4, %v1164_v7 }
 0x134   : > { %v1926_v52 = vadd.f32 %v1925_v51, %v1924_v47  ;;  %v2037_v53 = vpop.f32.mrb[29].mxu1  ;;  %v1927_v54 = vpop.f32.mrb[30].mxu0  ;;  %v1167_v13 = vsel %vm1141_vm0, %v2503_v45, 0.0 }
 0x135   : > { %v2038_v57 = vadd.f32 %v2037_v53, %v2036_v50  ;;  %v2039_v58 = vpop.f32.mrb[30].mxu1  ;;  %v1928_v60 = vpop.f32.mrb[31].mxu0  ;;  %v1168_v28 = vadd.f32 %v1167_v13, %v1166_v10 }
 0x136   : > { %v910_v63 = vadd.f32 %v1926_v52, %v2439_v34  ;;  %v1929_v1 = vadd.f32 %v1928_v60, %v1927_v54  ;;  %v2040_v2 = vpop.f32.mrb[31].mxu1 }
 0x137   : > { %v2041_v3 = vadd.f32 %v2040_v2, %v2039_v58 }
 0x138   : > { %v2510_v5 = vadd.f32 %v2038_v57, %v910_v63  ;;  %v913_v6 = vadd.f32 %v1929_v1, %v2439_v34 }
 0x13a   : > { %v2513_v8 = vadd.f32 %v2041_v3, %v913_v6  ;;  %v1930_v9 = vpop.f32.mrb[32].mxu0  ;;  %v1169_v24 = vsel %vm1141_vm0, %v2510_v5, 0.0 }
 0x13b   : > { %v2042_v11 = vpop.f32.mrb[32].mxu1  ;;  %v1931_v12 = vpop.f32.mrb[33].mxu0  ;;  %v1170_v33 = vadd.f32 %v1169_v24, %v1168_v28 }
 0x13c   : > { %v1932_v15 = vadd.f32 %v1931_v12, %v1930_v9  ;;  %v2043_v18 = vpop.f32.mrb[33].mxu1  ;;  %v1933_v19 = vpop.f32.mrb[34].mxu0  ;;  %v1171_v35 = vsel %vm1141_vm0, %v2513_v8, 0.0 }
 0x13d   : > { %v2044_v20 = vadd.f32 %v2043_v18, %v2042_v11  ;;  %v2045_v22 = vpop.f32.mrb[34].mxu1  ;;  %v1934_v23 = vpop.f32.mrb[35].mxu0  ;;  %v1172_v49 = vadd.f32 %v1171_v35, %v1170_v33 }
 0x13e   : > { %v918_v25 = vadd.f32 %v1932_v15, %v2439_v34  ;;  %v1935_v26 = vadd.f32 %v1934_v23, %v1933_v19  ;;  %v2046_v27 = vpop.f32.mrb[35].mxu1 }
 0x13f   : > { %v2047_v29 = vadd.f32 %v2046_v27, %v2045_v22 }
 0x140   : > { %v2520_v30 = vadd.f32 %v2044_v20, %v918_v25  ;;  %v921_v32 = vadd.f32 %v1935_v26, %v2439_v34 }
 0x142   : > { %v2525_v37 = vadd.f32 %v2047_v29, %v921_v32  ;;  %v1936_v38 = vpop.f32.mrb[36].mxu0  ;;  %v1173_v41 = vsel %vm1141_vm0, %v2520_v30, 0.0 }
 0x143   : > { %v2048_v39 = vpop.f32.mrb[36].mxu1  ;;  %v1937_v40 = vpop.f32.mrb[37].mxu0  ;;  %v1174_v57 = vadd.f32 %v1173_v41, %v1172_v49 }
 0x144   : > { %v1938_v43 = vadd.f32 %v1937_v40, %v1936_v38  ;;  %v2049_v44 = vpop.f32.mrb[37].mxu1  ;;  %v1939_v47 = vpop.f32.mrb[38].mxu0  ;;  %v1175_v60 = vsel %vm1141_vm0, %v2525_v37, 0.0 }
 0x145   : > { %v2050_v50 = vadd.f32 %v2049_v44, %v2048_v39  ;;  %v2051_v51 = vpop.f32.mrb[38].mxu1  ;;  %v1940_v52 = vpop.f32.mrb[39].mxu0  ;;  %v1176_v4 = vadd.f32 %v1175_v60, %v1174_v57 }
 0x146   : > { %v926_v53 = vadd.f32 %v1938_v43, %v2439_v34  ;;  %v1941_v54 = vadd.f32 %v1940_v52, %v1939_v47  ;;  %v2052_v55 = vpop.f32.mrb[39].mxu1 }
 0x147   : > { %v2053_v58 = vadd.f32 %v2052_v55, %v2051_v51 }
 0x148   : > { %v2532_v61 = vadd.f32 %v2050_v50, %v926_v53  ;;  %v929_v63 = vadd.f32 %v1941_v54, %v2439_v34 }
 0x14a   : > { %v1177_v1 = vsel %vm1141_vm0, %v2532_v61, 0.0  ;;  %v2537_v2 = vadd.f32 %v2053_v58, %v929_v63  ;;  %v1942_v3 = vpop.f32.mrb[40].mxu0 }
 0x14b   : > { %v2054_v6 = vpop.f32.mrb[40].mxu1  ;;  %v1943_v7 = vpop.f32.mrb[41].mxu0  ;;  %v1178_v12 = vadd.f32 %v1177_v1, %v1176_v4 }
 0x14c   : > { %v1944_v9 = vadd.f32 %v1943_v7, %v1942_v3  ;;  %v2055_v10 = vpop.f32.mrb[41].mxu1  ;;  %v1945_v11 = vpop.f32.mrb[42].mxu0  ;;  %v1179_v19 = vsel %vm1141_vm0, %v2537_v2, 0.0 }
 0x14d   : > { %v2056_v13 = vadd.f32 %v2055_v10, %v2054_v6  ;;  %v2057_v15 = vpop.f32.mrb[42].mxu1  ;;  %v1946_v18 = vpop.f32.mrb[43].mxu0  ;;  %v1180_v27 = vadd.f32 %v1179_v19, %v1178_v12 }
 0x14e   : > { %v934_v20 = vadd.f32 %v1944_v9, %v2439_v34  ;;  %v1947_v22 = vadd.f32 %v1946_v18, %v1945_v11  ;;  %v2058_v23 = vpop.f32.mrb[43].mxu1 }
 0x14f   : > { %v2059_v24 = vadd.f32 %v2058_v23, %v2057_v15 }
 0x150   : > { %v2542_v25 = vadd.f32 %v2056_v13, %v934_v20  ;;  %v937_v26 = vadd.f32 %v1947_v22, %v2439_v34 }
 0x152   : > { %v1181_v28 = vsel %vm1141_vm0, %v2542_v25, 0.0  ;;  %v2547_v29 = vadd.f32 %v2059_v24, %v937_v26  ;;  %v1948_v32 = vpop.f32.mrb[44].mxu0 }
 0x153   : > { %v1182_v33 = vadd.f32 %v1181_v28, %v1180_v27  ;;  %v2060_v35 = vpop.f32.mrb[44].mxu1  ;;  %v1949_v38 = vpop.f32.mrb[45].mxu0 }
 0x154   : > { %v1183_v39 = vsel %vm1141_vm0, %v2547_v29, 0.0  ;;  %v1950_v40 = vadd.f32 %v1949_v38, %v1948_v32  ;;  %v2061_v41 = vpop.f32.mrb[45].mxu1  ;;  %v1951_v43 = vpop.f32.mrb[46].mxu0 }
 0x155   : > { %v1184_v44 = vadd.f32 %v1183_v39, %v1182_v33  ;;  %v2062_v47 = vadd.f32 %v2061_v41, %v2060_v35  ;;  %v2063_v49 = vpop.f32.mrb[46].mxu1  ;;  %v1952_v50 = vpop.f32.mrb[47].mxu0 }
 0x156   : > { %v942_v51 = vadd.f32 %v1950_v40, %v2439_v34  ;;  %v1953_v52 = vadd.f32 %v1952_v50, %v1951_v43  ;;  %v2064_v53 = vpop.f32.mrb[47].mxu1 }
 0x157   : > { %v2065_v54 = vadd.f32 %v2064_v53, %v2063_v49 }
 0x158   : > { %v2552_v55 = vadd.f32 %v2062_v47, %v942_v51  ;;  %v945_v57 = vadd.f32 %v1953_v52, %v2439_v34 }
 0x15a   : > { %v1185_v58 = vsel %vm1141_vm0, %v2552_v55, 0.0  ;;  %v2557_v60 = vadd.f32 %v2065_v54, %v945_v57  ;;  %v1954_v63 = vpop.f32.mrb[48].mxu0 }
 0x15b   : > { %v1186_v1 = vadd.f32 %v1185_v58, %v1184_v44  ;;  %v2066_v3 = vpop.f32.mrb[48].mxu1  ;;  %v1955_v4 = vpop.f32.mrb[49].mxu0 }
 0x15c   : > { %v1187_v6 = vsel %vm1141_vm0, %v2557_v60, 0.0  ;;  %v1956_v7 = vadd.f32 %v1955_v4, %v1954_v63  ;;  %v2067_v9 = vpop.f32.mrb[49].mxu1  ;;  %v1957_v10 = vpop.f32.mrb[50].mxu0 }
 0x15d   : > { %v1188_v11 = vadd.f32 %v1187_v6, %v1186_v1  ;;  %v2068_v12 = vadd.f32 %v2067_v9, %v2066_v3  ;;  %v2069_v13 = vpop.f32.mrb[50].mxu1  ;;  %v1958_v15 = vpop.f32.mrb[51].mxu0 }
 0x15e   : > { %v950_v18 = vadd.f32 %v1956_v7, %v2439_v34  ;;  %v1959_v19 = vadd.f32 %v1958_v15, %v1957_v10  ;;  %v2070_v20 = vpop.f32.mrb[51].mxu1 }
 0x15f   : > { %v2071_v22 = vadd.f32 %v2070_v20, %v2069_v13 }
 0x160   : > { %v2562_v23 = vadd.f32 %v2068_v12, %v950_v18  ;;  %v953_v24 = vadd.f32 %v1959_v19, %v2439_v34 }
 0x162   : > { %v1189_v26 = vsel %vm1141_vm0, %v2562_v23, 0.0  ;;  %v2567_v27 = vadd.f32 %v2071_v22, %v953_v24  ;;  %v1960_v28 = vpop.f32.mrb[52].mxu0 }
 0x163   : > { %v1190_v32 = vadd.f32 %v1189_v26, %v1188_v11  ;;  %v2072_v33 = vpop.f32.mrb[52].mxu1  ;;  %v1961_v35 = vpop.f32.mrb[53].mxu0 }
 0x164   : > { %v1191_v38 = vsel %vm1141_vm0, %v2567_v27, 0.0  ;;  %v1962_v39 = vadd.f32 %v1961_v35, %v1960_v28  ;;  %v2073_v40 = vpop.f32.mrb[53].mxu1  ;;  %v1963_v41 = vpop.f32.mrb[54].mxu0 }
 0x165   : > { %v1192_v43 = vadd.f32 %v1191_v38, %v1190_v32  ;;  %v2074_v44 = vadd.f32 %v2073_v40, %v2072_v33  ;;  %v2075_v47 = vpop.f32.mrb[54].mxu1  ;;  %v1964_v49 = vpop.f32.mrb[55].mxu0 }
 0x166   : > { %v958_v50 = vadd.f32 %v1962_v39, %v2439_v34  ;;  %v1965_v51 = vadd.f32 %v1964_v49, %v1963_v41  ;;  %v2076_v52 = vpop.f32.mrb[55].mxu1 }
 0x167   : > { %v2077_v53 = vadd.f32 %v2076_v52, %v2075_v47 }
 0x168   : > { %v1119_v54 = vadd.f32 %v2074_v44, %v958_v50  ;;  %v961_v57 = vadd.f32 %v1965_v51, %v2439_v34 }
 0x16a   : > { %v1193_v58 = vsel %vm1141_vm0, %v1119_v54, 0.0  ;;  %v1122_v63 = vadd.f32 %v2077_v53, %v961_v57  ;;  %v1966_v1 = vpop.f32.mrb[56].mxu0 }
 0x16b   : > { %v1194_v3 = vadd.f32 %v1193_v58, %v1192_v43  ;;  %v2078_v4 = vpop.f32.mrb[56].mxu1  ;;  %v1967_v6 = vpop.f32.mrb[57].mxu0 }
 0x16c   : > { %v1195_v7 = vsel %vm1141_vm0, %v1122_v63, 0.0  ;;  %v1968_v9 = vadd.f32 %v1967_v6, %v1966_v1  ;;  %v2079_v10 = vpop.f32.mrb[57].mxu1  ;;  %v1969_v11 = vpop.f32.mrb[58].mxu0 }
 0x16d   : > { %v1196_v12 = vadd.f32 %v1195_v7, %v1194_v3  ;;  %v2080_v13 = vadd.f32 %v2079_v10, %v2078_v4  ;;  %v2081_v15 = vpop.f32.mrb[58].mxu1  ;;  %v1970_v18 = vpop.f32.mrb[59].mxu0 }
 0x16e   : > { %v966_v19 = vadd.f32 %v1968_v9, %v2439_v34  ;;  %v1971_v20 = vadd.f32 %v1970_v18, %v1969_v11  ;;  %v2082_v22 = vpop.f32.mrb[59].mxu1 }
 0x16f   : > { %v2083_v24 = vadd.f32 %v2082_v22, %v2081_v15 }
 0x170   : > { %v1127_v26 = vadd.f32 %v2080_v13, %v966_v19  ;;  %v969_v28 = vadd.f32 %v1971_v20, %v2439_v34 }
 0x172   : > { %v1197_v32 = vsel %vm1141_vm0, %v1127_v26, 0.0  ;;  %v1130_v33 = vadd.f32 %v2083_v24, %v969_v28  ;;  %v1972_v35 = vpop.f32.mrb[60].mxu0 }
 0x173   : > { %v1198_v38 = vadd.f32 %v1197_v32, %v1196_v12  ;;  %v2084_v39 = vpop.f32.mrb[60].mxu1  ;;  %v1973_v40 = vpop.f32.mrb[61].mxu0 }
 0x174   : > { %v1199_v41 = vsel %vm1141_vm0, %v1130_v33, 0.0  ;;  %v1974_v43 = vadd.f32 %v1973_v40, %v1972_v35  ;;  %v2085_v44 = vpop.f32.mrb[61].mxu1  ;;  %v1975_v47 = vpop.f32.mrb[62].mxu0 }
 0x175   : > { %v1200_v49 = vadd.f32 %v1199_v41, %v1198_v38  ;;  %v2086_v50 = vadd.f32 %v2085_v44, %v2084_v39  ;;  %v2087_v51 = vpop.f32.mrb[62].mxu1  ;;  %v1976_v52 = vpop.f32.mrb[63].mxu0 }
 0x176   : > { %v974_v53 = vadd.f32 %v1974_v43, %v2439_v34  ;;  %v1977_v57 = vadd.f32 %v1976_v52, %v1975_v47  ;;  %v2088_v58 = vpop.f32.mrb[63].mxu1 }
 0x177   : > { %v2089_v1 = vadd.f32 %v2088_v58, %v2087_v51 }
 0x178   : > { %v1135_v3 = vadd.f32 %v2086_v50, %v974_v53  ;;  %v977_v4 = vadd.f32 %v1977_v57, %v2439_v34 }
 0x17a   : > { %v1201_v6 = vsel %vm1141_vm0, %v1135_v3, 0.0  ;;  %v1138_v7 = vadd.f32 %v2089_v1, %v977_v4 }
 0x17b   : > { %v1202_v9 = vadd.f32 %v1201_v6, %v1200_v49 }
 0x17c   : > { %v1203_v10 = vsel %vm1141_vm0, %v1138_v7, 0.0 }
 0x17d   : > { %v1204_v11 = vadd.f32 %v1203_v10, %v1202_v9 }
 0x17f   : > { %v1205_v12 = vrot.slane %v1204_v11, 4 }
 0x181   : > { %v1206_v13 = vadd.f32 %v1205_v12, %v1204_v11 }
 0x183   : > { %v1207_v15 = vrot.slane %v1206_v13, 2 }
 0x185   : > { %v1208_v18 = vadd.f32 %v1207_v15, %v1206_v13 }
 0x187   : > { %v1209_v19 = vrot.slane %v1208_v18, 1 }
 0x189   : > { %v1210_v20 = vadd.f32 %v1209_v19, %v1208_v18 }
 0x18b   : > { %v2583_v22 = vmul.f32 0.00390625, %v1210_v20 }
 0x18d   : > { %v2587_v24 = vsub.f32 %v2542_v25, %v2583_v22  ;;  %v2591_v34 = vsub.f32 %v2547_v29, %v2583_v22  ;;  %v2595_v28 = vsub.f32 %v2552_v55, %v2583_v22  ;;  %v2599_v32 = vsub.f32 %v2557_v60, %v2583_v22 }
 0x18e   : > { %v2603_v35 = vsub.f32 %v2562_v23, %v2583_v22  ;;  %v2607_v25 = vsub.f32 %v2567_v27, %v2583_v22  ;;  %v2610_v38 = vsub.f32 %v1119_v54, %v2583_v22  ;;  %v2613_v29 = vsub.f32 %v1122_v63, %v2583_v22 }
 0x18f   : > { %v2616_v55 = vsub.f32 %v1127_v26, %v2583_v22  ;;  %v2619_v60 = vsub.f32 %v1130_v33, %v2583_v22  ;;  %v2622_v39 = vsub.f32 %v1135_v3, %v2583_v22  ;;  %v2625_v23 = vsub.f32 %v1138_v7, %v2583_v22 }
 0x190   : > { %v2629_v27 = vsub.f32 %v2442_v46, %v2583_v22  ;;  %v2633_v54 = vsub.f32 %v2445_v48, %v2583_v22  ;;  %v2637_v63 = vsub.f32 %v2448_v62, %v2583_v22  ;;  %v2641_v26 = vsub.f32 %v2451_v0, %v2583_v22 }
 0x191   : > { %v2649_v46 = vsub.f32 %v2454_v14, %v2583_v22  ;;  %v2655_v62 = vsub.f32 %v2457_v16, %v2583_v22  ;;  %v2663_v47 = vsub.f32 %v2462_v31, %v2583_v22  ;;  %v2670_v16 = vsub.f32 %v2469_v36, %v2583_v22 }
 0x192   : > { %v1244_v33 = vmul.f32 %v2629_v27, %v2629_v27  ;;  %v1245_v40 = vmul.f32 %v2633_v54, %v2633_v54  ;;  %v1246_v48 = vmul.f32 %v2637_v63, %v2637_v63  ;;  %v1247_v0 = vmul.f32 %v2641_v26, %v2641_v26 }
 0x193   : > { %v1248_v14 = vmul.f32 %v2649_v46, %v2649_v46  ;;  %v1249_v51 = vmul.f32 %v2655_v62, %v2655_v62  ;;  %v2677_v31 = vsub.f32 %v2476_v56, %v2583_v22  ;;  %v1250_v57 = vmul.f32 %v2663_v47, %v2663_v47 }
 0x194   : > { %v1276_v41 = vsel %vm1141_vm0, %v1244_v33, 0.0  ;;  %v1277_v43 = vsel %vm1141_vm0, %v1245_v40, 0.0  ;;  %v1279_v49 = vsel %vm1141_vm0, %v1246_v48, 0.0  ;;  %v1281_v52 = vsel %vm1141_vm0, %v1247_v0, 0.0 }
 0x195   : > { %v1278_v44 = vadd.f32 %v1277_v43, %v1276_v41  ;;  %v1283_v58 = vsel %vm1141_vm0, %v1248_v14, 0.0  ;;  %v2684_v36 = vsub.f32 %v2479_v59, %v2583_v22  ;;  %v1251_v3 = vmul.f32 %v2670_v16, %v2670_v16 }
 0x196   : > { %v1285_v4 = vsel %vm1141_vm0, %v1249_v51, 0.0  ;;  %v2691_v56 = vsub.f32 %v2486_v17, %v2583_v22  ;;  %v1252_v7 = vmul.f32 %v2677_v31, %v2677_v31  ;;  %v1287_v9 = vsel %vm1141_vm0, %v1250_v57, 0.0 }
 0x197   : > { %v1280_v50 = vadd.f32 %v1279_v49, %v1278_v44  ;;  %v2698_v59 = vsub.f32 %v2491_v21, %v2583_v22  ;;  %v1253_v11 = vmul.f32 %v2684_v36, %v2684_v36  ;;  %v1289_v12 = vsel %vm1141_vm0, %v1251_v3, 0.0 }
 0x198   : > { %v2705_v17 = vsub.f32 %v2498_v42, %v2583_v22  ;;  %v1254_v15 = vmul.f32 %v2691_v56, %v2691_v56  ;;  %v1291_v18 = vsel %vm1141_vm0, %v1252_v7, 0.0  ;;  %v2712_v21 = vsub.f32 %v2503_v45, %v2583_v22 }
 0x199   : > { %v1282_v53 = vadd.f32 %v1281_v52, %v1280_v50  ;;  %v1255_v20 = vmul.f32 %v2698_v59, %v2698_v59  ;;  %v1293_v33 = vsel %vm1141_vm0, %v1253_v11, 0.0  ;;  %v2719_v42 = vsub.f32 %v2510_v5, %v2583_v22 }
 0x19a   : > { %v1256_v48 = vmul.f32 %v2705_v17, %v2705_v17  ;;  %v1295_v0 = vsel %vm1141_vm0, %v1254_v15, 0.0  ;;  %v2726_v45 = vsub.f32 %v2513_v8, %v2583_v22  ;;  %v1257_v43 = vmul.f32 %v2712_v21, %v2712_v21 }
 0x19b   : > { %v1284_v1 = vadd.f32 %v1283_v58, %v1282_v53  ;;  %v1297_v44 = vsel %vm1141_vm0, %v1255_v20, 0.0  ;;  %v2733_v5 = vsub.f32 %v2520_v30, %v2583_v22  ;;  %v1258_v49 = vmul.f32 %v2719_v42, %v2719_v42 }
 0x19c   : > { %v1299_v50 = vsel %vm1141_vm0, %v1256_v48, 0.0  ;;  %v2740_v8 = vsub.f32 %v2525_v37, %v2583_v22  ;;  %v1259_v52 = vmul.f32 %v2726_v45, %v2726_v45  ;;  %v1301_v53 = vsel %vm1141_vm0, %v1257_v43, 0.0 }
 0x19d   : > { %v1286_v6 = vadd.f32 %v1285_v4, %v1284_v1  ;;  %v2747_v30 = vsub.f32 %v2532_v61, %v2583_v22  ;;  %v1260_v58 = vmul.f32 %v2733_v5, %v2733_v5  ;;  %v1303_v1 = vsel %vm1141_vm0, %v1258_v49, 0.0 }
 0x19e   : > { %v1231_v37 = vsub.f32 %v2537_v2, %v2583_v22  ;;  %v1261_v4 = vmul.f32 %v2740_v8, %v2740_v8  ;;  %v1264_v15 = vmul.f32 %v2587_v24, %v2587_v24 }
 0x19f   : > { %v1288_v10 = vadd.f32 %v1287_v9, %v1286_v6  ;;  %v1305_v6 = vsel %vm1141_vm0, %v1259_v52, 0.0  ;;  %v1262_v9 = vmul.f32 %v2747_v30, %v2747_v30  ;;  %v1307_v61 = vsel %vm1141_vm0, %v1260_v58, 0.0 }
 0x1a0   : > { %v1263_v11 = vmul.f32 %v1231_v37, %v1231_v37 }
 0x1a1   : > { %v1290_v13 = vadd.f32 %v1289_v12, %v1288_v10  ;;  %v1309_v12 = vsel %vm1141_vm0, %v1261_v4, 0.0  ;;  %v1311_v2 = vsel %vm1141_vm0, %v1262_v9, 0.0 }
 0x1a3   : > { %v1292_v19 = vadd.f32 %v1291_v18, %v1290_v13  ;;  %v1265_v18 = vmul.f32 %v2591_v34, %v2591_v34 }
 0x1a5   : > { %v1294_v40 = vadd.f32 %v1293_v33, %v1292_v19  ;;  %v1313_v19 = vsel %vm1141_vm0, %v1263_v11, 0.0  ;;  %v1266_v33 = vmul.f32 %v2595_v28, %v2595_v28 }
 0x1a7   : > { %v1296_v41 = vadd.f32 %v1295_v0, %v1294_v40  ;;  %v1315_v40 = vsel %vm1141_vm0, %v1264_v15, 0.0  ;;  %v1267_v0 = vmul.f32 %v2599_v32, %v2599_v32 }
 0x1a9   : > { %v1298_v14 = vadd.f32 %v1297_v44, %v1296_v41  ;;  %v1317_v41 = vsel %vm1141_vm0, %v1265_v18, 0.0  ;;  %v1268_v44 = vmul.f32 %v2603_v35, %v2603_v35 }
 0x1ab   : > { %v1300_v51 = vadd.f32 %v1299_v50, %v1298_v14  ;;  %v1319_v14 = vsel %vm1141_vm0, %v1266_v33, 0.0  ;;  %v1269_v50 = vmul.f32 %v2607_v25, %v2607_v25 }
 0x1ad   : > { %v1302_v57 = vadd.f32 %v1301_v53, %v1300_v51  ;;  %v1321_v51 = vsel %vm1141_vm0, %v1267_v0, 0.0  ;;  %v1270_v53 = vmul.f32 %v2610_v38, %v2610_v38 }
 0x1af   : > { %v1304_v3 = vadd.f32 %v1303_v1, %v1302_v57  ;;  %v1323_v57 = vsel %vm1141_vm0, %v1268_v44, 0.0  ;;  %v1271_v1 = vmul.f32 %v2613_v29, %v2613_v29 }
 0x1b1   : > { %v1306_v7 = vadd.f32 %v1305_v6, %v1304_v3  ;;  %v1325_v3 = vsel %vm1141_vm0, %v1269_v50, 0.0  ;;  %v1272_v6 = vmul.f32 %v2616_v55, %v2616_v55 }
 0x1b3   : > { %v1308_v10 = vadd.f32 %v1307_v61, %v1306_v7  ;;  %v1327_v7 = vsel %vm1141_vm0, %v1270_v53, 0.0  ;;  %v1273_v61 = vmul.f32 %v2619_v60, %v2619_v60 }
 0x1b5   : > { %v1310_v13 = vadd.f32 %v1309_v12, %v1308_v10  ;;  %v1329_v10 = vsel %vm1141_vm0, %v1271_v1, 0.0  ;;  %v1274_v12 = vmul.f32 %v2622_v39, %v2622_v39 }
 0x1b7   : > { %v1312_v22 = vadd.f32 %v1311_v2, %v1310_v13  ;;  %v1331_v13 = vsel %vm1141_vm0, %v1272_v6, 0.0  ;;  %v1275_v2 = vmul.f32 %v2625_v23, %v2625_v23 }
 0x1b9   : > { %v1314_v20 = vadd.f32 %v1313_v19, %v1312_v22  ;;  %v1333_v22 = vsel %vm1141_vm0, %v1273_v61, 0.0  ;;  %v1335_v19 = vsel %vm1141_vm0, %v1274_v12, 0.0  ;;  %v1337_v33 = vsel %vm1141_vm0, %v1275_v2, 0.0 }
 0x1bb   : > { %v1316_v48 = vadd.f32 %v1315_v40, %v1314_v20 }
 0x1bd   : > { %v1318_v43 = vadd.f32 %v1317_v41, %v1316_v48 }
 0x1bf   : > { %v1320_v49 = vadd.f32 %v1319_v14, %v1318_v43 }
 0x1c1   : > { %v1322_v52 = vadd.f32 %v1321_v51, %v1320_v49 }
 0x1c3   : > { %v1324_v58 = vadd.f32 %v1323_v57, %v1322_v52 }
 0x1c5   : > { %v1326_v4 = vadd.f32 %v1325_v3, %v1324_v58 }
 0x1c7   : > { %v1328_v9 = vadd.f32 %v1327_v7, %v1326_v4 }
 0x1c9   : > { %v1330_v11 = vadd.f32 %v1329_v10, %v1328_v9 }
 0x1cb   : > { %v1332_v15 = vadd.f32 %v1331_v13, %v1330_v11 }
 0x1cd   : > { %v1334_v18 = vadd.f32 %v1333_v22, %v1332_v15 }
 0x1cf   : > { %v1336_v20 = vadd.f32 %v1335_v19, %v1334_v18 }
 0x1d1   : > { %v1338_v40 = vadd.f32 %v1337_v33, %v1336_v20 }
 0x1d3   : > { %v1339_v48 = vrot.slane %v1338_v40, 4 }
 0x1d5   : > { %v1340_v0 = vadd.f32 %v1339_v48, %v1338_v40 }
 0x1d7   : > { %v1341_v41 = vrot.slane %v1340_v0, 2 }
 0x1d9   : > { %v1342_v43 = vadd.f32 %v1341_v41, %v1340_v0 }
 0x1db   : > { %v1343_v44 = vrot.slane %v1342_v43, 1 }
 0x1dd   : > { %v1344_v14 = vadd.f32 %v1343_v44, %v1342_v43 }
 0x1df   : > { %v1345_v49 = vmul.f32 0.00390625, %v1344_v14 }
 0x1e1   : > { %v1346_v50 = vadd.f32 1e-05, %v1345_v49 }
 0x1e3   : > { %2226 = vrsqrt.f32 %v1346_v50 }
 0x1ed   : > { %v2227_v51 = vpop.eup %2226 }
 0x1ee   : > { %v2800_v52 = vmul.f32 %v2227_v51, %v2740_v8  ;;  %v2803_v53 = vmul.f32 %v2227_v51, %v2747_v30  ;;  %v2805_v57 = vmul.f32 %v2227_v51, %v1231_v37  ;;  %v2808_v58 = vmul.f32 %v2227_v51, %v2587_v24 }
 0x1ef   : > { %v2811_v1 = vmul.f32 %v2227_v51, %v2591_v34  ;;  %v2814_v3 = vmul.f32 %v2227_v51, %v2595_v28  ;;  %v2817_v4 = vmul.f32 %v2227_v51, %v2599_v32  ;;  %v2820_v8 = vmul.f32 %v2227_v51, %v2603_v35 }
 0x1f0   : > { %v2823_v30 = vmul.f32 %v2227_v51, %v2607_v25  ;;  %v2826_v37 = vmul.f32 %v2227_v51, %v2610_v38  ;;  %v2829_v24 = vmul.f32 %v2227_v51, %v2613_v29  ;;  %v2832_v34 = vmul.f32 %v2227_v51, %v2616_v55 }
 0x1f1   : > { %v2835_v28 = vmul.f32 %v2227_v51, %v2619_v60  ;;  %v2838_v32 = vmul.f32 %v2227_v51, %v2622_v39  ;;  %v2841_v35 = vmul.f32 %v2227_v51, %v2625_v23  ;;  %v1348_v25 = vmul.f32 %v2227_v51, %v2629_v27 }
 0x1f2   : > { %v1349_v38 = vmul.f32 %v2227_v51, %v2633_v54  ;;  %v2846_v6 = vmul.f32 %v2227_v51, %v2637_v63  ;;  %v2849_v29 = vmul.f32 %v2227_v51, %v2641_v26  ;;  %v2852_v55 = vmul.f32 %v2227_v51, %v2649_v46 }
 0x1f3   : > { %v2855_v60 = vmul.f32 %v2227_v51, %v2655_v62  ;;  %v2858_v39 = vmul.f32 %v2227_v51, %v2663_v47  ;;  %v2861_v23 = vmul.f32 %v2227_v51, %v2670_v16  ;;  %v2864_v27 = vmul.f32 %v2227_v51, %v2677_v31 }
 0x1f4   : > { %v2867_v54 = vmul.f32 %v2227_v51, %v2684_v36  ;;  %v2870_v63 = vmul.f32 %v2227_v51, %v2691_v56  ;;  %v2873_v26 = vmul.f32 %v2227_v51, %v2698_v59  ;;  %v2876_v46 = vmul.f32 %v2227_v51, %v2705_v17 }
 0x1f5   : > { %v2879_v62 = vmul.f32 %v2227_v51, %v2712_v21  ;;  %v2882_v47 = vmul.f32 %v2227_v51, %v2719_v42  ;;  %v2885_v16 = vmul.f32 %v2227_v51, %v2726_v45  ;;  %v2888_v31 = vmul.f32 %v2227_v51, %v2733_v5 }
 0x1f6   : > { %vm1380_vm1 = vcmp.ge.f32.partialorder %v1348_v25, 0.0  ;;  %vm1381_vm2 = vcmp.ge.f32.partialorder %v1349_v38, 0.0  ;;  %vm1382_vm3 = vcmp.ge.f32.partialorder %v2846_v6, 0.0  ;;  %vm1383_vm4 = vcmp.ge.f32.partialorder %v2849_v29, 0.0 }
 0x1f7   : > { %vm1384_vm5 = vcmp.ge.f32.partialorder %v2852_v55, 0.0  ;;  %vm1385_vm6 = vcmp.ge.f32.partialorder %v2855_v60, 0.0  ;;  %vm1386_vm7 = vcmp.ge.f32.partialorder %v2858_v39, 0.0  ;;  %vm1387_vm8 = vcmp.ge.f32.partialorder %v2861_v23, 0.0 }
 0x1f8   : > { %vm1390_vm11 = vcmp.ge.f32.partialorder %v2870_v63, 0.0  ;;  %v1412_v36 = vmul.f32 0.2, %v1348_v25  ;;  %v1413_v56 = vmul.f32 0.2, %v1349_v38  ;;  %vm1395_vm0 = vcmp.ge.f32.partialorder %v2885_v16, 0.0 }
 0x1f9   : > { %v1414_v59 = vmul.f32 0.2, %v2846_v6  ;;  %v1415_v17 = vmul.f32 0.2, %v2849_v29  ;;  %v1416_v21 = vmul.f32 0.2, %v2852_v55 }
 0x1fa   : > { %v1417_v42 = vmul.f32 0.2, %v2855_v60  ;;  %vm1400_vm12 = vcmp.ge.f32.partialorder %v2808_v58, 0.0  ;;  %v1418_v45 = vmul.f32 0.2, %v2858_v39  ;;  %v2918_v9 = vsel %vm1380_vm1, %v1348_v25, %v1412_v36 }
 0x1fb   : > { %v1419_v5 = vmul.f32 0.2, %v2861_v23  ;;  %v1420_v7 = vmul.f32 0.2, %v2864_v27  ;;  %vm1404_vm14 = vcmp.ge.f32.partialorder %v2820_v8, 0.0  ;;  %vm1405_vm13 = vcmp.ge.f32.partialorder %v2823_v30, 0.0 }
 0x1fc   : > { %v1421_v61 = vmul.f32 0.2, %v2867_v54  ;;  %v1422_v10 = vmul.f32 0.2, %v2870_v63  ;;  %v1423_v11 = vmul.f32 0.2, %v2873_v26  ;;  %v2928_v12 = vsel %vm1381_vm2, %v1349_v38, %v1413_v56 }
 0x1fd   : > { %vm1407_vm15 = vcmp.ge.f32.partialorder %v2829_v24, 0.0  ;;  %vm1408_vm10 = vcmp.ge.f32.partialorder %v2832_v34, 0.0  ;;  %vm1409_vm9 = vcmp.ge.f32.partialorder %v2835_v28, 0.0  ;;  %v1424_v13 = vmul.f32 0.2, %v2876_v46 }
 0x1fe   : > { %v1425_v15 = vmul.f32 0.2, %v2879_v62  ;;  %v1426_v2 = vmul.f32 0.2, %v2882_v47  ;;  %v2940_v22 = vsel %vm1382_vm3, %v2846_v6, %v1414_v59  ;;  %vm1410_vm2 = vcmp.ge.f32.partialorder %v2838_v32, 0.0 }
 0x1ff   : > { %vm1411_vm1 = vcmp.ge.f32.partialorder %v2841_v35, 0.0  ;;  %v1427_v18 = vmul.f32 0.2, %v2885_v16  ;;  %v1428_v19 = vmul.f32 0.2, %v2888_v31  ;;  %v2950_v33 = vsel %vm1383_vm4, %v2849_v29, %v1415_v17 }
 0x200   : > { %v1429_v20 = vmul.f32 0.2, %v2800_v52  ;;  %v1430_v40 = vmul.f32 0.2, %v2803_v53  ;;  %v1431_v48 = vmul.f32 0.2, %v2805_v57  ;;  %v1448_v41 = vsel %vm1384_vm5, %v2852_v55, %v1416_v21 }
 0x201   : > { %v1432_v0 = vmul.f32 0.2, %v2808_v58  ;;  %v1433_v43 = vmul.f32 0.2, %v2811_v1  ;;  %v1434_v44 = vmul.f32 0.2, %v2814_v3  ;;  %v1449_v49 = vsel %vm1385_vm6, %v2855_v60, %v1417_v42 }
 0x202   : > { %v1435_v14 = vmul.f32 0.2, %v2817_v4  ;;  %vm1604_vm3 = vcmask 519168   ;;  %v1436_v50 = vmul.f32 0.2, %v2820_v8  ;;  %v1450_v38 = vsel %vm1386_vm7, %v2858_v39, %v1418_v45 }
 0x203   : > { %v1437_v51 = vmul.f32 0.2, %v2823_v30  ;;  %v1438_v25 = vmul.f32 0.2, %v2826_v37  ;;  %v1439_v6 = vmul.f32 0.2, %v2829_v24  ;;  %v1451_v60 = vsel %vm1387_vm8, %v2861_v23, %v1419_v5 }
 0x204   : > { %v1440_v29 = vmul.f32 0.2, %v2832_v34  ;;  %v1441_v55 = vmul.f32 0.2, %v2835_v28  ;;  %v1442_v36 = vmul.f32 0.2, %v2838_v32  ;;  %v1454_v17 = vsel %vm1390_vm11, %v2870_v63, %v1422_v10 }
 0x205   : > { %v1443_v56 = vmul.f32 0.2, %v2841_v35  ;;  %vm3191_vm4 = vcmp.ge.f32.partialorder %v2864_v27, 0.0  ;;  %vm3192_vm5 = vcmp.ge.f32.partialorder %v2867_v54, 0.0  ;;  %vm3193_vm6 = vcmp.ge.f32.partialorder %v2873_v26, 0.0 }
 0x206   : > { %v1452_v59 = vsel %vm3191_vm4, %v2864_v27, %v1420_v7  ;;  %v1453_v39 = vsel %vm3192_vm5, %v2867_v54, %v1421_v61  ;;  %v1455_v23 = vsel %vm3193_vm6, %v2873_v26, %v1423_v11  ;;  %vm3194_vm7 = vcmp.ge.f32.partialorder %v2876_v46, 0.0 }
 0x207   : > { %v1456_v21 = vsel %vm3194_vm7, %v2876_v46, %v1424_v13  ;;  %vm3195_vm8 = vcmp.ge.f32.partialorder %v2879_v62, 0.0  ;;  %vm3196_vm4 = vcmp.ge.f32.partialorder %v2882_v47, 0.0  ;;  %v1459_v63 = vsel %vm1395_vm0, %v2885_v16, %v1427_v18 }
 0x208   : > { %v1457_v27 = vsel %vm3195_vm8, %v2879_v62, %v1425_v15  ;;  %v1458_v54 = vsel %vm3196_vm4, %v2882_v47, %v1426_v2  ;;  %vm3197_vm11 = vcmp.ge.f32.partialorder %v2888_v31, 0.0  ;;  %vm3198_vm5 = vcmp.ge.f32.partialorder %v2800_v52, 0.0 }
 0x209   : > { %v1460_v26 = vsel %vm3197_vm11, %v2888_v31, %v1428_v19  ;;  %v1461_v46 = vsel %vm3198_vm5, %v2800_v52, %v1429_v20  ;;  %vm3199_vm6 = vcmp.ge.f32.partialorder %v2803_v53, 0.0  ;;  %vm3200_vm7 = vcmp.ge.f32.partialorder %v2805_v57, 0.0 }
 0x20a   : > { %v3012_v62 = vsel %vm3199_vm6, %v2803_v53, %v1430_v40  ;;  %v3017_v47 = vsel %vm3200_vm7, %v2805_v57, %v1431_v48  ;;  %v3022_v16 = vsel %vm1400_vm12, %v2808_v58, %v1432_v0  ;;  %vm3201_vm0 = vcmp.ge.f32.partialorder %v2811_v1, 0.0 }
 0x20b   : > { %v3027_v31 = vsel %vm3201_vm0, %v2811_v1, %v1433_v43  ;;  %vm3202_vm8 = vcmp.ge.f32.partialorder %v2814_v3, 0.0  ;;  %vm3203_vm4 = vcmp.ge.f32.partialorder %v2817_v4, 0.0  ;;  %v3042_v57 = vsel %vm1404_vm14, %v2820_v8, %v1436_v50 }
 0x20c   : > { %v3032_v52 = vsel %vm3202_vm8, %v2814_v3, %v1434_v44  ;;  %v3037_v53 = vsel %vm3203_vm4, %v2817_v4, %v1435_v14  ;;  %v3047_v58 = vsel %vm1405_vm13, %v2823_v30, %v1437_v51  ;;  %vm3204_vm12 = vcmp.ge.f32.partialorder %v2826_v37, 0.0 }
 0x20d   : > { %v3057_v1 = vsel %vm3204_vm12, %v2826_v37, %v1438_v25  ;;  %v3062_v3 = vsel %vm1407_vm15, %v2829_v24, %v1439_v6  ;;  %v3067_v4 = vsel %vm1408_vm10, %v2832_v34, %v1440_v29  ;;  %v3072_v8 = vsel %vm1409_vm9, %v2835_v28, %v1441_v55 }
 0x20e   : > { %v3077_v30 = vsel %vm1410_vm2, %v2838_v32, %v1442_v36  ;;  %v3082_v37 = vsel %vm1411_vm1, %v2841_v35, %v1443_v56  ;;  %v1834_v24 = vpack.c.bf16 %v2918_v9, %v2918_v9  ;;  %v1835_v34 = vpack.c.bf16 %v2928_v12, %v2928_v12 }
 0x20f   : > { %v1836_v28 = vpack.c.bf16 %v2940_v22, %v2940_v22  ;;  %v1837_v32 = vpack.c.bf16 %v2950_v33, %v2950_v33  ;;  %v1838_v42 = vpack.c.bf16 %v1448_v41, %v1448_v41  ;;  %v1839_v45 = vpack.c.bf16 %v1449_v49, %v1449_v49 }
 0x210   : > { %v1840_v35 = vpack.c.bf16 %v1450_v38, %v1450_v38  ;;  %v1841_v5 = vpack.c.bf16 %v1451_v60, %v1451_v60  ;;  %v1842_v7 = vpack.c.bf16 %v1452_v59, %v1452_v59  ;;  %v1843_v9 = vpack.c.bf16 %v1453_v39, %v1453_v39  ;;  %1605 = vst.msk [vmem:[%s3052_s9] sm:$0xf] %vm1604_vm3, %v1834_v24 }
 0x211   : > { %1606 = vst.msk [vmem:[%s3052_s9 + $0x4] sm:$0xf] %vm1604_vm3, %v1835_v34  ;;  %v1844_v61 = vpack.c.bf16 %v1454_v17, %v1454_v17  ;;  %v1845_v10 = vpack.c.bf16 %v1455_v23, %v1455_v23  ;;  %v1846_v11 = vpack.c.bf16 %v1456_v21, %v1456_v21  ;;  %v1847_v12 = vpack.c.bf16 %v1457_v27, %v1457_v27 }
 0x212   : > { %1607 = vst.msk [vmem:[%s3052_s9 + $0x8] sm:$0xf] %vm1604_vm3, %v1836_v28  ;;  %1608 = vst.msk [vmem:[%s3052_s9 + $0xc] sm:$0xf] %vm1604_vm3, %v1837_v32  ;;  %v1848_v13 = vpack.c.bf16 %v1458_v54, %v1458_v54  ;;  %v1849_v15 = vpack.c.bf16 %v1459_v63, %v1459_v63  ;;  %v1850_v2 = vpack.c.bf16 %v1460_v26, %v1460_v26 }
 0x213   : > { %1609 = vst.msk [vmem:[%s3052_s9 + $0x10] sm:$0xf] %vm1604_vm3, %v1838_v42  ;;  %1610 = vst.msk [vmem:[%s3052_s9 + $0x14] sm:$0xf] %vm1604_vm3, %v1839_v45  ;;  %v1851_v22 = vpack.c.bf16 %v1461_v46, %v1461_v46  ;;  %v1852_v18 = vpack.c.bf16 %v3012_v62, %v3012_v62  ;;  %v1853_v19 = vpack.c.bf16 %v3017_v47, %v3017_v47 }
 0x214   : > { %1611 = vst.msk [vmem:[%s3052_s9 + $0x18] sm:$0xf] %vm1604_vm3, %v1840_v35  ;;  %1612 = vst.msk [vmem:[%s3052_s9 + $0x1c] sm:$0xf] %vm1604_vm3, %v1841_v5  ;;  %v1854_v20 = vpack.c.bf16 %v3022_v16, %v3022_v16  ;;  %v1855_v33 = vpack.c.bf16 %v3027_v31, %v3027_v31  ;;  %v1856_v40 = vpack.c.bf16 %v3032_v52, %v3032_v52 }
 0x215   : > { %1613 = vst.msk [vmem:[%s3052_s9 + $0x20] sm:$0xf] %vm1604_vm3, %v1842_v7  ;;  %1614 = vst.msk [vmem:[%s3052_s9 + $0x24] sm:$0xf] %vm1604_vm3, %v1843_v9  ;;  %v1857_v48 = vpack.c.bf16 %v3037_v53, %v3037_v53  ;;  %v1858_v0 = vpack.c.bf16 %v3042_v57, %v3042_v57  ;;  %v1859_v41 = vpack.c.bf16 %v3047_v58, %v3047_v58 }
 0x216   : > { %1615 = vst.msk [vmem:[%s3052_s9 + $0x28] sm:$0xf] %vm1604_vm3, %v1844_v61  ;;  %1616 = vst.msk [vmem:[%s3052_s9 + $0x2c] sm:$0xf] %vm1604_vm3, %v1845_v10  ;;  %v1860_v43 = vpack.c.bf16 %v3057_v1, %v3057_v1  ;;  %v1861_v44 = vpack.c.bf16 %v3062_v3, %v3062_v3  ;;  %v1862_v14 = vpack.c.bf16 %v3067_v4, %v3067_v4 }
 0x217   : > { %1617 = vst.msk [vmem:[%s3052_s9 + $0x30] sm:$0xf] %vm1604_vm3, %v1846_v11  ;;  %1618 = vst.msk [vmem:[%s3052_s9 + $0x34] sm:$0xf] %vm1604_vm3, %v1847_v12  ;;  %v1863_v49 = vpack.c.bf16 %v3072_v8, %v3072_v8  ;;  %v1864_v50 = vpack.c.bf16 %v3077_v30, %v3077_v30  ;;  %v1865_v51 = vpack.c.bf16 %v3082_v37, %v3082_v37 }
 0x218   : > { %1619 = vst.msk [vmem:[%s3052_s9 + $0x38] sm:$0xf] %vm1604_vm3, %v1848_v13  ;;  %1620 = vst.msk [vmem:[%s3052_s9 + $0x3c] sm:$0xf] %vm1604_vm3, %v1849_v15 }
 0x219   : > { %1621 = vst.msk [vmem:[%s3052_s9 + $0x40] sm:$0xf] %vm1604_vm3, %v1850_v2  ;;  %1622 = vst.msk [vmem:[%s3052_s9 + $0x44] sm:$0xf] %vm1604_vm3, %v1851_v22 }
 0x21a   : > { %1623 = vst.msk [vmem:[%s3052_s9 + $0x48] sm:$0xf] %vm1604_vm3, %v1852_v18  ;;  %1624 = vst.msk [vmem:[%s3052_s9 + $0x4c] sm:$0xf] %vm1604_vm3, %v1853_v19 }
 0x21b   : > { %1625 = vst.msk [vmem:[%s3052_s9 + $0x50] sm:$0xf] %vm1604_vm3, %v1854_v20  ;;  %1626 = vst.msk [vmem:[%s3052_s9 + $0x54] sm:$0xf] %vm1604_vm3, %v1855_v33 }
 0x21c   : > { %1627 = vst.msk [vmem:[%s3052_s9 + $0x58] sm:$0xf] %vm1604_vm3, %v1856_v40  ;;  %1628 = vst.msk [vmem:[%s3052_s9 + $0x5c] sm:$0xf] %vm1604_vm3, %v1857_v48 }
 0x21d   : > { %1629 = vst.msk [vmem:[%s3052_s9 + $0x60] sm:$0xf] %vm1604_vm3, %v1858_v0  ;;  %1630 = vst.msk [vmem:[%s3052_s9 + $0x64] sm:$0xf] %vm1604_vm3, %v1859_v41 }
 0x21e   : > { %1631 = vst.msk [vmem:[%s3052_s9 + $0x68] sm:$0xf] %vm1604_vm3, %v1860_v43  ;;  %1632 = vst.msk [vmem:[%s3052_s9 + $0x6c] sm:$0xf] %vm1604_vm3, %v1861_v44 }
 0x21f   : > { %1633 = vst.msk [vmem:[%s3052_s9 + $0x70] sm:$0xf] %vm1604_vm3, %v1862_v14  ;;  %1634 = vst.msk [vmem:[%s3052_s9 + $0x74] sm:$0xf] %vm1604_vm3, %v1863_v49 }
 0x220   : > { %1635 = vst.msk [vmem:[%s3052_s9 + $0x78] sm:$0xf] %vm1604_vm3, %v1864_v50  ;;  %1636 = vst.msk [vmem:[%s3052_s9 + $0x7c] sm:$0xf] %vm1604_vm3, %v1865_v51 }
 0x221 PF: > { %s13_s12 = sadd.s32 1, %s2234_s12  }
 0x222   : > { %p10_p4 = scmp.ge.s32.totalorder %s13_s12, 4  }
 0x224   :  { %12 = sbr.rel (!%p10_p4) target bundleno = 1 (0x1), region = 62 }

// kernel: forward.8
= control target key start
LH: loop header
LB: loop body
LE: loop exit
PB: predicated region body
PF: predicated region fallthrough
CT: control target
= control target key end

     0   :  { %s1727_s12 = smov 0   ;;  %s2015_s0 = inlined_call_operand.vmem [shape: bf16[2,64,1024], index: 0, kind: input, shape index: {}]   ;;  %s2016_s1 = inlined_call_operand.vmem [shape: bf16[1024,128], index: 1, kind: input, shape index: {}]   ;;  %s2017_s2 = inlined_call_operand.vmem [shape: f32[1,128], index: 2, kind: input, shape index: {}]   ;;  %s2018_s3 = inlined_call_operand.vmem [shape: bf16[2,64,128], index: 3, kind: output, shape index: {}]  }
   0x1 LB: > { %s1316_s13 = sadd.s32 4294967295, %s1705_s12   ;;  %p1320_p0 = scmp.ge.s32.totalorder %s1705_s12, 1  ;;  %s1705_s12 = sphi %s1727_s12, %s13_s12  }
   0x2   : > { %p137_p1 = scmp.lt.s32.totalorder %s1705_s12, 3 }
   0x4   : > { %p138_p2 = pnand %p1320_p0, %p137_p1 }
   0x5   : > { %v1633_v0 = vld [vmem:[%s2016_s1 + $0x40] sm:$0xff] (!%p138_p2)   ;;  %v1637_v4 = vld [vmem:[%s2016_s1 + $0x48] sm:$0xff] (!%p138_p2)   ;;  %v1641_v8 = vld [vmem:[%s2016_s1 + $0x50] sm:$0xff] (!%p138_p2)   ;;  %p161_p3 = scmp.lt.s32.totalorder (!%p138_p2), %s1316_s13, 1 }
   0x6   : > { %141 = sbr.rel (%p138_p2) target bundleno = 389 (0x185), region = 32  ;;  %v1634_v1 = vld [vmem:[%s2016_s1 + $0xc0] sm:$0xff] (!%p138_p2)   ;;  %1465 = vmatprep.subr.bf16.mxu0 (!%p138_p2), %v1633_v0  ;;  %v1638_v5 = vld [vmem:[%s2016_s1 + $0xc8] sm:$0xff] (!%p138_p2)   ;;  %v1642_v9 = vld [vmem:[%s2016_s1 + $0xd0] sm:$0xff] (!%p138_p2)  }
   0x7   : > { %v1635_v2 = vld [vmem:[%s2016_s1] sm:$0xff] (!%p138_p2)   ;;  %1505 = vmatprep.subr.bf16.mxu1 (!%p138_p2), %v1634_v1  ;;  %v1639_v6 = vld [vmem:[%s2016_s1 + $0x8] sm:$0xff] (!%p138_p2)   ;;  %v1643_v10 = vld [vmem:[%s2016_s1 + $0x10] sm:$0xff] (!%p138_p2)  }
   0x8   : > { %v1636_v3 = vld [vmem:[%s2016_s1 + $0x80] sm:$0xff] (!%p138_p2)   ;;  %1466 = vmatpush3.bf16.msra.mxu0 (!%p138_p2), %v1635_v2  ;;  %v1640_v7 = vld [vmem:[%s2016_s1 + $0x88] sm:$0xff] (!%p138_p2)   ;;  %v1644_v11 = vld [vmem:[%s2016_s1 + $0x90] sm:$0xff] (!%p138_p2)  }
   0x9   : > { %1506 = vmatpush3.bf16.msra.mxu1 (!%p138_p2), %v1636_v3  ;;  %1467 = vmatprep.subr.bf16.mxu0 (!%p138_p2), %v1637_v4  ;;  %v1645_v12 = vld [vmem:[%s2016_s1 + $0x58] sm:$0xff] (!%p138_p2)   ;;  %v1649_v16 = vld [vmem:[%s2016_s1 + $0x60] sm:$0xff] (!%p138_p2)   ;;  %v1653_v20 = vld [vmem:[%s2016_s1 + $0x68] sm:$0xff] (!%p138_p2)  }
   0xa   : > { %1507 = vmatprep.subr.bf16.mxu1 (!%p138_p2), %v1638_v5  ;;  %v1646_v13 = vld [vmem:[%s2016_s1 + $0xd8] sm:$0xff] (!%p138_p2)   ;;  %v1650_v17 = vld [vmem:[%s2016_s1 + $0xe0] sm:$0xff] (!%p138_p2)   ;;  %v1654_v21 = vld [vmem:[%s2016_s1 + $0xe8] sm:$0xff] (!%p138_p2)  }
   0xb   : > { %v1647_v14 = vld [vmem:[%s2016_s1 + $0x18] sm:$0xff] (!%p138_p2)   ;;  %v1651_v18 = vld [vmem:[%s2016_s1 + $0x20] sm:$0xff] (!%p138_p2)   ;;  %v1655_v22 = vld [vmem:[%s2016_s1 + $0x28] sm:$0xff] (!%p138_p2)  }
   0xc   : > { %1468 = vmatpush3.bf16.msra.mxu0 (!%p138_p2), %v1639_v6  ;;  %v1648_v15 = vld [vmem:[%s2016_s1 + $0x98] sm:$0xff] (!%p138_p2)   ;;  %v1652_v19 = vld [vmem:[%s2016_s1 + $0xa0] sm:$0xff] (!%p138_p2)   ;;  %v1656_v23 = vld [vmem:[%s2016_s1 + $0xa8] sm:$0xff] (!%p138_p2)  }
   0xd   : > { %1508 = vmatpush3.bf16.msra.mxu1 %v1640_v7  ;;  %1469 = vmatprep.subr.bf16.mxu0 %v1641_v8  ;;  %s2020_s13 = smov (!%p161_p3, %s1316_s13), 1  ;;  %v1657_v24 = vld [vmem:[%s2016_s1 + $0x70] sm:$0xff]   ;;  %v1661_v28 = vld [vmem:[%s2016_s1 + $0x78] sm:$0xff]   ;;  %v1665_v40 = vld [vmem:[%s2016_s1 + $0x140] sm:$0xff]  }
   0xe   : > { %1509 = vmatprep.subr.bf16.mxu1 %v1642_v9  ;;  %v1658_v25 = vld [vmem:[%s2016_s1 + $0xf0] sm:$0xff]   ;;  %s1432_s18 = sshll.u32 %s2020_s13, 8  ;;  %v1662_v29 = vld [vmem:[%s2016_s1 + $0xf8] sm:$0xff]   ;;  %v1666_v41 = vld [vmem:[%s2016_s1 + $0x1c0] sm:$0xff]  }
   0xf   : > { %v1659_v26 = vld [vmem:[%s2016_s1 + $0x30] sm:$0xff]   ;;  %s1835_s27 = scalar_lea.vmem %s2015_s0, %s1432_s18  ;;  %v1663_v30 = vld [vmem:[%s2016_s1 + $0x38] sm:$0xff]   ;;  %v1667_v42 = vld [vmem:[%s2016_s1 + $0x100] sm:$0xff]  }
  0x10   : > { %1470 = vmatpush3.bf16.msra.mxu0 %v1643_v10  ;;  %v1660_v27 = vld [vmem:[%s2016_s1 + $0xb0] sm:$0xff]   ;;  %v1664_v31 = vld [vmem:[%s2016_s1 + $0xb8] sm:$0xff]   ;;  %v172_v32 = vld [vmem:[%s1835_s27] sm:$0xff] }
  0x11   : > { %1510 = vmatpush3.bf16.msra.mxu1 %v1644_v11  ;;  %1471 = vmatprep.subr.bf16.mxu0 %v1645_v12  ;;  %v176_v33 = vld [vmem:[%s1835_s27 + $0x20] sm:$0xff]  ;;  %v173_v34 = vld [vmem:[%s1835_s27 + $0x8] sm:$0xff]  ;;  %v1673_v56 = vld [vmem:[%s2016_s1 + $0x150] sm:$0xff]  }
  0x12   : > { %1511 = vmatprep.subr.bf16.mxu1 %v1646_v13  ;;  %v1326_v35 = vcombine.low %v172_v32, %v176_v33  ;;  %v1327_v36 = vcombine.high %v172_v32, %v176_v33  ;;  %v177_v37 = vld [vmem:[%s1835_s27 + $0x28] sm:$0xff]  ;;  %v1668_v43 = vld [vmem:[%s2016_s1 + $0x180] sm:$0xff]   ;;  %v1674_v57 = vld [vmem:[%s2016_s1 + $0x1d0] sm:$0xff]  }
  0x13   : > { %v1328_v38 = vcombine.low %v173_v34, %v177_v37  ;;  %v1329_v39 = vcombine.high %v173_v34, %v177_v37  ;;  %v1669_v44 = vld [vmem:[%s2016_s1 + $0x148] sm:$0xff]   ;;  %v180_v48 = vld [vmem:[%s1835_s27 + $0x40] sm:$0xff]  ;;  %v1675_v58 = vld [vmem:[%s2016_s1 + $0x110] sm:$0xff]  }
  0x14   : > { %1472 = vmatpush3.bf16.msra.mxu0 %v1647_v14  ;;  %915 = vmatprep.mubr.bf16.mxu0 %v1327_v36  ;;  %v1670_v45 = vld [vmem:[%s2016_s1 + $0x1c8] sm:$0xff]   ;;  %v184_v49 = vld [vmem:[%s1835_s27 + $0x60] sm:$0xff]  ;;  %v1676_v59 = vld [vmem:[%s2016_s1 + $0x190] sm:$0xff]  }
  0x15   : > { %1512 = vmatpush3.bf16.msra.mxu1 %v1648_v15  ;;  %1473 = vmatprep.subr.bf16.mxu0 %v1649_v16  ;;  %v1671_v46 = vld [vmem:[%s2016_s1 + $0x108] sm:$0xff]   ;;  %v1335_v50 = vcombine.high %v180_v48, %v184_v49  ;;  %v1334_v53 = vcombine.low %v180_v48, %v184_v49  ;;  %v1677_v60 = vld [vmem:[%s2016_s1 + $0x158] sm:$0xff]   ;;  %v188_v0 = vld [vmem:[%s1835_s27 + $0x80] sm:$0xff] }
  0x16   : > { %1513 = vmatprep.subr.bf16.mxu1 %v1650_v17  ;;  %980 = vmatprep.mubr.bf16.mxu1 %v1329_v39  ;;  %v1672_v47 = vld [vmem:[%s2016_s1 + $0x188] sm:$0xff]   ;;  %v1678_v61 = vld [vmem:[%s2016_s1 + $0x1d8] sm:$0xff]   ;;  %v192_v1 = vld [vmem:[%s1835_s27 + $0xa0] sm:$0xff] }
  0x17   : > { %v181_v51 = vld [vmem:[%s1835_s27 + $0x48] sm:$0xff]  ;;  %v1679_v62 = vld [vmem:[%s2016_s1 + $0x118] sm:$0xff]   ;;  %v1343_v4 = vcombine.high %v188_v0, %v192_v1  ;;  %v1342_v6 = vcombine.low %v188_v0, %v192_v1  ;;  %v1681_v8 = vld [vmem:[%s2016_s1 + $0x160] sm:$0xff]  }
  0x18   : > { %1474 = vmatpush3.bf16.msra.mxu0 %v1651_v18  ;;  %v185_v52 = vld [vmem:[%s1835_s27 + $0x68] sm:$0xff]  ;;  %v1680_v63 = vld [vmem:[%s2016_s1 + $0x198] sm:$0xff]   ;;  %v1682_v9 = vld [vmem:[%s2016_s1 + $0x1e0] sm:$0xff]  }
  0x19   : > { %1514 = vmatpush3.bf16.msra.mxu1 %v1652_v19  ;;  %1475 = vmatprep.subr.bf16.mxu0 %v1653_v20  ;;  %v1337_v54 = vcombine.high %v181_v51, %v185_v52  ;;  %v1336_v55 = vcombine.low %v181_v51, %v185_v52  ;;  %v189_v2 = vld [vmem:[%s1835_s27 + $0x88] sm:$0xff]  ;;  %v1683_v10 = vld [vmem:[%s2016_s1 + $0x120] sm:$0xff]   ;;  %v174_v32 = vld [vmem:[%s1835_s27 + $0x10] sm:$0xff] }
  0x1a   : > { %1515 = vmatprep.subr.bf16.mxu1 %v1654_v21  ;;  %v193_v3 = vld [vmem:[%s1835_s27 + $0xa8] sm:$0xff]  ;;  %v1684_v11 = vld [vmem:[%s2016_s1 + $0x1a0] sm:$0xff]   ;;  %v178_v33 = vld [vmem:[%s1835_s27 + $0x30] sm:$0xff] }
  0x1b   : > { %v1345_v5 = vcombine.high %v189_v2, %v193_v3  ;;  %v1344_v7 = vcombine.low %v189_v2, %v193_v3  ;;  %v1685_v12 = vld [vmem:[%s2016_s1 + $0x168] sm:$0xff]   ;;  %v196_v16 = vld [vmem:[%s1835_s27 + $0xc0] sm:$0xff]  ;;  %v1330_v34 = vcombine.low %v174_v32, %v178_v33  ;;  %v175_v36 = vld [vmem:[%s1835_s27 + $0x18] sm:$0xff] }
  0x1c   : > { %1476 = vmatpush3.bf16.msra.mxu0 %v1655_v22  ;;  %v1686_v13 = vld [vmem:[%s2016_s1 + $0x1e8] sm:$0xff]   ;;  %v200_v17 = vld [vmem:[%s1835_s27 + $0xe0] sm:$0xff]  ;;  %v179_v37 = vld [vmem:[%s1835_s27 + $0x38] sm:$0xff] }
  0x1d   : > { %1516 = vmatpush3.bf16.msra.mxu1 %v1656_v23  ;;  %1477 = vmatprep.subr.bf16.mxu0 %v1657_v24  ;;  %v1687_v14 = vld [vmem:[%s2016_s1 + $0x128] sm:$0xff]   ;;  %v1351_v19 = vcombine.high %v196_v16, %v200_v17  ;;  %v1350_v21 = vcombine.low %v196_v16, %v200_v17  ;;  %v1689_v24 = vld [vmem:[%s2016_s1 + $0x170] sm:$0xff]   ;;  %v1332_v39 = vcombine.low %v175_v36, %v179_v37  ;;  %v191_v48 = vld [vmem:[%s1835_s27 + $0x98] sm:$0xff] }
  0x1e   : > { %1517 = vmatprep.subr.bf16.mxu1 %v1658_v25  ;;  %v1688_v15 = vld [vmem:[%s2016_s1 + $0x1a8] sm:$0xff]   ;;  %v1690_v25 = vld [vmem:[%s2016_s1 + $0x1f0] sm:$0xff]   ;;  %v195_v49 = vld [vmem:[%s1835_s27 + $0xb8] sm:$0xff] }
  0x1f   : > { %v197_v18 = vld [vmem:[%s1835_s27 + $0xc8] sm:$0xff]  ;;  %v1325_v2 = vld [vmem:[%s2017_s2] ss:$0 sm:$0xff] }
  0x20   : > { %1478 = vmatpush3.bf16.msra.mxu0 %v1659_v26  ;;  %v201_v20 = vld [vmem:[%s1835_s27 + $0xe8] sm:$0xff]  ;;  %v1691_v26 = vld [vmem:[%s2016_s1 + $0x130] sm:$0xff]  }
  0x21   : > { %1518 = vmatpush3.bf16.msra.mxu1 %v1660_v27  ;;  %1479 = vmatprep.subr.bf16.mxu0 %v1661_v28  ;;  %v1353_v22 = vcombine.high %v197_v18, %v201_v20  ;;  %v1352_v23 = vcombine.low %v197_v18, %v201_v20  ;;  %v1692_v27 = vld [vmem:[%s2016_s1 + $0x1b0] sm:$0xff]   ;;  %v1693_v28 = vld [vmem:[%s2016_s1 + $0x178] sm:$0xff]  }
  0x22   : > { %1519 = vmatprep.subr.bf16.mxu1 %v1662_v29  ;;  %v1694_v29 = vld [vmem:[%s2016_s1 + $0x1f8] sm:$0xff]  }
  0x24   : > { %1480 = vmatpush3.bf16.msra.mxu0 %v1663_v30  ;;  %v1695_v30 = vld [vmem:[%s2016_s1 + $0x138] sm:$0xff]  }
  0x25   : > { %1520 = vmatpush3.bf16.msra.mxu1 %v1664_v31  ;;  %1545 = vmatprep.subr.bf16.mxu0 %v1665_v40  ;;  %v1696_v31 = vld [vmem:[%s2016_s1 + $0x1b8] sm:$0xff]   ;;  %v1333_v40 = vcombine.high %v175_v36, %v179_v37 }
  0x26   : > { %1585 = vmatprep.subr.bf16.mxu1 %v1666_v41  ;;  %v186_v41 = vld [vmem:[%s1835_s27 + $0x70] sm:$0xff] }
  0x27   : > { %916 = vmatmul.mubr.bf16.vlgmr.msra.gmra.mrb[0].mxu0 %v1326_v35  ;;  %v1331_v35 = vcombine.high %v174_v32, %v178_v33 }
  0x28   : > { %981 = vmatmul.mubr.bf16.vlgmr.msra.gmra.mrb[0].mxu1 %v1328_v38  ;;  %1546 = vmatpush3.bf16.msra.mxu0 %v1667_v42  ;;  %v182_v38 = vld [vmem:[%s1835_s27 + $0x50] sm:$0xff]  ;;  %v183_v42 = vld [vmem:[%s1835_s27 + $0x58] sm:$0xff] }
  0x29   : > { %1586 = vmatpush3.bf16.msra.mxu1 %v1668_v43  ;;  %1547 = vmatprep.subr.bf16.mxu0 %v1669_v44  ;;  %v187_v43 = vld [vmem:[%s1835_s27 + $0x78] sm:$0xff]  ;;  %v1339_v44 = vcombine.high %v182_v38, %v186_v41 }
  0x2a   : > { %1587 = vmatprep.subr.bf16.mxu1 %v1670_v45  ;;  %923 = vmatprep.mubr.bf16.mxu0 %v1335_v50  ;;  %v1341_v45 = vcombine.high %v183_v42, %v187_v43  ;;  %v1338_v50 = vcombine.low %v182_v38, %v186_v41  ;;  %v1340_v51 = vcombine.low %v183_v42, %v187_v43 }
  0x2b   : > { %988 = vmatprep.mubr.bf16.mxu1 %v1337_v54  ;;  %v198_v54 = vld [vmem:[%s1835_s27 + $0xd0] sm:$0xff] }
  0x2c   : > { %1548 = vmatpush3.bf16.msra.mxu0 %v1671_v46  ;;  %v190_v46 = vld [vmem:[%s1835_s27 + $0x90] sm:$0xff] }
  0x2d   : > { %1588 = vmatpush3.bf16.msra.mxu1 %v1672_v47  ;;  %1549 = vmatprep.subr.bf16.mxu0 %v1673_v56  ;;  %v194_v47 = vld [vmem:[%s1835_s27 + $0xb0] sm:$0xff]  ;;  %v199_v56 = vld [vmem:[%s1835_s27 + $0xd8] sm:$0xff] }
  0x2e   : > { %1589 = vmatprep.subr.bf16.mxu1 %v1674_v57  ;;  %v1347_v52 = vcombine.high %v190_v46, %v194_v47  ;;  %v203_v57 = vld [vmem:[%s1835_s27 + $0xf8] sm:$0xff] }
  0x2f   : > { %924 = vmatmul.mubr.bf16.gmra.mrb[4].mxu0 %v1334_v53  ;;  %v1349_v53 = vcombine.high %v191_v48, %v195_v49 }
  0x30   : > { %989 = vmatmul.mubr.bf16.gmra.mrb[4].mxu1 %v1336_v55  ;;  %1550 = vmatpush3.bf16.msra.mxu0 %v1675_v58  ;;  %v202_v55 = vld [vmem:[%s1835_s27 + $0xf0] sm:$0xff]  ;;  %v1346_v58 = vcombine.low %v190_v46, %v194_v47  ;;  %s1433_s27 = sshll.u32 %s2020_s13, 5 }
  0x31   : > { %1590 = vmatpush3.bf16.msra.mxu1 %v1676_v59  ;;  %1551 = vmatprep.subr.bf16.mxu0 %v1677_v60  ;;  %v1348_v59 = vcombine.low %v191_v48, %v195_v49  ;;  %v1355_v60 = vcombine.high %v198_v54, %v202_v55  ;;  %s170_s13 = scalar_lea.vmem %s2018_s3, %s1433_s27 }
  0x32   : > { %1591 = vmatprep.subr.bf16.mxu1 %v1678_v61  ;;  %931 = vmatprep.mubr.bf16.mxu0 %v1343_v4  ;;  %v1357_v61 = vcombine.high %v199_v56, %v203_v57 }
  0x33   : > { %996 = vmatprep.mubr.bf16.mxu1 %v1345_v5 }
  0x34   : > { %1552 = vmatpush3.bf16.msra.mxu0 %v1679_v62  ;;  %v1354_v62 = vcombine.low %v198_v54, %v202_v55 }
  0x35   : > { %1592 = vmatpush3.bf16.msra.mxu1 %v1680_v63  ;;  %1553 = vmatprep.subr.bf16.mxu0 %v1681_v8  ;;  %v1356_v63 = vcombine.low %v199_v56, %v203_v57 }
  0x36   : > { %1593 = vmatprep.subr.bf16.mxu1 %v1682_v9 }
  0x37   : > { %932 = vmatmul.mubr.bf16.gmra.mrb[8].mxu0 %v1342_v6 }
  0x38   : > { %997 = vmatmul.mubr.bf16.gmra.mrb[8].mxu1 %v1344_v7  ;;  %1554 = vmatpush3.bf16.msra.mxu0 %v1683_v10 }
  0x39   : > { %1594 = vmatpush3.bf16.msra.mxu1 %v1684_v11  ;;  %1555 = vmatprep.subr.bf16.mxu0 %v1685_v12 }
  0x3a   : > { %1595 = vmatprep.subr.bf16.mxu1 %v1686_v13  ;;  %939 = vmatprep.mubr.bf16.mxu0 %v1351_v19 }
  0x3b   : > { %1004 = vmatprep.mubr.bf16.mxu1 %v1353_v22 }
  0x3c   : > { %1556 = vmatpush3.bf16.msra.mxu0 %v1687_v14 }
  0x3d   : > { %1596 = vmatpush3.bf16.msra.mxu1 %v1688_v15  ;;  %1557 = vmatprep.subr.bf16.mxu0 %v1689_v24 }
  0x3e   : > { %1597 = vmatprep.subr.bf16.mxu1 %v1690_v25 }
  0x3f   : > { %940 = vmatmul.mubr.bf16.gmra.mrb[12].mxu0 %v1350_v21 }
  0x40   : > { %1005 = vmatmul.mubr.bf16.gmra.mrb[12].mxu1 %v1352_v23  ;;  %1558 = vmatpush3.bf16.msra.mxu0 %v1691_v26 }
  0x41   : > { %1598 = vmatpush3.bf16.msra.mxu1 %v1692_v27  ;;  %1559 = vmatprep.subr.bf16.mxu0 %v1693_v28 }
  0x42   : > { %1599 = vmatprep.subr.bf16.mxu1 %v1694_v29  ;;  %1045 = vmatprep.mubr.bf16.mxu0 %v1331_v35 }
  0x43   : > { %1110 = vmatprep.mubr.bf16.mxu1 %v1333_v40 }
  0x44   : > { %1560 = vmatpush3.bf16.msra.mxu0 %v1695_v30 }
  0x45   : > { %1600 = vmatpush3.bf16.msra.mxu1 %v1696_v31 }
  0x47   : > { %1046 = vmatmul.mubr.bf16.vlgmr.msra.gmra.mrb[16].mxu0 %v1330_v34 }
  0x48   : > { %1111 = vmatmul.mubr.bf16.vlgmr.msra.gmra.mrb[16].mxu1 %v1332_v39  ;;  %1053 = vmatprep.mubr.bf16.mxu0 %v1339_v44 }
  0x49   : > { %1118 = vmatprep.mubr.bf16.mxu1 %v1341_v45 }
  0x4f   : > { %1054 = vmatmul.mubr.bf16.gmra.mrb[20].mxu0 %v1338_v50 }
  0x50   : > { %1119 = vmatmul.mubr.bf16.gmra.mrb[20].mxu1 %v1340_v51  ;;  %1061 = vmatprep.mubr.bf16.mxu0 %v1347_v52 }
  0x51   : > { %1126 = vmatprep.mubr.bf16.mxu1 %v1349_v53 }
  0x57   : > { %1062 = vmatmul.mubr.bf16.gmra.mrb[24].mxu0 %v1346_v58 }
  0x58   : > { %1127 = vmatmul.mubr.bf16.gmra.mrb[24].mxu1 %v1348_v59  ;;  %1069 = vmatprep.mubr.bf16.mxu0 %v1355_v60 }
  0x59   : > { %1134 = vmatprep.mubr.bf16.mxu1 %v1357_v61 }
  0x5f   : > { %1070 = vmatmul.mubr.bf16.gmra.mrb[28].mxu0 %v1354_v62 }
  0x60   : > { %1135 = vmatmul.mubr.bf16.gmra.mrb[28].mxu1 %v1356_v63 }
  0xfa   : > { %v1481_v0 = vpop.f32.mrb[0].mxu0 }
  0xfb   : > { %v1521_v1 = vpop.f32.mrb[0].mxu1  ;;  %v1482_v3 = vpop.f32.mrb[1].mxu0 }
  0xfc   : > { %v1483_v4 = vadd.f32 %v1482_v3, %v1481_v0  ;;  %v1522_v5 = vpop.f32.mrb[1].mxu1  ;;  %v1484_v6 = vpop.f32.mrb[2].mxu0 }
  0xfd   : > { %v1523_v7 = vadd.f32 %v1522_v5, %v1521_v1  ;;  %v1524_v8 = vpop.f32.mrb[2].mxu1  ;;  %v1485_v9 = vpop.f32.mrb[3].mxu0 }
  0xfe   : > { %v918_v10 = vadd.f32 %v1483_v4, %v1325_v2  ;;  %v1486_v11 = vadd.f32 %v1485_v9, %v1484_v6  ;;  %v1525_v12 = vpop.f32.mrb[3].mxu1 }
  0xff   : > { %v1526_v13 = vadd.f32 %v1525_v12, %v1524_v8 }
 0x100   : > { %v983_v14 = vadd.f32 %v1523_v7, %v918_v10  ;;  %v921_v15 = vadd.f32 %v1486_v11, %v1325_v2 }
 0x102   : > { %v1974_v16 = vadd.f32 %v1526_v13, %v921_v15  ;;  %v1487_v17 = vpop.f32.mrb[4].mxu0 }
 0x103   : > { %v1527_v18 = vpop.f32.mrb[4].mxu1  ;;  %v1488_v19 = vpop.f32.mrb[5].mxu0 }
 0x104   : > { %v1489_v20 = vadd.f32 %v1488_v19, %v1487_v17  ;;  %v1528_v21 = vpop.f32.mrb[5].mxu1  ;;  %v1490_v22 = vpop.f32.mrb[6].mxu0 }
 0x105   : > { %v1529_v23 = vadd.f32 %v1528_v21, %v1527_v18  ;;  %v1530_v24 = vpop.f32.mrb[6].mxu1  ;;  %v1491_v25 = vpop.f32.mrb[7].mxu0 }
 0x106   : > { %v926_v26 = vadd.f32 %v1489_v20, %v1325_v2  ;;  %v1492_v27 = vadd.f32 %v1491_v25, %v1490_v22  ;;  %v1531_v28 = vpop.f32.mrb[7].mxu1 }
 0x107   : > { %v1532_v29 = vadd.f32 %v1531_v28, %v1530_v24 }
 0x108   : > { %v991_v30 = vadd.f32 %v1529_v23, %v926_v26  ;;  %v929_v31 = vadd.f32 %v1492_v27, %v1325_v2 }
 0x10a   : > { %v1976_v32 = vadd.f32 %v1532_v29, %v929_v31  ;;  %v1493_v33 = vpop.f32.mrb[8].mxu0 }
 0x10b   : > { %v1533_v34 = vpop.f32.mrb[8].mxu1  ;;  %v1494_v35 = vpop.f32.mrb[9].mxu0 }
 0x10c   : > { %v1534_v36 = vpop.f32.mrb[9].mxu1  ;;  %v1495_v37 = vadd.f32 %v1494_v35, %v1493_v33  ;;  %v1496_v39 = vpop.f32.mrb[10].mxu0 }
 0x10d   : > { %v1535_v38 = vadd.f32 %v1534_v36, %v1533_v34  ;;  %v1536_v40 = vpop.f32.mrb[10].mxu1  ;;  %v1497_v41 = vpop.f32.mrb[11].mxu0 }
 0x10e   : > { %v1537_v42 = vpop.f32.mrb[11].mxu1  ;;  %v934_v43 = vadd.f32 %v1495_v37, %v1325_v2  ;;  %v1498_v44 = vadd.f32 %v1497_v41, %v1496_v39 }
 0x10f   : > { %v1538_v45 = vadd.f32 %v1537_v42, %v1536_v40 }
 0x110   : > { %v1978_v46 = vadd.f32 %v1535_v38, %v934_v43  ;;  %v937_v47 = vadd.f32 %v1498_v44, %v1325_v2 }
 0x112   : > { %v1980_v48 = vadd.f32 %v1538_v45, %v937_v47  ;;  %v1499_v49 = vpop.f32.mrb[12].mxu0 }
 0x113   : > { %v1539_v50 = vpop.f32.mrb[12].mxu1  ;;  %v1500_v51 = vpop.f32.mrb[13].mxu0 }
 0x114   : > { %v1501_v52 = vadd.f32 %v1500_v51, %v1499_v49  ;;  %v1540_v53 = vpop.f32.mrb[13].mxu1  ;;  %v1502_v54 = vpop.f32.mrb[14].mxu0 }
 0x115   : > { %v1541_v55 = vadd.f32 %v1540_v53, %v1539_v50  ;;  %v1542_v56 = vpop.f32.mrb[14].mxu1  ;;  %v1503_v57 = vpop.f32.mrb[15].mxu0 }
 0x116   : > { %v942_v58 = vadd.f32 %v1501_v52, %v1325_v2  ;;  %v1504_v59 = vadd.f32 %v1503_v57, %v1502_v54  ;;  %v1543_v60 = vpop.f32.mrb[15].mxu1 }
 0x117   : > { %v1544_v61 = vadd.f32 %v1543_v60, %v1542_v56 }
 0x118   : > { %v1982_v62 = vadd.f32 %v1541_v55, %v942_v58  ;;  %v945_v63 = vadd.f32 %v1504_v59, %v1325_v2 }
 0x11a   : > { %v1984_v0 = vadd.f32 %v1544_v61, %v945_v63  ;;  %v1561_v1 = vpop.f32.mrb[16].mxu0 }
 0x11b   : > { %v1601_v3 = vpop.f32.mrb[16].mxu1  ;;  %v1562_v4 = vpop.f32.mrb[17].mxu0 }
 0x11c   : > { %v1563_v5 = vadd.f32 %v1562_v4, %v1561_v1  ;;  %v1602_v6 = vpop.f32.mrb[17].mxu1  ;;  %v1564_v7 = vpop.f32.mrb[18].mxu0 }
 0x11d   : > { %v1603_v8 = vadd.f32 %v1602_v6, %v1601_v3  ;;  %v1604_v9 = vpop.f32.mrb[18].mxu1  ;;  %v1565_v10 = vpop.f32.mrb[19].mxu0 }
 0x11e   : > { %v1048_v11 = vadd.f32 %v1563_v5, %v983_v14  ;;  %v1566_v12 = vadd.f32 %v1565_v10, %v1564_v7  ;;  %v1605_v13 = vpop.f32.mrb[19].mxu1 }
 0x11f   : > { %v1606_v15 = vadd.f32 %v1605_v13, %v1604_v9 }
 0x120   : > { %v1986_v17 = vadd.f32 %v1603_v8, %v1048_v11  ;;  %v1051_v18 = vadd.f32 %v1566_v12, %v1974_v16 }
 0x122   : > { %v1989_v2 = vadd.f32 %v1606_v15, %v1051_v18  ;;  %v1567_v19 = vpop.f32.mrb[20].mxu0 }
 0x123   : > { %v1607_v20 = vpop.f32.mrb[20].mxu1  ;;  %v1568_v21 = vpop.f32.mrb[21].mxu0 }
 0x124   : > { %v1143_v22 = vadd.f32 %v1989_v2, %v1986_v17  ;;  %v1569_v23 = vadd.f32 %v1568_v21, %v1567_v19  ;;  %v1608_v24 = vpop.f32.mrb[21].mxu1  ;;  %v1570_v25 = vpop.f32.mrb[22].mxu0 }
 0x125   : > { %v1609_v26 = vadd.f32 %v1608_v24, %v1607_v20  ;;  %v1610_v14 = vpop.f32.mrb[22].mxu1  ;;  %v1571_v27 = vpop.f32.mrb[23].mxu0 }
 0x126   : > { %v1056_v28 = vadd.f32 %v1569_v23, %v991_v30  ;;  %v1572_v29 = vadd.f32 %v1571_v27, %v1570_v25  ;;  %v1611_v31 = vpop.f32.mrb[23].mxu1 }
 0x127   : > { %v1612_v33 = vadd.f32 %v1611_v31, %v1610_v14 }
 0x128   : > { %v1121_v34 = vadd.f32 %v1609_v26, %v1056_v28  ;;  %v1059_v16 = vadd.f32 %v1572_v29, %v1976_v32 }
 0x12a   : > { %v1144_v35 = vadd.f32 %v1143_v22, %v1121_v34  ;;  %v1124_v36 = vadd.f32 %v1612_v33, %v1059_v16  ;;  %v1573_v37 = vpop.f32.mrb[24].mxu0 }
 0x12b   : > { %v1613_v38 = vpop.f32.mrb[24].mxu1  ;;  %v1574_v39 = vpop.f32.mrb[25].mxu0 }
 0x12c   : > { %v1145_v40 = vadd.f32 %v1144_v35, %v1124_v36  ;;  %v1575_v41 = vadd.f32 %v1574_v39, %v1573_v37  ;;  %v1614_v42 = vpop.f32.mrb[25].mxu1  ;;  %v1576_v43 = vpop.f32.mrb[26].mxu0 }
 0x12d   : > { %v1615_v44 = vadd.f32 %v1614_v42, %v1613_v38  ;;  %v1616_v45 = vpop.f32.mrb[26].mxu1  ;;  %v1577_v47 = vpop.f32.mrb[27].mxu0 }
 0x12e   : > { %v1064_v30 = vadd.f32 %v1575_v41, %v1978_v46  ;;  %v1578_v49 = vadd.f32 %v1577_v47, %v1576_v43  ;;  %v1617_v50 = vpop.f32.mrb[27].mxu1 }
 0x12f   : > { %v1618_v51 = vadd.f32 %v1617_v50, %v1616_v45 }
 0x130   : > { %v1129_v52 = vadd.f32 %v1615_v44, %v1064_v30  ;;  %v1067_v32 = vadd.f32 %v1578_v49, %v1980_v48 }
 0x132   : > { %v1146_v53 = vadd.f32 %v1145_v40, %v1129_v52  ;;  %v1132_v54 = vadd.f32 %v1618_v51, %v1067_v32  ;;  %v1579_v55 = vpop.f32.mrb[28].mxu0 }
 0x133   : > { %v1619_v56 = vpop.f32.mrb[28].mxu1  ;;  %v1580_v57 = vpop.f32.mrb[29].mxu0 }
 0x134   : > { %v1147_v58 = vadd.f32 %v1146_v53, %v1132_v54  ;;  %v1581_v59 = vadd.f32 %v1580_v57, %v1579_v55  ;;  %v1620_v60 = vpop.f32.mrb[29].mxu1  ;;  %v1582_v61 = vpop.f32.mrb[30].mxu0 }
 0x135   : > { %v1621_v63 = vadd.f32 %v1620_v60, %v1619_v56  ;;  %v1622_v1 = vpop.f32.mrb[30].mxu1  ;;  %v1583_v3 = vpop.f32.mrb[31].mxu0 }
 0x136   : > { %v1072_v46 = vadd.f32 %v1581_v59, %v1982_v62  ;;  %v1584_v4 = vadd.f32 %v1583_v3, %v1582_v61  ;;  %v1623_v5 = vpop.f32.mrb[31].mxu1 }
 0x137   : > { %v1624_v6 = vadd.f32 %v1623_v5, %v1622_v1 }
 0x138   : > { %v1137_v7 = vadd.f32 %v1621_v63, %v1072_v46  ;;  %v1075_v48 = vadd.f32 %v1584_v4, %v1984_v0 }
 0x13a   : > { %v1148_v8 = vadd.f32 %v1147_v58, %v1137_v7  ;;  %v1140_v9 = vadd.f32 %v1624_v6, %v1075_v48 }
 0x13c   : > { %v1149_v10 = vadd.f32 %v1148_v8, %v1140_v9 }
 0x13e   : > { %v1150_v11 = vrot.slane %v1149_v10, 4 }
 0x140   : > { %v1151_v12 = vadd.f32 %v1150_v11, %v1149_v10 }
 0x142   : > { %v1152_v13 = vrot.slane %v1151_v12, 2 }
 0x144   : > { %v1153_v15 = vadd.f32 %v1152_v13, %v1151_v12 }
 0x146   : > { %v1154_v18 = vrot.slane %v1153_v15, 1 }
 0x148   : > { %v1155_v19 = vadd.f32 %v1154_v18, %v1153_v15 }
 0x14a   : > { %v1156_v20 = vmul.f32 0.015625, %v1155_v19 }
 0x14c   : > { %v1157_v21 = vsub.f32 %v1986_v17, %v1156_v20  ;;  %v1158_v62 = vsub.f32 %v1989_v2, %v1156_v20  ;;  %v1159_v22 = vsub.f32 %v1121_v34, %v1156_v20  ;;  %v1160_v23 = vsub.f32 %v1124_v36, %v1156_v20 }
 0x14d   : > { %v1161_v24 = vsub.f32 %v1129_v52, %v1156_v20  ;;  %v1162_v25 = vsub.f32 %v1132_v54, %v1156_v20  ;;  %v1163_v26 = vsub.f32 %v1137_v7, %v1156_v20  ;;  %v1164_v0 = vsub.f32 %v1140_v9, %v1156_v20 }
 0x14e   : > { %v1165_v14 = vmul.f32 %v1157_v21, %v1157_v21  ;;  %v1166_v27 = vmul.f32 %v1158_v62, %v1158_v62  ;;  %v1167_v28 = vmul.f32 %v1159_v22, %v1159_v22  ;;  %v1168_v31 = vmul.f32 %v1160_v23, %v1160_v23 }
 0x14f   : > { %v1169_v16 = vmul.f32 %v1161_v24, %v1161_v24  ;;  %v1170_v37 = vmul.f32 %v1162_v25, %v1162_v25  ;;  %v1171_v39 = vmul.f32 %v1163_v26, %v1163_v26  ;;  %v1172_v40 = vmul.f32 %v1164_v0, %v1164_v0 }
 0x150   : > { %v1173_v29 = vadd.f32 %v1166_v27, %v1165_v14 }
 0x152   : > { %v1174_v33 = vadd.f32 %v1173_v29, %v1167_v28 }
 0x154   : > { %v1175_v35 = vadd.f32 %v1174_v33, %v1168_v31 }
 0x156   : > { %v1176_v38 = vadd.f32 %v1175_v35, %v1169_v16 }
 0x158   : > { %v1177_v17 = vadd.f32 %v1176_v38, %v1170_v37 }
 0x15a   : > { %v1178_v2 = vadd.f32 %v1177_v17, %v1171_v39 }
 0x15c   : > { %v1179_v34 = vadd.f32 %v1178_v2, %v1172_v40 }
 0x15e   : > { %v1180_v36 = vrot.slane %v1179_v34, 4 }
 0x160   : > { %v1181_v41 = vadd.f32 %v1180_v36, %v1179_v34 }
 0x162   : > { %v1182_v42 = vrot.slane %v1181_v41, 2 }
 0x164   : > { %v1183_v43 = vadd.f32 %v1182_v42, %v1181_v41 }
 0x166   : > { %v1184_v44 = vrot.slane %v1183_v43, 1 }
 0x168   : > { %v1185_v45 = vadd.f32 %v1184_v44, %v1183_v43 }
 0x16a   : > { %v1186_v47 = vmul.f32 0.015625, %v1185_v45 }
 0x16c   : > { %v1187_v30 = vadd.f32 1e-05, %v1186_v47 }
 0x16e   : > { %1697 = vrsqrt.f32 %v1187_v30 }
 0x178   : > { %v1698_v49 = vpop.eup %1697 }
 0x179   : > { %v1189_v50 = vmul.f32 %v1698_v49, %v1157_v21  ;;  %v1190_v51 = vmul.f32 %v1698_v49, %v1158_v62  ;;  %v1191_v52 = vmul.f32 %v1698_v49, %v1159_v22  ;;  %v1192_v32 = vmul.f32 %v1698_v49, %v1160_v23 }
 0x17a   : > { %v1193_v53 = vmul.f32 %v1698_v49, %v1161_v24  ;;  %v1194_v54 = vmul.f32 %v1698_v49, %v1162_v25  ;;  %v1195_v55 = vmul.f32 %v1698_v49, %v1163_v26  ;;  %v1196_v56 = vmul.f32 %v1698_v49, %v1164_v0 }
 0x17b   : > { %vm1197_vm0 = vcmp.ge.f32.partialorder %v1189_v50, 0.0  ;;  %vm1198_vm1 = vcmp.ge.f32.partialorder %v1190_v51, 0.0  ;;  %vm1199_vm2 = vcmp.ge.f32.partialorder %v1191_v52, 0.0  ;;  %vm1200_vm3 = vcmp.ge.f32.partialorder %v1192_v32, 0.0 }
 0x17c   : > { %vm1201_vm4 = vcmp.ge.f32.partialorder %v1193_v53, 0.0  ;;  %vm1202_vm5 = vcmp.ge.f32.partialorder %v1194_v54, 0.0  ;;  %vm1203_vm6 = vcmp.ge.f32.partialorder %v1195_v55, 0.0  ;;  %vm1204_vm7 = vcmp.ge.f32.partialorder %v1196_v56, 0.0 }
 0x17d   : > { %v1205_v57 = vmul.f32 0.2, %v1189_v50  ;;  %v1206_v58 = vmul.f32 0.2, %v1190_v51  ;;  %v1207_v59 = vmul.f32 0.2, %v1191_v52 }
 0x17e   : > { %v1208_v60 = vmul.f32 0.2, %v1192_v32  ;;  %v1209_v61 = vmul.f32 0.2, %v1193_v53  ;;  %v1210_v63 = vmul.f32 0.2, %v1194_v54 }
 0x17f   : > { %v1211_v1 = vmul.f32 0.2, %v1195_v55  ;;  %v1212_v3 = vmul.f32 0.2, %v1196_v56  ;;  %v1213_v46 = vsel %vm1197_vm0, %v1189_v50, %v1205_v57  ;;  %v1214_v4 = vsel %vm1198_vm1, %v1190_v51, %v1206_v58 }
 0x180   : > { %v1215_v5 = vsel %vm1199_vm2, %v1191_v52, %v1207_v59  ;;  %v1216_v6 = vsel %vm1200_vm3, %v1192_v32, %v1208_v60  ;;  %v1217_v7 = vsel %vm1201_vm4, %v1193_v53, %v1209_v61  ;;  %v1218_v48 = vsel %vm1202_vm5, %v1194_v54, %v1210_v63 }
 0x181   : > { %v1219_v8 = vsel %vm1203_vm6, %v1195_v55, %v1211_v1  ;;  %v1220_v9 = vsel %vm1204_vm7, %v1196_v56, %v1212_v3  ;;  %v1445_v10 = vpack.c.bf16 %v1214_v4, %v1213_v46  ;;  %v1450_v11 = vpack.c.bf16 %v1216_v6, %v1215_v5 }
 0x182   : > { %v1455_v12 = vpack.c.bf16 %v1218_v48, %v1217_v7  ;;  %v1460_v13 = vpack.c.bf16 %v1220_v9, %v1219_v8 }
 0x183   : > { %1446 = vst [vmem:[%s170_s13] sm:$0xff] %v1445_v10   ;;  %1462 = vst [vmem:[%s170_s13 + $0x8] sm:$0xff] %v1450_v11  }
 0x184   : > { %1463 = vst [vmem:[%s170_s13 + $0x10] sm:$0xff] %v1455_v12   ;;  %1464 = vst [vmem:[%s170_s13 + $0x18] sm:$0xff] %v1460_v13  }
 0x185 PF: > { %s13_s12 = sadd.s32 1, %s1705_s12  }
 0x186   : > { %p10_p4 = scmp.ge.s32.totalorder %s13_s12, 4  }
 0x188   :  { %12 = sbr.rel (!%p10_p4) target bundleno = 1 (0x1), region = 62 }

// kernel: forward.9
= control target key start
LH: loop header
LB: loop body
LE: loop exit
PB: predicated region body
PF: predicated region fallthrough
CT: control target
= control target key end

     0   :  { %s3033_s12 = smov 0   ;;  %s3895_s0 = inlined_call_operand.vmem [shape: bf16[2,16,2048], index: 0, kind: input, shape index: {}]   ;;  %s3896_s1 = inlined_call_operand.vmem [shape: bf16[2048,256], index: 1, kind: input, shape index: {}]   ;;  %s3897_s2 = inlined_call_operand.vmem [shape: f32[1,256], index: 2, kind: input, shape index: {}]   ;;  %s3898_s3 = inlined_call_operand.vmem [shape: bf16[2,16,256], index: 3, kind: output, shape index: {}]  }
   0x1 LB: > { %s2288_s13 = sadd.s32 4294967295, %s3011_s12   ;;  %p2292_p0 = scmp.ge.s32.totalorder %s3011_s12, 1  ;;  %s3011_s12 = sphi %s3033_s12, %s13_s12  }
   0x2   : > { %p137_p1 = scmp.lt.s32.totalorder %s3011_s12, 3 }
   0x4   : > { %p138_p2 = pnand %p2292_p0, %p137_p1 }
   0x5   : > { %v2617_v0 = vld [vmem:[%s3896_s1 + $0x4] ss:$8 sps:$4 sm:$0xff] (!%p138_p2)   ;;  %v2621_v2 = vld [vmem:[%s3896_s1] ss:$8 sps:$4 sm:$0xff] (!%p138_p2)   ;;  %v2623_v4 = vld [vmem:[%s3896_s1 + $0x14] ss:$8 sps:$4 sm:$0xff] (!%p138_p2)  }
   0x6   : > { %141 = sbr.rel (%p138_p2) target bundleno = 538 (0x21a), region = 32  ;;  %v2619_v1 = vld [vmem:[%s3896_s1 + $0x404] ss:$8 sps:$4 sm:$0xff] (!%p138_p2)   ;;  %1815 = vmatprep.subr.bf16.mxu1 (!%p138_p2), %v2617_v0  ;;  %v2622_v3 = vld [vmem:[%s3896_s1 + $0x400] ss:$8 sps:$4 sm:$0xff] (!%p138_p2)   ;;  %p161_p3 = scmp.lt.s32.totalorder (!%p138_p2), %s2288_s13, 1 }
   0x7   : > { %1987 = vmatprep.subr.bf16.mxu0 (!%p138_p2), %v2619_v1  ;;  %1816 = vmatpush1.bf16.msra.mxu1 (!%p138_p2), %v2621_v2  ;;  %v2625_v5 = vld [vmem:[%s3896_s1 + $0x414] ss:$8 sps:$4 sm:$0xff] (!%p138_p2)   ;;  %v2627_v6 = vld [vmem:[%s3896_s1 + $0x10] ss:$8 sps:$4 sm:$0xff] (!%p138_p2)   ;;  %v2629_v8 = vld [vmem:[%s3896_s1 + $0x24] ss:$8 sps:$4 sm:$0xff] (!%p138_p2)  }
   0x8   : > { %1988 = vmatpush1.bf16.msra.mxu0 (!%p138_p2), %v2622_v3  ;;  %1817 = vmatprep.subr.bf16.mxu1 (!%p138_p2), %v2623_v4  ;;  %v2628_v7 = vld [vmem:[%s3896_s1 + $0x410] ss:$8 sps:$4 sm:$0xff] (!%p138_p2)   ;;  %v2631_v9 = vld [vmem:[%s3896_s1 + $0x424] ss:$8 sps:$4 sm:$0xff] (!%p138_p2)   ;;  %v2633_v10 = vld [vmem:[%s3896_s1 + $0x20] ss:$8 sps:$4 sm:$0xff] (!%p138_p2)  }
   0x9   : > { %1989 = vmatprep.subr.bf16.mxu0 (!%p138_p2), %v2625_v5  ;;  %v2634_v11 = vld [vmem:[%s3896_s1 + $0x420] ss:$8 sps:$4 sm:$0xff] (!%p138_p2)   ;;  %v2635_v12 = vld [vmem:[%s3896_s1 + $0x34] ss:$8 sps:$4 sm:$0xff] (!%p138_p2)   ;;  %v2639_v14 = vld [vmem:[%s3896_s1 + $0x30] ss:$8 sps:$4 sm:$0xff] (!%p138_p2)  }
   0xa   : > { %v2637_v13 = vld [vmem:[%s3896_s1 + $0x434] ss:$8 sps:$4 sm:$0xff] (!%p138_p2)   ;;  %v2640_v15 = vld [vmem:[%s3896_s1 + $0x430] ss:$8 sps:$4 sm:$0xff] (!%p138_p2)   ;;  %v2641_v16 = vld [vmem:[%s3896_s1 + $0x44] ss:$8 sps:$4 sm:$0xff] (!%p138_p2)  }
   0xb   : > { %1818 = vmatpush1.bf16.msra.mxu1 (!%p138_p2), %v2627_v6  ;;  %v2643_v17 = vld [vmem:[%s3896_s1 + $0x444] ss:$8 sps:$4 sm:$0xff] (!%p138_p2)   ;;  %v2645_v18 = vld [vmem:[%s3896_s1 + $0x40] ss:$8 sps:$4 sm:$0xff] (!%p138_p2)   ;;  %v2647_v20 = vld [vmem:[%s3896_s1 + $0x54] ss:$8 sps:$4 sm:$0xff] (!%p138_p2)  }
   0xc   : > { %1990 = vmatpush1.bf16.msra.mxu0 (!%p138_p2), %v2628_v7  ;;  %1819 = vmatprep.subr.bf16.mxu1 (!%p138_p2), %v2629_v8  ;;  %v2646_v19 = vld [vmem:[%s3896_s1 + $0x440] ss:$8 sps:$4 sm:$0xff] (!%p138_p2)   ;;  %v2649_v21 = vld [vmem:[%s3896_s1 + $0x454] ss:$8 sps:$4 sm:$0xff] (!%p138_p2)   ;;  %v2651_v22 = vld [vmem:[%s3896_s1 + $0x50] ss:$8 sps:$4 sm:$0xff] (!%p138_p2)  }
   0xd   : > { %1991 = vmatprep.subr.bf16.mxu0 %v2631_v9  ;;  %v2652_v23 = vld [vmem:[%s3896_s1 + $0x450] ss:$8 sps:$4 sm:$0xff]   ;;  %v2653_v24 = vld [vmem:[%s3896_s1 + $0x64] ss:$8 sps:$4 sm:$0xff]   ;;  %v2657_v26 = vld [vmem:[%s3896_s1 + $0x60] ss:$8 sps:$4 sm:$0xff]  }
   0xe   : > { %v2655_v25 = vld [vmem:[%s3896_s1 + $0x464] ss:$8 sps:$4 sm:$0xff]   ;;  %v2658_v27 = vld [vmem:[%s3896_s1 + $0x460] ss:$8 sps:$4 sm:$0xff]   ;;  %v2659_v28 = vld [vmem:[%s3896_s1 + $0x74] ss:$8 sps:$4 sm:$0xff]  }
   0xf   : > { %1820 = vmatpush1.bf16.msra.mxu1 %v2633_v10  ;;  %v2661_v29 = vld [vmem:[%s3896_s1 + $0x474] ss:$8 sps:$4 sm:$0xff]   ;;  %v2663_v30 = vld [vmem:[%s3896_s1 + $0x70] ss:$8 sps:$4 sm:$0xff]   ;;  %v2665_v32 = vld [vmem:[%s3896_s1 + $0x84] ss:$8 sps:$4 sm:$0xff]  }
  0x10   : > { %1992 = vmatpush1.bf16.msra.mxu0 %v2634_v11  ;;  %1821 = vmatprep.subr.bf16.mxu1 %v2635_v12  ;;  %v2664_v31 = vld [vmem:[%s3896_s1 + $0x470] ss:$8 sps:$4 sm:$0xff]   ;;  %v2667_v33 = vld [vmem:[%s3896_s1 + $0x484] ss:$8 sps:$4 sm:$0xff]   ;;  %v2669_v34 = vld [vmem:[%s3896_s1 + $0x80] ss:$8 sps:$4 sm:$0xff]  }
  0x11   : > { %1993 = vmatprep.subr.bf16.mxu0 %v2637_v13  ;;  %v2670_v35 = vld [vmem:[%s3896_s1 + $0x480] ss:$8 sps:$4 sm:$0xff]   ;;  %v2671_v36 = vld [vmem:[%s3896_s1 + $0x94] ss:$8 sps:$4 sm:$0xff]   ;;  %s3900_s13 = smov (!%p161_p3, %s2288_s13), 1 }
  0x12   : > { %v2673_v37 = vld [vmem:[%s3896_s1 + $0x494] ss:$8 sps:$4 sm:$0xff]   ;;  %v2675_v38 = vld [vmem:[%s3896_s1 + $0x90] ss:$8 sps:$4 sm:$0xff]   ;;  %v2677_v40 = vld [vmem:[%s3896_s1 + $0xa4] ss:$8 sps:$4 sm:$0xff]  }
  0x13   : > { %1822 = vmatpush1.bf16.msra.mxu1 %v2639_v14  ;;  %v2676_v39 = vld [vmem:[%s3896_s1 + $0x490] ss:$8 sps:$4 sm:$0xff]   ;;  %s2573_s21 = sshll.u32 %s3900_s13, 7  ;;  %v2679_v41 = vld [vmem:[%s3896_s1 + $0x4a4] ss:$8 sps:$4 sm:$0xff]   ;;  %s2574_s19 = sshll.u32 %s3900_s13, 4 }
  0x14   : > { %1994 = vmatpush1.bf16.msra.mxu0 %v2640_v15  ;;  %1823 = vmatprep.subr.bf16.mxu1 %v2641_v16  ;;  %v2681_v42 = vld [vmem:[%s3896_s1 + $0xa0] ss:$8 sps:$4 sm:$0xff]   ;;  %s3183_s30 = scalar_lea.vmem %s3895_s0, %s2573_s21  ;;  %v2683_v44 = vld [vmem:[%s3896_s1 + $0xb4] ss:$8 sps:$4 sm:$0xff]   ;;  %v2687_v46 = vld [vmem:[%s3896_s1 + $0xb0] ss:$8 sps:$4 sm:$0xff]   ;;  %s170_s22 = scalar_lea.vmem %s3898_s3, %s2574_s19 }
  0x15   : > { %1995 = vmatprep.subr.bf16.mxu0 %v2643_v17  ;;  %v2682_v43 = vld [vmem:[%s3896_s1 + $0x4a0] ss:$8 sps:$4 sm:$0xff]   ;;  %v2685_v45 = vld [vmem:[%s3896_s1 + $0x4b4] ss:$8 sps:$4 sm:$0xff]   ;;  %v2688_v47 = vld [vmem:[%s3896_s1 + $0x4b0] ss:$8 sps:$4 sm:$0xff]  }
  0x16   : > { %v171_v48 = vld [vmem:[%s3183_s30] sm:$0xff]  ;;  %v2695_v58 = vld [vmem:[%s3896_s1 + $0xd4] ss:$8 sps:$4 sm:$0xff]   ;;  %v2699_v60 = vld [vmem:[%s3896_s1 + $0xd0] ss:$8 sps:$4 sm:$0xff]  }
  0x17   : > { %1824 = vmatpush1.bf16.msra.mxu1 %v2645_v18  ;;  %v179_v49 = vld [vmem:[%s3183_s30 + $0x40] sm:$0xff]  ;;  %v2697_v59 = vld [vmem:[%s3896_s1 + $0x4d4] ss:$8 sps:$4 sm:$0xff]   ;;  %v2700_v61 = vld [vmem:[%s3896_s1 + $0x4d0] ss:$8 sps:$4 sm:$0xff]  }
  0x18   : > { %1996 = vmatpush1.bf16.msra.mxu0 %v2646_v19  ;;  %1825 = vmatprep.subr.bf16.mxu1 %v2647_v20  ;;  %v2689_v50 = vld [vmem:[%s3896_s1 + $0xc4] ss:$8 sps:$4 sm:$0xff]   ;;  %v2298_v52 = vcombine.high %v171_v48, %v179_v49  ;;  %v2693_v56 = vld [vmem:[%s3896_s1 + $0xc0] ss:$8 sps:$4 sm:$0xff]   ;;  %v2707_v2 = vld [vmem:[%s3896_s1 + $0xf4] ss:$8 sps:$4 sm:$0xff]   ;;  %v2297_v8 = vcombine.low %v171_v48, %v179_v49 }
  0x19   : > { %1997 = vmatprep.subr.bf16.mxu0 %v2649_v21  ;;  %v2691_v51 = vld [vmem:[%s3896_s1 + $0x4c4] ss:$8 sps:$4 sm:$0xff]   ;;  %v2694_v57 = vld [vmem:[%s3896_s1 + $0x4c0] ss:$8 sps:$4 sm:$0xff]   ;;  %v2709_v3 = vld [vmem:[%s3896_s1 + $0x4f4] ss:$8 sps:$4 sm:$0xff]  }
  0x1a   : > { %v175_v53 = vld [vmem:[%s3183_s30 + $0x20] sm:$0xff]  ;;  %1847 = vmatprep.mubr.bf16.mxu1 %v2298_v52  ;;  %v2711_v4 = vld [vmem:[%s3896_s1 + $0xf0] ss:$8 sps:$4 sm:$0xff]   ;;  %v2721_v12 = vld [vmem:[%s3896_s1 + $0x114] ss:$8 sps:$4 sm:$0xff]  }
  0x1b   : > { %1826 = vmatpush1.bf16.msra.mxu1 %v2651_v22  ;;  %v183_v54 = vld [vmem:[%s3183_s30 + $0x60] sm:$0xff]  ;;  %v2712_v5 = vld [vmem:[%s3896_s1 + $0x4f0] ss:$8 sps:$4 sm:$0xff]   ;;  %v2724_v13 = vld [vmem:[%s3896_s1 + $0x514] ss:$8 sps:$4 sm:$0xff]  }
  0x1c   : > { %1998 = vmatpush1.bf16.msra.mxu0 %v2652_v23  ;;  %1827 = vmatprep.subr.bf16.mxu1 %v2653_v24  ;;  %v2306_v55 = vcombine.high %v175_v53, %v183_v54  ;;  %v2701_v62 = vld [vmem:[%s3896_s1 + $0xe4] ss:$8 sps:$4 sm:$0xff]   ;;  %v2705_v0 = vld [vmem:[%s3896_s1 + $0xe0] ss:$8 sps:$4 sm:$0xff]   ;;  %v2305_v10 = vcombine.low %v175_v53, %v183_v54  ;;  %v2719_v14 = vld [vmem:[%s3896_s1 + $0x110] ss:$8 sps:$4 sm:$0xff]  }
  0x1d   : > { %1999 = vmatprep.subr.bf16.mxu0 %v2655_v25  ;;  %v2703_v63 = vld [vmem:[%s3896_s1 + $0x4e4] ss:$8 sps:$4 sm:$0xff]   ;;  %v2706_v1 = vld [vmem:[%s3896_s1 + $0x4e0] ss:$8 sps:$4 sm:$0xff]   ;;  %v2722_v15 = vld [vmem:[%s3896_s1 + $0x510] ss:$8 sps:$4 sm:$0xff]  }
  0x1e   : > { %2019 = vmatprep.mubr.bf16.mxu0 %v2306_v55  ;;  %v2715_v6 = vld [vmem:[%s3896_s1 + $0x104] ss:$8 sps:$4 sm:$0xff]   ;;  %v2713_v9 = vld [vmem:[%s3896_s1 + $0x100] ss:$8 sps:$4 sm:$0xff]   ;;  %v2733_v20 = vld [vmem:[%s3896_s1 + $0x134] ss:$8 sps:$4 sm:$0xff]  }
  0x1f   : > { %1828 = vmatpush1.bf16.msra.mxu1 %v2657_v26  ;;  %v2718_v7 = vld [vmem:[%s3896_s1 + $0x504] ss:$8 sps:$4 sm:$0xff]   ;;  %v2716_v11 = vld [vmem:[%s3896_s1 + $0x500] ss:$8 sps:$4 sm:$0xff]   ;;  %v2736_v21 = vld [vmem:[%s3896_s1 + $0x534] ss:$8 sps:$4 sm:$0xff]  }
  0x20   : > { %2000 = vmatpush1.bf16.msra.mxu0 %v2658_v27  ;;  %1829 = vmatprep.subr.bf16.mxu1 %v2659_v28  ;;  %v2727_v16 = vld [vmem:[%s3896_s1 + $0x124] ss:$8 sps:$4 sm:$0xff]   ;;  %v2725_v18 = vld [vmem:[%s3896_s1 + $0x120] ss:$8 sps:$4 sm:$0xff]   ;;  %v2731_v22 = vld [vmem:[%s3896_s1 + $0x130] ss:$8 sps:$4 sm:$0xff]  }
  0x21   : > { %2001 = vmatprep.subr.bf16.mxu0 %v2661_v29  ;;  %v2730_v17 = vld [vmem:[%s3896_s1 + $0x524] ss:$8 sps:$4 sm:$0xff]   ;;  %v2728_v19 = vld [vmem:[%s3896_s1 + $0x520] ss:$8 sps:$4 sm:$0xff]   ;;  %v2734_v23 = vld [vmem:[%s3896_s1 + $0x530] ss:$8 sps:$4 sm:$0xff]  }
  0x22   : > { %v2739_v24 = vld [vmem:[%s3896_s1 + $0x144] ss:$8 sps:$4 sm:$0xff]   ;;  %v2737_v26 = vld [vmem:[%s3896_s1 + $0x140] ss:$8 sps:$4 sm:$0xff]   ;;  %v2745_v28 = vld [vmem:[%s3896_s1 + $0x154] ss:$8 sps:$4 sm:$0xff]  }
  0x23   : > { %1830 = vmatpush1.bf16.msra.mxu1 %v2663_v30  ;;  %v2742_v25 = vld [vmem:[%s3896_s1 + $0x544] ss:$8 sps:$4 sm:$0xff]   ;;  %v2740_v27 = vld [vmem:[%s3896_s1 + $0x540] ss:$8 sps:$4 sm:$0xff]   ;;  %v2748_v29 = vld [vmem:[%s3896_s1 + $0x554] ss:$8 sps:$4 sm:$0xff]  }
  0x24   : > { %2002 = vmatpush1.bf16.msra.mxu0 %v2664_v31  ;;  %1831 = vmatprep.subr.bf16.mxu1 %v2665_v32  ;;  %v2743_v30 = vld [vmem:[%s3896_s1 + $0x150] ss:$8 sps:$4 sm:$0xff]   ;;  %v2751_v32 = vld [vmem:[%s3896_s1 + $0x164] ss:$8 sps:$4 sm:$0xff]   ;;  %v2761_v48 = vld [vmem:[%s3896_s1 + $0x180] ss:$8 sps:$4 sm:$0xff]  }
  0x25   : > { %2003 = vmatprep.subr.bf16.mxu0 %v2667_v33  ;;  %v2746_v31 = vld [vmem:[%s3896_s1 + $0x550] ss:$8 sps:$4 sm:$0xff]   ;;  %v2754_v33 = vld [vmem:[%s3896_s1 + $0x564] ss:$8 sps:$4 sm:$0xff]   ;;  %v2764_v49 = vld [vmem:[%s3896_s1 + $0x580] ss:$8 sps:$4 sm:$0xff]  }
  0x26   : > { %v2767_v52 = vld [vmem:[%s3896_s1 + $0x190] ss:$8 sps:$4 sm:$0xff]   ;;  %v2775_v54 = vld [vmem:[%s3896_s1 + $0x1a4] ss:$8 sps:$4 sm:$0xff]  }
  0x27   : > { %1832 = vmatpush1.bf16.msra.mxu1 %v2669_v34  ;;  %v2749_v34 = vld [vmem:[%s3896_s1 + $0x160] ss:$8 sps:$4 sm:$0xff]   ;;  %v2770_v53 = vld [vmem:[%s3896_s1 + $0x590] ss:$8 sps:$4 sm:$0xff]   ;;  %v2778_v55 = vld [vmem:[%s3896_s1 + $0x5a4] ss:$8 sps:$4 sm:$0xff]  }
  0x28   : > { %2004 = vmatpush1.bf16.msra.mxu0 %v2670_v35  ;;  %1833 = vmatprep.subr.bf16.mxu1 %v2671_v36  ;;  %v2752_v35 = vld [vmem:[%s3896_s1 + $0x560] ss:$8 sps:$4 sm:$0xff]  }
  0x29   : > { %2005 = vmatprep.subr.bf16.mxu0 %v2673_v37  ;;  %v3334_v36 = vld [vmem:[%s3183_s30 + $0x8] sm:$0xff] }
  0x2a   : > { %v3337_v37 = vld [vmem:[%s3183_s30 + $0x48] sm:$0xff] }
  0x2b   : > { %1834 = vmatpush1.bf16.msra.mxu1 %v2675_v38  ;;  %v2757_v38 = vld [vmem:[%s3896_s1 + $0x174] ss:$8 sps:$4 sm:$0xff]  }
  0x2c   : > { %2006 = vmatpush1.bf16.msra.mxu0 %v2676_v39  ;;  %1835 = vmatprep.subr.bf16.mxu1 %v2677_v40  ;;  %v2760_v39 = vld [vmem:[%s3896_s1 + $0x574] ss:$8 sps:$4 sm:$0xff]   ;;  %v2300_v40 = vcombine.high %v3334_v36, %v3337_v37 }
  0x2d   : > { %2007 = vmatprep.subr.bf16.mxu0 %v2679_v41  ;;  %v3348_v41 = vld [vmem:[%s3183_s30 + $0x28] sm:$0xff] }
  0x2f   : > { %1836 = vmatpush1.bf16.msra.mxu1 %v2681_v42  ;;  %v3351_v42 = vld [vmem:[%s3183_s30 + $0x68] sm:$0xff] }
  0x30   : > { %2008 = vmatpush1.bf16.msra.mxu0 %v2682_v43  ;;  %1837 = vmatprep.subr.bf16.mxu1 %v2683_v44  ;;  %v2308_v43 = vcombine.high %v3348_v41, %v3351_v42  ;;  %v2755_v44 = vld [vmem:[%s3896_s1 + $0x170] ss:$8 sps:$4 sm:$0xff]  }
  0x31   : > { %2009 = vmatprep.subr.bf16.mxu0 %v2685_v45  ;;  %v2758_v45 = vld [vmem:[%s3896_s1 + $0x570] ss:$8 sps:$4 sm:$0xff]  }
  0x33   : > { %1838 = vmatpush1.bf16.msra.mxu1 %v2687_v46  ;;  %v2763_v46 = vld [vmem:[%s3896_s1 + $0x184] ss:$8 sps:$4 sm:$0xff]  }
  0x34   : > { %2010 = vmatpush1.bf16.msra.mxu0 %v2688_v47  ;;  %1839 = vmatprep.subr.bf16.mxu1 %v2689_v50  ;;  %v2766_v47 = vld [vmem:[%s3896_s1 + $0x584] ss:$8 sps:$4 sm:$0xff]   ;;  %v2769_v50 = vld [vmem:[%s3896_s1 + $0x194] ss:$8 sps:$4 sm:$0xff]  }
  0x35   : > { %2011 = vmatprep.subr.bf16.mxu0 %v2691_v51  ;;  %v2772_v51 = vld [vmem:[%s3896_s1 + $0x594] ss:$8 sps:$4 sm:$0xff]  }
  0x37   : > { %1840 = vmatpush1.bf16.msra.mxu1 %v2693_v56  ;;  %v2773_v56 = vld [vmem:[%s3896_s1 + $0x1a0] ss:$8 sps:$4 sm:$0xff]  }
  0x38   : > { %2012 = vmatpush1.bf16.msra.mxu0 %v2694_v57  ;;  %1841 = vmatprep.subr.bf16.mxu1 %v2695_v58  ;;  %v2776_v57 = vld [vmem:[%s3896_s1 + $0x5a0] ss:$8 sps:$4 sm:$0xff]   ;;  %v2781_v58 = vld [vmem:[%s3896_s1 + $0x1b4] ss:$8 sps:$4 sm:$0xff]  }
  0x39   : > { %2013 = vmatprep.subr.bf16.mxu0 %v2697_v59  ;;  %v2784_v59 = vld [vmem:[%s3896_s1 + $0x5b4] ss:$8 sps:$4 sm:$0xff]  }
  0x3b   : > { %1842 = vmatpush1.bf16.msra.mxu1 %v2699_v60  ;;  %v2779_v60 = vld [vmem:[%s3896_s1 + $0x1b0] ss:$8 sps:$4 sm:$0xff]  }
  0x3c   : > { %2014 = vmatpush1.bf16.msra.mxu0 %v2700_v61  ;;  %1843 = vmatprep.subr.bf16.mxu1 %v2701_v62  ;;  %v2782_v61 = vld [vmem:[%s3896_s1 + $0x5b0] ss:$8 sps:$4 sm:$0xff]   ;;  %v2787_v62 = vld [vmem:[%s3896_s1 + $0x1c4] ss:$8 sps:$4 sm:$0xff]  }
  0x3d   : > { %2015 = vmatprep.subr.bf16.mxu0 %v2703_v63  ;;  %v2790_v63 = vld [vmem:[%s3896_s1 + $0x5c4] ss:$8 sps:$4 sm:$0xff]  }
  0x3f   : > { %1844 = vmatpush1.bf16.msra.mxu1 %v2705_v0  ;;  %v2785_v0 = vld [vmem:[%s3896_s1 + $0x1c0] ss:$8 sps:$4 sm:$0xff]  }
  0x40   : > { %2016 = vmatpush1.bf16.msra.mxu0 %v2706_v1  ;;  %1845 = vmatprep.subr.bf16.mxu1 %v2707_v2  ;;  %v2788_v1 = vld [vmem:[%s3896_s1 + $0x5c0] ss:$8 sps:$4 sm:$0xff]   ;;  %v2793_v2 = vld [vmem:[%s3896_s1 + $0x1d4] ss:$8 sps:$4 sm:$0xff]  }
  0x41   : > { %2017 = vmatprep.subr.bf16.mxu0 %v2709_v3  ;;  %v2796_v3 = vld [vmem:[%s3896_s1 + $0x5d4] ss:$8 sps:$4 sm:$0xff]  }
  0x43   : > { %1846 = vmatpush1.bf16.msra.mxu1 %v2711_v4  ;;  %v2791_v4 = vld [vmem:[%s3896_s1 + $0x1d0] ss:$8 sps:$4 sm:$0xff]  }
  0x44   : > { %2018 = vmatpush1.bf16.msra.mxu0 %v2712_v5  ;;  %1858 = vmatprep.subr.bf16.mxu1 %v2715_v6  ;;  %v2794_v5 = vld [vmem:[%s3896_s1 + $0x5d0] ss:$8 sps:$4 sm:$0xff]   ;;  %v2799_v6 = vld [vmem:[%s3896_s1 + $0x1e4] ss:$8 sps:$4 sm:$0xff]  }
  0x45   : > { %2030 = vmatprep.subr.bf16.mxu0 %v2718_v7  ;;  %v2802_v7 = vld [vmem:[%s3896_s1 + $0x5e4] ss:$8 sps:$4 sm:$0xff]  }
  0x46   : > { %1848 = vmatmul.mubr.bf16.vlgmr.msra.gmra.mrb[0].mxu1 %v2297_v8  ;;  %v2797_v8 = vld [vmem:[%s3896_s1 + $0x1e0] ss:$8 sps:$4 sm:$0xff]  }
  0x47   : > { %2020 = vmatmul.mubr.bf16.vlgmr.msra.gmra.mrb[0].mxu0 %v2305_v10  ;;  %1859 = vmatpush1.bf16.msra.mxu1 %v2713_v9  ;;  %v2800_v9 = vld [vmem:[%s3896_s1 + $0x5e0] ss:$8 sps:$4 sm:$0xff]   ;;  %v2805_v10 = vld [vmem:[%s3896_s1 + $0x1f4] ss:$8 sps:$4 sm:$0xff]  }
  0x48   : > { %2031 = vmatpush1.bf16.msra.mxu0 %v2716_v11  ;;  %1860 = vmatprep.subr.bf16.mxu1 %v2721_v12  ;;  %v2808_v11 = vld [vmem:[%s3896_s1 + $0x5f4] ss:$8 sps:$4 sm:$0xff]   ;;  %v2803_v12 = vld [vmem:[%s3896_s1 + $0x1f0] ss:$8 sps:$4 sm:$0xff]  }
  0x49   : > { %2032 = vmatprep.subr.bf16.mxu0 %v2724_v13  ;;  %1890 = vmatprep.mubr.bf16.mxu1 %v2300_v40  ;;  %v2806_v13 = vld [vmem:[%s3896_s1 + $0x5f0] ss:$8 sps:$4 sm:$0xff]   ;;  %v2833_v40 = vld [vmem:[%s3896_s1 + $0x240] ss:$8 sps:$4 sm:$0xff]  }
  0x4a   : > { %2062 = vmatprep.mubr.bf16.mxu0 %v2308_v43  ;;  %v2844_v43 = vld [vmem:[%s3896_s1 + $0x654] ss:$8 sps:$4 sm:$0xff]  }
  0x4b   : > { %1861 = vmatpush1.bf16.msra.mxu1 %v2719_v14  ;;  %v2811_v14 = vld [vmem:[%s3896_s1 + $0x204] ss:$8 sps:$4 sm:$0xff]  }
  0x4c   : > { %2033 = vmatpush1.bf16.msra.mxu0 %v2722_v15  ;;  %1862 = vmatprep.subr.bf16.mxu1 %v2727_v16  ;;  %v2814_v15 = vld [vmem:[%s3896_s1 + $0x604] ss:$8 sps:$4 sm:$0xff]   ;;  %v2299_v16 = vcombine.low %v3334_v36, %v3337_v37  ;;  %v2827_v36 = vld [vmem:[%s3896_s1 + $0x230] ss:$8 sps:$4 sm:$0xff]  }
  0x4d   : > { %2034 = vmatprep.subr.bf16.mxu0 %v2730_v17  ;;  %v2809_v17 = vld [vmem:[%s3896_s1 + $0x200] ss:$8 sps:$4 sm:$0xff]   ;;  %v2830_v37 = vld [vmem:[%s3896_s1 + $0x630] ss:$8 sps:$4 sm:$0xff]  }
  0x4f   : > { %1863 = vmatpush1.bf16.msra.mxu1 %v2725_v18  ;;  %v2307_v18 = vcombine.low %v3348_v41, %v3351_v42  ;;  %v2836_v41 = vld [vmem:[%s3896_s1 + $0x640] ss:$8 sps:$4 sm:$0xff]   ;;  %v2841_v42 = vld [vmem:[%s3896_s1 + $0x254] ss:$8 sps:$4 sm:$0xff]  }
  0x50   : > { %2035 = vmatpush1.bf16.msra.mxu0 %v2728_v19  ;;  %1864 = vmatprep.subr.bf16.mxu1 %v2733_v20  ;;  %v2812_v19 = vld [vmem:[%s3896_s1 + $0x600] ss:$8 sps:$4 sm:$0xff]   ;;  %v2817_v20 = vld [vmem:[%s3896_s1 + $0x214] ss:$8 sps:$4 sm:$0xff]  }
  0x51   : > { %2036 = vmatprep.subr.bf16.mxu0 %v2736_v21  ;;  %v2820_v21 = vld [vmem:[%s3896_s1 + $0x614] ss:$8 sps:$4 sm:$0xff]  }
  0x53   : > { %1865 = vmatpush1.bf16.msra.mxu1 %v2731_v22  ;;  %v2815_v22 = vld [vmem:[%s3896_s1 + $0x210] ss:$8 sps:$4 sm:$0xff]  }
  0x54   : > { %2037 = vmatpush1.bf16.msra.mxu0 %v2734_v23  ;;  %1866 = vmatprep.subr.bf16.mxu1 %v2739_v24  ;;  %v2818_v23 = vld [vmem:[%s3896_s1 + $0x610] ss:$8 sps:$4 sm:$0xff]  }
  0x55   : > { %2038 = vmatprep.subr.bf16.mxu0 %v2742_v25  ;;  %v3486_v24 = vld [vmem:[%s3183_s30 + $0x10] sm:$0xff] }
  0x56   : > { %v3489_v25 = vld [vmem:[%s3183_s30 + $0x50] sm:$0xff] }
  0x57   : > { %1867 = vmatpush1.bf16.msra.mxu1 %v2737_v26  ;;  %v2823_v26 = vld [vmem:[%s3896_s1 + $0x224] ss:$8 sps:$4 sm:$0xff]  }
  0x58   : > { %2039 = vmatpush1.bf16.msra.mxu0 %v2740_v27  ;;  %1868 = vmatprep.subr.bf16.mxu1 %v2745_v28  ;;  %v2826_v27 = vld [vmem:[%s3896_s1 + $0x624] ss:$8 sps:$4 sm:$0xff]   ;;  %v2302_v28 = vcombine.high %v3486_v24, %v3489_v25 }
  0x59   : > { %2040 = vmatprep.subr.bf16.mxu0 %v2748_v29  ;;  %v3500_v29 = vld [vmem:[%s3183_s30 + $0x30] sm:$0xff] }
  0x5b   : > { %1869 = vmatpush1.bf16.msra.mxu1 %v2743_v30  ;;  %v3503_v30 = vld [vmem:[%s3183_s30 + $0x70] sm:$0xff] }
  0x5c   : > { %2041 = vmatpush1.bf16.msra.mxu0 %v2746_v31  ;;  %1870 = vmatprep.subr.bf16.mxu1 %v2751_v32  ;;  %v2310_v31 = vcombine.high %v3500_v29, %v3503_v30  ;;  %v2821_v32 = vld [vmem:[%s3896_s1 + $0x220] ss:$8 sps:$4 sm:$0xff]  }
  0x5d   : > { %2042 = vmatprep.subr.bf16.mxu0 %v2754_v33  ;;  %v2824_v33 = vld [vmem:[%s3896_s1 + $0x620] ss:$8 sps:$4 sm:$0xff]  }
  0x5f   : > { %1871 = vmatpush1.bf16.msra.mxu1 %v2749_v34  ;;  %v2829_v34 = vld [vmem:[%s3896_s1 + $0x234] ss:$8 sps:$4 sm:$0xff]  }
  0x60   : > { %2043 = vmatpush1.bf16.msra.mxu0 %v2752_v35  ;;  %1872 = vmatprep.subr.bf16.mxu1 %v2757_v38  ;;  %v2832_v35 = vld [vmem:[%s3896_s1 + $0x634] ss:$8 sps:$4 sm:$0xff]   ;;  %v2835_v38 = vld [vmem:[%s3896_s1 + $0x244] ss:$8 sps:$4 sm:$0xff]  }
  0x61   : > { %2044 = vmatprep.subr.bf16.mxu0 %v2760_v39  ;;  %v2838_v39 = vld [vmem:[%s3896_s1 + $0x644] ss:$8 sps:$4 sm:$0xff]  }
  0x63   : > { %1873 = vmatpush1.bf16.msra.mxu1 %v2755_v44  ;;  %v2839_v44 = vld [vmem:[%s3896_s1 + $0x250] ss:$8 sps:$4 sm:$0xff]  }
  0x64   : > { %2045 = vmatpush1.bf16.msra.mxu0 %v2758_v45  ;;  %1874 = vmatprep.subr.bf16.mxu1 %v2763_v46  ;;  %v2842_v45 = vld [vmem:[%s3896_s1 + $0x650] ss:$8 sps:$4 sm:$0xff]   ;;  %v2847_v46 = vld [vmem:[%s3896_s1 + $0x264] ss:$8 sps:$4 sm:$0xff]  }
  0x65   : > { %2046 = vmatprep.subr.bf16.mxu0 %v2766_v47  ;;  %v2850_v47 = vld [vmem:[%s3896_s1 + $0x664] ss:$8 sps:$4 sm:$0xff]  }
  0x67   : > { %1875 = vmatpush1.bf16.msra.mxu1 %v2761_v48  ;;  %v2845_v48 = vld [vmem:[%s3896_s1 + $0x260] ss:$8 sps:$4 sm:$0xff]  }
  0x68   : > { %2047 = vmatpush1.bf16.msra.mxu0 %v2764_v49  ;;  %1876 = vmatprep.subr.bf16.mxu1 %v2769_v50  ;;  %v2848_v49 = vld [vmem:[%s3896_s1 + $0x660] ss:$8 sps:$4 sm:$0xff]   ;;  %v2853_v50 = vld [vmem:[%s3896_s1 + $0x274] ss:$8 sps:$4 sm:$0xff]  }
  0x69   : > { %2048 = vmatprep.subr.bf16.mxu0 %v2772_v51  ;;  %v2856_v51 = vld [vmem:[%s3896_s1 + $0x674] ss:$8 sps:$4 sm:$0xff]  }
  0x6b   : > { %1877 = vmatpush1.bf16.msra.mxu1 %v2767_v52  ;;  %v2851_v52 = vld [vmem:[%s3896_s1 + $0x270] ss:$8 sps:$4 sm:$0xff]  }
  0x6c   : > { %2049 = vmatpush1.bf16.msra.mxu0 %v2770_v53  ;;  %1878 = vmatprep.subr.bf16.mxu1 %v2775_v54  ;;  %v2854_v53 = vld [vmem:[%s3896_s1 + $0x670] ss:$8 sps:$4 sm:$0xff]   ;;  %v2859_v54 = vld [vmem:[%s3896_s1 + $0x284] ss:$8 sps:$4 sm:$0xff]  }
  0x6d   : > { %2050 = vmatprep.subr.bf16.mxu0 %v2778_v55  ;;  %v2862_v55 = vld [vmem:[%s3896_s1 + $0x684] ss:$8 sps:$4 sm:$0xff]  }
  0x6f   : > { %1879 = vmatpush1.bf16.msra.mxu1 %v2773_v56  ;;  %v2857_v56 = vld [vmem:[%s3896_s1 + $0x280] ss:$8 sps:$4 sm:$0xff]  }
  0x70   : > { %2051 = vmatpush1.bf16.msra.mxu0 %v2776_v57  ;;  %1880 = vmatprep.subr.bf16.mxu1 %v2781_v58  ;;  %v2860_v57 = vld [vmem:[%s3896_s1 + $0x680] ss:$8 sps:$4 sm:$0xff]   ;;  %v2865_v58 = vld [vmem:[%s3896_s1 + $0x294] ss:$8 sps:$4 sm:$0xff]  }
  0x71   : > { %2052 = vmatprep.subr.bf16.mxu0 %v2784_v59  ;;  %v2868_v59 = vld [vmem:[%s3896_s1 + $0x694] ss:$8 sps:$4 sm:$0xff]  }
  0x73   : > { %1881 = vmatpush1.bf16.msra.mxu1 %v2779_v60  ;;  %v2863_v60 = vld [vmem:[%s3896_s1 + $0x290] ss:$8 sps:$4 sm:$0xff]  }
  0x74   : > { %2053 = vmatpush1.bf16.msra.mxu0 %v2782_v61  ;;  %1882 = vmatprep.subr.bf16.mxu1 %v2787_v62  ;;  %v2866_v61 = vld [vmem:[%s3896_s1 + $0x690] ss:$8 sps:$4 sm:$0xff]   ;;  %v2871_v62 = vld [vmem:[%s3896_s1 + $0x2a4] ss:$8 sps:$4 sm:$0xff]  }
  0x75   : > { %2054 = vmatprep.subr.bf16.mxu0 %v2790_v63  ;;  %v2874_v63 = vld [vmem:[%s3896_s1 + $0x6a4] ss:$8 sps:$4 sm:$0xff]  }
  0x77   : > { %1883 = vmatpush1.bf16.msra.mxu1 %v2785_v0  ;;  %v2869_v0 = vld [vmem:[%s3896_s1 + $0x2a0] ss:$8 sps:$4 sm:$0xff]  }
  0x78   : > { %2055 = vmatpush1.bf16.msra.mxu0 %v2788_v1  ;;  %1884 = vmatprep.subr.bf16.mxu1 %v2793_v2  ;;  %v2872_v1 = vld [vmem:[%s3896_s1 + $0x6a0] ss:$8 sps:$4 sm:$0xff]   ;;  %v2877_v2 = vld [vmem:[%s3896_s1 + $0x2b4] ss:$8 sps:$4 sm:$0xff]  }
  0x79   : > { %2056 = vmatprep.subr.bf16.mxu0 %v2796_v3  ;;  %v2880_v3 = vld [vmem:[%s3896_s1 + $0x6b4] ss:$8 sps:$4 sm:$0xff]  }
  0x7b   : > { %1885 = vmatpush1.bf16.msra.mxu1 %v2791_v4  ;;  %v2875_v4 = vld [vmem:[%s3896_s1 + $0x2b0] ss:$8 sps:$4 sm:$0xff]  }
  0x7c   : > { %2057 = vmatpush1.bf16.msra.mxu0 %v2794_v5  ;;  %1886 = vmatprep.subr.bf16.mxu1 %v2799_v6  ;;  %v2878_v5 = vld [vmem:[%s3896_s1 + $0x6b0] ss:$8 sps:$4 sm:$0xff]   ;;  %v2883_v6 = vld [vmem:[%s3896_s1 + $0x2c4] ss:$8 sps:$4 sm:$0xff]  }
  0x7d   : > { %2058 = vmatprep.subr.bf16.mxu0 %v2802_v7  ;;  %v2886_v7 = vld [vmem:[%s3896_s1 + $0x6c4] ss:$8 sps:$4 sm:$0xff]  }
  0x7f   : > { %1887 = vmatpush1.bf16.msra.mxu1 %v2797_v8  ;;  %v2881_v8 = vld [vmem:[%s3896_s1 + $0x2c0] ss:$8 sps:$4 sm:$0xff]  }
  0x80   : > { %2059 = vmatpush1.bf16.msra.mxu0 %v2800_v9  ;;  %1888 = vmatprep.subr.bf16.mxu1 %v2805_v10  ;;  %v2884_v9 = vld [vmem:[%s3896_s1 + $0x6c0] ss:$8 sps:$4 sm:$0xff]   ;;  %v2889_v10 = vld [vmem:[%s3896_s1 + $0x2d4] ss:$8 sps:$4 sm:$0xff]  }
  0x81   : > { %2060 = vmatprep.subr.bf16.mxu0 %v2808_v11  ;;  %v2892_v11 = vld [vmem:[%s3896_s1 + $0x6d4] ss:$8 sps:$4 sm:$0xff]  }
  0x83   : > { %1889 = vmatpush1.bf16.msra.mxu1 %v2803_v12  ;;  %v2887_v12 = vld [vmem:[%s3896_s1 + $0x2d0] ss:$8 sps:$4 sm:$0xff]  }
  0x84   : > { %2061 = vmatpush1.bf16.msra.mxu0 %v2806_v13  ;;  %1901 = vmatprep.subr.bf16.mxu1 %v2811_v14  ;;  %v2890_v13 = vld [vmem:[%s3896_s1 + $0x6d0] ss:$8 sps:$4 sm:$0xff]   ;;  %v2895_v14 = vld [vmem:[%s3896_s1 + $0x2e4] ss:$8 sps:$4 sm:$0xff]  }
  0x85   : > { %2073 = vmatprep.subr.bf16.mxu0 %v2814_v15  ;;  %v2898_v15 = vld [vmem:[%s3896_s1 + $0x6e4] ss:$8 sps:$4 sm:$0xff]  }
  0x86   : > { %1891 = vmatmul.mubr.bf16.vlgmr.msra.gmra.mrb[0].mxu1 %v2299_v16  ;;  %v2893_v16 = vld [vmem:[%s3896_s1 + $0x2e0] ss:$8 sps:$4 sm:$0xff]  }
  0x87   : > { %2063 = vmatmul.mubr.bf16.vlgmr.msra.gmra.mrb[0].mxu0 %v2307_v18  ;;  %1902 = vmatpush1.bf16.msra.mxu1 %v2809_v17  ;;  %v2896_v17 = vld [vmem:[%s3896_s1 + $0x6e0] ss:$8 sps:$4 sm:$0xff]   ;;  %v2901_v18 = vld [vmem:[%s3896_s1 + $0x2f4] ss:$8 sps:$4 sm:$0xff]  }
  0x88   : > { %2074 = vmatpush1.bf16.msra.mxu0 %v2812_v19  ;;  %1903 = vmatprep.subr.bf16.mxu1 %v2817_v20  ;;  %v2904_v19 = vld [vmem:[%s3896_s1 + $0x6f4] ss:$8 sps:$4 sm:$0xff]   ;;  %v2899_v20 = vld [vmem:[%s3896_s1 + $0x2f0] ss:$8 sps:$4 sm:$0xff]  }
  0x89   : > { %2075 = vmatprep.subr.bf16.mxu0 %v2820_v21  ;;  %1933 = vmatprep.mubr.bf16.mxu1 %v2302_v28  ;;  %v2902_v21 = vld [vmem:[%s3896_s1 + $0x6f0] ss:$8 sps:$4 sm:$0xff]   ;;  %v2309_v28 = vcombine.low %v3500_v29, %v3503_v30 }
  0x8a   : > { %2105 = vmatprep.mubr.bf16.mxu0 %v2310_v31  ;;  %v3683_v31 = vld [vmem:[%s3183_s30 + $0x58] sm:$0xff] }
  0x8b   : > { %1904 = vmatpush1.bf16.msra.mxu1 %v2815_v22  ;;  %v2907_v22 = vld [vmem:[%s3896_s1 + $0x304] ss:$8 sps:$4 sm:$0xff]  }
  0x8c   : > { %2076 = vmatpush1.bf16.msra.mxu0 %v2818_v23  ;;  %1905 = vmatprep.subr.bf16.mxu1 %v2823_v26  ;;  %v2910_v23 = vld [vmem:[%s3896_s1 + $0x704] ss:$8 sps:$4 sm:$0xff]   ;;  %v3676_v26 = vld [vmem:[%s3183_s30 + $0x18] sm:$0xff] }
  0x8d   : > { %2077 = vmatprep.subr.bf16.mxu0 %v2826_v27  ;;  %v2301_v27 = vcombine.low %v3486_v24, %v3489_v25  ;;  %v2913_v24 = vld [vmem:[%s3896_s1 + $0x314] ss:$8 sps:$4 sm:$0xff]   ;;  %v2304_v29 = vcombine.high %v3676_v26, %v3683_v31 }
  0x8e   : > { %v2916_v25 = vld [vmem:[%s3896_s1 + $0x714] ss:$8 sps:$4 sm:$0xff]  }
  0x8f   : > { %1906 = vmatpush1.bf16.msra.mxu1 %v2821_v32  ;;  %v3686_v32 = vld [vmem:[%s3183_s30 + $0x38] sm:$0xff] }
  0x90   : > { %2078 = vmatpush1.bf16.msra.mxu0 %v2824_v33  ;;  %1907 = vmatprep.subr.bf16.mxu1 %v2829_v34  ;;  %v3689_v33 = vld [vmem:[%s3183_s30 + $0x78] sm:$0xff]  ;;  %v2905_v34 = vld [vmem:[%s3896_s1 + $0x300] ss:$8 sps:$4 sm:$0xff]  }
  0x91   : > { %2079 = vmatprep.subr.bf16.mxu0 %v2832_v35  ;;  %v2908_v35 = vld [vmem:[%s3896_s1 + $0x700] ss:$8 sps:$4 sm:$0xff]   ;;  %v2312_v30 = vcombine.high %v3686_v32, %v3689_v33 }
  0x93   : > { %1908 = vmatpush1.bf16.msra.mxu1 %v2827_v36  ;;  %v2911_v36 = vld [vmem:[%s3896_s1 + $0x310] ss:$8 sps:$4 sm:$0xff]  }
  0x94   : > { %2080 = vmatpush1.bf16.msra.mxu0 %v2830_v37  ;;  %1909 = vmatprep.subr.bf16.mxu1 %v2835_v38  ;;  %v2914_v37 = vld [vmem:[%s3896_s1 + $0x710] ss:$8 sps:$4 sm:$0xff]   ;;  %v2919_v38 = vld [vmem:[%s3896_s1 + $0x324] ss:$8 sps:$4 sm:$0xff]  }
  0x95   : > { %2081 = vmatprep.subr.bf16.mxu0 %v2838_v39  ;;  %v2922_v39 = vld [vmem:[%s3896_s1 + $0x724] ss:$8 sps:$4 sm:$0xff]  }
  0x97   : > { %1910 = vmatpush1.bf16.msra.mxu1 %v2833_v40  ;;  %v2917_v40 = vld [vmem:[%s3896_s1 + $0x320] ss:$8 sps:$4 sm:$0xff]  }
  0x98   : > { %2082 = vmatpush1.bf16.msra.mxu0 %v2836_v41  ;;  %1911 = vmatprep.subr.bf16.mxu1 %v2841_v42  ;;  %v2920_v41 = vld [vmem:[%s3896_s1 + $0x720] ss:$8 sps:$4 sm:$0xff]   ;;  %v2925_v42 = vld [vmem:[%s3896_s1 + $0x334] ss:$8 sps:$4 sm:$0xff]  }
  0x99   : > { %2083 = vmatprep.subr.bf16.mxu0 %v2844_v43  ;;  %v2928_v43 = vld [vmem:[%s3896_s1 + $0x734] ss:$8 sps:$4 sm:$0xff]  }
  0x9b   : > { %1912 = vmatpush1.bf16.msra.mxu1 %v2839_v44  ;;  %v2923_v44 = vld [vmem:[%s3896_s1 + $0x330] ss:$8 sps:$4 sm:$0xff]  }
  0x9c   : > { %2084 = vmatpush1.bf16.msra.mxu0 %v2842_v45  ;;  %1913 = vmatprep.subr.bf16.mxu1 %v2847_v46  ;;  %v2926_v45 = vld [vmem:[%s3896_s1 + $0x730] ss:$8 sps:$4 sm:$0xff]   ;;  %v2931_v46 = vld [vmem:[%s3896_s1 + $0x344] ss:$8 sps:$4 sm:$0xff]  }
  0x9d   : > { %2085 = vmatprep.subr.bf16.mxu0 %v2850_v47  ;;  %v2934_v47 = vld [vmem:[%s3896_s1 + $0x744] ss:$8 sps:$4 sm:$0xff]  }
  0x9f   : > { %1914 = vmatpush1.bf16.msra.mxu1 %v2845_v48  ;;  %v2929_v48 = vld [vmem:[%s3896_s1 + $0x340] ss:$8 sps:$4 sm:$0xff]  }
  0xa0   : > { %2086 = vmatpush1.bf16.msra.mxu0 %v2848_v49  ;;  %1915 = vmatprep.subr.bf16.mxu1 %v2853_v50  ;;  %v2932_v49 = vld [vmem:[%s3896_s1 + $0x740] ss:$8 sps:$4 sm:$0xff]   ;;  %v2937_v50 = vld [vmem:[%s3896_s1 + $0x354] ss:$8 sps:$4 sm:$0xff]  }
  0xa1   : > { %2087 = vmatprep.subr.bf16.mxu0 %v2856_v51  ;;  %v2940_v51 = vld [vmem:[%s3896_s1 + $0x754] ss:$8 sps:$4 sm:$0xff]  }
  0xa3   : > { %1916 = vmatpush1.bf16.msra.mxu1 %v2851_v52  ;;  %v2935_v52 = vld [vmem:[%s3896_s1 + $0x350] ss:$8 sps:$4 sm:$0xff]  }
  0xa4   : > { %2088 = vmatpush1.bf16.msra.mxu0 %v2854_v53  ;;  %1917 = vmatprep.subr.bf16.mxu1 %v2859_v54  ;;  %v2938_v53 = vld [vmem:[%s3896_s1 + $0x750] ss:$8 sps:$4 sm:$0xff]   ;;  %v2943_v54 = vld [vmem:[%s3896_s1 + $0x364] ss:$8 sps:$4 sm:$0xff]  }
  0xa5   : > { %2089 = vmatprep.subr.bf16.mxu0 %v2862_v55  ;;  %v2946_v55 = vld [vmem:[%s3896_s1 + $0x764] ss:$8 sps:$4 sm:$0xff]  }
  0xa7   : > { %1918 = vmatpush1.bf16.msra.mxu1 %v2857_v56  ;;  %v2941_v56 = vld [vmem:[%s3896_s1 + $0x360] ss:$8 sps:$4 sm:$0xff]  }
  0xa8   : > { %2090 = vmatpush1.bf16.msra.mxu0 %v2860_v57  ;;  %1919 = vmatprep.subr.bf16.mxu1 %v2865_v58  ;;  %v2944_v57 = vld [vmem:[%s3896_s1 + $0x760] ss:$8 sps:$4 sm:$0xff]   ;;  %v2949_v58 = vld [vmem:[%s3896_s1 + $0x374] ss:$8 sps:$4 sm:$0xff]  }
  0xa9   : > { %2091 = vmatprep.subr.bf16.mxu0 %v2868_v59  ;;  %v2952_v59 = vld [vmem:[%s3896_s1 + $0x774] ss:$8 sps:$4 sm:$0xff]  }
  0xab   : > { %1920 = vmatpush1.bf16.msra.mxu1 %v2863_v60  ;;  %v2947_v60 = vld [vmem:[%s3896_s1 + $0x370] ss:$8 sps:$4 sm:$0xff]  }
  0xac   : > { %2092 = vmatpush1.bf16.msra.mxu0 %v2866_v61  ;;  %1921 = vmatprep.subr.bf16.mxu1 %v2871_v62  ;;  %v2950_v61 = vld [vmem:[%s3896_s1 + $0x770] ss:$8 sps:$4 sm:$0xff]   ;;  %v2955_v62 = vld [vmem:[%s3896_s1 + $0x384] ss:$8 sps:$4 sm:$0xff]  }
  0xad   : > { %2093 = vmatprep.subr.bf16.mxu0 %v2874_v63  ;;  %v2958_v63 = vld [vmem:[%s3896_s1 + $0x784] ss:$8 sps:$4 sm:$0xff]  }
  0xaf   : > { %1922 = vmatpush1.bf16.msra.mxu1 %v2869_v0  ;;  %v2953_v0 = vld [vmem:[%s3896_s1 + $0x380] ss:$8 sps:$4 sm:$0xff]  }
  0xb0   : > { %2094 = vmatpush1.bf16.msra.mxu0 %v2872_v1  ;;  %1923 = vmatprep.subr.bf16.mxu1 %v2877_v2  ;;  %v2956_v1 = vld [vmem:[%s3896_s1 + $0x780] ss:$8 sps:$4 sm:$0xff]   ;;  %v2961_v2 = vld [vmem:[%s3896_s1 + $0x394] ss:$8 sps:$4 sm:$0xff]  }
  0xb1   : > { %2095 = vmatprep.subr.bf16.mxu0 %v2880_v3  ;;  %v2964_v3 = vld [vmem:[%s3896_s1 + $0x794] ss:$8 sps:$4 sm:$0xff]  }
  0xb3   : > { %1924 = vmatpush1.bf16.msra.mxu1 %v2875_v4  ;;  %v2959_v4 = vld [vmem:[%s3896_s1 + $0x390] ss:$8 sps:$4 sm:$0xff]  }
  0xb4   : > { %2096 = vmatpush1.bf16.msra.mxu0 %v2878_v5  ;;  %1925 = vmatprep.subr.bf16.mxu1 %v2883_v6  ;;  %v2962_v5 = vld [vmem:[%s3896_s1 + $0x790] ss:$8 sps:$4 sm:$0xff]   ;;  %v2967_v6 = vld [vmem:[%s3896_s1 + $0x3a4] ss:$8 sps:$4 sm:$0xff]  }
  0xb5   : > { %2097 = vmatprep.subr.bf16.mxu0 %v2886_v7  ;;  %v2970_v7 = vld [vmem:[%s3896_s1 + $0x7a4] ss:$8 sps:$4 sm:$0xff]  }
  0xb7   : > { %1926 = vmatpush1.bf16.msra.mxu1 %v2881_v8  ;;  %v2965_v8 = vld [vmem:[%s3896_s1 + $0x3a0] ss:$8 sps:$4 sm:$0xff]  }
  0xb8   : > { %2098 = vmatpush1.bf16.msra.mxu0 %v2884_v9  ;;  %1927 = vmatprep.subr.bf16.mxu1 %v2889_v10  ;;  %v2968_v9 = vld [vmem:[%s3896_s1 + $0x7a0] ss:$8 sps:$4 sm:$0xff]   ;;  %v2973_v10 = vld [vmem:[%s3896_s1 + $0x3b4] ss:$8 sps:$4 sm:$0xff]  }
  0xb9   : > { %2099 = vmatprep.subr.bf16.mxu0 %v2892_v11  ;;  %v2976_v11 = vld [vmem:[%s3896_s1 + $0x7b4] ss:$8 sps:$4 sm:$0xff]  }
  0xbb   : > { %1928 = vmatpush1.bf16.msra.mxu1 %v2887_v12  ;;  %v2971_v12 = vld [vmem:[%s3896_s1 + $0x3b0] ss:$8 sps:$4 sm:$0xff]  }
  0xbc   : > { %2100 = vmatpush1.bf16.msra.mxu0 %v2890_v13  ;;  %1929 = vmatprep.subr.bf16.mxu1 %v2895_v14  ;;  %v2974_v13 = vld [vmem:[%s3896_s1 + $0x7b0] ss:$8 sps:$4 sm:$0xff]   ;;  %v2979_v14 = vld [vmem:[%s3896_s1 + $0x3c4] ss:$8 sps:$4 sm:$0xff]  }
  0xbd   : > { %2101 = vmatprep.subr.bf16.mxu0 %v2898_v15  ;;  %v2982_v15 = vld [vmem:[%s3896_s1 + $0x7c4] ss:$8 sps:$4 sm:$0xff]  }
  0xbf   : > { %1930 = vmatpush1.bf16.msra.mxu1 %v2893_v16  ;;  %v2977_v16 = vld [vmem:[%s3896_s1 + $0x3c0] ss:$8 sps:$4 sm:$0xff]  }
  0xc0   : > { %2102 = vmatpush1.bf16.msra.mxu0 %v2896_v17  ;;  %1931 = vmatprep.subr.bf16.mxu1 %v2901_v18  ;;  %v2980_v17 = vld [vmem:[%s3896_s1 + $0x7c0] ss:$8 sps:$4 sm:$0xff]   ;;  %v2985_v18 = vld [vmem:[%s3896_s1 + $0x3d4] ss:$8 sps:$4 sm:$0xff]  }
  0xc1   : > { %2103 = vmatprep.subr.bf16.mxu0 %v2904_v19  ;;  %v2988_v19 = vld [vmem:[%s3896_s1 + $0x7d4] ss:$8 sps:$4 sm:$0xff]  }
  0xc3   : > { %1932 = vmatpush1.bf16.msra.mxu1 %v2899_v20  ;;  %v2983_v20 = vld [vmem:[%s3896_s1 + $0x3d0] ss:$8 sps:$4 sm:$0xff]  }
  0xc4   : > { %2104 = vmatpush1.bf16.msra.mxu0 %v2902_v21  ;;  %1944 = vmatprep.subr.bf16.mxu1 %v2907_v22  ;;  %v2986_v21 = vld [vmem:[%s3896_s1 + $0x7d0] ss:$8 sps:$4 sm:$0xff]   ;;  %v2991_v22 = vld [vmem:[%s3896_s1 + $0x3e4] ss:$8 sps:$4 sm:$0xff]  }
  0xc5   : > { %2116 = vmatprep.subr.bf16.mxu0 %v2910_v23  ;;  %v2994_v23 = vld [vmem:[%s3896_s1 + $0x7e4] ss:$8 sps:$4 sm:$0xff]  }
  0xc6   : > { %1934 = vmatmul.mubr.bf16.vlgmr.msra.gmra.mrb[0].mxu1 %v2301_v27  ;;  %v2989_v27 = vld [vmem:[%s3896_s1 + $0x3e0] ss:$8 sps:$4 sm:$0xff]  }
  0xc7   : > { %2106 = vmatmul.mubr.bf16.vlgmr.msra.gmra.mrb[0].mxu0 %v2309_v28  ;;  %1945 = vmatpush1.bf16.msra.mxu1 %v2905_v34  ;;  %v2992_v28 = vld [vmem:[%s3896_s1 + $0x7e0] ss:$8 sps:$4 sm:$0xff]   ;;  %v2997_v34 = vld [vmem:[%s3896_s1 + $0x3f4] ss:$8 sps:$4 sm:$0xff]  }
  0xc8   : > { %2117 = vmatpush1.bf16.msra.mxu0 %v2908_v35  ;;  %1946 = vmatprep.subr.bf16.mxu1 %v2913_v24  ;;  %v3000_v35 = vld [vmem:[%s3896_s1 + $0x7f4] ss:$8 sps:$4 sm:$0xff]   ;;  %v2995_v24 = vld [vmem:[%s3896_s1 + $0x3f0] ss:$8 sps:$4 sm:$0xff]  }
  0xc9   : > { %2118 = vmatprep.subr.bf16.mxu0 %v2916_v25  ;;  %1976 = vmatprep.mubr.bf16.mxu1 %v2304_v29  ;;  %v2998_v25 = vld [vmem:[%s3896_s1 + $0x7f0] ss:$8 sps:$4 sm:$0xff]   ;;  %v2303_v29 = vcombine.low %v3676_v26, %v3683_v31 }
  0xca   : > { %2148 = vmatprep.mubr.bf16.mxu0 %v2312_v30  ;;  %v2311_v30 = vcombine.low %v3686_v32, %v3689_v33 }
  0xcb   : > { %1947 = vmatpush1.bf16.msra.mxu1 %v2911_v36  ;;  %v445_v36 = vlaneseq }
  0xcc   : > { %2119 = vmatpush1.bf16.msra.mxu0 %v2914_v37  ;;  %1948 = vmatprep.subr.bf16.mxu1 %v2919_v38 }
  0xcd   : > { %2120 = vmatprep.subr.bf16.mxu0 %v2922_v39  ;;  %v446_v37 = vshrl.u32 %v445_v36, 7  ;;  %v443_v39 = vld [vmem:[%s3897_s2] sm:$0x3] }
  0xcf   : > { %1949 = vmatpush1.bf16.msra.mxu1 %v2917_v40  ;;  %v447_v38 = vsub.s32 0, %v446_v37  ;;  %v451_v40 = vsub.s32 1, %v446_v37 }
  0xd0   : > { %2121 = vmatpush1.bf16.msra.mxu0 %v2920_v41  ;;  %1950 = vmatprep.subr.bf16.mxu1 %v2925_v42 }
  0xd1   : > { %2122 = vmatprep.subr.bf16.mxu0 %v2928_v43  ;;  %v448_v41 = vrot.slane %v443_v39, %v447_v38  ;;  %v452_v42 = vrot.slane %v443_v39, %v451_v40 }
  0xd3   : > { %1951 = vmatpush1.bf16.msra.mxu1 %v2923_v44 }
  0xd4   : > { %2123 = vmatpush1.bf16.msra.mxu0 %v2926_v45  ;;  %1952 = vmatprep.subr.bf16.mxu1 %v2931_v46 }
  0xd5   : > { %2124 = vmatprep.subr.bf16.mxu0 %v2934_v47 }
  0xd7   : > { %1953 = vmatpush1.bf16.msra.mxu1 %v2929_v48 }
  0xd8   : > { %2125 = vmatpush1.bf16.msra.mxu0 %v2932_v49  ;;  %1954 = vmatprep.subr.bf16.mxu1 %v2937_v50 }
  0xd9   : > { %2126 = vmatprep.subr.bf16.mxu0 %v2940_v51 }
  0xdb   : > { %1955 = vmatpush1.bf16.msra.mxu1 %v2935_v52 }
  0xdc   : > { %2127 = vmatpush1.bf16.msra.mxu0 %v2938_v53  ;;  %1956 = vmatprep.subr.bf16.mxu1 %v2943_v54 }
  0xdd   : > { %2128 = vmatprep.subr.bf16.mxu0 %v2946_v55 }
  0xdf   : > { %1957 = vmatpush1.bf16.msra.mxu1 %v2941_v56 }
  0xe0   : > { %2129 = vmatpush1.bf16.msra.mxu0 %v2944_v57  ;;  %1958 = vmatprep.subr.bf16.mxu1 %v2949_v58 }
  0xe1   : > { %2130 = vmatprep.subr.bf16.mxu0 %v2952_v59 }
  0xe3   : > { %1959 = vmatpush1.bf16.msra.mxu1 %v2947_v60 }
  0xe4   : > { %2131 = vmatpush1.bf16.msra.mxu0 %v2950_v61  ;;  %1960 = vmatprep.subr.bf16.mxu1 %v2955_v62 }
  0xe5   : > { %2132 = vmatprep.subr.bf16.mxu0 %v2958_v63 }
  0xe7   : > { %1961 = vmatpush1.bf16.msra.mxu1 %v2953_v0 }
  0xe8   : > { %2133 = vmatpush1.bf16.msra.mxu0 %v2956_v1  ;;  %1962 = vmatprep.subr.bf16.mxu1 %v2961_v2 }
  0xe9   : > { %2134 = vmatprep.subr.bf16.mxu0 %v2964_v3 }
  0xeb   : > { %1963 = vmatpush1.bf16.msra.mxu1 %v2959_v4 }
  0xec   : > { %2135 = vmatpush1.bf16.msra.mxu0 %v2962_v5  ;;  %1964 = vmatprep.subr.bf16.mxu1 %v2967_v6 }
  0xed   : > { %2136 = vmatprep.subr.bf16.mxu0 %v2970_v7 }
  0xef   : > { %1965 = vmatpush1.bf16.msra.mxu1 %v2965_v8 }
  0xf0   : > { %2137 = vmatpush1.bf16.msra.mxu0 %v2968_v9  ;;  %1966 = vmatprep.subr.bf16.mxu1 %v2973_v10 }
  0xf1   : > { %2138 = vmatprep.subr.bf16.mxu0 %v2976_v11 }
  0xf3   : > { %1967 = vmatpush1.bf16.msra.mxu1 %v2971_v12 }
  0xf4   : > { %2139 = vmatpush1.bf16.msra.mxu0 %v2974_v13  ;;  %1968 = vmatprep.subr.bf16.mxu1 %v2979_v14 }
  0xf5   : > { %2140 = vmatprep.subr.bf16.mxu0 %v2982_v15 }
  0xf7   : > { %1969 = vmatpush1.bf16.msra.mxu1 %v2977_v16 }
  0xf8   : > { %2141 = vmatpush1.bf16.msra.mxu0 %v2980_v17  ;;  %1970 = vmatprep.subr.bf16.mxu1 %v2985_v18 }
  0xf9   : > { %2142 = vmatprep.subr.bf16.mxu0 %v2988_v19 }
  0xfb   : > { %1971 = vmatpush1.bf16.msra.mxu1 %v2983_v20 }
  0xfc   : > { %2143 = vmatpush1.bf16.msra.mxu0 %v2986_v21  ;;  %1972 = vmatprep.subr.bf16.mxu1 %v2991_v22 }
  0xfd   : > { %2144 = vmatprep.subr.bf16.mxu0 %v2994_v23 }
  0xff   : > { %1973 = vmatpush1.bf16.msra.mxu1 %v2989_v27 }
 0x100   : > { %2145 = vmatpush1.bf16.msra.mxu0 %v2992_v28  ;;  %1974 = vmatprep.subr.bf16.mxu1 %v2997_v34 }
 0x101   : > { %2146 = vmatprep.subr.bf16.mxu0 %v3000_v35 }
 0x103   : > { %1975 = vmatpush1.bf16.msra.mxu1 %v2995_v24 }
 0x104   : > { %2147 = vmatpush1.bf16.msra.mxu0 %v2998_v25 }
 0x106   : > { %1977 = vmatmul.mubr.bf16.vlgmr.msra.gmra.mrb[0].mxu1 %v2303_v29 }
 0x107   : > { %2149 = vmatmul.mubr.bf16.vlgmr.msra.gmra.mrb[0].mxu0 %v2311_v30 }
 0x1d9   : > { %v1978_v43 = vpop.f32.mrb[0].mxu1 }
 0x1da   : > { %v2150_v44 = vpop.f32.mrb[0].mxu0  ;;  %v2577_v26 = vadd.f32 %v1978_v43, %v448_v41  ;;  %v1980_v31 = vpop.f32.mrb[1].mxu1 }
 0x1db   : > { %v2152_v45 = vpop.f32.mrb[1].mxu0  ;;  %v2579_v32 = vadd.f32 %v1980_v31, %v452_v42  ;;  %v1982_v33 = vpop.f32.mrb[2].mxu1 }
 0x1dc   : > { %v2154_v46 = vpop.f32.mrb[2].mxu0  ;;  %v2578_v47 = vadd.f32 %v2577_v26, %v2150_v44  ;;  %v2581_v48 = vadd.f32 %v1982_v33, %v448_v41  ;;  %v1984_v49 = vpop.f32.mrb[3].mxu1 }
 0x1dd   : > { %v2156_v50 = vpop.f32.mrb[3].mxu0  ;;  %v2580_v51 = vadd.f32 %v2579_v32, %v2152_v45  ;;  %v2583_v52 = vadd.f32 %v1984_v49, %v452_v42 }
 0x1de   : > { %v2582_v53 = vadd.f32 %v2581_v48, %v2154_v46 }
 0x1df   : > { %v2584_v54 = vadd.f32 %v2583_v52, %v2156_v50 }
 0x1e0   : > { %v2159_v55 = vadd.f32 %v2582_v53, %v2578_v47 }
 0x1e1   : > { %v2166_v56 = vadd.f32 %v2584_v54, %v2580_v51 }
 0x1e2   : > { %v2160_v57 = vrot.slane %v2159_v55, 4 }
 0x1e3   : > { %v2167_v58 = vrot.slane %v2166_v56, 4 }
 0x1e4   : > { %v2161_v59 = vadd.f32 %v2160_v57, %v2159_v55 }
 0x1e5   : > { %v2168_v60 = vadd.f32 %v2167_v58, %v2166_v56 }
 0x1e6   : > { %v2162_v61 = vrot.slane %v2161_v59, 2 }
 0x1e7   : > { %v2169_v62 = vrot.slane %v2168_v60, 2 }
 0x1e8   : > { %v2163_v63 = vadd.f32 %v2162_v61, %v2161_v59 }
 0x1e9   : > { %v2170_v0 = vadd.f32 %v2169_v62, %v2168_v60 }
 0x1ea   : > { %v2164_v1 = vrot.slane %v2163_v63, 1 }
 0x1eb   : > { %v2171_v2 = vrot.slane %v2170_v0, 1 }
 0x1ec   : > { %v2165_v3 = vadd.f32 %v2164_v1, %v2163_v63 }
 0x1ed   : > { %v2172_v4 = vadd.f32 %v2171_v2, %v2170_v0 }
 0x1ee   : > { %v2173_v5 = vmul.f32 0.0625, %v2165_v3 }
 0x1ef   : > { %v2174_v6 = vmul.f32 0.0625, %v2172_v4 }
 0x1f0   : > { %v2175_v7 = vsub.f32 %v2578_v47, %v2173_v5  ;;  %v2177_v8 = vsub.f32 %v2582_v53, %v2173_v5 }
 0x1f1   : > { %v2176_v9 = vsub.f32 %v2580_v51, %v2174_v6  ;;  %v2178_v10 = vsub.f32 %v2584_v54, %v2174_v6 }
 0x1f2   : > { %v2179_v11 = vmul.f32 %v2175_v7, %v2175_v7  ;;  %v2181_v12 = vmul.f32 %v2177_v8, %v2177_v8 }
 0x1f3   : > { %v2180_v13 = vmul.f32 %v2176_v9, %v2176_v9  ;;  %v2182_v14 = vmul.f32 %v2178_v10, %v2178_v10 }
 0x1f4   : > { %v2183_v15 = vadd.f32 %v2181_v12, %v2179_v11 }
 0x1f5   : > { %v2190_v16 = vadd.f32 %v2182_v14, %v2180_v13 }
 0x1f6   : > { %v2184_v17 = vrot.slane %v2183_v15, 4 }
 0x1f7   : > { %v2191_v18 = vrot.slane %v2190_v16, 4 }
 0x1f8   : > { %v2185_v19 = vadd.f32 %v2184_v17, %v2183_v15 }
 0x1f9   : > { %v2192_v20 = vadd.f32 %v2191_v18, %v2190_v16 }
 0x1fa   : > { %v2186_v21 = vrot.slane %v2185_v19, 2 }
 0x1fb   : > { %v2193_v22 = vrot.slane %v2192_v20, 2 }
 0x1fc   : > { %v2187_v23 = vadd.f32 %v2186_v21, %v2185_v19 }
 0x1fd   : > { %v2194_v27 = vadd.f32 %v2193_v22, %v2192_v20 }
 0x1fe   : > { %v2188_v28 = vrot.slane %v2187_v23, 1 }
 0x1ff   : > { %v2195_v34 = vrot.slane %v2194_v27, 1 }
 0x200   : > { %v2189_v35 = vadd.f32 %v2188_v28, %v2187_v23 }
 0x201   : > { %v2196_v24 = vadd.f32 %v2195_v34, %v2194_v27 }
 0x202   : > { %v2197_v25 = vmul.f32 0.0625, %v2189_v35 }
 0x203   : > { %v2198_v29 = vmul.f32 0.0625, %v2196_v24 }
 0x204   : > { %v2199_v30 = vadd.f32 1e-05, %v2197_v25 }
 0x205   : > { %v2200_v36 = vadd.f32 1e-05, %v2198_v29 }
 0x206   : > { %3001 = vrsqrt.f32 %v2199_v30 }
 0x207   : > { %3003 = vrsqrt.f32 %v2200_v36 }
 0x210   : > { %v3002_v37 = vpop.eup %3001 }
 0x211   : > { %v3004_v38 = vpop.eup %3003  ;;  %v2203_v39 = vmul.f32 %v3002_v37, %v2175_v7  ;;  %v2205_v40 = vmul.f32 %v3002_v37, %v2177_v8 }
 0x212   : > { %v2204_v41 = vmul.f32 %v3004_v38, %v2176_v9  ;;  %v2206_v42 = vmul.f32 %v3004_v38, %v2178_v10 }
 0x213   : > { %vm2207_vm0 = vcmp.ge.f32.partialorder %v2203_v39, 0.0  ;;  %vm2209_vm1 = vcmp.ge.f32.partialorder %v2205_v40, 0.0  ;;  %v2211_v43 = vmul.f32 0.2, %v2203_v39  ;;  %v2213_v44 = vmul.f32 0.2, %v2205_v40 }
 0x214   : > { %vm2208_vm2 = vcmp.ge.f32.partialorder %v2204_v41, 0.0  ;;  %vm2210_vm3 = vcmp.ge.f32.partialorder %v2206_v42, 0.0  ;;  %v2212_v26 = vmul.f32 0.2, %v2204_v41  ;;  %v2214_v31 = vmul.f32 0.2, %v2206_v42 }
 0x215   : > { %v2215_v45 = vsel %vm2207_vm0, %v2203_v39, %v2211_v43  ;;  %v2217_v32 = vsel %vm2209_vm1, %v2205_v40, %v2213_v44 }
 0x216   : > { %v2216_v33 = vsel %vm2208_vm2, %v2204_v41, %v2212_v26  ;;  %v2218_v46 = vsel %vm2210_vm3, %v2206_v42, %v2214_v31 }
 0x217   : > { %v2575_v47 = vpack.c.bf16 %v2216_v33, %v2215_v45  ;;  %v2576_v48 = vpack.c.bf16 %v2218_v46, %v2217_v32 }
 0x219   : > { %2231 = vst [vmem:[%s170_s22] sm:$0xff] %v2575_v47  ;;  %2232 = vst [vmem:[%s170_s22 + $0x8] sm:$0xff] %v2576_v48 }
 0x21a PF: > { %s13_s12 = sadd.s32 1, %s3011_s12  }
 0x21b   : > { %p10_p4 = scmp.ge.s32.totalorder %s13_s12, 4  }
 0x21d   :  { %12 = sbr.rel (!%p10_p4) target bundleno = 1 (0x1), region = 62 }

// kernel: forward.10
= control target key start
LH: loop header
LB: loop body
LE: loop exit
PB: predicated region body
PF: predicated region fallthrough
CT: control target
= control target key end

     0   :  { %s10765_s12 = smov 0   ;;  %s14035_s0 = inlined_call_operand.vmem [shape: bf16[2,4,4096], index: 0, kind: input, shape index: {}]   ;;  %s14036_s1 = inlined_call_operand.vmem [shape: bf16[4096,512], index: 1, kind: input, shape index: {}]   ;;  %s14037_s2 = inlined_call_operand.vmem [shape: f32[1,512], index: 2, kind: input, shape index: {}]   ;;  %s14038_s3 = inlined_call_operand.vmem [shape: bf16[2,4,512], index: 3, kind: output, shape index: {}]  }
   0x1 LB: > { %s8012_s13 = sadd.s32 4294967295, %s10742_s12   ;;  %p8016_p0 = scmp.ge.s32.totalorder %s10742_s12, 1  ;;  %s10742_s12 = sphi %s10765_s12, %s13_s12  }
   0x2   : > { %p137_p1 = scmp.lt.s32.totalorder %s10742_s12, 3 }
   0x4   : > { %p138_p2 = pnand %p8016_p0, %p137_p1 }
   0x5   : > { %v9184_v0 = vld [vmem:[%s14036_s1 + $0x4] ss:$16 sps:$4 sm:$0xff] (!%p138_p2)   ;;  %v9186_v1 = vld [vmem:[%s14036_s1 + $0xc] ss:$16 sps:$4 sm:$0xff] (!%p138_p2)   ;;  %v9188_v2 = vld [vmem:[%s14036_s1] ss:$16 sps:$4 sm:$0xff] (!%p138_p2)   ;;  %v1205_v36 = vlaneseq (!%p138_p2) }
   0x6   : > { %141 = sbr.rel (%p138_p2) target bundleno = 1306 (0x51a), region = 32  ;;  %6521 = vmatprep.subr.bf16.mxu0 (!%p138_p2), %v9184_v0  ;;  %v9189_v3 = vld [vmem:[%s14036_s1 + $0x8] ss:$16 sps:$4 sm:$0xff] (!%p138_p2)   ;;  %7177 = vmatprep.subr.bf16.mxu1 (!%p138_p2), %v9186_v1  ;;  %v9190_v4 = vld [vmem:[%s14036_s1 + $0x24] ss:$16 sps:$4 sm:$0xff] (!%p138_p2)   ;;  %p161_p3 = scmp.lt.s32.totalorder (!%p138_p2), %s8012_s13, 1 }
   0x7   : > { %6522 = vmatpush1.bf16.msra.mxu0 (!%p138_p2), %v9188_v2  ;;  %7178 = vmatpush1.bf16.msra.mxu1 (!%p138_p2), %v9189_v3  ;;  %v9192_v5 = vld [vmem:[%s14036_s1 + $0x2c] ss:$16 sps:$4 sm:$0xff] (!%p138_p2)   ;;  %v9194_v6 = vld [vmem:[%s14036_s1 + $0x20] ss:$16 sps:$4 sm:$0xff] (!%p138_p2)   ;;  %v9195_v7 = vld [vmem:[%s14036_s1 + $0x28] ss:$16 sps:$4 sm:$0xff] (!%p138_p2)  }
   0x8   : > { %6523 = vmatprep.subr.bf16.mxu0 (!%p138_p2), %v9190_v4  ;;  %7179 = vmatprep.subr.bf16.mxu1 (!%p138_p2), %v9192_v5  ;;  %v9196_v8 = vld [vmem:[%s14036_s1 + $0x44] ss:$16 sps:$4 sm:$0xff] (!%p138_p2)   ;;  %v9198_v9 = vld [vmem:[%s14036_s1 + $0x4c] ss:$16 sps:$4 sm:$0xff] (!%p138_p2)   ;;  %v9200_v10 = vld [vmem:[%s14036_s1 + $0x40] ss:$16 sps:$4 sm:$0xff] (!%p138_p2)  }
   0x9   : > { %v9201_v11 = vld [vmem:[%s14036_s1 + $0x48] ss:$16 sps:$4 sm:$0xff] (!%p138_p2)   ;;  %v9202_v12 = vld [vmem:[%s14036_s1 + $0x64] ss:$16 sps:$4 sm:$0xff] (!%p138_p2)   ;;  %v9204_v13 = vld [vmem:[%s14036_s1 + $0x6c] ss:$16 sps:$4 sm:$0xff] (!%p138_p2)  }
   0xa   : > { %v9206_v14 = vld [vmem:[%s14036_s1 + $0x60] ss:$16 sps:$4 sm:$0xff] (!%p138_p2)   ;;  %v9207_v15 = vld [vmem:[%s14036_s1 + $0x68] ss:$16 sps:$4 sm:$0xff] (!%p138_p2)   ;;  %v9208_v16 = vld [vmem:[%s14036_s1 + $0x84] ss:$16 sps:$4 sm:$0xff] (!%p138_p2)  }
   0xb   : > { %6524 = vmatpush1.bf16.msra.mxu0 (!%p138_p2), %v9194_v6  ;;  %7180 = vmatpush1.bf16.msra.mxu1 (!%p138_p2), %v9195_v7  ;;  %v9210_v17 = vld [vmem:[%s14036_s1 + $0x8c] ss:$16 sps:$4 sm:$0xff] (!%p138_p2)   ;;  %v9212_v18 = vld [vmem:[%s14036_s1 + $0x80] ss:$16 sps:$4 sm:$0xff] (!%p138_p2)   ;;  %v9213_v19 = vld [vmem:[%s14036_s1 + $0x88] ss:$16 sps:$4 sm:$0xff] (!%p138_p2)  }
   0xc   : > { %6525 = vmatprep.subr.bf16.mxu0 (!%p138_p2), %v9196_v8  ;;  %7181 = vmatprep.subr.bf16.mxu1 (!%p138_p2), %v9198_v9  ;;  %v9214_v20 = vld [vmem:[%s14036_s1 + $0xa4] ss:$16 sps:$4 sm:$0xff] (!%p138_p2)   ;;  %v9216_v21 = vld [vmem:[%s14036_s1 + $0xac] ss:$16 sps:$4 sm:$0xff] (!%p138_p2)   ;;  %v9218_v22 = vld [vmem:[%s14036_s1 + $0xa0] ss:$16 sps:$4 sm:$0xff] (!%p138_p2)  }
   0xd   : > { %v9219_v23 = vld [vmem:[%s14036_s1 + $0xa8] ss:$16 sps:$4 sm:$0xff]   ;;  %v9220_v24 = vld [vmem:[%s14036_s1 + $0xc4] ss:$16 sps:$4 sm:$0xff]   ;;  %v9222_v25 = vld [vmem:[%s14036_s1 + $0xcc] ss:$16 sps:$4 sm:$0xff]  }
   0xe   : > { %v9224_v26 = vld [vmem:[%s14036_s1 + $0xc0] ss:$16 sps:$4 sm:$0xff]   ;;  %v9225_v27 = vld [vmem:[%s14036_s1 + $0xc8] ss:$16 sps:$4 sm:$0xff]   ;;  %v9226_v28 = vld [vmem:[%s14036_s1 + $0xe4] ss:$16 sps:$4 sm:$0xff]  }
   0xf   : > { %6526 = vmatpush1.bf16.msra.mxu0 %v9200_v10  ;;  %7182 = vmatpush1.bf16.msra.mxu1 %v9201_v11  ;;  %v9228_v29 = vld [vmem:[%s14036_s1 + $0xec] ss:$16 sps:$4 sm:$0xff]   ;;  %v9230_v30 = vld [vmem:[%s14036_s1 + $0xe0] ss:$16 sps:$4 sm:$0xff]   ;;  %v9231_v31 = vld [vmem:[%s14036_s1 + $0xe8] ss:$16 sps:$4 sm:$0xff]  }
  0x10   : > { %6527 = vmatprep.subr.bf16.mxu0 %v9202_v12  ;;  %7183 = vmatprep.subr.bf16.mxu1 %v9204_v13  ;;  %v9232_v32 = vld [vmem:[%s14036_s1 + $0x104] ss:$16 sps:$4 sm:$0xff]   ;;  %v9234_v33 = vld [vmem:[%s14036_s1 + $0x10c] ss:$16 sps:$4 sm:$0xff]   ;;  %v9236_v34 = vld [vmem:[%s14036_s1 + $0x100] ss:$16 sps:$4 sm:$0xff]  }
  0x11   : > { %v9237_v35 = vld [vmem:[%s14036_s1 + $0x108] ss:$16 sps:$4 sm:$0xff]   ;;  %v10744_v37 = vmov 1983009808   ;;  %v9238_v39 = vld [vmem:[%s14036_s1 + $0x124] ss:$16 sps:$4 sm:$0xff]  }
  0x12   : > { %v1235_v38 = vunpack.c.l.s4 %v10744_v37  ;;  %s14040_s13 = smov (!%p161_p3, %s8012_s13), 1  ;;  %v9240_v40 = vld [vmem:[%s14036_s1 + $0x12c] ss:$16 sps:$4 sm:$0xff]   ;;  %v9242_v41 = vld [vmem:[%s14036_s1 + $0x120] ss:$16 sps:$4 sm:$0xff]   ;;  %v10896_v42 = vshrl.u32 %v1205_v36, 7 }
  0x13   : > { %6528 = vmatpush1.bf16.msra.mxu0 %v9206_v14  ;;  %7184 = vmatpush1.bf16.msra.mxu1 %v9207_v15  ;;  %v9243_v44 = vld [vmem:[%s14036_s1 + $0x128] ss:$16 sps:$4 sm:$0xff]   ;;  %v9244_v45 = vld [vmem:[%s14036_s1 + $0x144] ss:$16 sps:$4 sm:$0xff]   ;;  %s9049_s21 = sshll.u32 %s14040_s13, 6  ;;  %vm7833_vm0 = vcmask 1043456  }
  0x14   : > { %6529 = vmatprep.subr.bf16.mxu0 %v9208_v16  ;;  %7185 = vmatprep.subr.bf16.mxu1 %v9210_v17  ;;  %v1236_v43 = vunpack.c.0.s8 %v1235_v38  ;;  %v9246_v46 = vld [vmem:[%s14036_s1 + $0x14c] ss:$16 sps:$4 sm:$0xff]   ;;  %v9248_v47 = vld [vmem:[%s14036_s1 + $0x140] ss:$16 sps:$4 sm:$0xff]   ;;  %v9249_v48 = vld [vmem:[%s14036_s1 + $0x148] ss:$16 sps:$4 sm:$0xff]   ;;  %s10917_s30 = scalar_lea.vmem %s14035_s0, %s9049_s21 }
  0x15   : > { %v9250_v50 = vld [vmem:[%s14036_s1 + $0x164] ss:$16 sps:$4 sm:$0xff]   ;;  %v9252_v51 = vld [vmem:[%s14036_s1 + $0x16c] ss:$16 sps:$4 sm:$0xff]   ;;  %v9254_v53 = vld [vmem:[%s14036_s1 + $0x160] ss:$16 sps:$4 sm:$0xff]  }
  0x16   : > { %v10920_v49 = vsub.s32 %v1236_v43, %v10896_v42  ;;  %v171_v52 = vld [vmem:[%s10917_s30] sm:$0xff]  ;;  %v9255_v55 = vld [vmem:[%s14036_s1 + $0x168] ss:$16 sps:$4 sm:$0xff]   ;;  %v9258_v57 = vld [vmem:[%s14036_s1 + $0x18c] ss:$16 sps:$4 sm:$0xff]   ;;  %s9050_s11 = sshll.u32 %s14040_s13, 3 }
  0x17   : > { %6530 = vmatpush1.bf16.msra.mxu0 %v9212_v18  ;;  %7186 = vmatpush1.bf16.msra.mxu1 %v9213_v19  ;;  %v9256_v56 = vld [vmem:[%s14036_s1 + $0x184] ss:$16 sps:$4 sm:$0xff]   ;;  %v9260_v59 = vld [vmem:[%s14036_s1 + $0x180] ss:$16 sps:$4 sm:$0xff]   ;;  %v9261_v60 = vld [vmem:[%s14036_s1 + $0x188] ss:$16 sps:$4 sm:$0xff]   ;;  %v1233_v7 = vcombine.high %v171_v52, %v171_v52  ;;  %s170_s16 = scalar_lea.vmem %s14038_s3, %s9050_s11 }
  0x18   : > { %6531 = vmatprep.subr.bf16.mxu0 %v9214_v20  ;;  %7187 = vmatprep.subr.bf16.mxu1 %v9216_v21  ;;  %v1240_v54 = vrot.slane %v171_v52, %v10920_v49  ;;  %v9262_v61 = vld [vmem:[%s14036_s1 + $0x1a4] ss:$16 sps:$4 sm:$0xff]   ;;  %v9264_v62 = vld [vmem:[%s14036_s1 + $0x1ac] ss:$16 sps:$4 sm:$0xff]   ;;  %v9266_v63 = vld [vmem:[%s14036_s1 + $0x1a0] ss:$16 sps:$4 sm:$0xff]  }
  0x19   : > { %v9267_v0 = vld [vmem:[%s14036_s1 + $0x1a8] ss:$16 sps:$4 sm:$0xff]   ;;  %v9268_v1 = vld [vmem:[%s14036_s1 + $0x1c4] ss:$16 sps:$4 sm:$0xff]   ;;  %v9270_v2 = vld [vmem:[%s14036_s1 + $0x1cc] ss:$16 sps:$4 sm:$0xff]   ;;  %v10991_v12 = vrot.slane %v1233_v7, %v10920_v49 }
  0x1a   : > { %v1248_v58 = vcombine.high %v1240_v54, %v1240_v54  ;;  %v9272_v3 = vld [vmem:[%s14036_s1 + $0x1c0] ss:$16 sps:$4 sm:$0xff]   ;;  %v9273_v4 = vld [vmem:[%s14036_s1 + $0x1c8] ss:$16 sps:$4 sm:$0xff]   ;;  %v9274_v5 = vld [vmem:[%s14036_s1 + $0x1e4] ss:$16 sps:$4 sm:$0xff]  }
  0x1b   : > { %6532 = vmatpush1.bf16.msra.mxu0 %v9218_v22  ;;  %7188 = vmatpush1.bf16.msra.mxu1 %v9219_v23  ;;  %v9276_v6 = vld [vmem:[%s14036_s1 + $0x1ec] ss:$16 sps:$4 sm:$0xff]   ;;  %v9278_v8 = vld [vmem:[%s14036_s1 + $0x1e0] ss:$16 sps:$4 sm:$0xff]   ;;  %v9279_v9 = vld [vmem:[%s14036_s1 + $0x1e8] ss:$16 sps:$4 sm:$0xff]   ;;  %v1249_v17 = vcombine.high %v10991_v12, %v10991_v12 }
  0x1c   : > { %6533 = vmatprep.subr.bf16.mxu0 %v9220_v24  ;;  %7189 = vmatprep.subr.bf16.mxu1 %v9222_v25  ;;  %v9283_v10 = vld [vmem:[%s14036_s1 + $0x204] ss:$16 sps:$4 sm:$0xff]   ;;  %v9286_v11 = vld [vmem:[%s14036_s1 + $0x20c] ss:$16 sps:$4 sm:$0xff]   ;;  %v9281_v13 = vld [vmem:[%s14036_s1 + $0x200] ss:$16 sps:$4 sm:$0xff]  }
  0x1d   : > { %6553 = vmatprep.mubr.bf16.mxu0 %v1248_v58  ;;  %7209 = vmatprep.mubr.bf16.mxu1 %v1248_v58  ;;  %v9284_v14 = vld [vmem:[%s14036_s1 + $0x208] ss:$16 sps:$4 sm:$0xff]   ;;  %v9289_v15 = vld [vmem:[%s14036_s1 + $0x224] ss:$16 sps:$4 sm:$0xff]   ;;  %v9292_v16 = vld [vmem:[%s14036_s1 + $0x22c] ss:$16 sps:$4 sm:$0xff]  }
  0x1e   : > { %v9287_v18 = vld [vmem:[%s14036_s1 + $0x220] ss:$16 sps:$4 sm:$0xff]   ;;  %v9290_v19 = vld [vmem:[%s14036_s1 + $0x228] ss:$16 sps:$4 sm:$0xff]   ;;  %v9295_v20 = vld [vmem:[%s14036_s1 + $0x244] ss:$16 sps:$4 sm:$0xff]  }
  0x1f   : > { %6534 = vmatpush1.bf16.msra.mxu0 %v9224_v26  ;;  %7190 = vmatpush1.bf16.msra.mxu1 %v9225_v27  ;;  %v9298_v21 = vld [vmem:[%s14036_s1 + $0x24c] ss:$16 sps:$4 sm:$0xff]   ;;  %v9293_v22 = vld [vmem:[%s14036_s1 + $0x240] ss:$16 sps:$4 sm:$0xff]   ;;  %v9296_v23 = vld [vmem:[%s14036_s1 + $0x248] ss:$16 sps:$4 sm:$0xff]  }
  0x20   : > { %6535 = vmatprep.subr.bf16.mxu0 %v9226_v28  ;;  %7191 = vmatprep.subr.bf16.mxu1 %v9228_v29  ;;  %v9301_v24 = vld [vmem:[%s14036_s1 + $0x264] ss:$16 sps:$4 sm:$0xff]   ;;  %v9304_v25 = vld [vmem:[%s14036_s1 + $0x26c] ss:$16 sps:$4 sm:$0xff]   ;;  %v9299_v26 = vld [vmem:[%s14036_s1 + $0x260] ss:$16 sps:$4 sm:$0xff]  }
  0x21   : > { %v9302_v27 = vld [vmem:[%s14036_s1 + $0x268] ss:$16 sps:$4 sm:$0xff]   ;;  %v9307_v28 = vld [vmem:[%s14036_s1 + $0x284] ss:$16 sps:$4 sm:$0xff]   ;;  %v9310_v29 = vld [vmem:[%s14036_s1 + $0x28c] ss:$16 sps:$4 sm:$0xff]  }
  0x22   : > { %v9319_v36 = vld [vmem:[%s14036_s1 + $0x2c4] ss:$16 sps:$4 sm:$0xff]   ;;  %v9322_v37 = vld [vmem:[%s14036_s1 + $0x2cc] ss:$16 sps:$4 sm:$0xff]   ;;  %v9317_v38 = vld [vmem:[%s14036_s1 + $0x2c0] ss:$16 sps:$4 sm:$0xff]  }
  0x23   : > { %6536 = vmatpush1.bf16.msra.mxu0 %v9230_v30  ;;  %7192 = vmatpush1.bf16.msra.mxu1 %v9231_v31  ;;  %v9305_v30 = vld [vmem:[%s14036_s1 + $0x280] ss:$16 sps:$4 sm:$0xff]   ;;  %v9308_v31 = vld [vmem:[%s14036_s1 + $0x288] ss:$16 sps:$4 sm:$0xff]   ;;  %v9349_v58 = vld [vmem:[%s14036_s1 + $0x364] ss:$16 sps:$4 sm:$0xff]  }
  0x24   : > { %6537 = vmatprep.subr.bf16.mxu0 %v9232_v32  ;;  %7193 = vmatprep.subr.bf16.mxu1 %v9234_v33  ;;  %v9313_v32 = vld [vmem:[%s14036_s1 + $0x2a4] ss:$16 sps:$4 sm:$0xff]   ;;  %v9316_v33 = vld [vmem:[%s14036_s1 + $0x2ac] ss:$16 sps:$4 sm:$0xff]   ;;  %v9323_v43 = vld [vmem:[%s14036_s1 + $0x2e0] ss:$16 sps:$4 sm:$0xff]  }
  0x25   : > { %v9335_v52 = vld [vmem:[%s14036_s1 + $0x320] ss:$16 sps:$4 sm:$0xff]   ;;  %v9370_v7 = vld [vmem:[%s14036_s1 + $0x3cc] ss:$16 sps:$4 sm:$0xff]  }
  0x27   : > { %6538 = vmatpush1.bf16.msra.mxu0 %v9236_v34  ;;  %7194 = vmatpush1.bf16.msra.mxu1 %v9237_v35  ;;  %v9311_v34 = vld [vmem:[%s14036_s1 + $0x2a0] ss:$16 sps:$4 sm:$0xff]   ;;  %v9314_v35 = vld [vmem:[%s14036_s1 + $0x2a8] ss:$16 sps:$4 sm:$0xff]  }
  0x28   : > { %6539 = vmatprep.subr.bf16.mxu0 %v9238_v39  ;;  %7195 = vmatprep.subr.bf16.mxu1 %v9240_v40  ;;  %v9320_v39 = vld [vmem:[%s14036_s1 + $0x2c8] ss:$16 sps:$4 sm:$0xff]   ;;  %v9325_v40 = vld [vmem:[%s14036_s1 + $0x2e4] ss:$16 sps:$4 sm:$0xff]  }
  0x2b   : > { %6540 = vmatpush1.bf16.msra.mxu0 %v9242_v41  ;;  %7196 = vmatpush1.bf16.msra.mxu1 %v9243_v44  ;;  %v9328_v41 = vld [vmem:[%s14036_s1 + $0x2ec] ss:$16 sps:$4 sm:$0xff]   ;;  %v9326_v44 = vld [vmem:[%s14036_s1 + $0x2e8] ss:$16 sps:$4 sm:$0xff]  }
  0x2c   : > { %6541 = vmatprep.subr.bf16.mxu0 %v9244_v45  ;;  %7197 = vmatprep.subr.bf16.mxu1 %v9246_v46  ;;  %v9331_v45 = vld [vmem:[%s14036_s1 + $0x304] ss:$16 sps:$4 sm:$0xff]   ;;  %v9334_v46 = vld [vmem:[%s14036_s1 + $0x30c] ss:$16 sps:$4 sm:$0xff]  }
  0x2f   : > { %6542 = vmatpush1.bf16.msra.mxu0 %v9248_v47  ;;  %7198 = vmatpush1.bf16.msra.mxu1 %v9249_v48  ;;  %v9329_v47 = vld [vmem:[%s14036_s1 + $0x300] ss:$16 sps:$4 sm:$0xff]   ;;  %v9332_v48 = vld [vmem:[%s14036_s1 + $0x308] ss:$16 sps:$4 sm:$0xff]  }
  0x30   : > { %6543 = vmatprep.subr.bf16.mxu0 %v9250_v50  ;;  %7199 = vmatprep.subr.bf16.mxu1 %v9252_v51  ;;  %v9337_v50 = vld [vmem:[%s14036_s1 + $0x324] ss:$16 sps:$4 sm:$0xff]   ;;  %v9340_v51 = vld [vmem:[%s14036_s1 + $0x32c] ss:$16 sps:$4 sm:$0xff]  }
  0x33   : > { %6544 = vmatpush1.bf16.msra.mxu0 %v9254_v53  ;;  %7200 = vmatpush1.bf16.msra.mxu1 %v9255_v55  ;;  %v9338_v53 = vld [vmem:[%s14036_s1 + $0x328] ss:$16 sps:$4 sm:$0xff]   ;;  %v9346_v55 = vld [vmem:[%s14036_s1 + $0x34c] ss:$16 sps:$4 sm:$0xff]  }
  0x34   : > { %6545 = vmatprep.subr.bf16.mxu0 %v9256_v56  ;;  %7201 = vmatprep.subr.bf16.mxu1 %v9258_v57  ;;  %v9341_v56 = vld [vmem:[%s14036_s1 + $0x340] ss:$16 sps:$4 sm:$0xff]   ;;  %v9344_v57 = vld [vmem:[%s14036_s1 + $0x348] ss:$16 sps:$4 sm:$0xff]  }
  0x37   : > { %6546 = vmatpush1.bf16.msra.mxu0 %v9260_v59  ;;  %7202 = vmatpush1.bf16.msra.mxu1 %v9261_v60  ;;  %v9352_v59 = vld [vmem:[%s14036_s1 + $0x36c] ss:$16 sps:$4 sm:$0xff]   ;;  %v9347_v60 = vld [vmem:[%s14036_s1 + $0x360] ss:$16 sps:$4 sm:$0xff]  }
  0x38   : > { %6547 = vmatprep.subr.bf16.mxu0 %v9262_v61  ;;  %7203 = vmatprep.subr.bf16.mxu1 %v9264_v62  ;;  %v9350_v61 = vld [vmem:[%s14036_s1 + $0x368] ss:$16 sps:$4 sm:$0xff]   ;;  %v9355_v62 = vld [vmem:[%s14036_s1 + $0x384] ss:$16 sps:$4 sm:$0xff]  }
  0x3b   : > { %6548 = vmatpush1.bf16.msra.mxu0 %v9266_v63  ;;  %7204 = vmatpush1.bf16.msra.mxu1 %v9267_v0  ;;  %v9358_v63 = vld [vmem:[%s14036_s1 + $0x38c] ss:$16 sps:$4 sm:$0xff]   ;;  %v9353_v0 = vld [vmem:[%s14036_s1 + $0x380] ss:$16 sps:$4 sm:$0xff]  }
  0x3c   : > { %6549 = vmatprep.subr.bf16.mxu0 %v9268_v1  ;;  %7205 = vmatprep.subr.bf16.mxu1 %v9270_v2  ;;  %v9356_v1 = vld [vmem:[%s14036_s1 + $0x388] ss:$16 sps:$4 sm:$0xff]   ;;  %v9361_v2 = vld [vmem:[%s14036_s1 + $0x3a4] ss:$16 sps:$4 sm:$0xff]  }
  0x3f   : > { %6550 = vmatpush1.bf16.msra.mxu0 %v9272_v3  ;;  %7206 = vmatpush1.bf16.msra.mxu1 %v9273_v4  ;;  %v9364_v3 = vld [vmem:[%s14036_s1 + $0x3ac] ss:$16 sps:$4 sm:$0xff]   ;;  %v9359_v4 = vld [vmem:[%s14036_s1 + $0x3a0] ss:$16 sps:$4 sm:$0xff]  }
  0x40   : > { %6551 = vmatprep.subr.bf16.mxu0 %v9274_v5  ;;  %7207 = vmatprep.subr.bf16.mxu1 %v9276_v6  ;;  %v9362_v5 = vld [vmem:[%s14036_s1 + $0x3a8] ss:$16 sps:$4 sm:$0xff]   ;;  %v9367_v6 = vld [vmem:[%s14036_s1 + $0x3c4] ss:$16 sps:$4 sm:$0xff]  }
  0x43   : > { %6552 = vmatpush1.bf16.msra.mxu0 %v9278_v8  ;;  %7208 = vmatpush1.bf16.msra.mxu1 %v9279_v9  ;;  %v9365_v8 = vld [vmem:[%s14036_s1 + $0x3c0] ss:$16 sps:$4 sm:$0xff]   ;;  %v9368_v9 = vld [vmem:[%s14036_s1 + $0x3c8] ss:$16 sps:$4 sm:$0xff]  }
  0x44   : > { %6562 = vmatprep.subr.bf16.mxu0 %v9283_v10  ;;  %7218 = vmatprep.subr.bf16.mxu1 %v9286_v11  ;;  %v9373_v10 = vld [vmem:[%s14036_s1 + $0x3e4] ss:$16 sps:$4 sm:$0xff]   ;;  %v9376_v11 = vld [vmem:[%s14036_s1 + $0x3ec] ss:$16 sps:$4 sm:$0xff]  }
  0x46   : > { %6554 = vmatmul.mubr.bf16.vlgmr.msra.gmra.mrb[0].mxu0 %v1240_v54  ;;  %7210 = vmatmul.mubr.bf16.vlgmr.msra.gmra.mrb[0].mxu1 %v1240_v54  ;;  %v9343_v54 = vld [vmem:[%s14036_s1 + $0x344] ss:$16 sps:$4 sm:$0xff]  }
  0x47   : > { %6563 = vmatpush1.bf16.msra.mxu0 %v9281_v13  ;;  %7219 = vmatpush1.bf16.msra.mxu1 %v9284_v14  ;;  %v9371_v13 = vld [vmem:[%s14036_s1 + $0x3e0] ss:$16 sps:$4 sm:$0xff]   ;;  %v9374_v14 = vld [vmem:[%s14036_s1 + $0x3e8] ss:$16 sps:$4 sm:$0xff]  }
  0x48   : > { %6564 = vmatprep.subr.bf16.mxu0 %v9289_v15  ;;  %7220 = vmatprep.subr.bf16.mxu1 %v9292_v16  ;;  %v9379_v15 = vld [vmem:[%s14036_s1 + $0x404] ss:$16 sps:$4 sm:$0xff]   ;;  %v9382_v16 = vld [vmem:[%s14036_s1 + $0x40c] ss:$16 sps:$4 sm:$0xff]  }
  0x49   : > { %6594 = vmatprep.mubr.bf16.mxu0 %v1249_v17  ;;  %7250 = vmatprep.mubr.bf16.mxu1 %v1249_v17  ;;  %v9377_v17 = vld [vmem:[%s14036_s1 + $0x400] ss:$16 sps:$4 sm:$0xff]  }
  0x4b   : > { %6565 = vmatpush1.bf16.msra.mxu0 %v9287_v18  ;;  %7221 = vmatpush1.bf16.msra.mxu1 %v9290_v19  ;;  %v9380_v18 = vld [vmem:[%s14036_s1 + $0x408] ss:$16 sps:$4 sm:$0xff]  }
  0x4c   : > { %6566 = vmatprep.subr.bf16.mxu0 %v9295_v20  ;;  %7222 = vmatprep.subr.bf16.mxu1 %v9298_v21  ;;  %v11194_v19 = vld [vmem:[%s10917_s30 + $0x8] sm:$0xff]  ;;  %v9385_v20 = vld [vmem:[%s14036_s1 + $0x424] ss:$16 sps:$4 sm:$0xff]  }
  0x4d   : > { %v9388_v21 = vld [vmem:[%s14036_s1 + $0x42c] ss:$16 sps:$4 sm:$0xff]  }
  0x4f   : > { %6567 = vmatpush1.bf16.msra.mxu0 %v9293_v22  ;;  %7223 = vmatpush1.bf16.msra.mxu1 %v9296_v23  ;;  %v11204_v22 = vrot.slane %v11194_v19, %v10920_v49 }
  0x50   : > { %6568 = vmatprep.subr.bf16.mxu0 %v9301_v24  ;;  %7224 = vmatprep.subr.bf16.mxu1 %v9304_v25  ;;  %v9383_v24 = vld [vmem:[%s14036_s1 + $0x420] ss:$16 sps:$4 sm:$0xff]   ;;  %v9386_v25 = vld [vmem:[%s14036_s1 + $0x428] ss:$16 sps:$4 sm:$0xff]  }
  0x51   : > { %v1265_v23 = vcombine.high %v11204_v22, %v11204_v22 }
  0x53   : > { %6569 = vmatpush1.bf16.msra.mxu0 %v9299_v26  ;;  %7225 = vmatpush1.bf16.msra.mxu1 %v9302_v27  ;;  %v9391_v26 = vld [vmem:[%s14036_s1 + $0x444] ss:$16 sps:$4 sm:$0xff]   ;;  %v9389_v27 = vld [vmem:[%s14036_s1 + $0x440] ss:$16 sps:$4 sm:$0xff]  }
  0x54   : > { %6570 = vmatprep.subr.bf16.mxu0 %v9307_v28  ;;  %7226 = vmatprep.subr.bf16.mxu1 %v9310_v29  ;;  %v9392_v28 = vld [vmem:[%s14036_s1 + $0x448] ss:$16 sps:$4 sm:$0xff]   ;;  %v9397_v29 = vld [vmem:[%s14036_s1 + $0x464] ss:$16 sps:$4 sm:$0xff]  }
  0x57   : > { %6571 = vmatpush1.bf16.msra.mxu0 %v9305_v30  ;;  %7227 = vmatpush1.bf16.msra.mxu1 %v9308_v31  ;;  %v9400_v30 = vld [vmem:[%s14036_s1 + $0x46c] ss:$16 sps:$4 sm:$0xff]   ;;  %v9395_v31 = vld [vmem:[%s14036_s1 + $0x460] ss:$16 sps:$4 sm:$0xff]  }
  0x58   : > { %6572 = vmatprep.subr.bf16.mxu0 %v9313_v32  ;;  %7228 = vmatprep.subr.bf16.mxu1 %v9316_v33  ;;  %v9398_v32 = vld [vmem:[%s14036_s1 + $0x468] ss:$16 sps:$4 sm:$0xff]   ;;  %v9403_v33 = vld [vmem:[%s14036_s1 + $0x484] ss:$16 sps:$4 sm:$0xff]  }
  0x5b   : > { %6573 = vmatpush1.bf16.msra.mxu0 %v9311_v34  ;;  %7229 = vmatpush1.bf16.msra.mxu1 %v9314_v35  ;;  %v9406_v34 = vld [vmem:[%s14036_s1 + $0x48c] ss:$16 sps:$4 sm:$0xff]   ;;  %v9401_v35 = vld [vmem:[%s14036_s1 + $0x480] ss:$16 sps:$4 sm:$0xff]  }
  0x5c   : > { %6574 = vmatprep.subr.bf16.mxu0 %v9319_v36  ;;  %7230 = vmatprep.subr.bf16.mxu1 %v9322_v37  ;;  %v9404_v36 = vld [vmem:[%s14036_s1 + $0x488] ss:$16 sps:$4 sm:$0xff]   ;;  %v9409_v37 = vld [vmem:[%s14036_s1 + $0x4a4] ss:$16 sps:$4 sm:$0xff]  }
  0x5f   : > { %6575 = vmatpush1.bf16.msra.mxu0 %v9317_v38  ;;  %7231 = vmatpush1.bf16.msra.mxu1 %v9320_v39  ;;  %v9412_v38 = vld [vmem:[%s14036_s1 + $0x4ac] ss:$16 sps:$4 sm:$0xff]   ;;  %v9407_v39 = vld [vmem:[%s14036_s1 + $0x4a0] ss:$16 sps:$4 sm:$0xff]  }
  0x60   : > { %6576 = vmatprep.subr.bf16.mxu0 %v9325_v40  ;;  %7232 = vmatprep.subr.bf16.mxu1 %v9328_v41  ;;  %v9410_v40 = vld [vmem:[%s14036_s1 + $0x4a8] ss:$16 sps:$4 sm:$0xff]   ;;  %v9415_v41 = vld [vmem:[%s14036_s1 + $0x4c4] ss:$16 sps:$4 sm:$0xff]  }
  0x63   : > { %6577 = vmatpush1.bf16.msra.mxu0 %v9323_v43  ;;  %7233 = vmatpush1.bf16.msra.mxu1 %v9326_v44  ;;  %v9418_v43 = vld [vmem:[%s14036_s1 + $0x4cc] ss:$16 sps:$4 sm:$0xff]   ;;  %v9413_v44 = vld [vmem:[%s14036_s1 + $0x4c0] ss:$16 sps:$4 sm:$0xff]  }
  0x64   : > { %6578 = vmatprep.subr.bf16.mxu0 %v9331_v45  ;;  %7234 = vmatprep.subr.bf16.mxu1 %v9334_v46  ;;  %v9416_v45 = vld [vmem:[%s14036_s1 + $0x4c8] ss:$16 sps:$4 sm:$0xff]   ;;  %v9421_v46 = vld [vmem:[%s14036_s1 + $0x4e4] ss:$16 sps:$4 sm:$0xff]  }
  0x67   : > { %6579 = vmatpush1.bf16.msra.mxu0 %v9329_v47  ;;  %7235 = vmatpush1.bf16.msra.mxu1 %v9332_v48  ;;  %v9424_v47 = vld [vmem:[%s14036_s1 + $0x4ec] ss:$16 sps:$4 sm:$0xff]   ;;  %v9419_v48 = vld [vmem:[%s14036_s1 + $0x4e0] ss:$16 sps:$4 sm:$0xff]  }
  0x68   : > { %6580 = vmatprep.subr.bf16.mxu0 %v9337_v50  ;;  %7236 = vmatprep.subr.bf16.mxu1 %v9340_v51  ;;  %v9422_v50 = vld [vmem:[%s14036_s1 + $0x4e8] ss:$16 sps:$4 sm:$0xff]   ;;  %v9427_v51 = vld [vmem:[%s14036_s1 + $0x504] ss:$16 sps:$4 sm:$0xff]  }
  0x6b   : > { %6581 = vmatpush1.bf16.msra.mxu0 %v9335_v52  ;;  %7237 = vmatpush1.bf16.msra.mxu1 %v9338_v53  ;;  %v9430_v52 = vld [vmem:[%s14036_s1 + $0x50c] ss:$16 sps:$4 sm:$0xff]   ;;  %v9425_v53 = vld [vmem:[%s14036_s1 + $0x500] ss:$16 sps:$4 sm:$0xff]  }
  0x6c   : > { %6582 = vmatprep.subr.bf16.mxu0 %v9343_v54  ;;  %7238 = vmatprep.subr.bf16.mxu1 %v9346_v55  ;;  %v9428_v54 = vld [vmem:[%s14036_s1 + $0x508] ss:$16 sps:$4 sm:$0xff]   ;;  %v9433_v55 = vld [vmem:[%s14036_s1 + $0x524] ss:$16 sps:$4 sm:$0xff]  }
  0x6f   : > { %6583 = vmatpush1.bf16.msra.mxu0 %v9341_v56  ;;  %7239 = vmatpush1.bf16.msra.mxu1 %v9344_v57  ;;  %v9436_v56 = vld [vmem:[%s14036_s1 + $0x52c] ss:$16 sps:$4 sm:$0xff]   ;;  %v9431_v57 = vld [vmem:[%s14036_s1 + $0x520] ss:$16 sps:$4 sm:$0xff]  }
  0x70   : > { %6584 = vmatprep.subr.bf16.mxu0 %v9349_v58  ;;  %7240 = vmatprep.subr.bf16.mxu1 %v9352_v59  ;;  %v9434_v58 = vld [vmem:[%s14036_s1 + $0x528] ss:$16 sps:$4 sm:$0xff]   ;;  %v9439_v59 = vld [vmem:[%s14036_s1 + $0x544] ss:$16 sps:$4 sm:$0xff]  }
  0x73   : > { %6585 = vmatpush1.bf16.msra.mxu0 %v9347_v60  ;;  %7241 = vmatpush1.bf16.msra.mxu1 %v9350_v61  ;;  %v9442_v60 = vld [vmem:[%s14036_s1 + $0x54c] ss:$16 sps:$4 sm:$0xff]   ;;  %v9437_v61 = vld [vmem:[%s14036_s1 + $0x540] ss:$16 sps:$4 sm:$0xff]  }
  0x74   : > { %6586 = vmatprep.subr.bf16.mxu0 %v9355_v62  ;;  %7242 = vmatprep.subr.bf16.mxu1 %v9358_v63  ;;  %v9440_v62 = vld [vmem:[%s14036_s1 + $0x548] ss:$16 sps:$4 sm:$0xff]   ;;  %v9445_v63 = vld [vmem:[%s14036_s1 + $0x564] ss:$16 sps:$4 sm:$0xff]  }
  0x77   : > { %6587 = vmatpush1.bf16.msra.mxu0 %v9353_v0  ;;  %7243 = vmatpush1.bf16.msra.mxu1 %v9356_v1  ;;  %v9448_v0 = vld [vmem:[%s14036_s1 + $0x56c] ss:$16 sps:$4 sm:$0xff]   ;;  %v9443_v1 = vld [vmem:[%s14036_s1 + $0x560] ss:$16 sps:$4 sm:$0xff]  }
  0x78   : > { %6588 = vmatprep.subr.bf16.mxu0 %v9361_v2  ;;  %7244 = vmatprep.subr.bf16.mxu1 %v9364_v3  ;;  %v9446_v2 = vld [vmem:[%s14036_s1 + $0x568] ss:$16 sps:$4 sm:$0xff]   ;;  %v9451_v3 = vld [vmem:[%s14036_s1 + $0x584] ss:$16 sps:$4 sm:$0xff]  }
  0x7b   : > { %6589 = vmatpush1.bf16.msra.mxu0 %v9359_v4  ;;  %7245 = vmatpush1.bf16.msra.mxu1 %v9362_v5  ;;  %v9454_v4 = vld [vmem:[%s14036_s1 + $0x58c] ss:$16 sps:$4 sm:$0xff]   ;;  %v9449_v5 = vld [vmem:[%s14036_s1 + $0x580] ss:$16 sps:$4 sm:$0xff]  }
  0x7c   : > { %6590 = vmatprep.subr.bf16.mxu0 %v9367_v6  ;;  %7246 = vmatprep.subr.bf16.mxu1 %v9370_v7  ;;  %v9452_v6 = vld [vmem:[%s14036_s1 + $0x588] ss:$16 sps:$4 sm:$0xff]   ;;  %v9457_v7 = vld [vmem:[%s14036_s1 + $0x5a4] ss:$16 sps:$4 sm:$0xff]  }
  0x7f   : > { %6591 = vmatpush1.bf16.msra.mxu0 %v9365_v8  ;;  %7247 = vmatpush1.bf16.msra.mxu1 %v9368_v9  ;;  %v9460_v8 = vld [vmem:[%s14036_s1 + $0x5ac] ss:$16 sps:$4 sm:$0xff]   ;;  %v9455_v9 = vld [vmem:[%s14036_s1 + $0x5a0] ss:$16 sps:$4 sm:$0xff]  }
  0x80   : > { %6592 = vmatprep.subr.bf16.mxu0 %v9373_v10  ;;  %7248 = vmatprep.subr.bf16.mxu1 %v9376_v11  ;;  %v9458_v10 = vld [vmem:[%s14036_s1 + $0x5a8] ss:$16 sps:$4 sm:$0xff]   ;;  %v9463_v11 = vld [vmem:[%s14036_s1 + $0x5c4] ss:$16 sps:$4 sm:$0xff]  }
  0x83   : > { %6593 = vmatpush1.bf16.msra.mxu0 %v9371_v13  ;;  %7249 = vmatpush1.bf16.msra.mxu1 %v9374_v14  ;;  %v9466_v13 = vld [vmem:[%s14036_s1 + $0x5cc] ss:$16 sps:$4 sm:$0xff]   ;;  %v9461_v14 = vld [vmem:[%s14036_s1 + $0x5c0] ss:$16 sps:$4 sm:$0xff]  }
  0x84   : > { %6603 = vmatprep.subr.bf16.mxu0 %v9379_v15  ;;  %7259 = vmatprep.subr.bf16.mxu1 %v9382_v16  ;;  %v9464_v15 = vld [vmem:[%s14036_s1 + $0x5c8] ss:$16 sps:$4 sm:$0xff]   ;;  %v9469_v16 = vld [vmem:[%s14036_s1 + $0x5e4] ss:$16 sps:$4 sm:$0xff]  }
  0x86   : > { %6595 = vmatmul.mubr.bf16.vlgmr.msra.gmra.mrb[0].mxu0 %v10991_v12  ;;  %7251 = vmatmul.mubr.bf16.vlgmr.msra.gmra.mrb[0].mxu1 %v10991_v12  ;;  %v9394_v12 = vld [vmem:[%s14036_s1 + $0x44c] ss:$16 sps:$4 sm:$0xff]  }
  0x87   : > { %6604 = vmatpush1.bf16.msra.mxu0 %v9377_v17  ;;  %7260 = vmatpush1.bf16.msra.mxu1 %v9380_v18  ;;  %v9472_v17 = vld [vmem:[%s14036_s1 + $0x5ec] ss:$16 sps:$4 sm:$0xff]   ;;  %v1250_v18 = vcombine.high %v11194_v19, %v11194_v19 }
  0x88   : > { %6605 = vmatprep.subr.bf16.mxu0 %v9385_v20  ;;  %7261 = vmatprep.subr.bf16.mxu1 %v9388_v21  ;;  %v9467_v20 = vld [vmem:[%s14036_s1 + $0x5e0] ss:$16 sps:$4 sm:$0xff]   ;;  %v9470_v21 = vld [vmem:[%s14036_s1 + $0x5e8] ss:$16 sps:$4 sm:$0xff]   ;;  %v9478_v19 = vld [vmem:[%s14036_s1 + $0x60c] ss:$16 sps:$4 sm:$0xff]  }
  0x89   : > { %6635 = vmatprep.mubr.bf16.mxu0 %v1265_v23  ;;  %7291 = vmatprep.mubr.bf16.mxu1 %v1265_v23  ;;  %v9475_v23 = vld [vmem:[%s14036_s1 + $0x604] ss:$16 sps:$4 sm:$0xff]  }
  0x8b   : > { %6606 = vmatpush1.bf16.msra.mxu0 %v9383_v24  ;;  %7262 = vmatpush1.bf16.msra.mxu1 %v9386_v25  ;;  %v11393_v24 = vrot.slane %v1250_v18, %v10920_v49  ;;  %v9473_v25 = vld [vmem:[%s14036_s1 + $0x600] ss:$16 sps:$4 sm:$0xff]   ;;  %v9562_v18 = vld [vmem:[%s14036_s1 + $0x7cc] ss:$16 sps:$4 sm:$0xff]  }
  0x8c   : > { %6607 = vmatprep.subr.bf16.mxu0 %v9391_v26  ;;  %7263 = vmatprep.subr.bf16.mxu1 %v9394_v12  ;;  %v9476_v26 = vld [vmem:[%s14036_s1 + $0x608] ss:$16 sps:$4 sm:$0xff]   ;;  %v9481_v12 = vld [vmem:[%s14036_s1 + $0x624] ss:$16 sps:$4 sm:$0xff]  }
  0x8f   : > { %6608 = vmatpush1.bf16.msra.mxu0 %v9389_v27  ;;  %7264 = vmatpush1.bf16.msra.mxu1 %v9392_v28  ;;  %v9484_v27 = vld [vmem:[%s14036_s1 + $0x62c] ss:$16 sps:$4 sm:$0xff]   ;;  %v1266_v28 = vcombine.high %v11393_v24, %v11393_v24 }
  0x90   : > { %6609 = vmatprep.subr.bf16.mxu0 %v9397_v29  ;;  %7265 = vmatprep.subr.bf16.mxu1 %v9400_v30  ;;  %v9479_v29 = vld [vmem:[%s14036_s1 + $0x620] ss:$16 sps:$4 sm:$0xff]   ;;  %v9482_v30 = vld [vmem:[%s14036_s1 + $0x628] ss:$16 sps:$4 sm:$0xff]  }
  0x93   : > { %6610 = vmatpush1.bf16.msra.mxu0 %v9395_v31  ;;  %7266 = vmatpush1.bf16.msra.mxu1 %v9398_v32  ;;  %v9487_v31 = vld [vmem:[%s14036_s1 + $0x644] ss:$16 sps:$4 sm:$0xff]   ;;  %v9485_v32 = vld [vmem:[%s14036_s1 + $0x640] ss:$16 sps:$4 sm:$0xff]  }
  0x94   : > { %6611 = vmatprep.subr.bf16.mxu0 %v9403_v33  ;;  %7267 = vmatprep.subr.bf16.mxu1 %v9406_v34  ;;  %v9488_v33 = vld [vmem:[%s14036_s1 + $0x648] ss:$16 sps:$4 sm:$0xff]   ;;  %v9493_v34 = vld [vmem:[%s14036_s1 + $0x664] ss:$16 sps:$4 sm:$0xff]  }
  0x97   : > { %6612 = vmatpush1.bf16.msra.mxu0 %v9401_v35  ;;  %7268 = vmatpush1.bf16.msra.mxu1 %v9404_v36  ;;  %v9496_v35 = vld [vmem:[%s14036_s1 + $0x66c] ss:$16 sps:$4 sm:$0xff]   ;;  %v9491_v36 = vld [vmem:[%s14036_s1 + $0x660] ss:$16 sps:$4 sm:$0xff]  }
  0x98   : > { %6613 = vmatprep.subr.bf16.mxu0 %v9409_v37  ;;  %7269 = vmatprep.subr.bf16.mxu1 %v9412_v38  ;;  %v9494_v37 = vld [vmem:[%s14036_s1 + $0x668] ss:$16 sps:$4 sm:$0xff]   ;;  %v9499_v38 = vld [vmem:[%s14036_s1 + $0x684] ss:$16 sps:$4 sm:$0xff]  }
  0x9b   : > { %6614 = vmatpush1.bf16.msra.mxu0 %v9407_v39  ;;  %7270 = vmatpush1.bf16.msra.mxu1 %v9410_v40  ;;  %v9502_v39 = vld [vmem:[%s14036_s1 + $0x68c] ss:$16 sps:$4 sm:$0xff]   ;;  %v9497_v40 = vld [vmem:[%s14036_s1 + $0x680] ss:$16 sps:$4 sm:$0xff]  }
  0x9c   : > { %6615 = vmatprep.subr.bf16.mxu0 %v9415_v41  ;;  %7271 = vmatprep.subr.bf16.mxu1 %v9418_v43  ;;  %v9500_v41 = vld [vmem:[%s14036_s1 + $0x688] ss:$16 sps:$4 sm:$0xff]   ;;  %v9505_v43 = vld [vmem:[%s14036_s1 + $0x6a4] ss:$16 sps:$4 sm:$0xff]  }
  0x9f   : > { %6616 = vmatpush1.bf16.msra.mxu0 %v9413_v44  ;;  %7272 = vmatpush1.bf16.msra.mxu1 %v9416_v45  ;;  %v9508_v44 = vld [vmem:[%s14036_s1 + $0x6ac] ss:$16 sps:$4 sm:$0xff]   ;;  %v9503_v45 = vld [vmem:[%s14036_s1 + $0x6a0] ss:$16 sps:$4 sm:$0xff]  }
  0xa0   : > { %6617 = vmatprep.subr.bf16.mxu0 %v9421_v46  ;;  %7273 = vmatprep.subr.bf16.mxu1 %v9424_v47  ;;  %v9506_v46 = vld [vmem:[%s14036_s1 + $0x6a8] ss:$16 sps:$4 sm:$0xff]   ;;  %v9511_v47 = vld [vmem:[%s14036_s1 + $0x6c4] ss:$16 sps:$4 sm:$0xff]  }
  0xa3   : > { %6618 = vmatpush1.bf16.msra.mxu0 %v9419_v48  ;;  %7274 = vmatpush1.bf16.msra.mxu1 %v9422_v50  ;;  %v9514_v48 = vld [vmem:[%s14036_s1 + $0x6cc] ss:$16 sps:$4 sm:$0xff]   ;;  %v9509_v50 = vld [vmem:[%s14036_s1 + $0x6c0] ss:$16 sps:$4 sm:$0xff]  }
  0xa4   : > { %6619 = vmatprep.subr.bf16.mxu0 %v9427_v51  ;;  %7275 = vmatprep.subr.bf16.mxu1 %v9430_v52  ;;  %v9512_v51 = vld [vmem:[%s14036_s1 + $0x6c8] ss:$16 sps:$4 sm:$0xff]   ;;  %v9517_v52 = vld [vmem:[%s14036_s1 + $0x6e4] ss:$16 sps:$4 sm:$0xff]  }
  0xa7   : > { %6620 = vmatpush1.bf16.msra.mxu0 %v9425_v53  ;;  %7276 = vmatpush1.bf16.msra.mxu1 %v9428_v54  ;;  %v9520_v53 = vld [vmem:[%s14036_s1 + $0x6ec] ss:$16 sps:$4 sm:$0xff]   ;;  %v9515_v54 = vld [vmem:[%s14036_s1 + $0x6e0] ss:$16 sps:$4 sm:$0xff]  }
  0xa8   : > { %6621 = vmatprep.subr.bf16.mxu0 %v9433_v55  ;;  %7277 = vmatprep.subr.bf16.mxu1 %v9436_v56  ;;  %v9518_v55 = vld [vmem:[%s14036_s1 + $0x6e8] ss:$16 sps:$4 sm:$0xff]   ;;  %v9523_v56 = vld [vmem:[%s14036_s1 + $0x704] ss:$16 sps:$4 sm:$0xff]  }
  0xab   : > { %6622 = vmatpush1.bf16.msra.mxu0 %v9431_v57  ;;  %7278 = vmatpush1.bf16.msra.mxu1 %v9434_v58  ;;  %v9526_v57 = vld [vmem:[%s14036_s1 + $0x70c] ss:$16 sps:$4 sm:$0xff]   ;;  %v9521_v58 = vld [vmem:[%s14036_s1 + $0x700] ss:$16 sps:$4 sm:$0xff]  }
  0xac   : > { %6623 = vmatprep.subr.bf16.mxu0 %v9439_v59  ;;  %7279 = vmatprep.subr.bf16.mxu1 %v9442_v60  ;;  %v9524_v59 = vld [vmem:[%s14036_s1 + $0x708] ss:$16 sps:$4 sm:$0xff]   ;;  %v9529_v60 = vld [vmem:[%s14036_s1 + $0x724] ss:$16 sps:$4 sm:$0xff]  }
  0xaf   : > { %6624 = vmatpush1.bf16.msra.mxu0 %v9437_v61  ;;  %7280 = vmatpush1.bf16.msra.mxu1 %v9440_v62  ;;  %v9532_v61 = vld [vmem:[%s14036_s1 + $0x72c] ss:$16 sps:$4 sm:$0xff]   ;;  %v9527_v62 = vld [vmem:[%s14036_s1 + $0x720] ss:$16 sps:$4 sm:$0xff]  }
  0xb0   : > { %6625 = vmatprep.subr.bf16.mxu0 %v9445_v63  ;;  %7281 = vmatprep.subr.bf16.mxu1 %v9448_v0  ;;  %v9530_v63 = vld [vmem:[%s14036_s1 + $0x728] ss:$16 sps:$4 sm:$0xff]   ;;  %v9535_v0 = vld [vmem:[%s14036_s1 + $0x744] ss:$16 sps:$4 sm:$0xff]  }
  0xb3   : > { %6626 = vmatpush1.bf16.msra.mxu0 %v9443_v1  ;;  %7282 = vmatpush1.bf16.msra.mxu1 %v9446_v2  ;;  %v9538_v1 = vld [vmem:[%s14036_s1 + $0x74c] ss:$16 sps:$4 sm:$0xff]   ;;  %v9533_v2 = vld [vmem:[%s14036_s1 + $0x740] ss:$16 sps:$4 sm:$0xff]  }
  0xb4   : > { %6627 = vmatprep.subr.bf16.mxu0 %v9451_v3  ;;  %7283 = vmatprep.subr.bf16.mxu1 %v9454_v4  ;;  %v9536_v3 = vld [vmem:[%s14036_s1 + $0x748] ss:$16 sps:$4 sm:$0xff]   ;;  %v9541_v4 = vld [vmem:[%s14036_s1 + $0x764] ss:$16 sps:$4 sm:$0xff]  }
  0xb7   : > { %6628 = vmatpush1.bf16.msra.mxu0 %v9449_v5  ;;  %7284 = vmatpush1.bf16.msra.mxu1 %v9452_v6  ;;  %v9544_v5 = vld [vmem:[%s14036_s1 + $0x76c] ss:$16 sps:$4 sm:$0xff]   ;;  %v9539_v6 = vld [vmem:[%s14036_s1 + $0x760] ss:$16 sps:$4 sm:$0xff]  }
  0xb8   : > { %6629 = vmatprep.subr.bf16.mxu0 %v9457_v7  ;;  %7285 = vmatprep.subr.bf16.mxu1 %v9460_v8  ;;  %v9542_v7 = vld [vmem:[%s14036_s1 + $0x768] ss:$16 sps:$4 sm:$0xff]   ;;  %v9547_v8 = vld [vmem:[%s14036_s1 + $0x784] ss:$16 sps:$4 sm:$0xff]  }
  0xbb   : > { %6630 = vmatpush1.bf16.msra.mxu0 %v9455_v9  ;;  %7286 = vmatpush1.bf16.msra.mxu1 %v9458_v10  ;;  %v9550_v9 = vld [vmem:[%s14036_s1 + $0x78c] ss:$16 sps:$4 sm:$0xff]   ;;  %v9545_v10 = vld [vmem:[%s14036_s1 + $0x780] ss:$16 sps:$4 sm:$0xff]  }
  0xbc   : > { %6631 = vmatprep.subr.bf16.mxu0 %v9463_v11  ;;  %7287 = vmatprep.subr.bf16.mxu1 %v9466_v13  ;;  %v9548_v11 = vld [vmem:[%s14036_s1 + $0x788] ss:$16 sps:$4 sm:$0xff]   ;;  %v9553_v13 = vld [vmem:[%s14036_s1 + $0x7a4] ss:$16 sps:$4 sm:$0xff]  }
  0xbf   : > { %6632 = vmatpush1.bf16.msra.mxu0 %v9461_v14  ;;  %7288 = vmatpush1.bf16.msra.mxu1 %v9464_v15  ;;  %v9556_v14 = vld [vmem:[%s14036_s1 + $0x7ac] ss:$16 sps:$4 sm:$0xff]   ;;  %v9551_v15 = vld [vmem:[%s14036_s1 + $0x7a0] ss:$16 sps:$4 sm:$0xff]  }
  0xc0   : > { %6633 = vmatprep.subr.bf16.mxu0 %v9469_v16  ;;  %7289 = vmatprep.subr.bf16.mxu1 %v9472_v17  ;;  %v9554_v16 = vld [vmem:[%s14036_s1 + $0x7a8] ss:$16 sps:$4 sm:$0xff]   ;;  %v9559_v17 = vld [vmem:[%s14036_s1 + $0x7c4] ss:$16 sps:$4 sm:$0xff]  }
  0xc3   : > { %6634 = vmatpush1.bf16.msra.mxu0 %v9467_v20  ;;  %7290 = vmatpush1.bf16.msra.mxu1 %v9470_v21  ;;  %v9557_v20 = vld [vmem:[%s14036_s1 + $0x7c0] ss:$16 sps:$4 sm:$0xff]   ;;  %v9560_v21 = vld [vmem:[%s14036_s1 + $0x7c8] ss:$16 sps:$4 sm:$0xff]  }
  0xc4   : > { %6644 = vmatprep.subr.bf16.mxu0 %v9475_v23  ;;  %7300 = vmatprep.subr.bf16.mxu1 %v9478_v19  ;;  %v9565_v23 = vld [vmem:[%s14036_s1 + $0x7e4] ss:$16 sps:$4 sm:$0xff]   ;;  %v9568_v19 = vld [vmem:[%s14036_s1 + $0x7ec] ss:$16 sps:$4 sm:$0xff]  }
  0xc6   : > { %6636 = vmatmul.mubr.bf16.vlgmr.msra.gmra.mrb[0].mxu0 %v11204_v22  ;;  %7292 = vmatmul.mubr.bf16.vlgmr.msra.gmra.mrb[0].mxu1 %v11204_v22  ;;  %v9490_v22 = vld [vmem:[%s14036_s1 + $0x64c] ss:$16 sps:$4 sm:$0xff]  }
  0xc7   : > { %6645 = vmatpush1.bf16.msra.mxu0 %v9473_v25  ;;  %7301 = vmatpush1.bf16.msra.mxu1 %v9476_v26  ;;  %v9563_v25 = vld [vmem:[%s14036_s1 + $0x7e0] ss:$16 sps:$4 sm:$0xff]  }
  0xc8   : > { %6646 = vmatprep.subr.bf16.mxu0 %v9481_v12  ;;  %7302 = vmatprep.subr.bf16.mxu1 %v9484_v27  ;;  %v11583_v26 = vld [vmem:[%s10917_s30 + $0x10] sm:$0xff]  ;;  %v9566_v12 = vld [vmem:[%s14036_s1 + $0x7e8] ss:$16 sps:$4 sm:$0xff]  }
  0xc9   : > { %6676 = vmatprep.mubr.bf16.mxu0 %v1266_v28  ;;  %7332 = vmatprep.mubr.bf16.mxu1 %v1266_v28  ;;  %v9572_v27 = vld [vmem:[%s14036_s1 + $0x804] ss:$16 sps:$4 sm:$0xff]   ;;  %v9575_v28 = vld [vmem:[%s14036_s1 + $0x80c] ss:$16 sps:$4 sm:$0xff]  }
  0xcb   : > { %6647 = vmatpush1.bf16.msra.mxu0 %v9479_v29  ;;  %7303 = vmatpush1.bf16.msra.mxu1 %v9482_v30  ;;  %v11596_v29 = vrot.slane %v11583_v26, %v10920_v49  ;;  %v9570_v30 = vld [vmem:[%s14036_s1 + $0x800] ss:$16 sps:$4 sm:$0xff]  }
  0xcc   : > { %6648 = vmatprep.subr.bf16.mxu0 %v9487_v31  ;;  %7304 = vmatprep.subr.bf16.mxu1 %v9490_v22  ;;  %v9573_v31 = vld [vmem:[%s14036_s1 + $0x808] ss:$16 sps:$4 sm:$0xff]   ;;  %v9578_v22 = vld [vmem:[%s14036_s1 + $0x824] ss:$16 sps:$4 sm:$0xff]  }
  0xcf   : > { %6649 = vmatpush1.bf16.msra.mxu0 %v9485_v32  ;;  %7305 = vmatpush1.bf16.msra.mxu1 %v9488_v33  ;;  %v9581_v32 = vld [vmem:[%s14036_s1 + $0x82c] ss:$16 sps:$4 sm:$0xff]   ;;  %v1282_v33 = vcombine.high %v11596_v29, %v11596_v29 }
  0xd0   : > { %6650 = vmatprep.subr.bf16.mxu0 %v9493_v34  ;;  %7306 = vmatprep.subr.bf16.mxu1 %v9496_v35  ;;  %v9576_v34 = vld [vmem:[%s14036_s1 + $0x820] ss:$16 sps:$4 sm:$0xff]   ;;  %v9579_v35 = vld [vmem:[%s14036_s1 + $0x828] ss:$16 sps:$4 sm:$0xff]  }
  0xd3   : > { %6651 = vmatpush1.bf16.msra.mxu0 %v9491_v36  ;;  %7307 = vmatpush1.bf16.msra.mxu1 %v9494_v37  ;;  %v9584_v36 = vld [vmem:[%s14036_s1 + $0x844] ss:$16 sps:$4 sm:$0xff]   ;;  %v9582_v37 = vld [vmem:[%s14036_s1 + $0x840] ss:$16 sps:$4 sm:$0xff]  }
  0xd4   : > { %6652 = vmatprep.subr.bf16.mxu0 %v9499_v38  ;;  %7308 = vmatprep.subr.bf16.mxu1 %v9502_v39  ;;  %v9585_v38 = vld [vmem:[%s14036_s1 + $0x848] ss:$16 sps:$4 sm:$0xff]   ;;  %v9590_v39 = vld [vmem:[%s14036_s1 + $0x864] ss:$16 sps:$4 sm:$0xff]  }
  0xd7   : > { %6653 = vmatpush1.bf16.msra.mxu0 %v9497_v40  ;;  %7309 = vmatpush1.bf16.msra.mxu1 %v9500_v41  ;;  %v9593_v40 = vld [vmem:[%s14036_s1 + $0x86c] ss:$16 sps:$4 sm:$0xff]   ;;  %v9588_v41 = vld [vmem:[%s14036_s1 + $0x860] ss:$16 sps:$4 sm:$0xff]  }
  0xd8   : > { %6654 = vmatprep.subr.bf16.mxu0 %v9505_v43  ;;  %7310 = vmatprep.subr.bf16.mxu1 %v9508_v44  ;;  %v9591_v43 = vld [vmem:[%s14036_s1 + $0x868] ss:$16 sps:$4 sm:$0xff]   ;;  %v9596_v44 = vld [vmem:[%s14036_s1 + $0x884] ss:$16 sps:$4 sm:$0xff]  }
  0xdb   : > { %6655 = vmatpush1.bf16.msra.mxu0 %v9503_v45  ;;  %7311 = vmatpush1.bf16.msra.mxu1 %v9506_v46  ;;  %v9599_v45 = vld [vmem:[%s14036_s1 + $0x88c] ss:$16 sps:$4 sm:$0xff]   ;;  %v9594_v46 = vld [vmem:[%s14036_s1 + $0x880] ss:$16 sps:$4 sm:$0xff]  }
  0xdc   : > { %6656 = vmatprep.subr.bf16.mxu0 %v9511_v47  ;;  %7312 = vmatprep.subr.bf16.mxu1 %v9514_v48  ;;  %v9597_v47 = vld [vmem:[%s14036_s1 + $0x888] ss:$16 sps:$4 sm:$0xff]   ;;  %v9602_v48 = vld [vmem:[%s14036_s1 + $0x8a4] ss:$16 sps:$4 sm:$0xff]  }
  0xdf   : > { %6657 = vmatpush1.bf16.msra.mxu0 %v9509_v50  ;;  %7313 = vmatpush1.bf16.msra.mxu1 %v9512_v51  ;;  %v9605_v50 = vld [vmem:[%s14036_s1 + $0x8ac] ss:$16 sps:$4 sm:$0xff]   ;;  %v9600_v51 = vld [vmem:[%s14036_s1 + $0x8a0] ss:$16 sps:$4 sm:$0xff]  }
  0xe0   : > { %6658 = vmatprep.subr.bf16.mxu0 %v9517_v52  ;;  %7314 = vmatprep.subr.bf16.mxu1 %v9520_v53  ;;  %v9603_v52 = vld [vmem:[%s14036_s1 + $0x8a8] ss:$16 sps:$4 sm:$0xff]   ;;  %v9608_v53 = vld [vmem:[%s14036_s1 + $0x8c4] ss:$16 sps:$4 sm:$0xff]  }
  0xe3   : > { %6659 = vmatpush1.bf16.msra.mxu0 %v9515_v54  ;;  %7315 = vmatpush1.bf16.msra.mxu1 %v9518_v55  ;;  %v9611_v54 = vld [vmem:[%s14036_s1 + $0x8cc] ss:$16 sps:$4 sm:$0xff]   ;;  %v9606_v55 = vld [vmem:[%s14036_s1 + $0x8c0] ss:$16 sps:$4 sm:$0xff]  }
  0xe4   : > { %6660 = vmatprep.subr.bf16.mxu0 %v9523_v56  ;;  %7316 = vmatprep.subr.bf16.mxu1 %v9526_v57  ;;  %v9609_v56 = vld [vmem:[%s14036_s1 + $0x8c8] ss:$16 sps:$4 sm:$0xff]   ;;  %v9614_v57 = vld [vmem:[%s14036_s1 + $0x8e4] ss:$16 sps:$4 sm:$0xff]  }
  0xe7   : > { %6661 = vmatpush1.bf16.msra.mxu0 %v9521_v58  ;;  %7317 = vmatpush1.bf16.msra.mxu1 %v9524_v59  ;;  %v9617_v58 = vld [vmem:[%s14036_s1 + $0x8ec] ss:$16 sps:$4 sm:$0xff]   ;;  %v9612_v59 = vld [vmem:[%s14036_s1 + $0x8e0] ss:$16 sps:$4 sm:$0xff]  }
  0xe8   : > { %6662 = vmatprep.subr.bf16.mxu0 %v9529_v60  ;;  %7318 = vmatprep.subr.bf16.mxu1 %v9532_v61  ;;  %v9615_v60 = vld [vmem:[%s14036_s1 + $0x8e8] ss:$16 sps:$4 sm:$0xff]   ;;  %v9620_v61 = vld [vmem:[%s14036_s1 + $0x904] ss:$16 sps:$4 sm:$0xff]  }
  0xeb   : > { %6663 = vmatpush1.bf16.msra.mxu0 %v9527_v62  ;;  %7319 = vmatpush1.bf16.msra.mxu1 %v9530_v63  ;;  %v9623_v62 = vld [vmem:[%s14036_s1 + $0x90c] ss:$16 sps:$4 sm:$0xff]   ;;  %v9618_v63 = vld [vmem:[%s14036_s1 + $0x900] ss:$16 sps:$4 sm:$0xff]  }
  0xec   : > { %6664 = vmatprep.subr.bf16.mxu0 %v9535_v0  ;;  %7320 = vmatprep.subr.bf16.mxu1 %v9538_v1  ;;  %v9621_v0 = vld [vmem:[%s14036_s1 + $0x908] ss:$16 sps:$4 sm:$0xff]   ;;  %v9626_v1 = vld [vmem:[%s14036_s1 + $0x924] ss:$16 sps:$4 sm:$0xff]  }
  0xef   : > { %6665 = vmatpush1.bf16.msra.mxu0 %v9533_v2  ;;  %7321 = vmatpush1.bf16.msra.mxu1 %v9536_v3  ;;  %v9629_v2 = vld [vmem:[%s14036_s1 + $0x92c] ss:$16 sps:$4 sm:$0xff]   ;;  %v9624_v3 = vld [vmem:[%s14036_s1 + $0x920] ss:$16 sps:$4 sm:$0xff]  }
  0xf0   : > { %6666 = vmatprep.subr.bf16.mxu0 %v9541_v4  ;;  %7322 = vmatprep.subr.bf16.mxu1 %v9544_v5  ;;  %v9627_v4 = vld [vmem:[%s14036_s1 + $0x928] ss:$16 sps:$4 sm:$0xff]   ;;  %v9632_v5 = vld [vmem:[%s14036_s1 + $0x944] ss:$16 sps:$4 sm:$0xff]  }
  0xf3   : > { %6667 = vmatpush1.bf16.msra.mxu0 %v9539_v6  ;;  %7323 = vmatpush1.bf16.msra.mxu1 %v9542_v7  ;;  %v9635_v6 = vld [vmem:[%s14036_s1 + $0x94c] ss:$16 sps:$4 sm:$0xff]   ;;  %v9630_v7 = vld [vmem:[%s14036_s1 + $0x940] ss:$16 sps:$4 sm:$0xff]  }
  0xf4   : > { %6668 = vmatprep.subr.bf16.mxu0 %v9547_v8  ;;  %7324 = vmatprep.subr.bf16.mxu1 %v9550_v9  ;;  %v9633_v8 = vld [vmem:[%s14036_s1 + $0x948] ss:$16 sps:$4 sm:$0xff]   ;;  %v9638_v9 = vld [vmem:[%s14036_s1 + $0x964] ss:$16 sps:$4 sm:$0xff]  }
  0xf7   : > { %6669 = vmatpush1.bf16.msra.mxu0 %v9545_v10  ;;  %7325 = vmatpush1.bf16.msra.mxu1 %v9548_v11  ;;  %v9641_v10 = vld [vmem:[%s14036_s1 + $0x96c] ss:$16 sps:$4 sm:$0xff]   ;;  %v9636_v11 = vld [vmem:[%s14036_s1 + $0x960] ss:$16 sps:$4 sm:$0xff]  }
  0xf8   : > { %6670 = vmatprep.subr.bf16.mxu0 %v9553_v13  ;;  %7326 = vmatprep.subr.bf16.mxu1 %v9556_v14  ;;  %v9639_v13 = vld [vmem:[%s14036_s1 + $0x968] ss:$16 sps:$4 sm:$0xff]   ;;  %v9644_v14 = vld [vmem:[%s14036_s1 + $0x984] ss:$16 sps:$4 sm:$0xff]  }
  0xfb   : > { %6671 = vmatpush1.bf16.msra.mxu0 %v9551_v15  ;;  %7327 = vmatpush1.bf16.msra.mxu1 %v9554_v16  ;;  %v9647_v15 = vld [vmem:[%s14036_s1 + $0x98c] ss:$16 sps:$4 sm:$0xff]   ;;  %v9642_v16 = vld [vmem:[%s14036_s1 + $0x980] ss:$16 sps:$4 sm:$0xff]  }
  0xfc   : > { %6672 = vmatprep.subr.bf16.mxu0 %v9559_v17  ;;  %7328 = vmatprep.subr.bf16.mxu1 %v9562_v18  ;;  %v9645_v17 = vld [vmem:[%s14036_s1 + $0x988] ss:$16 sps:$4 sm:$0xff]   ;;  %v9650_v18 = vld [vmem:[%s14036_s1 + $0x9a4] ss:$16 sps:$4 sm:$0xff]  }
  0xff   : > { %6673 = vmatpush1.bf16.msra.mxu0 %v9557_v20  ;;  %7329 = vmatpush1.bf16.msra.mxu1 %v9560_v21  ;;  %v9653_v20 = vld [vmem:[%s14036_s1 + $0x9ac] ss:$16 sps:$4 sm:$0xff]   ;;  %v9648_v21 = vld [vmem:[%s14036_s1 + $0x9a0] ss:$16 sps:$4 sm:$0xff]  }
 0x100   : > { %6674 = vmatprep.subr.bf16.mxu0 %v9565_v23  ;;  %7330 = vmatprep.subr.bf16.mxu1 %v9568_v19  ;;  %v9651_v23 = vld [vmem:[%s14036_s1 + $0x9a8] ss:$16 sps:$4 sm:$0xff]   ;;  %v9656_v19 = vld [vmem:[%s14036_s1 + $0x9c4] ss:$16 sps:$4 sm:$0xff]  }
 0x103   : > { %6675 = vmatpush1.bf16.msra.mxu0 %v9563_v25  ;;  %7331 = vmatpush1.bf16.msra.mxu1 %v9566_v12  ;;  %v9659_v25 = vld [vmem:[%s14036_s1 + $0x9cc] ss:$16 sps:$4 sm:$0xff]   ;;  %v9654_v12 = vld [vmem:[%s14036_s1 + $0x9c0] ss:$16 sps:$4 sm:$0xff]  }
 0x104   : > { %6685 = vmatprep.subr.bf16.mxu0 %v9572_v27  ;;  %7341 = vmatprep.subr.bf16.mxu1 %v9575_v28  ;;  %v9657_v27 = vld [vmem:[%s14036_s1 + $0x9c8] ss:$16 sps:$4 sm:$0xff]   ;;  %v9662_v28 = vld [vmem:[%s14036_s1 + $0x9e4] ss:$16 sps:$4 sm:$0xff]  }
 0x106   : > { %6677 = vmatmul.mubr.bf16.vlgmr.msra.gmra.mrb[0].mxu0 %v11393_v24  ;;  %7333 = vmatmul.mubr.bf16.vlgmr.msra.gmra.mrb[0].mxu1 %v11393_v24  ;;  %v9587_v24 = vld [vmem:[%s14036_s1 + $0x84c] ss:$16 sps:$4 sm:$0xff]  }
 0x107   : > { %6686 = vmatpush1.bf16.msra.mxu0 %v9570_v30  ;;  %7342 = vmatpush1.bf16.msra.mxu1 %v9573_v31  ;;  %v9665_v30 = vld [vmem:[%s14036_s1 + $0x9ec] ss:$16 sps:$4 sm:$0xff]   ;;  %v1267_v31 = vcombine.high %v11583_v26, %v11583_v26 }
 0x108   : > { %6687 = vmatprep.subr.bf16.mxu0 %v9578_v22  ;;  %7343 = vmatprep.subr.bf16.mxu1 %v9581_v32  ;;  %v9660_v22 = vld [vmem:[%s14036_s1 + $0x9e0] ss:$16 sps:$4 sm:$0xff]   ;;  %v9663_v32 = vld [vmem:[%s14036_s1 + $0x9e8] ss:$16 sps:$4 sm:$0xff]   ;;  %v9671_v26 = vld [vmem:[%s14036_s1 + $0xa0c] ss:$16 sps:$4 sm:$0xff]  }
 0x109   : > { %6717 = vmatprep.mubr.bf16.mxu0 %v1282_v33  ;;  %7373 = vmatprep.mubr.bf16.mxu1 %v1282_v33  ;;  %v9668_v33 = vld [vmem:[%s14036_s1 + $0xa04] ss:$16 sps:$4 sm:$0xff]  }
 0x10b   : > { %6688 = vmatpush1.bf16.msra.mxu0 %v9576_v34  ;;  %7344 = vmatpush1.bf16.msra.mxu1 %v9579_v35  ;;  %v11797_v34 = vrot.slane %v1267_v31, %v10920_v49  ;;  %v9666_v35 = vld [vmem:[%s14036_s1 + $0xa00] ss:$16 sps:$4 sm:$0xff]   ;;  %v9755_v31 = vld [vmem:[%s14036_s1 + $0xbcc] ss:$16 sps:$4 sm:$0xff]  }
 0x10c   : > { %6689 = vmatprep.subr.bf16.mxu0 %v9584_v36  ;;  %7345 = vmatprep.subr.bf16.mxu1 %v9587_v24  ;;  %v9669_v36 = vld [vmem:[%s14036_s1 + $0xa08] ss:$16 sps:$4 sm:$0xff]   ;;  %v9674_v24 = vld [vmem:[%s14036_s1 + $0xa24] ss:$16 sps:$4 sm:$0xff]  }
 0x10f   : > { %6690 = vmatpush1.bf16.msra.mxu0 %v9582_v37  ;;  %7346 = vmatpush1.bf16.msra.mxu1 %v9585_v38  ;;  %v9677_v37 = vld [vmem:[%s14036_s1 + $0xa2c] ss:$16 sps:$4 sm:$0xff]   ;;  %v1283_v38 = vcombine.high %v11797_v34, %v11797_v34 }
 0x110   : > { %6691 = vmatprep.subr.bf16.mxu0 %v9590_v39  ;;  %7347 = vmatprep.subr.bf16.mxu1 %v9593_v40  ;;  %v9672_v39 = vld [vmem:[%s14036_s1 + $0xa20] ss:$16 sps:$4 sm:$0xff]   ;;  %v9675_v40 = vld [vmem:[%s14036_s1 + $0xa28] ss:$16 sps:$4 sm:$0xff]  }
 0x113   : > { %6692 = vmatpush1.bf16.msra.mxu0 %v9588_v41  ;;  %7348 = vmatpush1.bf16.msra.mxu1 %v9591_v43  ;;  %v9680_v41 = vld [vmem:[%s14036_s1 + $0xa44] ss:$16 sps:$4 sm:$0xff]   ;;  %v9678_v43 = vld [vmem:[%s14036_s1 + $0xa40] ss:$16 sps:$4 sm:$0xff]  }
 0x114   : > { %6693 = vmatprep.subr.bf16.mxu0 %v9596_v44  ;;  %7349 = vmatprep.subr.bf16.mxu1 %v9599_v45  ;;  %v9681_v44 = vld [vmem:[%s14036_s1 + $0xa48] ss:$16 sps:$4 sm:$0xff]   ;;  %v9686_v45 = vld [vmem:[%s14036_s1 + $0xa64] ss:$16 sps:$4 sm:$0xff]  }
 0x117   : > { %6694 = vmatpush1.bf16.msra.mxu0 %v9594_v46  ;;  %7350 = vmatpush1.bf16.msra.mxu1 %v9597_v47  ;;  %v9689_v46 = vld [vmem:[%s14036_s1 + $0xa6c] ss:$16 sps:$4 sm:$0xff]   ;;  %v9684_v47 = vld [vmem:[%s14036_s1 + $0xa60] ss:$16 sps:$4 sm:$0xff]  }
 0x118   : > { %6695 = vmatprep.subr.bf16.mxu0 %v9602_v48  ;;  %7351 = vmatprep.subr.bf16.mxu1 %v9605_v50  ;;  %v9687_v48 = vld [vmem:[%s14036_s1 + $0xa68] ss:$16 sps:$4 sm:$0xff]   ;;  %v9692_v50 = vld [vmem:[%s14036_s1 + $0xa84] ss:$16 sps:$4 sm:$0xff]  }
 0x11b   : > { %6696 = vmatpush1.bf16.msra.mxu0 %v9600_v51  ;;  %7352 = vmatpush1.bf16.msra.mxu1 %v9603_v52  ;;  %v9695_v51 = vld [vmem:[%s14036_s1 + $0xa8c] ss:$16 sps:$4 sm:$0xff]   ;;  %v9690_v52 = vld [vmem:[%s14036_s1 + $0xa80] ss:$16 sps:$4 sm:$0xff]  }
 0x11c   : > { %6697 = vmatprep.subr.bf16.mxu0 %v9608_v53  ;;  %7353 = vmatprep.subr.bf16.mxu1 %v9611_v54  ;;  %v9693_v53 = vld [vmem:[%s14036_s1 + $0xa88] ss:$16 sps:$4 sm:$0xff]   ;;  %v9698_v54 = vld [vmem:[%s14036_s1 + $0xaa4] ss:$16 sps:$4 sm:$0xff]  }
 0x11f   : > { %6698 = vmatpush1.bf16.msra.mxu0 %v9606_v55  ;;  %7354 = vmatpush1.bf16.msra.mxu1 %v9609_v56  ;;  %v9701_v55 = vld [vmem:[%s14036_s1 + $0xaac] ss:$16 sps:$4 sm:$0xff]   ;;  %v9696_v56 = vld [vmem:[%s14036_s1 + $0xaa0] ss:$16 sps:$4 sm:$0xff]  }
 0x120   : > { %6699 = vmatprep.subr.bf16.mxu0 %v9614_v57  ;;  %7355 = vmatprep.subr.bf16.mxu1 %v9617_v58  ;;  %v9699_v57 = vld [vmem:[%s14036_s1 + $0xaa8] ss:$16 sps:$4 sm:$0xff]   ;;  %v9704_v58 = vld [vmem:[%s14036_s1 + $0xac4] ss:$16 sps:$4 sm:$0xff]  }
 0x123   : > { %6700 = vmatpush1.bf16.msra.mxu0 %v9612_v59  ;;  %7356 = vmatpush1.bf16.msra.mxu1 %v9615_v60  ;;  %v9707_v59 = vld [vmem:[%s14036_s1 + $0xacc] ss:$16 sps:$4 sm:$0xff]   ;;  %v9702_v60 = vld [vmem:[%s14036_s1 + $0xac0] ss:$16 sps:$4 sm:$0xff]  }
 0x124   : > { %6701 = vmatprep.subr.bf16.mxu0 %v9620_v61  ;;  %7357 = vmatprep.subr.bf16.mxu1 %v9623_v62  ;;  %v9705_v61 = vld [vmem:[%s14036_s1 + $0xac8] ss:$16 sps:$4 sm:$0xff]   ;;  %v9710_v62 = vld [vmem:[%s14036_s1 + $0xae4] ss:$16 sps:$4 sm:$0xff]  }
 0x127   : > { %6702 = vmatpush1.bf16.msra.mxu0 %v9618_v63  ;;  %7358 = vmatpush1.bf16.msra.mxu1 %v9621_v0  ;;  %v9713_v63 = vld [vmem:[%s14036_s1 + $0xaec] ss:$16 sps:$4 sm:$0xff]   ;;  %v9708_v0 = vld [vmem:[%s14036_s1 + $0xae0] ss:$16 sps:$4 sm:$0xff]  }
 0x128   : > { %6703 = vmatprep.subr.bf16.mxu0 %v9626_v1  ;;  %7359 = vmatprep.subr.bf16.mxu1 %v9629_v2  ;;  %v9711_v1 = vld [vmem:[%s14036_s1 + $0xae8] ss:$16 sps:$4 sm:$0xff]   ;;  %v9716_v2 = vld [vmem:[%s14036_s1 + $0xb04] ss:$16 sps:$4 sm:$0xff]  }
 0x12b   : > { %6704 = vmatpush1.bf16.msra.mxu0 %v9624_v3  ;;  %7360 = vmatpush1.bf16.msra.mxu1 %v9627_v4  ;;  %v9719_v3 = vld [vmem:[%s14036_s1 + $0xb0c] ss:$16 sps:$4 sm:$0xff]   ;;  %v9714_v4 = vld [vmem:[%s14036_s1 + $0xb00] ss:$16 sps:$4 sm:$0xff]  }
 0x12c   : > { %6705 = vmatprep.subr.bf16.mxu0 %v9632_v5  ;;  %7361 = vmatprep.subr.bf16.mxu1 %v9635_v6  ;;  %v9717_v5 = vld [vmem:[%s14036_s1 + $0xb08] ss:$16 sps:$4 sm:$0xff]   ;;  %v9722_v6 = vld [vmem:[%s14036_s1 + $0xb24] ss:$16 sps:$4 sm:$0xff]  }
 0x12f   : > { %6706 = vmatpush1.bf16.msra.mxu0 %v9630_v7  ;;  %7362 = vmatpush1.bf16.msra.mxu1 %v9633_v8  ;;  %v9725_v7 = vld [vmem:[%s14036_s1 + $0xb2c] ss:$16 sps:$4 sm:$0xff]   ;;  %v9720_v8 = vld [vmem:[%s14036_s1 + $0xb20] ss:$16 sps:$4 sm:$0xff]  }
 0x130   : > { %6707 = vmatprep.subr.bf16.mxu0 %v9638_v9  ;;  %7363 = vmatprep.subr.bf16.mxu1 %v9641_v10  ;;  %v9723_v9 = vld [vmem:[%s14036_s1 + $0xb28] ss:$16 sps:$4 sm:$0xff]   ;;  %v9728_v10 = vld [vmem:[%s14036_s1 + $0xb44] ss:$16 sps:$4 sm:$0xff]  }
 0x133   : > { %6708 = vmatpush1.bf16.msra.mxu0 %v9636_v11  ;;  %7364 = vmatpush1.bf16.msra.mxu1 %v9639_v13  ;;  %v9731_v11 = vld [vmem:[%s14036_s1 + $0xb4c] ss:$16 sps:$4 sm:$0xff]   ;;  %v9726_v13 = vld [vmem:[%s14036_s1 + $0xb40] ss:$16 sps:$4 sm:$0xff]  }
 0x134   : > { %6709 = vmatprep.subr.bf16.mxu0 %v9644_v14  ;;  %7365 = vmatprep.subr.bf16.mxu1 %v9647_v15  ;;  %v9729_v14 = vld [vmem:[%s14036_s1 + $0xb48] ss:$16 sps:$4 sm:$0xff]   ;;  %v9734_v15 = vld [vmem:[%s14036_s1 + $0xb64] ss:$16 sps:$4 sm:$0xff]  }
 0x137   : > { %6710 = vmatpush1.bf16.msra.mxu0 %v9642_v16  ;;  %7366 = vmatpush1.bf16.msra.mxu1 %v9645_v17  ;;  %v9737_v16 = vld [vmem:[%s14036_s1 + $0xb6c] ss:$16 sps:$4 sm:$0xff]   ;;  %v9732_v17 = vld [vmem:[%s14036_s1 + $0xb60] ss:$16 sps:$4 sm:$0xff]  }
 0x138   : > { %6711 = vmatprep.subr.bf16.mxu0 %v9650_v18  ;;  %7367 = vmatprep.subr.bf16.mxu1 %v9653_v20  ;;  %v9735_v18 = vld [vmem:[%s14036_s1 + $0xb68] ss:$16 sps:$4 sm:$0xff]   ;;  %v9740_v20 = vld [vmem:[%s14036_s1 + $0xb84] ss:$16 sps:$4 sm:$0xff]  }
 0x13b   : > { %6712 = vmatpush1.bf16.msra.mxu0 %v9648_v21  ;;  %7368 = vmatpush1.bf16.msra.mxu1 %v9651_v23  ;;  %v9743_v21 = vld [vmem:[%s14036_s1 + $0xb8c] ss:$16 sps:$4 sm:$0xff]   ;;  %v9738_v23 = vld [vmem:[%s14036_s1 + $0xb80] ss:$16 sps:$4 sm:$0xff]  }
 0x13c   : > { %6713 = vmatprep.subr.bf16.mxu0 %v9656_v19  ;;  %7369 = vmatprep.subr.bf16.mxu1 %v9659_v25  ;;  %v9741_v19 = vld [vmem:[%s14036_s1 + $0xb88] ss:$16 sps:$4 sm:$0xff]   ;;  %v9746_v25 = vld [vmem:[%s14036_s1 + $0xba4] ss:$16 sps:$4 sm:$0xff]  }
 0x13f   : > { %6714 = vmatpush1.bf16.msra.mxu0 %v9654_v12  ;;  %7370 = vmatpush1.bf16.msra.mxu1 %v9657_v27  ;;  %v9749_v12 = vld [vmem:[%s14036_s1 + $0xbac] ss:$16 sps:$4 sm:$0xff]   ;;  %v9744_v27 = vld [vmem:[%s14036_s1 + $0xba0] ss:$16 sps:$4 sm:$0xff]  }
 0x140   : > { %6715 = vmatprep.subr.bf16.mxu0 %v9662_v28  ;;  %7371 = vmatprep.subr.bf16.mxu1 %v9665_v30  ;;  %v9747_v28 = vld [vmem:[%s14036_s1 + $0xba8] ss:$16 sps:$4 sm:$0xff]   ;;  %v9752_v30 = vld [vmem:[%s14036_s1 + $0xbc4] ss:$16 sps:$4 sm:$0xff]  }
 0x143   : > { %6716 = vmatpush1.bf16.msra.mxu0 %v9660_v22  ;;  %7372 = vmatpush1.bf16.msra.mxu1 %v9663_v32  ;;  %v9750_v22 = vld [vmem:[%s14036_s1 + $0xbc0] ss:$16 sps:$4 sm:$0xff]   ;;  %v9753_v32 = vld [vmem:[%s14036_s1 + $0xbc8] ss:$16 sps:$4 sm:$0xff]  }
 0x144   : > { %6726 = vmatprep.subr.bf16.mxu0 %v9668_v33  ;;  %7382 = vmatprep.subr.bf16.mxu1 %v9671_v26  ;;  %v9758_v33 = vld [vmem:[%s14036_s1 + $0xbe4] ss:$16 sps:$4 sm:$0xff]   ;;  %v9761_v26 = vld [vmem:[%s14036_s1 + $0xbec] ss:$16 sps:$4 sm:$0xff]  }
 0x146   : > { %6718 = vmatmul.mubr.bf16.vlgmr.msra.gmra.mrb[0].mxu0 %v11596_v29  ;;  %7374 = vmatmul.mubr.bf16.vlgmr.msra.gmra.mrb[0].mxu1 %v11596_v29  ;;  %v9683_v29 = vld [vmem:[%s14036_s1 + $0xa4c] ss:$16 sps:$4 sm:$0xff]  }
 0x147   : > { %6727 = vmatpush1.bf16.msra.mxu0 %v9666_v35  ;;  %7383 = vmatpush1.bf16.msra.mxu1 %v9669_v36  ;;  %v11984_v35 = vld [vmem:[%s10917_s30 + $0x18] sm:$0xff]  ;;  %v9756_v36 = vld [vmem:[%s14036_s1 + $0xbe0] ss:$16 sps:$4 sm:$0xff]  }
 0x148   : > { %6728 = vmatprep.subr.bf16.mxu0 %v9674_v24  ;;  %7384 = vmatprep.subr.bf16.mxu1 %v9677_v37  ;;  %v9759_v24 = vld [vmem:[%s14036_s1 + $0xbe8] ss:$16 sps:$4 sm:$0xff]   ;;  %v9765_v37 = vld [vmem:[%s14036_s1 + $0xc04] ss:$16 sps:$4 sm:$0xff]  }
 0x149   : > { %6758 = vmatprep.mubr.bf16.mxu0 %v1283_v38  ;;  %7414 = vmatprep.mubr.bf16.mxu1 %v1283_v38  ;;  %v9768_v38 = vld [vmem:[%s14036_s1 + $0xc0c] ss:$16 sps:$4 sm:$0xff]  }
 0x14b   : > { %6729 = vmatpush1.bf16.msra.mxu0 %v9672_v39  ;;  %7385 = vmatpush1.bf16.msra.mxu1 %v9675_v40  ;;  %v12000_v39 = vrot.slane %v11984_v35, %v10920_v49  ;;  %v9763_v40 = vld [vmem:[%s14036_s1 + $0xc00] ss:$16 sps:$4 sm:$0xff]  }
 0x14c   : > { %6730 = vmatprep.subr.bf16.mxu0 %v9680_v41  ;;  %7386 = vmatprep.subr.bf16.mxu1 %v9683_v29  ;;  %v9766_v41 = vld [vmem:[%s14036_s1 + $0xc08] ss:$16 sps:$4 sm:$0xff]   ;;  %v9771_v29 = vld [vmem:[%s14036_s1 + $0xc24] ss:$16 sps:$4 sm:$0xff]  }
 0x14f   : > { %6731 = vmatpush1.bf16.msra.mxu0 %v9678_v43  ;;  %7387 = vmatpush1.bf16.msra.mxu1 %v9681_v44  ;;  %v9774_v43 = vld [vmem:[%s14036_s1 + $0xc2c] ss:$16 sps:$4 sm:$0xff]   ;;  %v1299_v44 = vcombine.high %v12000_v39, %v12000_v39 }
 0x150   : > { %6732 = vmatprep.subr.bf16.mxu0 %v9686_v45  ;;  %7388 = vmatprep.subr.bf16.mxu1 %v9689_v46  ;;  %v9769_v45 = vld [vmem:[%s14036_s1 + $0xc20] ss:$16 sps:$4 sm:$0xff]   ;;  %v9772_v46 = vld [vmem:[%s14036_s1 + $0xc28] ss:$16 sps:$4 sm:$0xff]  }
 0x153   : > { %6733 = vmatpush1.bf16.msra.mxu0 %v9684_v47  ;;  %7389 = vmatpush1.bf16.msra.mxu1 %v9687_v48  ;;  %v9777_v47 = vld [vmem:[%s14036_s1 + $0xc44] ss:$16 sps:$4 sm:$0xff]   ;;  %v9775_v48 = vld [vmem:[%s14036_s1 + $0xc40] ss:$16 sps:$4 sm:$0xff]  }
 0x154   : > { %6734 = vmatprep.subr.bf16.mxu0 %v9692_v50  ;;  %7390 = vmatprep.subr.bf16.mxu1 %v9695_v51  ;;  %v9778_v50 = vld [vmem:[%s14036_s1 + $0xc48] ss:$16 sps:$4 sm:$0xff]   ;;  %v9783_v51 = vld [vmem:[%s14036_s1 + $0xc64] ss:$16 sps:$4 sm:$0xff]  }
 0x157   : > { %6735 = vmatpush1.bf16.msra.mxu0 %v9690_v52  ;;  %7391 = vmatpush1.bf16.msra.mxu1 %v9693_v53  ;;  %v9786_v52 = vld [vmem:[%s14036_s1 + $0xc6c] ss:$16 sps:$4 sm:$0xff]   ;;  %v9781_v53 = vld [vmem:[%s14036_s1 + $0xc60] ss:$16 sps:$4 sm:$0xff]  }
 0x158   : > { %6736 = vmatprep.subr.bf16.mxu0 %v9698_v54  ;;  %7392 = vmatprep.subr.bf16.mxu1 %v9701_v55  ;;  %v9784_v54 = vld [vmem:[%s14036_s1 + $0xc68] ss:$16 sps:$4 sm:$0xff]   ;;  %v9789_v55 = vld [vmem:[%s14036_s1 + $0xc84] ss:$16 sps:$4 sm:$0xff]  }
 0x15b   : > { %6737 = vmatpush1.bf16.msra.mxu0 %v9696_v56  ;;  %7393 = vmatpush1.bf16.msra.mxu1 %v9699_v57  ;;  %v9792_v56 = vld [vmem:[%s14036_s1 + $0xc8c] ss:$16 sps:$4 sm:$0xff]   ;;  %v9787_v57 = vld [vmem:[%s14036_s1 + $0xc80] ss:$16 sps:$4 sm:$0xff]  }
 0x15c   : > { %6738 = vmatprep.subr.bf16.mxu0 %v9704_v58  ;;  %7394 = vmatprep.subr.bf16.mxu1 %v9707_v59  ;;  %v9790_v58 = vld [vmem:[%s14036_s1 + $0xc88] ss:$16 sps:$4 sm:$0xff]   ;;  %v9795_v59 = vld [vmem:[%s14036_s1 + $0xca4] ss:$16 sps:$4 sm:$0xff]  }
 0x15f   : > { %6739 = vmatpush1.bf16.msra.mxu0 %v9702_v60  ;;  %7395 = vmatpush1.bf16.msra.mxu1 %v9705_v61  ;;  %v9798_v60 = vld [vmem:[%s14036_s1 + $0xcac] ss:$16 sps:$4 sm:$0xff]   ;;  %v9793_v61 = vld [vmem:[%s14036_s1 + $0xca0] ss:$16 sps:$4 sm:$0xff]  }
 0x160   : > { %6740 = vmatprep.subr.bf16.mxu0 %v9710_v62  ;;  %7396 = vmatprep.subr.bf16.mxu1 %v9713_v63  ;;  %v9796_v62 = vld [vmem:[%s14036_s1 + $0xca8] ss:$16 sps:$4 sm:$0xff]   ;;  %v9801_v63 = vld [vmem:[%s14036_s1 + $0xcc4] ss:$16 sps:$4 sm:$0xff]  }
 0x163   : > { %6741 = vmatpush1.bf16.msra.mxu0 %v9708_v0  ;;  %7397 = vmatpush1.bf16.msra.mxu1 %v9711_v1  ;;  %v9804_v0 = vld [vmem:[%s14036_s1 + $0xccc] ss:$16 sps:$4 sm:$0xff]   ;;  %v9799_v1 = vld [vmem:[%s14036_s1 + $0xcc0] ss:$16 sps:$4 sm:$0xff]  }
 0x164   : > { %6742 = vmatprep.subr.bf16.mxu0 %v9716_v2  ;;  %7398 = vmatprep.subr.bf16.mxu1 %v9719_v3  ;;  %v9802_v2 = vld [vmem:[%s14036_s1 + $0xcc8] ss:$16 sps:$4 sm:$0xff]   ;;  %v9807_v3 = vld [vmem:[%s14036_s1 + $0xce4] ss:$16 sps:$4 sm:$0xff]  }
 0x167   : > { %6743 = vmatpush1.bf16.msra.mxu0 %v9714_v4  ;;  %7399 = vmatpush1.bf16.msra.mxu1 %v9717_v5  ;;  %v9810_v4 = vld [vmem:[%s14036_s1 + $0xcec] ss:$16 sps:$4 sm:$0xff]   ;;  %v9805_v5 = vld [vmem:[%s14036_s1 + $0xce0] ss:$16 sps:$4 sm:$0xff]  }
 0x168   : > { %6744 = vmatprep.subr.bf16.mxu0 %v9722_v6  ;;  %7400 = vmatprep.subr.bf16.mxu1 %v9725_v7  ;;  %v9808_v6 = vld [vmem:[%s14036_s1 + $0xce8] ss:$16 sps:$4 sm:$0xff]   ;;  %v9813_v7 = vld [vmem:[%s14036_s1 + $0xd04] ss:$16 sps:$4 sm:$0xff]  }
 0x16b   : > { %6745 = vmatpush1.bf16.msra.mxu0 %v9720_v8  ;;  %7401 = vmatpush1.bf16.msra.mxu1 %v9723_v9  ;;  %v9816_v8 = vld [vmem:[%s14036_s1 + $0xd0c] ss:$16 sps:$4 sm:$0xff]   ;;  %v9811_v9 = vld [vmem:[%s14036_s1 + $0xd00] ss:$16 sps:$4 sm:$0xff]  }
 0x16c   : > { %6746 = vmatprep.subr.bf16.mxu0 %v9728_v10  ;;  %7402 = vmatprep.subr.bf16.mxu1 %v9731_v11  ;;  %v9814_v10 = vld [vmem:[%s14036_s1 + $0xd08] ss:$16 sps:$4 sm:$0xff]   ;;  %v9819_v11 = vld [vmem:[%s14036_s1 + $0xd24] ss:$16 sps:$4 sm:$0xff]  }
 0x16f   : > { %6747 = vmatpush1.bf16.msra.mxu0 %v9726_v13  ;;  %7403 = vmatpush1.bf16.msra.mxu1 %v9729_v14  ;;  %v9822_v13 = vld [vmem:[%s14036_s1 + $0xd2c] ss:$16 sps:$4 sm:$0xff]   ;;  %v9817_v14 = vld [vmem:[%s14036_s1 + $0xd20] ss:$16 sps:$4 sm:$0xff]  }
 0x170   : > { %6748 = vmatprep.subr.bf16.mxu0 %v9734_v15  ;;  %7404 = vmatprep.subr.bf16.mxu1 %v9737_v16  ;;  %v9820_v15 = vld [vmem:[%s14036_s1 + $0xd28] ss:$16 sps:$4 sm:$0xff]   ;;  %v9825_v16 = vld [vmem:[%s14036_s1 + $0xd44] ss:$16 sps:$4 sm:$0xff]  }
 0x173   : > { %6749 = vmatpush1.bf16.msra.mxu0 %v9732_v17  ;;  %7405 = vmatpush1.bf16.msra.mxu1 %v9735_v18  ;;  %v9828_v17 = vld [vmem:[%s14036_s1 + $0xd4c] ss:$16 sps:$4 sm:$0xff]   ;;  %v9823_v18 = vld [vmem:[%s14036_s1 + $0xd40] ss:$16 sps:$4 sm:$0xff]  }
 0x174   : > { %6750 = vmatprep.subr.bf16.mxu0 %v9740_v20  ;;  %7406 = vmatprep.subr.bf16.mxu1 %v9743_v21  ;;  %v9826_v20 = vld [vmem:[%s14036_s1 + $0xd48] ss:$16 sps:$4 sm:$0xff]   ;;  %v9831_v21 = vld [vmem:[%s14036_s1 + $0xd64] ss:$16 sps:$4 sm:$0xff]  }
 0x177   : > { %6751 = vmatpush1.bf16.msra.mxu0 %v9738_v23  ;;  %7407 = vmatpush1.bf16.msra.mxu1 %v9741_v19  ;;  %v9834_v23 = vld [vmem:[%s14036_s1 + $0xd6c] ss:$16 sps:$4 sm:$0xff]   ;;  %v9829_v19 = vld [vmem:[%s14036_s1 + $0xd60] ss:$16 sps:$4 sm:$0xff]  }
 0x178   : > { %6752 = vmatprep.subr.bf16.mxu0 %v9746_v25  ;;  %7408 = vmatprep.subr.bf16.mxu1 %v9749_v12  ;;  %v9832_v25 = vld [vmem:[%s14036_s1 + $0xd68] ss:$16 sps:$4 sm:$0xff]   ;;  %v9837_v12 = vld [vmem:[%s14036_s1 + $0xd84] ss:$16 sps:$4 sm:$0xff]  }
 0x17b   : > { %6753 = vmatpush1.bf16.msra.mxu0 %v9744_v27  ;;  %7409 = vmatpush1.bf16.msra.mxu1 %v9747_v28  ;;  %v9840_v27 = vld [vmem:[%s14036_s1 + $0xd8c] ss:$16 sps:$4 sm:$0xff]   ;;  %v9835_v28 = vld [vmem:[%s14036_s1 + $0xd80] ss:$16 sps:$4 sm:$0xff]  }
 0x17c   : > { %6754 = vmatprep.subr.bf16.mxu0 %v9752_v30  ;;  %7410 = vmatprep.subr.bf16.mxu1 %v9755_v31  ;;  %v9838_v30 = vld [vmem:[%s14036_s1 + $0xd88] ss:$16 sps:$4 sm:$0xff]   ;;  %v9843_v31 = vld [vmem:[%s14036_s1 + $0xda4] ss:$16 sps:$4 sm:$0xff]  }
 0x17f   : > { %6755 = vmatpush1.bf16.msra.mxu0 %v9750_v22  ;;  %7411 = vmatpush1.bf16.msra.mxu1 %v9753_v32  ;;  %v9846_v22 = vld [vmem:[%s14036_s1 + $0xdac] ss:$16 sps:$4 sm:$0xff]   ;;  %v9841_v32 = vld [vmem:[%s14036_s1 + $0xda0] ss:$16 sps:$4 sm:$0xff]  }
 0x180   : > { %6756 = vmatprep.subr.bf16.mxu0 %v9758_v33  ;;  %7412 = vmatprep.subr.bf16.mxu1 %v9761_v26  ;;  %v9844_v33 = vld [vmem:[%s14036_s1 + $0xda8] ss:$16 sps:$4 sm:$0xff]   ;;  %v9849_v26 = vld [vmem:[%s14036_s1 + $0xdc4] ss:$16 sps:$4 sm:$0xff]  }
 0x183   : > { %6757 = vmatpush1.bf16.msra.mxu0 %v9756_v36  ;;  %7413 = vmatpush1.bf16.msra.mxu1 %v9759_v24  ;;  %v9852_v36 = vld [vmem:[%s14036_s1 + $0xdcc] ss:$16 sps:$4 sm:$0xff]   ;;  %v9847_v24 = vld [vmem:[%s14036_s1 + $0xdc0] ss:$16 sps:$4 sm:$0xff]  }
 0x184   : > { %6767 = vmatprep.subr.bf16.mxu0 %v9765_v37  ;;  %7423 = vmatprep.subr.bf16.mxu1 %v9768_v38  ;;  %v9850_v37 = vld [vmem:[%s14036_s1 + $0xdc8] ss:$16 sps:$4 sm:$0xff]   ;;  %v9855_v38 = vld [vmem:[%s14036_s1 + $0xde4] ss:$16 sps:$4 sm:$0xff]  }
 0x186   : > { %6759 = vmatmul.mubr.bf16.vlgmr.msra.gmra.mrb[0].mxu0 %v11797_v34  ;;  %7415 = vmatmul.mubr.bf16.vlgmr.msra.gmra.mrb[0].mxu1 %v11797_v34  ;;  %v9780_v34 = vld [vmem:[%s14036_s1 + $0xc4c] ss:$16 sps:$4 sm:$0xff]  }
 0x187   : > { %6768 = vmatpush1.bf16.msra.mxu0 %v9763_v40  ;;  %7424 = vmatpush1.bf16.msra.mxu1 %v9766_v41  ;;  %v9858_v40 = vld [vmem:[%s14036_s1 + $0xdec] ss:$16 sps:$4 sm:$0xff]   ;;  %v1284_v41 = vcombine.high %v11984_v35, %v11984_v35 }
 0x188   : > { %6769 = vmatprep.subr.bf16.mxu0 %v9771_v29  ;;  %7425 = vmatprep.subr.bf16.mxu1 %v9774_v43  ;;  %v9853_v29 = vld [vmem:[%s14036_s1 + $0xde0] ss:$16 sps:$4 sm:$0xff]   ;;  %v9856_v43 = vld [vmem:[%s14036_s1 + $0xde8] ss:$16 sps:$4 sm:$0xff]   ;;  %v9864_v35 = vld [vmem:[%s14036_s1 + $0xe0c] ss:$16 sps:$4 sm:$0xff]  }
 0x189   : > { %6799 = vmatprep.mubr.bf16.mxu0 %v1299_v44  ;;  %7455 = vmatprep.mubr.bf16.mxu1 %v1299_v44  ;;  %v9861_v44 = vld [vmem:[%s14036_s1 + $0xe04] ss:$16 sps:$4 sm:$0xff]  }
 0x18b   : > { %6770 = vmatpush1.bf16.msra.mxu0 %v9769_v45  ;;  %7426 = vmatpush1.bf16.msra.mxu1 %v9772_v46  ;;  %v12201_v45 = vrot.slane %v1284_v41, %v10920_v49  ;;  %v9859_v46 = vld [vmem:[%s14036_s1 + $0xe00] ss:$16 sps:$4 sm:$0xff]   ;;  %v9948_v41 = vld [vmem:[%s14036_s1 + $0xfcc] ss:$16 sps:$4 sm:$0xff]  }
 0x18c   : > { %6771 = vmatprep.subr.bf16.mxu0 %v9777_v47  ;;  %7427 = vmatprep.subr.bf16.mxu1 %v9780_v34  ;;  %v9862_v47 = vld [vmem:[%s14036_s1 + $0xe08] ss:$16 sps:$4 sm:$0xff]   ;;  %v9867_v34 = vld [vmem:[%s14036_s1 + $0xe24] ss:$16 sps:$4 sm:$0xff]  }
 0x18f   : > { %6772 = vmatpush1.bf16.msra.mxu0 %v9775_v48  ;;  %7428 = vmatpush1.bf16.msra.mxu1 %v9778_v50  ;;  %v9870_v48 = vld [vmem:[%s14036_s1 + $0xe2c] ss:$16 sps:$4 sm:$0xff]   ;;  %v1300_v50 = vcombine.high %v12201_v45, %v12201_v45 }
 0x190   : > { %6773 = vmatprep.subr.bf16.mxu0 %v9783_v51  ;;  %7429 = vmatprep.subr.bf16.mxu1 %v9786_v52  ;;  %v9865_v51 = vld [vmem:[%s14036_s1 + $0xe20] ss:$16 sps:$4 sm:$0xff]   ;;  %v9868_v52 = vld [vmem:[%s14036_s1 + $0xe28] ss:$16 sps:$4 sm:$0xff]  }
 0x193   : > { %6774 = vmatpush1.bf16.msra.mxu0 %v9781_v53  ;;  %7430 = vmatpush1.bf16.msra.mxu1 %v9784_v54  ;;  %v9873_v53 = vld [vmem:[%s14036_s1 + $0xe44] ss:$16 sps:$4 sm:$0xff]   ;;  %v9871_v54 = vld [vmem:[%s14036_s1 + $0xe40] ss:$16 sps:$4 sm:$0xff]  }
 0x194   : > { %6775 = vmatprep.subr.bf16.mxu0 %v9789_v55  ;;  %7431 = vmatprep.subr.bf16.mxu1 %v9792_v56  ;;  %v9874_v55 = vld [vmem:[%s14036_s1 + $0xe48] ss:$16 sps:$4 sm:$0xff]   ;;  %v9879_v56 = vld [vmem:[%s14036_s1 + $0xe64] ss:$16 sps:$4 sm:$0xff]  }
 0x197   : > { %6776 = vmatpush1.bf16.msra.mxu0 %v9787_v57  ;;  %7432 = vmatpush1.bf16.msra.mxu1 %v9790_v58  ;;  %v9882_v57 = vld [vmem:[%s14036_s1 + $0xe6c] ss:$16 sps:$4 sm:$0xff]   ;;  %v9877_v58 = vld [vmem:[%s14036_s1 + $0xe60] ss:$16 sps:$4 sm:$0xff]  }
 0x198   : > { %6777 = vmatprep.subr.bf16.mxu0 %v9795_v59  ;;  %7433 = vmatprep.subr.bf16.mxu1 %v9798_v60  ;;  %v9880_v59 = vld [vmem:[%s14036_s1 + $0xe68] ss:$16 sps:$4 sm:$0xff]   ;;  %v9885_v60 = vld [vmem:[%s14036_s1 + $0xe84] ss:$16 sps:$4 sm:$0xff]  }
 0x19b   : > { %6778 = vmatpush1.bf16.msra.mxu0 %v9793_v61  ;;  %7434 = vmatpush1.bf16.msra.mxu1 %v9796_v62  ;;  %v9888_v61 = vld [vmem:[%s14036_s1 + $0xe8c] ss:$16 sps:$4 sm:$0xff]   ;;  %v9883_v62 = vld [vmem:[%s14036_s1 + $0xe80] ss:$16 sps:$4 sm:$0xff]  }
 0x19c   : > { %6779 = vmatprep.subr.bf16.mxu0 %v9801_v63  ;;  %7435 = vmatprep.subr.bf16.mxu1 %v9804_v0  ;;  %v9886_v63 = vld [vmem:[%s14036_s1 + $0xe88] ss:$16 sps:$4 sm:$0xff]   ;;  %v9891_v0 = vld [vmem:[%s14036_s1 + $0xea4] ss:$16 sps:$4 sm:$0xff]  }
 0x19f   : > { %6780 = vmatpush1.bf16.msra.mxu0 %v9799_v1  ;;  %7436 = vmatpush1.bf16.msra.mxu1 %v9802_v2  ;;  %v9894_v1 = vld [vmem:[%s14036_s1 + $0xeac] ss:$16 sps:$4 sm:$0xff]   ;;  %v9889_v2 = vld [vmem:[%s14036_s1 + $0xea0] ss:$16 sps:$4 sm:$0xff]  }
 0x1a0   : > { %6781 = vmatprep.subr.bf16.mxu0 %v9807_v3  ;;  %7437 = vmatprep.subr.bf16.mxu1 %v9810_v4  ;;  %v9892_v3 = vld [vmem:[%s14036_s1 + $0xea8] ss:$16 sps:$4 sm:$0xff]   ;;  %v9897_v4 = vld [vmem:[%s14036_s1 + $0xec4] ss:$16 sps:$4 sm:$0xff]  }
 0x1a3   : > { %6782 = vmatpush1.bf16.msra.mxu0 %v9805_v5  ;;  %7438 = vmatpush1.bf16.msra.mxu1 %v9808_v6  ;;  %v9900_v5 = vld [vmem:[%s14036_s1 + $0xecc] ss:$16 sps:$4 sm:$0xff]   ;;  %v9895_v6 = vld [vmem:[%s14036_s1 + $0xec0] ss:$16 sps:$4 sm:$0xff]  }
 0x1a4   : > { %6783 = vmatprep.subr.bf16.mxu0 %v9813_v7  ;;  %7439 = vmatprep.subr.bf16.mxu1 %v9816_v8  ;;  %v9898_v7 = vld [vmem:[%s14036_s1 + $0xec8] ss:$16 sps:$4 sm:$0xff]   ;;  %v9903_v8 = vld [vmem:[%s14036_s1 + $0xee4] ss:$16 sps:$4 sm:$0xff]  }
 0x1a7   : > { %6784 = vmatpush1.bf16.msra.mxu0 %v9811_v9  ;;  %7440 = vmatpush1.bf16.msra.mxu1 %v9814_v10  ;;  %v9906_v9 = vld [vmem:[%s14036_s1 + $0xeec] ss:$16 sps:$4 sm:$0xff]   ;;  %v9901_v10 = vld [vmem:[%s14036_s1 + $0xee0] ss:$16 sps:$4 sm:$0xff]  }
 0x1a8   : > { %6785 = vmatprep.subr.bf16.mxu0 %v9819_v11  ;;  %7441 = vmatprep.subr.bf16.mxu1 %v9822_v13  ;;  %v9904_v11 = vld [vmem:[%s14036_s1 + $0xee8] ss:$16 sps:$4 sm:$0xff]   ;;  %v9909_v13 = vld [vmem:[%s14036_s1 + $0xf04] ss:$16 sps:$4 sm:$0xff]  }
 0x1ab   : > { %6786 = vmatpush1.bf16.msra.mxu0 %v9817_v14  ;;  %7442 = vmatpush1.bf16.msra.mxu1 %v9820_v15  ;;  %v9912_v14 = vld [vmem:[%s14036_s1 + $0xf0c] ss:$16 sps:$4 sm:$0xff]   ;;  %v9907_v15 = vld [vmem:[%s14036_s1 + $0xf00] ss:$16 sps:$4 sm:$0xff]  }
 0x1ac   : > { %6787 = vmatprep.subr.bf16.mxu0 %v9825_v16  ;;  %7443 = vmatprep.subr.bf16.mxu1 %v9828_v17  ;;  %v9910_v16 = vld [vmem:[%s14036_s1 + $0xf08] ss:$16 sps:$4 sm:$0xff]   ;;  %v9915_v17 = vld [vmem:[%s14036_s1 + $0xf24] ss:$16 sps:$4 sm:$0xff]  }
 0x1af   : > { %6788 = vmatpush1.bf16.msra.mxu0 %v9823_v18  ;;  %7444 = vmatpush1.bf16.msra.mxu1 %v9826_v20  ;;  %v9918_v18 = vld [vmem:[%s14036_s1 + $0xf2c] ss:$16 sps:$4 sm:$0xff]   ;;  %v9913_v20 = vld [vmem:[%s14036_s1 + $0xf20] ss:$16 sps:$4 sm:$0xff]  }
 0x1b0   : > { %6789 = vmatprep.subr.bf16.mxu0 %v9831_v21  ;;  %7445 = vmatprep.subr.bf16.mxu1 %v9834_v23  ;;  %v9916_v21 = vld [vmem:[%s14036_s1 + $0xf28] ss:$16 sps:$4 sm:$0xff]   ;;  %v9921_v23 = vld [vmem:[%s14036_s1 + $0xf44] ss:$16 sps:$4 sm:$0xff]  }
 0x1b3   : > { %6790 = vmatpush1.bf16.msra.mxu0 %v9829_v19  ;;  %7446 = vmatpush1.bf16.msra.mxu1 %v9832_v25  ;;  %v9924_v19 = vld [vmem:[%s14036_s1 + $0xf4c] ss:$16 sps:$4 sm:$0xff]   ;;  %v9919_v25 = vld [vmem:[%s14036_s1 + $0xf40] ss:$16 sps:$4 sm:$0xff]  }
 0x1b4   : > { %6791 = vmatprep.subr.bf16.mxu0 %v9837_v12  ;;  %7447 = vmatprep.subr.bf16.mxu1 %v9840_v27  ;;  %v9922_v12 = vld [vmem:[%s14036_s1 + $0xf48] ss:$16 sps:$4 sm:$0xff]   ;;  %v9927_v27 = vld [vmem:[%s14036_s1 + $0xf64] ss:$16 sps:$4 sm:$0xff]  }
 0x1b7   : > { %6792 = vmatpush1.bf16.msra.mxu0 %v9835_v28  ;;  %7448 = vmatpush1.bf16.msra.mxu1 %v9838_v30  ;;  %v9930_v28 = vld [vmem:[%s14036_s1 + $0xf6c] ss:$16 sps:$4 sm:$0xff]   ;;  %v9925_v30 = vld [vmem:[%s14036_s1 + $0xf60] ss:$16 sps:$4 sm:$0xff]  }
 0x1b8   : > { %6793 = vmatprep.subr.bf16.mxu0 %v9843_v31  ;;  %7449 = vmatprep.subr.bf16.mxu1 %v9846_v22  ;;  %v9928_v31 = vld [vmem:[%s14036_s1 + $0xf68] ss:$16 sps:$4 sm:$0xff]   ;;  %v9933_v22 = vld [vmem:[%s14036_s1 + $0xf84] ss:$16 sps:$4 sm:$0xff]  }
 0x1bb   : > { %6794 = vmatpush1.bf16.msra.mxu0 %v9841_v32  ;;  %7450 = vmatpush1.bf16.msra.mxu1 %v9844_v33  ;;  %v9936_v32 = vld [vmem:[%s14036_s1 + $0xf8c] ss:$16 sps:$4 sm:$0xff]   ;;  %v9931_v33 = vld [vmem:[%s14036_s1 + $0xf80] ss:$16 sps:$4 sm:$0xff]  }
 0x1bc   : > { %6795 = vmatprep.subr.bf16.mxu0 %v9849_v26  ;;  %7451 = vmatprep.subr.bf16.mxu1 %v9852_v36  ;;  %v9934_v26 = vld [vmem:[%s14036_s1 + $0xf88] ss:$16 sps:$4 sm:$0xff]   ;;  %v9939_v36 = vld [vmem:[%s14036_s1 + $0xfa4] ss:$16 sps:$4 sm:$0xff]  }
 0x1bf   : > { %6796 = vmatpush1.bf16.msra.mxu0 %v9847_v24  ;;  %7452 = vmatpush1.bf16.msra.mxu1 %v9850_v37  ;;  %v9942_v24 = vld [vmem:[%s14036_s1 + $0xfac] ss:$16 sps:$4 sm:$0xff]   ;;  %v9937_v37 = vld [vmem:[%s14036_s1 + $0xfa0] ss:$16 sps:$4 sm:$0xff]  }
 0x1c0   : > { %6797 = vmatprep.subr.bf16.mxu0 %v9855_v38  ;;  %7453 = vmatprep.subr.bf16.mxu1 %v9858_v40  ;;  %v9940_v38 = vld [vmem:[%s14036_s1 + $0xfa8] ss:$16 sps:$4 sm:$0xff]   ;;  %v9945_v40 = vld [vmem:[%s14036_s1 + $0xfc4] ss:$16 sps:$4 sm:$0xff]  }
 0x1c3   : > { %6798 = vmatpush1.bf16.msra.mxu0 %v9853_v29  ;;  %7454 = vmatpush1.bf16.msra.mxu1 %v9856_v43  ;;  %v9943_v29 = vld [vmem:[%s14036_s1 + $0xfc0] ss:$16 sps:$4 sm:$0xff]   ;;  %v9946_v43 = vld [vmem:[%s14036_s1 + $0xfc8] ss:$16 sps:$4 sm:$0xff]  }
 0x1c4   : > { %6808 = vmatprep.subr.bf16.mxu0 %v9861_v44  ;;  %7464 = vmatprep.subr.bf16.mxu1 %v9864_v35  ;;  %v9951_v44 = vld [vmem:[%s14036_s1 + $0xfe4] ss:$16 sps:$4 sm:$0xff]   ;;  %v9954_v35 = vld [vmem:[%s14036_s1 + $0xfec] ss:$16 sps:$4 sm:$0xff]  }
 0x1c6   : > { %6800 = vmatmul.mubr.bf16.vlgmr.msra.gmra.mrb[0].mxu0 %v12000_v39  ;;  %7456 = vmatmul.mubr.bf16.vlgmr.msra.gmra.mrb[0].mxu1 %v12000_v39  ;;  %v9876_v39 = vld [vmem:[%s14036_s1 + $0xe4c] ss:$16 sps:$4 sm:$0xff]  }
 0x1c7   : > { %6809 = vmatpush1.bf16.msra.mxu0 %v9859_v46  ;;  %7465 = vmatpush1.bf16.msra.mxu1 %v9862_v47  ;;  %v12388_v46 = vld [vmem:[%s10917_s30 + $0x20] sm:$0xff] }
 0x1c8   : > { %6810 = vmatprep.subr.bf16.mxu0 %v9867_v34  ;;  %7466 = vmatprep.subr.bf16.mxu1 %v9870_v48  ;;  %v9949_v47 = vld [vmem:[%s14036_s1 + $0xfe0] ss:$16 sps:$4 sm:$0xff]   ;;  %v9952_v34 = vld [vmem:[%s14036_s1 + $0xfe8] ss:$16 sps:$4 sm:$0xff]   ;;  %v9958_v48 = vld [vmem:[%s14036_s1 + $0x1004] ss:$16 sps:$4 sm:$0xff]  }
 0x1c9   : > { %6840 = vmatprep.mubr.bf16.mxu0 %v1300_v50  ;;  %7496 = vmatprep.mubr.bf16.mxu1 %v1300_v50  ;;  %v9961_v50 = vld [vmem:[%s14036_s1 + $0x100c] ss:$16 sps:$4 sm:$0xff]  }
 0x1cb   : > { %6811 = vmatpush1.bf16.msra.mxu0 %v9865_v51  ;;  %7467 = vmatpush1.bf16.msra.mxu1 %v9868_v52  ;;  %v12404_v51 = vrot.slane %v12388_v46, %v10920_v49  ;;  %v9956_v52 = vld [vmem:[%s14036_s1 + $0x1000] ss:$16 sps:$4 sm:$0xff]  }
 0x1cc   : > { %6812 = vmatprep.subr.bf16.mxu0 %v9873_v53  ;;  %7468 = vmatprep.subr.bf16.mxu1 %v9876_v39  ;;  %v9959_v53 = vld [vmem:[%s14036_s1 + $0x1008] ss:$16 sps:$4 sm:$0xff]   ;;  %v9964_v39 = vld [vmem:[%s14036_s1 + $0x1024] ss:$16 sps:$4 sm:$0xff]  }
 0x1cf   : > { %6813 = vmatpush1.bf16.msra.mxu0 %v9871_v54  ;;  %7469 = vmatpush1.bf16.msra.mxu1 %v9874_v55  ;;  %v9967_v54 = vld [vmem:[%s14036_s1 + $0x102c] ss:$16 sps:$4 sm:$0xff]   ;;  %v1316_v55 = vcombine.high %v12404_v51, %v12404_v51 }
 0x1d0   : > { %6814 = vmatprep.subr.bf16.mxu0 %v9879_v56  ;;  %7470 = vmatprep.subr.bf16.mxu1 %v9882_v57  ;;  %v9962_v56 = vld [vmem:[%s14036_s1 + $0x1020] ss:$16 sps:$4 sm:$0xff]   ;;  %v9965_v57 = vld [vmem:[%s14036_s1 + $0x1028] ss:$16 sps:$4 sm:$0xff]  }
 0x1d3   : > { %6815 = vmatpush1.bf16.msra.mxu0 %v9877_v58  ;;  %7471 = vmatpush1.bf16.msra.mxu1 %v9880_v59  ;;  %v9970_v58 = vld [vmem:[%s14036_s1 + $0x1044] ss:$16 sps:$4 sm:$0xff]   ;;  %v9968_v59 = vld [vmem:[%s14036_s1 + $0x1040] ss:$16 sps:$4 sm:$0xff]  }
 0x1d4   : > { %6816 = vmatprep.subr.bf16.mxu0 %v9885_v60  ;;  %7472 = vmatprep.subr.bf16.mxu1 %v9888_v61  ;;  %v9971_v60 = vld [vmem:[%s14036_s1 + $0x1048] ss:$16 sps:$4 sm:$0xff]   ;;  %v9976_v61 = vld [vmem:[%s14036_s1 + $0x1064] ss:$16 sps:$4 sm:$0xff]  }
 0x1d7   : > { %6817 = vmatpush1.bf16.msra.mxu0 %v9883_v62  ;;  %7473 = vmatpush1.bf16.msra.mxu1 %v9886_v63  ;;  %v9979_v62 = vld [vmem:[%s14036_s1 + $0x106c] ss:$16 sps:$4 sm:$0xff]   ;;  %v9974_v63 = vld [vmem:[%s14036_s1 + $0x1060] ss:$16 sps:$4 sm:$0xff]  }
 0x1d8   : > { %6818 = vmatprep.subr.bf16.mxu0 %v9891_v0  ;;  %7474 = vmatprep.subr.bf16.mxu1 %v9894_v1  ;;  %v9977_v0 = vld [vmem:[%s14036_s1 + $0x1068] ss:$16 sps:$4 sm:$0xff]   ;;  %v9982_v1 = vld [vmem:[%s14036_s1 + $0x1084] ss:$16 sps:$4 sm:$0xff]  }
 0x1db   : > { %6819 = vmatpush1.bf16.msra.mxu0 %v9889_v2  ;;  %7475 = vmatpush1.bf16.msra.mxu1 %v9892_v3  ;;  %v9985_v2 = vld [vmem:[%s14036_s1 + $0x108c] ss:$16 sps:$4 sm:$0xff]   ;;  %v9980_v3 = vld [vmem:[%s14036_s1 + $0x1080] ss:$16 sps:$4 sm:$0xff]  }
 0x1dc   : > { %6820 = vmatprep.subr.bf16.mxu0 %v9897_v4  ;;  %7476 = vmatprep.subr.bf16.mxu1 %v9900_v5  ;;  %v9983_v4 = vld [vmem:[%s14036_s1 + $0x1088] ss:$16 sps:$4 sm:$0xff]   ;;  %v9988_v5 = vld [vmem:[%s14036_s1 + $0x10a4] ss:$16 sps:$4 sm:$0xff]  }
 0x1df   : > { %6821 = vmatpush1.bf16.msra.mxu0 %v9895_v6  ;;  %7477 = vmatpush1.bf16.msra.mxu1 %v9898_v7  ;;  %v9991_v6 = vld [vmem:[%s14036_s1 + $0x10ac] ss:$16 sps:$4 sm:$0xff]   ;;  %v9986_v7 = vld [vmem:[%s14036_s1 + $0x10a0] ss:$16 sps:$4 sm:$0xff]  }
 0x1e0   : > { %6822 = vmatprep.subr.bf16.mxu0 %v9903_v8  ;;  %7478 = vmatprep.subr.bf16.mxu1 %v9906_v9  ;;  %v9989_v8 = vld [vmem:[%s14036_s1 + $0x10a8] ss:$16 sps:$4 sm:$0xff]   ;;  %v9994_v9 = vld [vmem:[%s14036_s1 + $0x10c4] ss:$16 sps:$4 sm:$0xff]  }
 0x1e3   : > { %6823 = vmatpush1.bf16.msra.mxu0 %v9901_v10  ;;  %7479 = vmatpush1.bf16.msra.mxu1 %v9904_v11  ;;  %v9997_v10 = vld [vmem:[%s14036_s1 + $0x10cc] ss:$16 sps:$4 sm:$0xff]   ;;  %v9992_v11 = vld [vmem:[%s14036_s1 + $0x10c0] ss:$16 sps:$4 sm:$0xff]  }
 0x1e4   : > { %6824 = vmatprep.subr.bf16.mxu0 %v9909_v13  ;;  %7480 = vmatprep.subr.bf16.mxu1 %v9912_v14  ;;  %v9995_v13 = vld [vmem:[%s14036_s1 + $0x10c8] ss:$16 sps:$4 sm:$0xff]   ;;  %v10000_v14 = vld [vmem:[%s14036_s1 + $0x10e4] ss:$16 sps:$4 sm:$0xff]  }
 0x1e7   : > { %6825 = vmatpush1.bf16.msra.mxu0 %v9907_v15  ;;  %7481 = vmatpush1.bf16.msra.mxu1 %v9910_v16  ;;  %v10003_v15 = vld [vmem:[%s14036_s1 + $0x10ec] ss:$16 sps:$4 sm:$0xff]   ;;  %v9998_v16 = vld [vmem:[%s14036_s1 + $0x10e0] ss:$16 sps:$4 sm:$0xff]  }
 0x1e8   : > { %6826 = vmatprep.subr.bf16.mxu0 %v9915_v17  ;;  %7482 = vmatprep.subr.bf16.mxu1 %v9918_v18  ;;  %v10001_v17 = vld [vmem:[%s14036_s1 + $0x10e8] ss:$16 sps:$4 sm:$0xff]   ;;  %v10006_v18 = vld [vmem:[%s14036_s1 + $0x1104] ss:$16 sps:$4 sm:$0xff]  }
 0x1eb   : > { %6827 = vmatpush1.bf16.msra.mxu0 %v9913_v20  ;;  %7483 = vmatpush1.bf16.msra.mxu1 %v9916_v21  ;;  %v10009_v20 = vld [vmem:[%s14036_s1 + $0x110c] ss:$16 sps:$4 sm:$0xff]   ;;  %v10004_v21 = vld [vmem:[%s14036_s1 + $0x1100] ss:$16 sps:$4 sm:$0xff]  }
 0x1ec   : > { %6828 = vmatprep.subr.bf16.mxu0 %v9921_v23  ;;  %7484 = vmatprep.subr.bf16.mxu1 %v9924_v19  ;;  %v10007_v23 = vld [vmem:[%s14036_s1 + $0x1108] ss:$16 sps:$4 sm:$0xff]   ;;  %v10012_v19 = vld [vmem:[%s14036_s1 + $0x1124] ss:$16 sps:$4 sm:$0xff]  }
 0x1ef   : > { %6829 = vmatpush1.bf16.msra.mxu0 %v9919_v25  ;;  %7485 = vmatpush1.bf16.msra.mxu1 %v9922_v12  ;;  %v10015_v25 = vld [vmem:[%s14036_s1 + $0x112c] ss:$16 sps:$4 sm:$0xff]   ;;  %v10010_v12 = vld [vmem:[%s14036_s1 + $0x1120] ss:$16 sps:$4 sm:$0xff]  }
 0x1f0   : > { %6830 = vmatprep.subr.bf16.mxu0 %v9927_v27  ;;  %7486 = vmatprep.subr.bf16.mxu1 %v9930_v28  ;;  %v10013_v27 = vld [vmem:[%s14036_s1 + $0x1128] ss:$16 sps:$4 sm:$0xff]   ;;  %v10018_v28 = vld [vmem:[%s14036_s1 + $0x1144] ss:$16 sps:$4 sm:$0xff]  }
 0x1f3   : > { %6831 = vmatpush1.bf16.msra.mxu0 %v9925_v30  ;;  %7487 = vmatpush1.bf16.msra.mxu1 %v9928_v31  ;;  %v10021_v30 = vld [vmem:[%s14036_s1 + $0x114c] ss:$16 sps:$4 sm:$0xff]   ;;  %v10016_v31 = vld [vmem:[%s14036_s1 + $0x1140] ss:$16 sps:$4 sm:$0xff]  }
 0x1f4   : > { %6832 = vmatprep.subr.bf16.mxu0 %v9933_v22  ;;  %7488 = vmatprep.subr.bf16.mxu1 %v9936_v32  ;;  %v10019_v22 = vld [vmem:[%s14036_s1 + $0x1148] ss:$16 sps:$4 sm:$0xff]   ;;  %v10024_v32 = vld [vmem:[%s14036_s1 + $0x1164] ss:$16 sps:$4 sm:$0xff]  }
 0x1f7   : > { %6833 = vmatpush1.bf16.msra.mxu0 %v9931_v33  ;;  %7489 = vmatpush1.bf16.msra.mxu1 %v9934_v26  ;;  %v10027_v33 = vld [vmem:[%s14036_s1 + $0x116c] ss:$16 sps:$4 sm:$0xff]   ;;  %v10022_v26 = vld [vmem:[%s14036_s1 + $0x1160] ss:$16 sps:$4 sm:$0xff]  }
 0x1f8   : > { %6834 = vmatprep.subr.bf16.mxu0 %v9939_v36  ;;  %7490 = vmatprep.subr.bf16.mxu1 %v9942_v24  ;;  %v10025_v36 = vld [vmem:[%s14036_s1 + $0x1168] ss:$16 sps:$4 sm:$0xff]   ;;  %v10030_v24 = vld [vmem:[%s14036_s1 + $0x1184] ss:$16 sps:$4 sm:$0xff]  }
 0x1fb   : > { %6835 = vmatpush1.bf16.msra.mxu0 %v9937_v37  ;;  %7491 = vmatpush1.bf16.msra.mxu1 %v9940_v38  ;;  %v10033_v37 = vld [vmem:[%s14036_s1 + $0x118c] ss:$16 sps:$4 sm:$0xff]   ;;  %v10028_v38 = vld [vmem:[%s14036_s1 + $0x1180] ss:$16 sps:$4 sm:$0xff]  }
 0x1fc   : > { %6836 = vmatprep.subr.bf16.mxu0 %v9945_v40  ;;  %7492 = vmatprep.subr.bf16.mxu1 %v9948_v41  ;;  %v10031_v40 = vld [vmem:[%s14036_s1 + $0x1188] ss:$16 sps:$4 sm:$0xff]   ;;  %v10036_v41 = vld [vmem:[%s14036_s1 + $0x11a4] ss:$16 sps:$4 sm:$0xff]  }
 0x1ff   : > { %6837 = vmatpush1.bf16.msra.mxu0 %v9943_v29  ;;  %7493 = vmatpush1.bf16.msra.mxu1 %v9946_v43  ;;  %v10039_v29 = vld [vmem:[%s14036_s1 + $0x11ac] ss:$16 sps:$4 sm:$0xff]   ;;  %v10034_v43 = vld [vmem:[%s14036_s1 + $0x11a0] ss:$16 sps:$4 sm:$0xff]  }
 0x200   : > { %6838 = vmatprep.subr.bf16.mxu0 %v9951_v44  ;;  %7494 = vmatprep.subr.bf16.mxu1 %v9954_v35  ;;  %v10037_v44 = vld [vmem:[%s14036_s1 + $0x11a8] ss:$16 sps:$4 sm:$0xff]   ;;  %v10042_v35 = vld [vmem:[%s14036_s1 + $0x11c4] ss:$16 sps:$4 sm:$0xff]  }
 0x203   : > { %6839 = vmatpush1.bf16.msra.mxu0 %v9949_v47  ;;  %7495 = vmatpush1.bf16.msra.mxu1 %v9952_v34  ;;  %v10045_v47 = vld [vmem:[%s14036_s1 + $0x11cc] ss:$16 sps:$4 sm:$0xff]   ;;  %v10040_v34 = vld [vmem:[%s14036_s1 + $0x11c0] ss:$16 sps:$4 sm:$0xff]  }
 0x204   : > { %6849 = vmatprep.subr.bf16.mxu0 %v9958_v48  ;;  %7505 = vmatprep.subr.bf16.mxu1 %v9961_v50  ;;  %v10043_v48 = vld [vmem:[%s14036_s1 + $0x11c8] ss:$16 sps:$4 sm:$0xff]   ;;  %v10048_v50 = vld [vmem:[%s14036_s1 + $0x11e4] ss:$16 sps:$4 sm:$0xff]  }
 0x206   : > { %6841 = vmatmul.mubr.bf16.vlgmr.msra.gmra.mrb[0].mxu0 %v12201_v45  ;;  %7497 = vmatmul.mubr.bf16.vlgmr.msra.gmra.mrb[0].mxu1 %v12201_v45  ;;  %v9973_v45 = vld [vmem:[%s14036_s1 + $0x104c] ss:$16 sps:$4 sm:$0xff]  }
 0x207   : > { %6850 = vmatpush1.bf16.msra.mxu0 %v9956_v52  ;;  %7506 = vmatpush1.bf16.msra.mxu1 %v9959_v53  ;;  %v10051_v52 = vld [vmem:[%s14036_s1 + $0x11ec] ss:$16 sps:$4 sm:$0xff]   ;;  %v1301_v53 = vcombine.high %v12388_v46, %v12388_v46 }
 0x208   : > { %6851 = vmatprep.subr.bf16.mxu0 %v9964_v39  ;;  %7507 = vmatprep.subr.bf16.mxu1 %v9967_v54  ;;  %v10046_v39 = vld [vmem:[%s14036_s1 + $0x11e0] ss:$16 sps:$4 sm:$0xff]   ;;  %v10049_v54 = vld [vmem:[%s14036_s1 + $0x11e8] ss:$16 sps:$4 sm:$0xff]   ;;  %v10057_v46 = vld [vmem:[%s14036_s1 + $0x120c] ss:$16 sps:$4 sm:$0xff]  }
 0x209   : > { %6881 = vmatprep.mubr.bf16.mxu0 %v1316_v55  ;;  %7537 = vmatprep.mubr.bf16.mxu1 %v1316_v55  ;;  %v10054_v55 = vld [vmem:[%s14036_s1 + $0x1204] ss:$16 sps:$4 sm:$0xff]  }
 0x20b   : > { %6852 = vmatpush1.bf16.msra.mxu0 %v9962_v56  ;;  %7508 = vmatpush1.bf16.msra.mxu1 %v9965_v57  ;;  %v12605_v56 = vrot.slane %v1301_v53, %v10920_v49  ;;  %v10052_v57 = vld [vmem:[%s14036_s1 + $0x1200] ss:$16 sps:$4 sm:$0xff]   ;;  %v10141_v53 = vld [vmem:[%s14036_s1 + $0x13cc] ss:$16 sps:$4 sm:$0xff]  }
 0x20c   : > { %6853 = vmatprep.subr.bf16.mxu0 %v9970_v58  ;;  %7509 = vmatprep.subr.bf16.mxu1 %v9973_v45  ;;  %v10055_v58 = vld [vmem:[%s14036_s1 + $0x1208] ss:$16 sps:$4 sm:$0xff]   ;;  %v10060_v45 = vld [vmem:[%s14036_s1 + $0x1224] ss:$16 sps:$4 sm:$0xff]  }
 0x20f   : > { %6854 = vmatpush1.bf16.msra.mxu0 %v9968_v59  ;;  %7510 = vmatpush1.bf16.msra.mxu1 %v9971_v60  ;;  %v10063_v59 = vld [vmem:[%s14036_s1 + $0x122c] ss:$16 sps:$4 sm:$0xff]   ;;  %v1317_v60 = vcombine.high %v12605_v56, %v12605_v56 }
 0x210   : > { %6855 = vmatprep.subr.bf16.mxu0 %v9976_v61  ;;  %7511 = vmatprep.subr.bf16.mxu1 %v9979_v62  ;;  %v10058_v61 = vld [vmem:[%s14036_s1 + $0x1220] ss:$16 sps:$4 sm:$0xff]   ;;  %v10061_v62 = vld [vmem:[%s14036_s1 + $0x1228] ss:$16 sps:$4 sm:$0xff]  }
 0x213   : > { %6856 = vmatpush1.bf16.msra.mxu0 %v9974_v63  ;;  %7512 = vmatpush1.bf16.msra.mxu1 %v9977_v0  ;;  %v10066_v63 = vld [vmem:[%s14036_s1 + $0x1244] ss:$16 sps:$4 sm:$0xff]   ;;  %v10064_v0 = vld [vmem:[%s14036_s1 + $0x1240] ss:$16 sps:$4 sm:$0xff]  }
 0x214   : > { %6857 = vmatprep.subr.bf16.mxu0 %v9982_v1  ;;  %7513 = vmatprep.subr.bf16.mxu1 %v9985_v2  ;;  %v10067_v1 = vld [vmem:[%s14036_s1 + $0x1248] ss:$16 sps:$4 sm:$0xff]   ;;  %v10072_v2 = vld [vmem:[%s14036_s1 + $0x1264] ss:$16 sps:$4 sm:$0xff]  }
 0x217   : > { %6858 = vmatpush1.bf16.msra.mxu0 %v9980_v3  ;;  %7514 = vmatpush1.bf16.msra.mxu1 %v9983_v4  ;;  %v10075_v3 = vld [vmem:[%s14036_s1 + $0x126c] ss:$16 sps:$4 sm:$0xff]   ;;  %v10070_v4 = vld [vmem:[%s14036_s1 + $0x1260] ss:$16 sps:$4 sm:$0xff]  }
 0x218   : > { %6859 = vmatprep.subr.bf16.mxu0 %v9988_v5  ;;  %7515 = vmatprep.subr.bf16.mxu1 %v9991_v6  ;;  %v10073_v5 = vld [vmem:[%s14036_s1 + $0x1268] ss:$16 sps:$4 sm:$0xff]   ;;  %v10078_v6 = vld [vmem:[%s14036_s1 + $0x1284] ss:$16 sps:$4 sm:$0xff]  }
 0x21b   : > { %6860 = vmatpush1.bf16.msra.mxu0 %v9986_v7  ;;  %7516 = vmatpush1.bf16.msra.mxu1 %v9989_v8  ;;  %v10081_v7 = vld [vmem:[%s14036_s1 + $0x128c] ss:$16 sps:$4 sm:$0xff]   ;;  %v10076_v8 = vld [vmem:[%s14036_s1 + $0x1280] ss:$16 sps:$4 sm:$0xff]  }
 0x21c   : > { %6861 = vmatprep.subr.bf16.mxu0 %v9994_v9  ;;  %7517 = vmatprep.subr.bf16.mxu1 %v9997_v10  ;;  %v10079_v9 = vld [vmem:[%s14036_s1 + $0x1288] ss:$16 sps:$4 sm:$0xff]   ;;  %v10084_v10 = vld [vmem:[%s14036_s1 + $0x12a4] ss:$16 sps:$4 sm:$0xff]  }
 0x21f   : > { %6862 = vmatpush1.bf16.msra.mxu0 %v9992_v11  ;;  %7518 = vmatpush1.bf16.msra.mxu1 %v9995_v13  ;;  %v10087_v11 = vld [vmem:[%s14036_s1 + $0x12ac] ss:$16 sps:$4 sm:$0xff]   ;;  %v10082_v13 = vld [vmem:[%s14036_s1 + $0x12a0] ss:$16 sps:$4 sm:$0xff]  }
 0x220   : > { %6863 = vmatprep.subr.bf16.mxu0 %v10000_v14  ;;  %7519 = vmatprep.subr.bf16.mxu1 %v10003_v15  ;;  %v10085_v14 = vld [vmem:[%s14036_s1 + $0x12a8] ss:$16 sps:$4 sm:$0xff]   ;;  %v10090_v15 = vld [vmem:[%s14036_s1 + $0x12c4] ss:$16 sps:$4 sm:$0xff]  }
 0x223   : > { %6864 = vmatpush1.bf16.msra.mxu0 %v9998_v16  ;;  %7520 = vmatpush1.bf16.msra.mxu1 %v10001_v17  ;;  %v10093_v16 = vld [vmem:[%s14036_s1 + $0x12cc] ss:$16 sps:$4 sm:$0xff]   ;;  %v10088_v17 = vld [vmem:[%s14036_s1 + $0x12c0] ss:$16 sps:$4 sm:$0xff]  }
 0x224   : > { %6865 = vmatprep.subr.bf16.mxu0 %v10006_v18  ;;  %7521 = vmatprep.subr.bf16.mxu1 %v10009_v20  ;;  %v10091_v18 = vld [vmem:[%s14036_s1 + $0x12c8] ss:$16 sps:$4 sm:$0xff]   ;;  %v10096_v20 = vld [vmem:[%s14036_s1 + $0x12e4] ss:$16 sps:$4 sm:$0xff]  }
 0x227   : > { %6866 = vmatpush1.bf16.msra.mxu0 %v10004_v21  ;;  %7522 = vmatpush1.bf16.msra.mxu1 %v10007_v23  ;;  %v10099_v21 = vld [vmem:[%s14036_s1 + $0x12ec] ss:$16 sps:$4 sm:$0xff]   ;;  %v10094_v23 = vld [vmem:[%s14036_s1 + $0x12e0] ss:$16 sps:$4 sm:$0xff]  }
 0x228   : > { %6867 = vmatprep.subr.bf16.mxu0 %v10012_v19  ;;  %7523 = vmatprep.subr.bf16.mxu1 %v10015_v25  ;;  %v10097_v19 = vld [vmem:[%s14036_s1 + $0x12e8] ss:$16 sps:$4 sm:$0xff]   ;;  %v10102_v25 = vld [vmem:[%s14036_s1 + $0x1304] ss:$16 sps:$4 sm:$0xff]  }
 0x22b   : > { %6868 = vmatpush1.bf16.msra.mxu0 %v10010_v12  ;;  %7524 = vmatpush1.bf16.msra.mxu1 %v10013_v27  ;;  %v10105_v12 = vld [vmem:[%s14036_s1 + $0x130c] ss:$16 sps:$4 sm:$0xff]   ;;  %v10100_v27 = vld [vmem:[%s14036_s1 + $0x1300] ss:$16 sps:$4 sm:$0xff]  }
 0x22c   : > { %6869 = vmatprep.subr.bf16.mxu0 %v10018_v28  ;;  %7525 = vmatprep.subr.bf16.mxu1 %v10021_v30  ;;  %v10103_v28 = vld [vmem:[%s14036_s1 + $0x1308] ss:$16 sps:$4 sm:$0xff]   ;;  %v10108_v30 = vld [vmem:[%s14036_s1 + $0x1324] ss:$16 sps:$4 sm:$0xff]  }
 0x22f   : > { %6870 = vmatpush1.bf16.msra.mxu0 %v10016_v31  ;;  %7526 = vmatpush1.bf16.msra.mxu1 %v10019_v22  ;;  %v10111_v31 = vld [vmem:[%s14036_s1 + $0x132c] ss:$16 sps:$4 sm:$0xff]   ;;  %v10106_v22 = vld [vmem:[%s14036_s1 + $0x1320] ss:$16 sps:$4 sm:$0xff]  }
 0x230   : > { %6871 = vmatprep.subr.bf16.mxu0 %v10024_v32  ;;  %7527 = vmatprep.subr.bf16.mxu1 %v10027_v33  ;;  %v10109_v32 = vld [vmem:[%s14036_s1 + $0x1328] ss:$16 sps:$4 sm:$0xff]   ;;  %v10114_v33 = vld [vmem:[%s14036_s1 + $0x1344] ss:$16 sps:$4 sm:$0xff]  }
 0x233   : > { %6872 = vmatpush1.bf16.msra.mxu0 %v10022_v26  ;;  %7528 = vmatpush1.bf16.msra.mxu1 %v10025_v36  ;;  %v10117_v26 = vld [vmem:[%s14036_s1 + $0x134c] ss:$16 sps:$4 sm:$0xff]   ;;  %v10112_v36 = vld [vmem:[%s14036_s1 + $0x1340] ss:$16 sps:$4 sm:$0xff]  }
 0x234   : > { %6873 = vmatprep.subr.bf16.mxu0 %v10030_v24  ;;  %7529 = vmatprep.subr.bf16.mxu1 %v10033_v37  ;;  %v10115_v24 = vld [vmem:[%s14036_s1 + $0x1348] ss:$16 sps:$4 sm:$0xff]   ;;  %v10120_v37 = vld [vmem:[%s14036_s1 + $0x1364] ss:$16 sps:$4 sm:$0xff]  }
 0x237   : > { %6874 = vmatpush1.bf16.msra.mxu0 %v10028_v38  ;;  %7530 = vmatpush1.bf16.msra.mxu1 %v10031_v40  ;;  %v10123_v38 = vld [vmem:[%s14036_s1 + $0x136c] ss:$16 sps:$4 sm:$0xff]   ;;  %v10118_v40 = vld [vmem:[%s14036_s1 + $0x1360] ss:$16 sps:$4 sm:$0xff]  }
 0x238   : > { %6875 = vmatprep.subr.bf16.mxu0 %v10036_v41  ;;  %7531 = vmatprep.subr.bf16.mxu1 %v10039_v29  ;;  %v10121_v41 = vld [vmem:[%s14036_s1 + $0x1368] ss:$16 sps:$4 sm:$0xff]   ;;  %v10126_v29 = vld [vmem:[%s14036_s1 + $0x1384] ss:$16 sps:$4 sm:$0xff]  }
 0x23b   : > { %6876 = vmatpush1.bf16.msra.mxu0 %v10034_v43  ;;  %7532 = vmatpush1.bf16.msra.mxu1 %v10037_v44  ;;  %v10129_v43 = vld [vmem:[%s14036_s1 + $0x138c] ss:$16 sps:$4 sm:$0xff]   ;;  %v10124_v44 = vld [vmem:[%s14036_s1 + $0x1380] ss:$16 sps:$4 sm:$0xff]  }
 0x23c   : > { %6877 = vmatprep.subr.bf16.mxu0 %v10042_v35  ;;  %7533 = vmatprep.subr.bf16.mxu1 %v10045_v47  ;;  %v10127_v35 = vld [vmem:[%s14036_s1 + $0x1388] ss:$16 sps:$4 sm:$0xff]   ;;  %v10132_v47 = vld [vmem:[%s14036_s1 + $0x13a4] ss:$16 sps:$4 sm:$0xff]  }
 0x23f   : > { %6878 = vmatpush1.bf16.msra.mxu0 %v10040_v34  ;;  %7534 = vmatpush1.bf16.msra.mxu1 %v10043_v48  ;;  %v10135_v34 = vld [vmem:[%s14036_s1 + $0x13ac] ss:$16 sps:$4 sm:$0xff]   ;;  %v10130_v48 = vld [vmem:[%s14036_s1 + $0x13a0] ss:$16 sps:$4 sm:$0xff]  }
 0x240   : > { %6879 = vmatprep.subr.bf16.mxu0 %v10048_v50  ;;  %7535 = vmatprep.subr.bf16.mxu1 %v10051_v52  ;;  %v10133_v50 = vld [vmem:[%s14036_s1 + $0x13a8] ss:$16 sps:$4 sm:$0xff]   ;;  %v10138_v52 = vld [vmem:[%s14036_s1 + $0x13c4] ss:$16 sps:$4 sm:$0xff]  }
 0x243   : > { %6880 = vmatpush1.bf16.msra.mxu0 %v10046_v39  ;;  %7536 = vmatpush1.bf16.msra.mxu1 %v10049_v54  ;;  %v10136_v39 = vld [vmem:[%s14036_s1 + $0x13c0] ss:$16 sps:$4 sm:$0xff]   ;;  %v10139_v54 = vld [vmem:[%s14036_s1 + $0x13c8] ss:$16 sps:$4 sm:$0xff]  }
 0x244   : > { %6890 = vmatprep.subr.bf16.mxu0 %v10054_v55  ;;  %7546 = vmatprep.subr.bf16.mxu1 %v10057_v46  ;;  %v10144_v55 = vld [vmem:[%s14036_s1 + $0x13e4] ss:$16 sps:$4 sm:$0xff]   ;;  %v10147_v46 = vld [vmem:[%s14036_s1 + $0x13ec] ss:$16 sps:$4 sm:$0xff]  }
 0x246   : > { %6882 = vmatmul.mubr.bf16.vlgmr.msra.gmra.mrb[0].mxu0 %v12404_v51  ;;  %7538 = vmatmul.mubr.bf16.vlgmr.msra.gmra.mrb[0].mxu1 %v12404_v51  ;;  %v10069_v51 = vld [vmem:[%s14036_s1 + $0x124c] ss:$16 sps:$4 sm:$0xff]  }
 0x247   : > { %6891 = vmatpush1.bf16.msra.mxu0 %v10052_v57  ;;  %7547 = vmatpush1.bf16.msra.mxu1 %v10055_v58  ;;  %v12792_v57 = vld [vmem:[%s10917_s30 + $0x28] sm:$0xff]  ;;  %v10142_v58 = vld [vmem:[%s14036_s1 + $0x13e0] ss:$16 sps:$4 sm:$0xff]  }
 0x248   : > { %6892 = vmatprep.subr.bf16.mxu0 %v10060_v45  ;;  %7548 = vmatprep.subr.bf16.mxu1 %v10063_v59  ;;  %v10145_v45 = vld [vmem:[%s14036_s1 + $0x13e8] ss:$16 sps:$4 sm:$0xff]   ;;  %v10151_v59 = vld [vmem:[%s14036_s1 + $0x1404] ss:$16 sps:$4 sm:$0xff]  }
 0x249   : > { %6922 = vmatprep.mubr.bf16.mxu0 %v1317_v60  ;;  %7578 = vmatprep.mubr.bf16.mxu1 %v1317_v60  ;;  %v10154_v60 = vld [vmem:[%s14036_s1 + $0x140c] ss:$16 sps:$4 sm:$0xff]  }
 0x24b   : > { %6893 = vmatpush1.bf16.msra.mxu0 %v10058_v61  ;;  %7549 = vmatpush1.bf16.msra.mxu1 %v10061_v62  ;;  %v12808_v61 = vrot.slane %v12792_v57, %v10920_v49  ;;  %v10149_v62 = vld [vmem:[%s14036_s1 + $0x1400] ss:$16 sps:$4 sm:$0xff]  }
 0x24c   : > { %6894 = vmatprep.subr.bf16.mxu0 %v10066_v63  ;;  %7550 = vmatprep.subr.bf16.mxu1 %v10069_v51  ;;  %v10152_v63 = vld [vmem:[%s14036_s1 + $0x1408] ss:$16 sps:$4 sm:$0xff]   ;;  %v10157_v51 = vld [vmem:[%s14036_s1 + $0x1424] ss:$16 sps:$4 sm:$0xff]  }
 0x24f   : > { %6895 = vmatpush1.bf16.msra.mxu0 %v10064_v0  ;;  %7551 = vmatpush1.bf16.msra.mxu1 %v10067_v1  ;;  %v10160_v0 = vld [vmem:[%s14036_s1 + $0x142c] ss:$16 sps:$4 sm:$0xff]   ;;  %v1333_v1 = vcombine.high %v12808_v61, %v12808_v61 }
 0x250   : > { %6896 = vmatprep.subr.bf16.mxu0 %v10072_v2  ;;  %7552 = vmatprep.subr.bf16.mxu1 %v10075_v3  ;;  %v10155_v2 = vld [vmem:[%s14036_s1 + $0x1420] ss:$16 sps:$4 sm:$0xff]   ;;  %v10158_v3 = vld [vmem:[%s14036_s1 + $0x1428] ss:$16 sps:$4 sm:$0xff]  }
 0x253   : > { %6897 = vmatpush1.bf16.msra.mxu0 %v10070_v4  ;;  %7553 = vmatpush1.bf16.msra.mxu1 %v10073_v5  ;;  %v10163_v4 = vld [vmem:[%s14036_s1 + $0x1444] ss:$16 sps:$4 sm:$0xff]   ;;  %v10161_v5 = vld [vmem:[%s14036_s1 + $0x1440] ss:$16 sps:$4 sm:$0xff]  }
 0x254   : > { %6898 = vmatprep.subr.bf16.mxu0 %v10078_v6  ;;  %7554 = vmatprep.subr.bf16.mxu1 %v10081_v7  ;;  %v10164_v6 = vld [vmem:[%s14036_s1 + $0x1448] ss:$16 sps:$4 sm:$0xff]   ;;  %v10169_v7 = vld [vmem:[%s14036_s1 + $0x1464] ss:$16 sps:$4 sm:$0xff]  }
 0x257   : > { %6899 = vmatpush1.bf16.msra.mxu0 %v10076_v8  ;;  %7555 = vmatpush1.bf16.msra.mxu1 %v10079_v9  ;;  %v10172_v8 = vld [vmem:[%s14036_s1 + $0x146c] ss:$16 sps:$4 sm:$0xff]   ;;  %v10167_v9 = vld [vmem:[%s14036_s1 + $0x1460] ss:$16 sps:$4 sm:$0xff]  }
 0x258   : > { %6900 = vmatprep.subr.bf16.mxu0 %v10084_v10  ;;  %7556 = vmatprep.subr.bf16.mxu1 %v10087_v11  ;;  %v10170_v10 = vld [vmem:[%s14036_s1 + $0x1468] ss:$16 sps:$4 sm:$0xff]   ;;  %v10175_v11 = vld [vmem:[%s14036_s1 + $0x1484] ss:$16 sps:$4 sm:$0xff]  }
 0x25b   : > { %6901 = vmatpush1.bf16.msra.mxu0 %v10082_v13  ;;  %7557 = vmatpush1.bf16.msra.mxu1 %v10085_v14  ;;  %v10178_v13 = vld [vmem:[%s14036_s1 + $0x148c] ss:$16 sps:$4 sm:$0xff]   ;;  %v10173_v14 = vld [vmem:[%s14036_s1 + $0x1480] ss:$16 sps:$4 sm:$0xff]  }
 0x25c   : > { %6902 = vmatprep.subr.bf16.mxu0 %v10090_v15  ;;  %7558 = vmatprep.subr.bf16.mxu1 %v10093_v16  ;;  %v10176_v15 = vld [vmem:[%s14036_s1 + $0x1488] ss:$16 sps:$4 sm:$0xff]   ;;  %v10181_v16 = vld [vmem:[%s14036_s1 + $0x14a4] ss:$16 sps:$4 sm:$0xff]  }
 0x25f   : > { %6903 = vmatpush1.bf16.msra.mxu0 %v10088_v17  ;;  %7559 = vmatpush1.bf16.msra.mxu1 %v10091_v18  ;;  %v10184_v17 = vld [vmem:[%s14036_s1 + $0x14ac] ss:$16 sps:$4 sm:$0xff]   ;;  %v10179_v18 = vld [vmem:[%s14036_s1 + $0x14a0] ss:$16 sps:$4 sm:$0xff]  }
 0x260   : > { %6904 = vmatprep.subr.bf16.mxu0 %v10096_v20  ;;  %7560 = vmatprep.subr.bf16.mxu1 %v10099_v21  ;;  %v10182_v20 = vld [vmem:[%s14036_s1 + $0x14a8] ss:$16 sps:$4 sm:$0xff]   ;;  %v10187_v21 = vld [vmem:[%s14036_s1 + $0x14c4] ss:$16 sps:$4 sm:$0xff]  }
 0x263   : > { %6905 = vmatpush1.bf16.msra.mxu0 %v10094_v23  ;;  %7561 = vmatpush1.bf16.msra.mxu1 %v10097_v19  ;;  %v10190_v23 = vld [vmem:[%s14036_s1 + $0x14cc] ss:$16 sps:$4 sm:$0xff]   ;;  %v10185_v19 = vld [vmem:[%s14036_s1 + $0x14c0] ss:$16 sps:$4 sm:$0xff]  }
 0x264   : > { %6906 = vmatprep.subr.bf16.mxu0 %v10102_v25  ;;  %7562 = vmatprep.subr.bf16.mxu1 %v10105_v12  ;;  %v10188_v25 = vld [vmem:[%s14036_s1 + $0x14c8] ss:$16 sps:$4 sm:$0xff]   ;;  %v10193_v12 = vld [vmem:[%s14036_s1 + $0x14e4] ss:$16 sps:$4 sm:$0xff]  }
 0x267   : > { %6907 = vmatpush1.bf16.msra.mxu0 %v10100_v27  ;;  %7563 = vmatpush1.bf16.msra.mxu1 %v10103_v28  ;;  %v10196_v27 = vld [vmem:[%s14036_s1 + $0x14ec] ss:$16 sps:$4 sm:$0xff]   ;;  %v10191_v28 = vld [vmem:[%s14036_s1 + $0x14e0] ss:$16 sps:$4 sm:$0xff]  }
 0x268   : > { %6908 = vmatprep.subr.bf16.mxu0 %v10108_v30  ;;  %7564 = vmatprep.subr.bf16.mxu1 %v10111_v31  ;;  %v10194_v30 = vld [vmem:[%s14036_s1 + $0x14e8] ss:$16 sps:$4 sm:$0xff]   ;;  %v10199_v31 = vld [vmem:[%s14036_s1 + $0x1504] ss:$16 sps:$4 sm:$0xff]  }
 0x26b   : > { %6909 = vmatpush1.bf16.msra.mxu0 %v10106_v22  ;;  %7565 = vmatpush1.bf16.msra.mxu1 %v10109_v32  ;;  %v10202_v22 = vld [vmem:[%s14036_s1 + $0x150c] ss:$16 sps:$4 sm:$0xff]   ;;  %v10197_v32 = vld [vmem:[%s14036_s1 + $0x1500] ss:$16 sps:$4 sm:$0xff]  }
 0x26c   : > { %6910 = vmatprep.subr.bf16.mxu0 %v10114_v33  ;;  %7566 = vmatprep.subr.bf16.mxu1 %v10117_v26  ;;  %v10200_v33 = vld [vmem:[%s14036_s1 + $0x1508] ss:$16 sps:$4 sm:$0xff]   ;;  %v10205_v26 = vld [vmem:[%s14036_s1 + $0x1524] ss:$16 sps:$4 sm:$0xff]  }
 0x26f   : > { %6911 = vmatpush1.bf16.msra.mxu0 %v10112_v36  ;;  %7567 = vmatpush1.bf16.msra.mxu1 %v10115_v24  ;;  %v10208_v36 = vld [vmem:[%s14036_s1 + $0x152c] ss:$16 sps:$4 sm:$0xff]   ;;  %v10203_v24 = vld [vmem:[%s14036_s1 + $0x1520] ss:$16 sps:$4 sm:$0xff]  }
 0x270   : > { %6912 = vmatprep.subr.bf16.mxu0 %v10120_v37  ;;  %7568 = vmatprep.subr.bf16.mxu1 %v10123_v38  ;;  %v10206_v37 = vld [vmem:[%s14036_s1 + $0x1528] ss:$16 sps:$4 sm:$0xff]   ;;  %v10211_v38 = vld [vmem:[%s14036_s1 + $0x1544] ss:$16 sps:$4 sm:$0xff]  }
 0x273   : > { %6913 = vmatpush1.bf16.msra.mxu0 %v10118_v40  ;;  %7569 = vmatpush1.bf16.msra.mxu1 %v10121_v41  ;;  %v10214_v40 = vld [vmem:[%s14036_s1 + $0x154c] ss:$16 sps:$4 sm:$0xff]   ;;  %v10209_v41 = vld [vmem:[%s14036_s1 + $0x1540] ss:$16 sps:$4 sm:$0xff]  }
 0x274   : > { %6914 = vmatprep.subr.bf16.mxu0 %v10126_v29  ;;  %7570 = vmatprep.subr.bf16.mxu1 %v10129_v43  ;;  %v10212_v29 = vld [vmem:[%s14036_s1 + $0x1548] ss:$16 sps:$4 sm:$0xff]   ;;  %v10217_v43 = vld [vmem:[%s14036_s1 + $0x1564] ss:$16 sps:$4 sm:$0xff]  }
 0x277   : > { %6915 = vmatpush1.bf16.msra.mxu0 %v10124_v44  ;;  %7571 = vmatpush1.bf16.msra.mxu1 %v10127_v35  ;;  %v10220_v44 = vld [vmem:[%s14036_s1 + $0x156c] ss:$16 sps:$4 sm:$0xff]   ;;  %v10215_v35 = vld [vmem:[%s14036_s1 + $0x1560] ss:$16 sps:$4 sm:$0xff]  }
 0x278   : > { %6916 = vmatprep.subr.bf16.mxu0 %v10132_v47  ;;  %7572 = vmatprep.subr.bf16.mxu1 %v10135_v34  ;;  %v10218_v47 = vld [vmem:[%s14036_s1 + $0x1568] ss:$16 sps:$4 sm:$0xff]   ;;  %v10223_v34 = vld [vmem:[%s14036_s1 + $0x1584] ss:$16 sps:$4 sm:$0xff]  }
 0x27b   : > { %6917 = vmatpush1.bf16.msra.mxu0 %v10130_v48  ;;  %7573 = vmatpush1.bf16.msra.mxu1 %v10133_v50  ;;  %v10226_v48 = vld [vmem:[%s14036_s1 + $0x158c] ss:$16 sps:$4 sm:$0xff]   ;;  %v10221_v50 = vld [vmem:[%s14036_s1 + $0x1580] ss:$16 sps:$4 sm:$0xff]  }
 0x27c   : > { %6918 = vmatprep.subr.bf16.mxu0 %v10138_v52  ;;  %7574 = vmatprep.subr.bf16.mxu1 %v10141_v53  ;;  %v10224_v52 = vld [vmem:[%s14036_s1 + $0x1588] ss:$16 sps:$4 sm:$0xff]   ;;  %v10229_v53 = vld [vmem:[%s14036_s1 + $0x15a4] ss:$16 sps:$4 sm:$0xff]  }
 0x27f   : > { %6919 = vmatpush1.bf16.msra.mxu0 %v10136_v39  ;;  %7575 = vmatpush1.bf16.msra.mxu1 %v10139_v54  ;;  %v10232_v39 = vld [vmem:[%s14036_s1 + $0x15ac] ss:$16 sps:$4 sm:$0xff]   ;;  %v10227_v54 = vld [vmem:[%s14036_s1 + $0x15a0] ss:$16 sps:$4 sm:$0xff]  }
 0x280   : > { %6920 = vmatprep.subr.bf16.mxu0 %v10144_v55  ;;  %7576 = vmatprep.subr.bf16.mxu1 %v10147_v46  ;;  %v10230_v55 = vld [vmem:[%s14036_s1 + $0x15a8] ss:$16 sps:$4 sm:$0xff]   ;;  %v10235_v46 = vld [vmem:[%s14036_s1 + $0x15c4] ss:$16 sps:$4 sm:$0xff]  }
 0x283   : > { %6921 = vmatpush1.bf16.msra.mxu0 %v10142_v58  ;;  %7577 = vmatpush1.bf16.msra.mxu1 %v10145_v45  ;;  %v10238_v58 = vld [vmem:[%s14036_s1 + $0x15cc] ss:$16 sps:$4 sm:$0xff]   ;;  %v10233_v45 = vld [vmem:[%s14036_s1 + $0x15c0] ss:$16 sps:$4 sm:$0xff]  }
 0x284   : > { %6931 = vmatprep.subr.bf16.mxu0 %v10151_v59  ;;  %7587 = vmatprep.subr.bf16.mxu1 %v10154_v60  ;;  %v10236_v59 = vld [vmem:[%s14036_s1 + $0x15c8] ss:$16 sps:$4 sm:$0xff]   ;;  %v10241_v60 = vld [vmem:[%s14036_s1 + $0x15e4] ss:$16 sps:$4 sm:$0xff]  }
 0x286   : > { %6923 = vmatmul.mubr.bf16.vlgmr.msra.gmra.mrb[0].mxu0 %v12605_v56  ;;  %7579 = vmatmul.mubr.bf16.vlgmr.msra.gmra.mrb[0].mxu1 %v12605_v56  ;;  %v10166_v56 = vld [vmem:[%s14036_s1 + $0x144c] ss:$16 sps:$4 sm:$0xff]  }
 0x287   : > { %6932 = vmatpush1.bf16.msra.mxu0 %v10149_v62  ;;  %7588 = vmatpush1.bf16.msra.mxu1 %v10152_v63  ;;  %v10244_v62 = vld [vmem:[%s14036_s1 + $0x15ec] ss:$16 sps:$4 sm:$0xff]   ;;  %v1318_v63 = vcombine.high %v12792_v57, %v12792_v57 }
 0x288   : > { %6933 = vmatprep.subr.bf16.mxu0 %v10157_v51  ;;  %7589 = vmatprep.subr.bf16.mxu1 %v10160_v0  ;;  %v10239_v51 = vld [vmem:[%s14036_s1 + $0x15e0] ss:$16 sps:$4 sm:$0xff]   ;;  %v10242_v0 = vld [vmem:[%s14036_s1 + $0x15e8] ss:$16 sps:$4 sm:$0xff]   ;;  %v10250_v57 = vld [vmem:[%s14036_s1 + $0x160c] ss:$16 sps:$4 sm:$0xff]  }
 0x289   : > { %6963 = vmatprep.mubr.bf16.mxu0 %v1333_v1  ;;  %7619 = vmatprep.mubr.bf16.mxu1 %v1333_v1  ;;  %v10247_v1 = vld [vmem:[%s14036_s1 + $0x1604] ss:$16 sps:$4 sm:$0xff]  }
 0x28b   : > { %6934 = vmatpush1.bf16.msra.mxu0 %v10155_v2  ;;  %7590 = vmatpush1.bf16.msra.mxu1 %v10158_v3  ;;  %v13009_v2 = vrot.slane %v1318_v63, %v10920_v49  ;;  %v10245_v3 = vld [vmem:[%s14036_s1 + $0x1600] ss:$16 sps:$4 sm:$0xff]   ;;  %v10334_v63 = vld [vmem:[%s14036_s1 + $0x17cc] ss:$16 sps:$4 sm:$0xff]  }
 0x28c   : > { %6935 = vmatprep.subr.bf16.mxu0 %v10163_v4  ;;  %7591 = vmatprep.subr.bf16.mxu1 %v10166_v56  ;;  %v10248_v4 = vld [vmem:[%s14036_s1 + $0x1608] ss:$16 sps:$4 sm:$0xff]   ;;  %v10253_v56 = vld [vmem:[%s14036_s1 + $0x1624] ss:$16 sps:$4 sm:$0xff]  }
 0x28f   : > { %6936 = vmatpush1.bf16.msra.mxu0 %v10161_v5  ;;  %7592 = vmatpush1.bf16.msra.mxu1 %v10164_v6  ;;  %v10256_v5 = vld [vmem:[%s14036_s1 + $0x162c] ss:$16 sps:$4 sm:$0xff]   ;;  %v1334_v6 = vcombine.high %v13009_v2, %v13009_v2 }
 0x290   : > { %6937 = vmatprep.subr.bf16.mxu0 %v10169_v7  ;;  %7593 = vmatprep.subr.bf16.mxu1 %v10172_v8  ;;  %v10251_v7 = vld [vmem:[%s14036_s1 + $0x1620] ss:$16 sps:$4 sm:$0xff]   ;;  %v10254_v8 = vld [vmem:[%s14036_s1 + $0x1628] ss:$16 sps:$4 sm:$0xff]  }
 0x293   : > { %6938 = vmatpush1.bf16.msra.mxu0 %v10167_v9  ;;  %7594 = vmatpush1.bf16.msra.mxu1 %v10170_v10  ;;  %v10259_v9 = vld [vmem:[%s14036_s1 + $0x1644] ss:$16 sps:$4 sm:$0xff]   ;;  %v10257_v10 = vld [vmem:[%s14036_s1 + $0x1640] ss:$16 sps:$4 sm:$0xff]  }
 0x294   : > { %6939 = vmatprep.subr.bf16.mxu0 %v10175_v11  ;;  %7595 = vmatprep.subr.bf16.mxu1 %v10178_v13  ;;  %v10260_v11 = vld [vmem:[%s14036_s1 + $0x1648] ss:$16 sps:$4 sm:$0xff]   ;;  %v10265_v13 = vld [vmem:[%s14036_s1 + $0x1664] ss:$16 sps:$4 sm:$0xff]  }
 0x297   : > { %6940 = vmatpush1.bf16.msra.mxu0 %v10173_v14  ;;  %7596 = vmatpush1.bf16.msra.mxu1 %v10176_v15  ;;  %v10268_v14 = vld [vmem:[%s14036_s1 + $0x166c] ss:$16 sps:$4 sm:$0xff]   ;;  %v10263_v15 = vld [vmem:[%s14036_s1 + $0x1660] ss:$16 sps:$4 sm:$0xff]  }
 0x298   : > { %6941 = vmatprep.subr.bf16.mxu0 %v10181_v16  ;;  %7597 = vmatprep.subr.bf16.mxu1 %v10184_v17  ;;  %v10266_v16 = vld [vmem:[%s14036_s1 + $0x1668] ss:$16 sps:$4 sm:$0xff]   ;;  %v10271_v17 = vld [vmem:[%s14036_s1 + $0x1684] ss:$16 sps:$4 sm:$0xff]  }
 0x29b   : > { %6942 = vmatpush1.bf16.msra.mxu0 %v10179_v18  ;;  %7598 = vmatpush1.bf16.msra.mxu1 %v10182_v20  ;;  %v10274_v18 = vld [vmem:[%s14036_s1 + $0x168c] ss:$16 sps:$4 sm:$0xff]   ;;  %v10269_v20 = vld [vmem:[%s14036_s1 + $0x1680] ss:$16 sps:$4 sm:$0xff]  }
 0x29c   : > { %6943 = vmatprep.subr.bf16.mxu0 %v10187_v21  ;;  %7599 = vmatprep.subr.bf16.mxu1 %v10190_v23  ;;  %v10272_v21 = vld [vmem:[%s14036_s1 + $0x1688] ss:$16 sps:$4 sm:$0xff]   ;;  %v10277_v23 = vld [vmem:[%s14036_s1 + $0x16a4] ss:$16 sps:$4 sm:$0xff]  }
 0x29f   : > { %6944 = vmatpush1.bf16.msra.mxu0 %v10185_v19  ;;  %7600 = vmatpush1.bf16.msra.mxu1 %v10188_v25  ;;  %v10280_v19 = vld [vmem:[%s14036_s1 + $0x16ac] ss:$16 sps:$4 sm:$0xff]   ;;  %v10275_v25 = vld [vmem:[%s14036_s1 + $0x16a0] ss:$16 sps:$4 sm:$0xff]  }
 0x2a0   : > { %6945 = vmatprep.subr.bf16.mxu0 %v10193_v12  ;;  %7601 = vmatprep.subr.bf16.mxu1 %v10196_v27  ;;  %v10278_v12 = vld [vmem:[%s14036_s1 + $0x16a8] ss:$16 sps:$4 sm:$0xff]   ;;  %v10283_v27 = vld [vmem:[%s14036_s1 + $0x16c4] ss:$16 sps:$4 sm:$0xff]  }
 0x2a3   : > { %6946 = vmatpush1.bf16.msra.mxu0 %v10191_v28  ;;  %7602 = vmatpush1.bf16.msra.mxu1 %v10194_v30  ;;  %v10286_v28 = vld [vmem:[%s14036_s1 + $0x16cc] ss:$16 sps:$4 sm:$0xff]   ;;  %v10281_v30 = vld [vmem:[%s14036_s1 + $0x16c0] ss:$16 sps:$4 sm:$0xff]  }
 0x2a4   : > { %6947 = vmatprep.subr.bf16.mxu0 %v10199_v31  ;;  %7603 = vmatprep.subr.bf16.mxu1 %v10202_v22  ;;  %v10284_v31 = vld [vmem:[%s14036_s1 + $0x16c8] ss:$16 sps:$4 sm:$0xff]   ;;  %v10289_v22 = vld [vmem:[%s14036_s1 + $0x16e4] ss:$16 sps:$4 sm:$0xff]  }
 0x2a7   : > { %6948 = vmatpush1.bf16.msra.mxu0 %v10197_v32  ;;  %7604 = vmatpush1.bf16.msra.mxu1 %v10200_v33  ;;  %v10292_v32 = vld [vmem:[%s14036_s1 + $0x16ec] ss:$16 sps:$4 sm:$0xff]   ;;  %v10287_v33 = vld [vmem:[%s14036_s1 + $0x16e0] ss:$16 sps:$4 sm:$0xff]  }
 0x2a8   : > { %6949 = vmatprep.subr.bf16.mxu0 %v10205_v26  ;;  %7605 = vmatprep.subr.bf16.mxu1 %v10208_v36  ;;  %v10290_v26 = vld [vmem:[%s14036_s1 + $0x16e8] ss:$16 sps:$4 sm:$0xff]   ;;  %v10295_v36 = vld [vmem:[%s14036_s1 + $0x1704] ss:$16 sps:$4 sm:$0xff]  }
 0x2ab   : > { %6950 = vmatpush1.bf16.msra.mxu0 %v10203_v24  ;;  %7606 = vmatpush1.bf16.msra.mxu1 %v10206_v37  ;;  %v10298_v24 = vld [vmem:[%s14036_s1 + $0x170c] ss:$16 sps:$4 sm:$0xff]   ;;  %v10293_v37 = vld [vmem:[%s14036_s1 + $0x1700] ss:$16 sps:$4 sm:$0xff]  }
 0x2ac   : > { %6951 = vmatprep.subr.bf16.mxu0 %v10211_v38  ;;  %7607 = vmatprep.subr.bf16.mxu1 %v10214_v40  ;;  %v10296_v38 = vld [vmem:[%s14036_s1 + $0x1708] ss:$16 sps:$4 sm:$0xff]   ;;  %v10301_v40 = vld [vmem:[%s14036_s1 + $0x1724] ss:$16 sps:$4 sm:$0xff]  }
 0x2af   : > { %6952 = vmatpush1.bf16.msra.mxu0 %v10209_v41  ;;  %7608 = vmatpush1.bf16.msra.mxu1 %v10212_v29  ;;  %v10304_v41 = vld [vmem:[%s14036_s1 + $0x172c] ss:$16 sps:$4 sm:$0xff]   ;;  %v10299_v29 = vld [vmem:[%s14036_s1 + $0x1720] ss:$16 sps:$4 sm:$0xff]  }
 0x2b0   : > { %6953 = vmatprep.subr.bf16.mxu0 %v10217_v43  ;;  %7609 = vmatprep.subr.bf16.mxu1 %v10220_v44  ;;  %v10302_v43 = vld [vmem:[%s14036_s1 + $0x1728] ss:$16 sps:$4 sm:$0xff]   ;;  %v10307_v44 = vld [vmem:[%s14036_s1 + $0x1744] ss:$16 sps:$4 sm:$0xff]  }
 0x2b3   : > { %6954 = vmatpush1.bf16.msra.mxu0 %v10215_v35  ;;  %7610 = vmatpush1.bf16.msra.mxu1 %v10218_v47  ;;  %v10310_v35 = vld [vmem:[%s14036_s1 + $0x174c] ss:$16 sps:$4 sm:$0xff]   ;;  %v10305_v47 = vld [vmem:[%s14036_s1 + $0x1740] ss:$16 sps:$4 sm:$0xff]  }
 0x2b4   : > { %6955 = vmatprep.subr.bf16.mxu0 %v10223_v34  ;;  %7611 = vmatprep.subr.bf16.mxu1 %v10226_v48  ;;  %v10308_v34 = vld [vmem:[%s14036_s1 + $0x1748] ss:$16 sps:$4 sm:$0xff]   ;;  %v10313_v48 = vld [vmem:[%s14036_s1 + $0x1764] ss:$16 sps:$4 sm:$0xff]  }
 0x2b7   : > { %6956 = vmatpush1.bf16.msra.mxu0 %v10221_v50  ;;  %7612 = vmatpush1.bf16.msra.mxu1 %v10224_v52  ;;  %v10316_v50 = vld [vmem:[%s14036_s1 + $0x176c] ss:$16 sps:$4 sm:$0xff]   ;;  %v10311_v52 = vld [vmem:[%s14036_s1 + $0x1760] ss:$16 sps:$4 sm:$0xff]  }
 0x2b8   : > { %6957 = vmatprep.subr.bf16.mxu0 %v10229_v53  ;;  %7613 = vmatprep.subr.bf16.mxu1 %v10232_v39  ;;  %v10314_v53 = vld [vmem:[%s14036_s1 + $0x1768] ss:$16 sps:$4 sm:$0xff]   ;;  %v10319_v39 = vld [vmem:[%s14036_s1 + $0x1784] ss:$16 sps:$4 sm:$0xff]  }
 0x2bb   : > { %6958 = vmatpush1.bf16.msra.mxu0 %v10227_v54  ;;  %7614 = vmatpush1.bf16.msra.mxu1 %v10230_v55  ;;  %v10322_v54 = vld [vmem:[%s14036_s1 + $0x178c] ss:$16 sps:$4 sm:$0xff]   ;;  %v10317_v55 = vld [vmem:[%s14036_s1 + $0x1780] ss:$16 sps:$4 sm:$0xff]  }
 0x2bc   : > { %6959 = vmatprep.subr.bf16.mxu0 %v10235_v46  ;;  %7615 = vmatprep.subr.bf16.mxu1 %v10238_v58  ;;  %v10320_v46 = vld [vmem:[%s14036_s1 + $0x1788] ss:$16 sps:$4 sm:$0xff]   ;;  %v10325_v58 = vld [vmem:[%s14036_s1 + $0x17a4] ss:$16 sps:$4 sm:$0xff]  }
 0x2bf   : > { %6960 = vmatpush1.bf16.msra.mxu0 %v10233_v45  ;;  %7616 = vmatpush1.bf16.msra.mxu1 %v10236_v59  ;;  %v10328_v45 = vld [vmem:[%s14036_s1 + $0x17ac] ss:$16 sps:$4 sm:$0xff]   ;;  %v10323_v59 = vld [vmem:[%s14036_s1 + $0x17a0] ss:$16 sps:$4 sm:$0xff]  }
 0x2c0   : > { %6961 = vmatprep.subr.bf16.mxu0 %v10241_v60  ;;  %7617 = vmatprep.subr.bf16.mxu1 %v10244_v62  ;;  %v10326_v60 = vld [vmem:[%s14036_s1 + $0x17a8] ss:$16 sps:$4 sm:$0xff]   ;;  %v10331_v62 = vld [vmem:[%s14036_s1 + $0x17c4] ss:$16 sps:$4 sm:$0xff]  }
 0x2c3   : > { %6962 = vmatpush1.bf16.msra.mxu0 %v10239_v51  ;;  %7618 = vmatpush1.bf16.msra.mxu1 %v10242_v0  ;;  %v10329_v51 = vld [vmem:[%s14036_s1 + $0x17c0] ss:$16 sps:$4 sm:$0xff]   ;;  %v10332_v0 = vld [vmem:[%s14036_s1 + $0x17c8] ss:$16 sps:$4 sm:$0xff]  }
 0x2c4   : > { %6972 = vmatprep.subr.bf16.mxu0 %v10247_v1  ;;  %7628 = vmatprep.subr.bf16.mxu1 %v10250_v57  ;;  %v10337_v1 = vld [vmem:[%s14036_s1 + $0x17e4] ss:$16 sps:$4 sm:$0xff]   ;;  %v10340_v57 = vld [vmem:[%s14036_s1 + $0x17ec] ss:$16 sps:$4 sm:$0xff]  }
 0x2c6   : > { %6964 = vmatmul.mubr.bf16.vlgmr.msra.gmra.mrb[0].mxu0 %v12808_v61  ;;  %7620 = vmatmul.mubr.bf16.vlgmr.msra.gmra.mrb[0].mxu1 %v12808_v61  ;;  %v10262_v61 = vld [vmem:[%s14036_s1 + $0x164c] ss:$16 sps:$4 sm:$0xff]  }
 0x2c7   : > { %6973 = vmatpush1.bf16.msra.mxu0 %v10245_v3  ;;  %7629 = vmatpush1.bf16.msra.mxu1 %v10248_v4  ;;  %v13196_v3 = vld [vmem:[%s10917_s30 + $0x30] sm:$0xff] }
 0x2c8   : > { %6974 = vmatprep.subr.bf16.mxu0 %v10253_v56  ;;  %7630 = vmatprep.subr.bf16.mxu1 %v10256_v5  ;;  %v10335_v4 = vld [vmem:[%s14036_s1 + $0x17e0] ss:$16 sps:$4 sm:$0xff]   ;;  %v10338_v56 = vld [vmem:[%s14036_s1 + $0x17e8] ss:$16 sps:$4 sm:$0xff]   ;;  %v10344_v5 = vld [vmem:[%s14036_s1 + $0x1804] ss:$16 sps:$4 sm:$0xff]  }
 0x2c9   : > { %7004 = vmatprep.mubr.bf16.mxu0 %v1334_v6  ;;  %7660 = vmatprep.mubr.bf16.mxu1 %v1334_v6  ;;  %v10347_v6 = vld [vmem:[%s14036_s1 + $0x180c] ss:$16 sps:$4 sm:$0xff]  }
 0x2cb   : > { %6975 = vmatpush1.bf16.msra.mxu0 %v10251_v7  ;;  %7631 = vmatpush1.bf16.msra.mxu1 %v10254_v8  ;;  %v13212_v7 = vrot.slane %v13196_v3, %v10920_v49  ;;  %v10342_v8 = vld [vmem:[%s14036_s1 + $0x1800] ss:$16 sps:$4 sm:$0xff]  }
 0x2cc   : > { %6976 = vmatprep.subr.bf16.mxu0 %v10259_v9  ;;  %7632 = vmatprep.subr.bf16.mxu1 %v10262_v61  ;;  %v10345_v9 = vld [vmem:[%s14036_s1 + $0x1808] ss:$16 sps:$4 sm:$0xff]   ;;  %v10350_v61 = vld [vmem:[%s14036_s1 + $0x1824] ss:$16 sps:$4 sm:$0xff]  }
 0x2cf   : > { %6977 = vmatpush1.bf16.msra.mxu0 %v10257_v10  ;;  %7633 = vmatpush1.bf16.msra.mxu1 %v10260_v11  ;;  %v10353_v10 = vld [vmem:[%s14036_s1 + $0x182c] ss:$16 sps:$4 sm:$0xff]   ;;  %v1350_v11 = vcombine.high %v13212_v7, %v13212_v7 }
 0x2d0   : > { %6978 = vmatprep.subr.bf16.mxu0 %v10265_v13  ;;  %7634 = vmatprep.subr.bf16.mxu1 %v10268_v14  ;;  %v10348_v13 = vld [vmem:[%s14036_s1 + $0x1820] ss:$16 sps:$4 sm:$0xff]   ;;  %v10351_v14 = vld [vmem:[%s14036_s1 + $0x1828] ss:$16 sps:$4 sm:$0xff]  }
 0x2d3   : > { %6979 = vmatpush1.bf16.msra.mxu0 %v10263_v15  ;;  %7635 = vmatpush1.bf16.msra.mxu1 %v10266_v16  ;;  %v10356_v15 = vld [vmem:[%s14036_s1 + $0x1844] ss:$16 sps:$4 sm:$0xff]   ;;  %v10354_v16 = vld [vmem:[%s14036_s1 + $0x1840] ss:$16 sps:$4 sm:$0xff]  }
 0x2d4   : > { %6980 = vmatprep.subr.bf16.mxu0 %v10271_v17  ;;  %7636 = vmatprep.subr.bf16.mxu1 %v10274_v18  ;;  %v10357_v17 = vld [vmem:[%s14036_s1 + $0x1848] ss:$16 sps:$4 sm:$0xff]   ;;  %v10362_v18 = vld [vmem:[%s14036_s1 + $0x1864] ss:$16 sps:$4 sm:$0xff]  }
 0x2d7   : > { %6981 = vmatpush1.bf16.msra.mxu0 %v10269_v20  ;;  %7637 = vmatpush1.bf16.msra.mxu1 %v10272_v21  ;;  %v10365_v20 = vld [vmem:[%s14036_s1 + $0x186c] ss:$16 sps:$4 sm:$0xff]   ;;  %v10360_v21 = vld [vmem:[%s14036_s1 + $0x1860] ss:$16 sps:$4 sm:$0xff]  }
 0x2d8   : > { %6982 = vmatprep.subr.bf16.mxu0 %v10277_v23  ;;  %7638 = vmatprep.subr.bf16.mxu1 %v10280_v19  ;;  %v10363_v23 = vld [vmem:[%s14036_s1 + $0x1868] ss:$16 sps:$4 sm:$0xff]   ;;  %v10368_v19 = vld [vmem:[%s14036_s1 + $0x1884] ss:$16 sps:$4 sm:$0xff]  }
 0x2db   : > { %6983 = vmatpush1.bf16.msra.mxu0 %v10275_v25  ;;  %7639 = vmatpush1.bf16.msra.mxu1 %v10278_v12  ;;  %v10371_v25 = vld [vmem:[%s14036_s1 + $0x188c] ss:$16 sps:$4 sm:$0xff]   ;;  %v10366_v12 = vld [vmem:[%s14036_s1 + $0x1880] ss:$16 sps:$4 sm:$0xff]  }
 0x2dc   : > { %6984 = vmatprep.subr.bf16.mxu0 %v10283_v27  ;;  %7640 = vmatprep.subr.bf16.mxu1 %v10286_v28  ;;  %v10369_v27 = vld [vmem:[%s14036_s1 + $0x1888] ss:$16 sps:$4 sm:$0xff]   ;;  %v10374_v28 = vld [vmem:[%s14036_s1 + $0x18a4] ss:$16 sps:$4 sm:$0xff]  }
 0x2df   : > { %6985 = vmatpush1.bf16.msra.mxu0 %v10281_v30  ;;  %7641 = vmatpush1.bf16.msra.mxu1 %v10284_v31  ;;  %v10377_v30 = vld [vmem:[%s14036_s1 + $0x18ac] ss:$16 sps:$4 sm:$0xff]   ;;  %v10372_v31 = vld [vmem:[%s14036_s1 + $0x18a0] ss:$16 sps:$4 sm:$0xff]  }
 0x2e0   : > { %6986 = vmatprep.subr.bf16.mxu0 %v10289_v22  ;;  %7642 = vmatprep.subr.bf16.mxu1 %v10292_v32  ;;  %v10375_v22 = vld [vmem:[%s14036_s1 + $0x18a8] ss:$16 sps:$4 sm:$0xff]   ;;  %v10380_v32 = vld [vmem:[%s14036_s1 + $0x18c4] ss:$16 sps:$4 sm:$0xff]  }
 0x2e3   : > { %6987 = vmatpush1.bf16.msra.mxu0 %v10287_v33  ;;  %7643 = vmatpush1.bf16.msra.mxu1 %v10290_v26  ;;  %v10383_v33 = vld [vmem:[%s14036_s1 + $0x18cc] ss:$16 sps:$4 sm:$0xff]   ;;  %v10378_v26 = vld [vmem:[%s14036_s1 + $0x18c0] ss:$16 sps:$4 sm:$0xff]  }
 0x2e4   : > { %6988 = vmatprep.subr.bf16.mxu0 %v10295_v36  ;;  %7644 = vmatprep.subr.bf16.mxu1 %v10298_v24  ;;  %v10381_v36 = vld [vmem:[%s14036_s1 + $0x18c8] ss:$16 sps:$4 sm:$0xff]   ;;  %v10386_v24 = vld [vmem:[%s14036_s1 + $0x18e4] ss:$16 sps:$4 sm:$0xff]  }
 0x2e7   : > { %6989 = vmatpush1.bf16.msra.mxu0 %v10293_v37  ;;  %7645 = vmatpush1.bf16.msra.mxu1 %v10296_v38  ;;  %v10389_v37 = vld [vmem:[%s14036_s1 + $0x18ec] ss:$16 sps:$4 sm:$0xff]   ;;  %v10384_v38 = vld [vmem:[%s14036_s1 + $0x18e0] ss:$16 sps:$4 sm:$0xff]  }
 0x2e8   : > { %6990 = vmatprep.subr.bf16.mxu0 %v10301_v40  ;;  %7646 = vmatprep.subr.bf16.mxu1 %v10304_v41  ;;  %v10387_v40 = vld [vmem:[%s14036_s1 + $0x18e8] ss:$16 sps:$4 sm:$0xff]   ;;  %v10392_v41 = vld [vmem:[%s14036_s1 + $0x1904] ss:$16 sps:$4 sm:$0xff]  }
 0x2eb   : > { %6991 = vmatpush1.bf16.msra.mxu0 %v10299_v29  ;;  %7647 = vmatpush1.bf16.msra.mxu1 %v10302_v43  ;;  %v10395_v29 = vld [vmem:[%s14036_s1 + $0x190c] ss:$16 sps:$4 sm:$0xff]   ;;  %v10390_v43 = vld [vmem:[%s14036_s1 + $0x1900] ss:$16 sps:$4 sm:$0xff]  }
 0x2ec   : > { %6992 = vmatprep.subr.bf16.mxu0 %v10307_v44  ;;  %7648 = vmatprep.subr.bf16.mxu1 %v10310_v35  ;;  %v10393_v44 = vld [vmem:[%s14036_s1 + $0x1908] ss:$16 sps:$4 sm:$0xff]   ;;  %v10398_v35 = vld [vmem:[%s14036_s1 + $0x1924] ss:$16 sps:$4 sm:$0xff]  }
 0x2ef   : > { %6993 = vmatpush1.bf16.msra.mxu0 %v10305_v47  ;;  %7649 = vmatpush1.bf16.msra.mxu1 %v10308_v34  ;;  %v10401_v47 = vld [vmem:[%s14036_s1 + $0x192c] ss:$16 sps:$4 sm:$0xff]   ;;  %v10396_v34 = vld [vmem:[%s14036_s1 + $0x1920] ss:$16 sps:$4 sm:$0xff]  }
 0x2f0   : > { %6994 = vmatprep.subr.bf16.mxu0 %v10313_v48  ;;  %7650 = vmatprep.subr.bf16.mxu1 %v10316_v50  ;;  %v10399_v48 = vld [vmem:[%s14036_s1 + $0x1928] ss:$16 sps:$4 sm:$0xff]   ;;  %v10404_v50 = vld [vmem:[%s14036_s1 + $0x1944] ss:$16 sps:$4 sm:$0xff]  }
 0x2f3   : > { %6995 = vmatpush1.bf16.msra.mxu0 %v10311_v52  ;;  %7651 = vmatpush1.bf16.msra.mxu1 %v10314_v53  ;;  %v10407_v52 = vld [vmem:[%s14036_s1 + $0x194c] ss:$16 sps:$4 sm:$0xff]   ;;  %v10402_v53 = vld [vmem:[%s14036_s1 + $0x1940] ss:$16 sps:$4 sm:$0xff]  }
 0x2f4   : > { %6996 = vmatprep.subr.bf16.mxu0 %v10319_v39  ;;  %7652 = vmatprep.subr.bf16.mxu1 %v10322_v54  ;;  %v10405_v39 = vld [vmem:[%s14036_s1 + $0x1948] ss:$16 sps:$4 sm:$0xff]   ;;  %v10410_v54 = vld [vmem:[%s14036_s1 + $0x1964] ss:$16 sps:$4 sm:$0xff]  }
 0x2f7   : > { %6997 = vmatpush1.bf16.msra.mxu0 %v10317_v55  ;;  %7653 = vmatpush1.bf16.msra.mxu1 %v10320_v46  ;;  %v10413_v55 = vld [vmem:[%s14036_s1 + $0x196c] ss:$16 sps:$4 sm:$0xff]   ;;  %v10408_v46 = vld [vmem:[%s14036_s1 + $0x1960] ss:$16 sps:$4 sm:$0xff]  }
 0x2f8   : > { %6998 = vmatprep.subr.bf16.mxu0 %v10325_v58  ;;  %7654 = vmatprep.subr.bf16.mxu1 %v10328_v45  ;;  %v10411_v58 = vld [vmem:[%s14036_s1 + $0x1968] ss:$16 sps:$4 sm:$0xff]   ;;  %v10416_v45 = vld [vmem:[%s14036_s1 + $0x1984] ss:$16 sps:$4 sm:$0xff]  }
 0x2fb   : > { %6999 = vmatpush1.bf16.msra.mxu0 %v10323_v59  ;;  %7655 = vmatpush1.bf16.msra.mxu1 %v10326_v60  ;;  %v10419_v59 = vld [vmem:[%s14036_s1 + $0x198c] ss:$16 sps:$4 sm:$0xff]   ;;  %v10414_v60 = vld [vmem:[%s14036_s1 + $0x1980] ss:$16 sps:$4 sm:$0xff]  }
 0x2fc   : > { %7000 = vmatprep.subr.bf16.mxu0 %v10331_v62  ;;  %7656 = vmatprep.subr.bf16.mxu1 %v10334_v63  ;;  %v10417_v62 = vld [vmem:[%s14036_s1 + $0x1988] ss:$16 sps:$4 sm:$0xff]   ;;  %v10422_v63 = vld [vmem:[%s14036_s1 + $0x19a4] ss:$16 sps:$4 sm:$0xff]  }
 0x2ff   : > { %7001 = vmatpush1.bf16.msra.mxu0 %v10329_v51  ;;  %7657 = vmatpush1.bf16.msra.mxu1 %v10332_v0  ;;  %v10425_v51 = vld [vmem:[%s14036_s1 + $0x19ac] ss:$16 sps:$4 sm:$0xff]   ;;  %v10420_v0 = vld [vmem:[%s14036_s1 + $0x19a0] ss:$16 sps:$4 sm:$0xff]  }
 0x300   : > { %7002 = vmatprep.subr.bf16.mxu0 %v10337_v1  ;;  %7658 = vmatprep.subr.bf16.mxu1 %v10340_v57  ;;  %v10423_v1 = vld [vmem:[%s14036_s1 + $0x19a8] ss:$16 sps:$4 sm:$0xff]   ;;  %v10428_v57 = vld [vmem:[%s14036_s1 + $0x19c4] ss:$16 sps:$4 sm:$0xff]  }
 0x303   : > { %7003 = vmatpush1.bf16.msra.mxu0 %v10335_v4  ;;  %7659 = vmatpush1.bf16.msra.mxu1 %v10338_v56  ;;  %v10431_v4 = vld [vmem:[%s14036_s1 + $0x19cc] ss:$16 sps:$4 sm:$0xff]   ;;  %v10426_v56 = vld [vmem:[%s14036_s1 + $0x19c0] ss:$16 sps:$4 sm:$0xff]  }
 0x304   : > { %7013 = vmatprep.subr.bf16.mxu0 %v10344_v5  ;;  %7669 = vmatprep.subr.bf16.mxu1 %v10347_v6  ;;  %v10429_v5 = vld [vmem:[%s14036_s1 + $0x19c8] ss:$16 sps:$4 sm:$0xff]   ;;  %v10434_v6 = vld [vmem:[%s14036_s1 + $0x19e4] ss:$16 sps:$4 sm:$0xff]  }
 0x306   : > { %7005 = vmatmul.mubr.bf16.vlgmr.msra.gmra.mrb[0].mxu0 %v13009_v2  ;;  %7661 = vmatmul.mubr.bf16.vlgmr.msra.gmra.mrb[0].mxu1 %v13009_v2  ;;  %v10359_v2 = vld [vmem:[%s14036_s1 + $0x184c] ss:$16 sps:$4 sm:$0xff]  }
 0x307   : > { %7014 = vmatpush1.bf16.msra.mxu0 %v10342_v8  ;;  %7670 = vmatpush1.bf16.msra.mxu1 %v10345_v9  ;;  %v10437_v8 = vld [vmem:[%s14036_s1 + $0x19ec] ss:$16 sps:$4 sm:$0xff]   ;;  %v1335_v9 = vcombine.high %v13196_v3, %v13196_v3 }
 0x308   : > { %7015 = vmatprep.subr.bf16.mxu0 %v10350_v61  ;;  %7671 = vmatprep.subr.bf16.mxu1 %v10353_v10  ;;  %v10432_v61 = vld [vmem:[%s14036_s1 + $0x19e0] ss:$16 sps:$4 sm:$0xff]   ;;  %v10435_v10 = vld [vmem:[%s14036_s1 + $0x19e8] ss:$16 sps:$4 sm:$0xff]   ;;  %v10443_v3 = vld [vmem:[%s14036_s1 + $0x1a0c] ss:$16 sps:$4 sm:$0xff]  }
 0x309   : > { %7045 = vmatprep.mubr.bf16.mxu0 %v1350_v11  ;;  %7701 = vmatprep.mubr.bf16.mxu1 %v1350_v11  ;;  %v10440_v11 = vld [vmem:[%s14036_s1 + $0x1a04] ss:$16 sps:$4 sm:$0xff]  }
 0x30b   : > { %7016 = vmatpush1.bf16.msra.mxu0 %v10348_v13  ;;  %7672 = vmatpush1.bf16.msra.mxu1 %v10351_v14  ;;  %v13413_v13 = vrot.slane %v1335_v9, %v10920_v49  ;;  %v10438_v14 = vld [vmem:[%s14036_s1 + $0x1a00] ss:$16 sps:$4 sm:$0xff]   ;;  %v10527_v9 = vld [vmem:[%s14036_s1 + $0x1bcc] ss:$16 sps:$4 sm:$0xff]  }
 0x30c   : > { %7017 = vmatprep.subr.bf16.mxu0 %v10356_v15  ;;  %7673 = vmatprep.subr.bf16.mxu1 %v10359_v2  ;;  %v10441_v15 = vld [vmem:[%s14036_s1 + $0x1a08] ss:$16 sps:$4 sm:$0xff]   ;;  %v10446_v2 = vld [vmem:[%s14036_s1 + $0x1a24] ss:$16 sps:$4 sm:$0xff]  }
 0x30f   : > { %7018 = vmatpush1.bf16.msra.mxu0 %v10354_v16  ;;  %7674 = vmatpush1.bf16.msra.mxu1 %v10357_v17  ;;  %v10449_v16 = vld [vmem:[%s14036_s1 + $0x1a2c] ss:$16 sps:$4 sm:$0xff]   ;;  %v1351_v17 = vcombine.high %v13413_v13, %v13413_v13 }
 0x310   : > { %7019 = vmatprep.subr.bf16.mxu0 %v10362_v18  ;;  %7675 = vmatprep.subr.bf16.mxu1 %v10365_v20  ;;  %v10444_v18 = vld [vmem:[%s14036_s1 + $0x1a20] ss:$16 sps:$4 sm:$0xff]   ;;  %v10447_v20 = vld [vmem:[%s14036_s1 + $0x1a28] ss:$16 sps:$4 sm:$0xff]  }
 0x313   : > { %7020 = vmatpush1.bf16.msra.mxu0 %v10360_v21  ;;  %7676 = vmatpush1.bf16.msra.mxu1 %v10363_v23  ;;  %v10452_v21 = vld [vmem:[%s14036_s1 + $0x1a44] ss:$16 sps:$4 sm:$0xff]   ;;  %v10450_v23 = vld [vmem:[%s14036_s1 + $0x1a40] ss:$16 sps:$4 sm:$0xff]  }
 0x314   : > { %7021 = vmatprep.subr.bf16.mxu0 %v10368_v19  ;;  %7677 = vmatprep.subr.bf16.mxu1 %v10371_v25  ;;  %v10453_v19 = vld [vmem:[%s14036_s1 + $0x1a48] ss:$16 sps:$4 sm:$0xff]   ;;  %v10458_v25 = vld [vmem:[%s14036_s1 + $0x1a64] ss:$16 sps:$4 sm:$0xff]  }
 0x317   : > { %7022 = vmatpush1.bf16.msra.mxu0 %v10366_v12  ;;  %7678 = vmatpush1.bf16.msra.mxu1 %v10369_v27  ;;  %v10461_v12 = vld [vmem:[%s14036_s1 + $0x1a6c] ss:$16 sps:$4 sm:$0xff]   ;;  %v10456_v27 = vld [vmem:[%s14036_s1 + $0x1a60] ss:$16 sps:$4 sm:$0xff]  }
 0x318   : > { %7023 = vmatprep.subr.bf16.mxu0 %v10374_v28  ;;  %7679 = vmatprep.subr.bf16.mxu1 %v10377_v30  ;;  %v10459_v28 = vld [vmem:[%s14036_s1 + $0x1a68] ss:$16 sps:$4 sm:$0xff]   ;;  %v10464_v30 = vld [vmem:[%s14036_s1 + $0x1a84] ss:$16 sps:$4 sm:$0xff]  }
 0x31b   : > { %7024 = vmatpush1.bf16.msra.mxu0 %v10372_v31  ;;  %7680 = vmatpush1.bf16.msra.mxu1 %v10375_v22  ;;  %v10467_v31 = vld [vmem:[%s14036_s1 + $0x1a8c] ss:$16 sps:$4 sm:$0xff]   ;;  %v10462_v22 = vld [vmem:[%s14036_s1 + $0x1a80] ss:$16 sps:$4 sm:$0xff]  }
 0x31c   : > { %7025 = vmatprep.subr.bf16.mxu0 %v10380_v32  ;;  %7681 = vmatprep.subr.bf16.mxu1 %v10383_v33  ;;  %v10465_v32 = vld [vmem:[%s14036_s1 + $0x1a88] ss:$16 sps:$4 sm:$0xff]   ;;  %v10470_v33 = vld [vmem:[%s14036_s1 + $0x1aa4] ss:$16 sps:$4 sm:$0xff]  }
 0x31f   : > { %7026 = vmatpush1.bf16.msra.mxu0 %v10378_v26  ;;  %7682 = vmatpush1.bf16.msra.mxu1 %v10381_v36  ;;  %v10473_v26 = vld [vmem:[%s14036_s1 + $0x1aac] ss:$16 sps:$4 sm:$0xff]   ;;  %v10468_v36 = vld [vmem:[%s14036_s1 + $0x1aa0] ss:$16 sps:$4 sm:$0xff]  }
 0x320   : > { %7027 = vmatprep.subr.bf16.mxu0 %v10386_v24  ;;  %7683 = vmatprep.subr.bf16.mxu1 %v10389_v37  ;;  %v10471_v24 = vld [vmem:[%s14036_s1 + $0x1aa8] ss:$16 sps:$4 sm:$0xff]   ;;  %v10476_v37 = vld [vmem:[%s14036_s1 + $0x1ac4] ss:$16 sps:$4 sm:$0xff]  }
 0x323   : > { %7028 = vmatpush1.bf16.msra.mxu0 %v10384_v38  ;;  %7684 = vmatpush1.bf16.msra.mxu1 %v10387_v40  ;;  %v10479_v38 = vld [vmem:[%s14036_s1 + $0x1acc] ss:$16 sps:$4 sm:$0xff]   ;;  %v10474_v40 = vld [vmem:[%s14036_s1 + $0x1ac0] ss:$16 sps:$4 sm:$0xff]  }
 0x324   : > { %7029 = vmatprep.subr.bf16.mxu0 %v10392_v41  ;;  %7685 = vmatprep.subr.bf16.mxu1 %v10395_v29  ;;  %v10477_v41 = vld [vmem:[%s14036_s1 + $0x1ac8] ss:$16 sps:$4 sm:$0xff]   ;;  %v10482_v29 = vld [vmem:[%s14036_s1 + $0x1ae4] ss:$16 sps:$4 sm:$0xff]  }
 0x327   : > { %7030 = vmatpush1.bf16.msra.mxu0 %v10390_v43  ;;  %7686 = vmatpush1.bf16.msra.mxu1 %v10393_v44  ;;  %v10485_v43 = vld [vmem:[%s14036_s1 + $0x1aec] ss:$16 sps:$4 sm:$0xff]   ;;  %v10480_v44 = vld [vmem:[%s14036_s1 + $0x1ae0] ss:$16 sps:$4 sm:$0xff]  }
 0x328   : > { %7031 = vmatprep.subr.bf16.mxu0 %v10398_v35  ;;  %7687 = vmatprep.subr.bf16.mxu1 %v10401_v47  ;;  %v10483_v35 = vld [vmem:[%s14036_s1 + $0x1ae8] ss:$16 sps:$4 sm:$0xff]   ;;  %v10488_v47 = vld [vmem:[%s14036_s1 + $0x1b04] ss:$16 sps:$4 sm:$0xff]  }
 0x32b   : > { %7032 = vmatpush1.bf16.msra.mxu0 %v10396_v34  ;;  %7688 = vmatpush1.bf16.msra.mxu1 %v10399_v48  ;;  %v10491_v34 = vld [vmem:[%s14036_s1 + $0x1b0c] ss:$16 sps:$4 sm:$0xff]   ;;  %v10486_v48 = vld [vmem:[%s14036_s1 + $0x1b00] ss:$16 sps:$4 sm:$0xff]  }
 0x32c   : > { %7033 = vmatprep.subr.bf16.mxu0 %v10404_v50  ;;  %7689 = vmatprep.subr.bf16.mxu1 %v10407_v52  ;;  %v10489_v50 = vld [vmem:[%s14036_s1 + $0x1b08] ss:$16 sps:$4 sm:$0xff]   ;;  %v10494_v52 = vld [vmem:[%s14036_s1 + $0x1b24] ss:$16 sps:$4 sm:$0xff]  }
 0x32f   : > { %7034 = vmatpush1.bf16.msra.mxu0 %v10402_v53  ;;  %7690 = vmatpush1.bf16.msra.mxu1 %v10405_v39  ;;  %v10497_v53 = vld [vmem:[%s14036_s1 + $0x1b2c] ss:$16 sps:$4 sm:$0xff]   ;;  %v10492_v39 = vld [vmem:[%s14036_s1 + $0x1b20] ss:$16 sps:$4 sm:$0xff]  }
 0x330   : > { %7035 = vmatprep.subr.bf16.mxu0 %v10410_v54  ;;  %7691 = vmatprep.subr.bf16.mxu1 %v10413_v55  ;;  %v10495_v54 = vld [vmem:[%s14036_s1 + $0x1b28] ss:$16 sps:$4 sm:$0xff]   ;;  %v10500_v55 = vld [vmem:[%s14036_s1 + $0x1b44] ss:$16 sps:$4 sm:$0xff]  }
 0x333   : > { %7036 = vmatpush1.bf16.msra.mxu0 %v10408_v46  ;;  %7692 = vmatpush1.bf16.msra.mxu1 %v10411_v58  ;;  %v10503_v46 = vld [vmem:[%s14036_s1 + $0x1b4c] ss:$16 sps:$4 sm:$0xff]   ;;  %v10498_v58 = vld [vmem:[%s14036_s1 + $0x1b40] ss:$16 sps:$4 sm:$0xff]  }
 0x334   : > { %7037 = vmatprep.subr.bf16.mxu0 %v10416_v45  ;;  %7693 = vmatprep.subr.bf16.mxu1 %v10419_v59  ;;  %v10501_v45 = vld [vmem:[%s14036_s1 + $0x1b48] ss:$16 sps:$4 sm:$0xff]   ;;  %v10506_v59 = vld [vmem:[%s14036_s1 + $0x1b64] ss:$16 sps:$4 sm:$0xff]  }
 0x337   : > { %7038 = vmatpush1.bf16.msra.mxu0 %v10414_v60  ;;  %7694 = vmatpush1.bf16.msra.mxu1 %v10417_v62  ;;  %v10509_v60 = vld [vmem:[%s14036_s1 + $0x1b6c] ss:$16 sps:$4 sm:$0xff]   ;;  %v10504_v62 = vld [vmem:[%s14036_s1 + $0x1b60] ss:$16 sps:$4 sm:$0xff]  }
 0x338   : > { %7039 = vmatprep.subr.bf16.mxu0 %v10422_v63  ;;  %7695 = vmatprep.subr.bf16.mxu1 %v10425_v51  ;;  %v10507_v63 = vld [vmem:[%s14036_s1 + $0x1b68] ss:$16 sps:$4 sm:$0xff]   ;;  %v10512_v51 = vld [vmem:[%s14036_s1 + $0x1b84] ss:$16 sps:$4 sm:$0xff]  }
 0x33b   : > { %7040 = vmatpush1.bf16.msra.mxu0 %v10420_v0  ;;  %7696 = vmatpush1.bf16.msra.mxu1 %v10423_v1  ;;  %v10515_v0 = vld [vmem:[%s14036_s1 + $0x1b8c] ss:$16 sps:$4 sm:$0xff]   ;;  %v10510_v1 = vld [vmem:[%s14036_s1 + $0x1b80] ss:$16 sps:$4 sm:$0xff]  }
 0x33c   : > { %7041 = vmatprep.subr.bf16.mxu0 %v10428_v57  ;;  %7697 = vmatprep.subr.bf16.mxu1 %v10431_v4  ;;  %v10513_v57 = vld [vmem:[%s14036_s1 + $0x1b88] ss:$16 sps:$4 sm:$0xff]   ;;  %v10518_v4 = vld [vmem:[%s14036_s1 + $0x1ba4] ss:$16 sps:$4 sm:$0xff]  }
 0x33f   : > { %7042 = vmatpush1.bf16.msra.mxu0 %v10426_v56  ;;  %7698 = vmatpush1.bf16.msra.mxu1 %v10429_v5  ;;  %v10521_v56 = vld [vmem:[%s14036_s1 + $0x1bac] ss:$16 sps:$4 sm:$0xff]   ;;  %v10516_v5 = vld [vmem:[%s14036_s1 + $0x1ba0] ss:$16 sps:$4 sm:$0xff]  }
 0x340   : > { %7043 = vmatprep.subr.bf16.mxu0 %v10434_v6  ;;  %7699 = vmatprep.subr.bf16.mxu1 %v10437_v8  ;;  %v10519_v6 = vld [vmem:[%s14036_s1 + $0x1ba8] ss:$16 sps:$4 sm:$0xff]   ;;  %v10524_v8 = vld [vmem:[%s14036_s1 + $0x1bc4] ss:$16 sps:$4 sm:$0xff]  }
 0x343   : > { %7044 = vmatpush1.bf16.msra.mxu0 %v10432_v61  ;;  %7700 = vmatpush1.bf16.msra.mxu1 %v10435_v10  ;;  %v10522_v61 = vld [vmem:[%s14036_s1 + $0x1bc0] ss:$16 sps:$4 sm:$0xff]   ;;  %v10525_v10 = vld [vmem:[%s14036_s1 + $0x1bc8] ss:$16 sps:$4 sm:$0xff]  }
 0x344   : > { %7054 = vmatprep.subr.bf16.mxu0 %v10440_v11  ;;  %7710 = vmatprep.subr.bf16.mxu1 %v10443_v3  ;;  %v10530_v11 = vld [vmem:[%s14036_s1 + $0x1be4] ss:$16 sps:$4 sm:$0xff]   ;;  %v10533_v3 = vld [vmem:[%s14036_s1 + $0x1bec] ss:$16 sps:$4 sm:$0xff]  }
 0x346   : > { %7046 = vmatmul.mubr.bf16.vlgmr.msra.gmra.mrb[0].mxu0 %v13212_v7  ;;  %7702 = vmatmul.mubr.bf16.vlgmr.msra.gmra.mrb[0].mxu1 %v13212_v7  ;;  %v10455_v7 = vld [vmem:[%s14036_s1 + $0x1a4c] ss:$16 sps:$4 sm:$0xff]  }
 0x347   : > { %7055 = vmatpush1.bf16.msra.mxu0 %v10438_v14  ;;  %7711 = vmatpush1.bf16.msra.mxu1 %v10441_v15  ;;  %v13600_v14 = vld [vmem:[%s10917_s30 + $0x38] sm:$0xff]  ;;  %v10528_v15 = vld [vmem:[%s14036_s1 + $0x1be0] ss:$16 sps:$4 sm:$0xff]  }
 0x348   : > { %7056 = vmatprep.subr.bf16.mxu0 %v10446_v2  ;;  %7712 = vmatprep.subr.bf16.mxu1 %v10449_v16  ;;  %v10531_v2 = vld [vmem:[%s14036_s1 + $0x1be8] ss:$16 sps:$4 sm:$0xff]   ;;  %v10537_v16 = vld [vmem:[%s14036_s1 + $0x1c04] ss:$16 sps:$4 sm:$0xff]  }
 0x349   : > { %7086 = vmatprep.mubr.bf16.mxu0 %v1351_v17  ;;  %7742 = vmatprep.mubr.bf16.mxu1 %v1351_v17  ;;  %v10540_v17 = vld [vmem:[%s14036_s1 + $0x1c0c] ss:$16 sps:$4 sm:$0xff]  }
 0x34b   : > { %7057 = vmatpush1.bf16.msra.mxu0 %v10444_v18  ;;  %7713 = vmatpush1.bf16.msra.mxu1 %v10447_v20  ;;  %v13616_v18 = vrot.slane %v13600_v14, %v10920_v49  ;;  %v10535_v20 = vld [vmem:[%s14036_s1 + $0x1c00] ss:$16 sps:$4 sm:$0xff]  }
 0x34c   : > { %7058 = vmatprep.subr.bf16.mxu0 %v10452_v21  ;;  %7714 = vmatprep.subr.bf16.mxu1 %v10455_v7  ;;  %v10538_v21 = vld [vmem:[%s14036_s1 + $0x1c08] ss:$16 sps:$4 sm:$0xff]   ;;  %v10543_v7 = vld [vmem:[%s14036_s1 + $0x1c24] ss:$16 sps:$4 sm:$0xff]  }
 0x34f   : > { %7059 = vmatpush1.bf16.msra.mxu0 %v10450_v23  ;;  %7715 = vmatpush1.bf16.msra.mxu1 %v10453_v19  ;;  %v10546_v23 = vld [vmem:[%s14036_s1 + $0x1c2c] ss:$16 sps:$4 sm:$0xff]   ;;  %v1367_v19 = vcombine.high %v13616_v18, %v13616_v18 }
 0x350   : > { %7060 = vmatprep.subr.bf16.mxu0 %v10458_v25  ;;  %7716 = vmatprep.subr.bf16.mxu1 %v10461_v12  ;;  %v10541_v25 = vld [vmem:[%s14036_s1 + $0x1c20] ss:$16 sps:$4 sm:$0xff]   ;;  %v10544_v12 = vld [vmem:[%s14036_s1 + $0x1c28] ss:$16 sps:$4 sm:$0xff]  }
 0x353   : > { %7061 = vmatpush1.bf16.msra.mxu0 %v10456_v27  ;;  %7717 = vmatpush1.bf16.msra.mxu1 %v10459_v28  ;;  %v10549_v27 = vld [vmem:[%s14036_s1 + $0x1c44] ss:$16 sps:$4 sm:$0xff]   ;;  %v10547_v28 = vld [vmem:[%s14036_s1 + $0x1c40] ss:$16 sps:$4 sm:$0xff]  }
 0x354   : > { %7062 = vmatprep.subr.bf16.mxu0 %v10464_v30  ;;  %7718 = vmatprep.subr.bf16.mxu1 %v10467_v31  ;;  %v10550_v30 = vld [vmem:[%s14036_s1 + $0x1c48] ss:$16 sps:$4 sm:$0xff]   ;;  %v10555_v31 = vld [vmem:[%s14036_s1 + $0x1c64] ss:$16 sps:$4 sm:$0xff]  }
 0x357   : > { %7063 = vmatpush1.bf16.msra.mxu0 %v10462_v22  ;;  %7719 = vmatpush1.bf16.msra.mxu1 %v10465_v32  ;;  %v10558_v22 = vld [vmem:[%s14036_s1 + $0x1c6c] ss:$16 sps:$4 sm:$0xff]   ;;  %v10553_v32 = vld [vmem:[%s14036_s1 + $0x1c60] ss:$16 sps:$4 sm:$0xff]  }
 0x358   : > { %7064 = vmatprep.subr.bf16.mxu0 %v10470_v33  ;;  %7720 = vmatprep.subr.bf16.mxu1 %v10473_v26  ;;  %v10556_v33 = vld [vmem:[%s14036_s1 + $0x1c68] ss:$16 sps:$4 sm:$0xff]   ;;  %v10561_v26 = vld [vmem:[%s14036_s1 + $0x1c84] ss:$16 sps:$4 sm:$0xff]  }
 0x35b   : > { %7065 = vmatpush1.bf16.msra.mxu0 %v10468_v36  ;;  %7721 = vmatpush1.bf16.msra.mxu1 %v10471_v24  ;;  %v10564_v36 = vld [vmem:[%s14036_s1 + $0x1c8c] ss:$16 sps:$4 sm:$0xff]   ;;  %v10559_v24 = vld [vmem:[%s14036_s1 + $0x1c80] ss:$16 sps:$4 sm:$0xff]  }
 0x35c   : > { %7066 = vmatprep.subr.bf16.mxu0 %v10476_v37  ;;  %7722 = vmatprep.subr.bf16.mxu1 %v10479_v38  ;;  %v10562_v37 = vld [vmem:[%s14036_s1 + $0x1c88] ss:$16 sps:$4 sm:$0xff]   ;;  %v10567_v38 = vld [vmem:[%s14036_s1 + $0x1ca4] ss:$16 sps:$4 sm:$0xff]  }
 0x35f   : > { %7067 = vmatpush1.bf16.msra.mxu0 %v10474_v40  ;;  %7723 = vmatpush1.bf16.msra.mxu1 %v10477_v41  ;;  %v10570_v40 = vld [vmem:[%s14036_s1 + $0x1cac] ss:$16 sps:$4 sm:$0xff]   ;;  %v10565_v41 = vld [vmem:[%s14036_s1 + $0x1ca0] ss:$16 sps:$4 sm:$0xff]  }
 0x360   : > { %7068 = vmatprep.subr.bf16.mxu0 %v10482_v29  ;;  %7724 = vmatprep.subr.bf16.mxu1 %v10485_v43  ;;  %v10568_v29 = vld [vmem:[%s14036_s1 + $0x1ca8] ss:$16 sps:$4 sm:$0xff]   ;;  %v10573_v43 = vld [vmem:[%s14036_s1 + $0x1cc4] ss:$16 sps:$4 sm:$0xff]  }
 0x363   : > { %7069 = vmatpush1.bf16.msra.mxu0 %v10480_v44  ;;  %7725 = vmatpush1.bf16.msra.mxu1 %v10483_v35  ;;  %v10576_v44 = vld [vmem:[%s14036_s1 + $0x1ccc] ss:$16 sps:$4 sm:$0xff]   ;;  %v10571_v35 = vld [vmem:[%s14036_s1 + $0x1cc0] ss:$16 sps:$4 sm:$0xff]  }
 0x364   : > { %7070 = vmatprep.subr.bf16.mxu0 %v10488_v47  ;;  %7726 = vmatprep.subr.bf16.mxu1 %v10491_v34  ;;  %v10574_v47 = vld [vmem:[%s14036_s1 + $0x1cc8] ss:$16 sps:$4 sm:$0xff]   ;;  %v10579_v34 = vld [vmem:[%s14036_s1 + $0x1ce4] ss:$16 sps:$4 sm:$0xff]  }
 0x367   : > { %7071 = vmatpush1.bf16.msra.mxu0 %v10486_v48  ;;  %7727 = vmatpush1.bf16.msra.mxu1 %v10489_v50  ;;  %v10582_v48 = vld [vmem:[%s14036_s1 + $0x1cec] ss:$16 sps:$4 sm:$0xff]   ;;  %v10577_v50 = vld [vmem:[%s14036_s1 + $0x1ce0] ss:$16 sps:$4 sm:$0xff]  }
 0x368   : > { %7072 = vmatprep.subr.bf16.mxu0 %v10494_v52  ;;  %7728 = vmatprep.subr.bf16.mxu1 %v10497_v53  ;;  %v10580_v52 = vld [vmem:[%s14036_s1 + $0x1ce8] ss:$16 sps:$4 sm:$0xff]   ;;  %v10585_v53 = vld [vmem:[%s14036_s1 + $0x1d04] ss:$16 sps:$4 sm:$0xff]  }
 0x36b   : > { %7073 = vmatpush1.bf16.msra.mxu0 %v10492_v39  ;;  %7729 = vmatpush1.bf16.msra.mxu1 %v10495_v54  ;;  %v10588_v39 = vld [vmem:[%s14036_s1 + $0x1d0c] ss:$16 sps:$4 sm:$0xff]   ;;  %v10583_v54 = vld [vmem:[%s14036_s1 + $0x1d00] ss:$16 sps:$4 sm:$0xff]  }
 0x36c   : > { %7074 = vmatprep.subr.bf16.mxu0 %v10500_v55  ;;  %7730 = vmatprep.subr.bf16.mxu1 %v10503_v46  ;;  %v10586_v55 = vld [vmem:[%s14036_s1 + $0x1d08] ss:$16 sps:$4 sm:$0xff]   ;;  %v10591_v46 = vld [vmem:[%s14036_s1 + $0x1d24] ss:$16 sps:$4 sm:$0xff]  }
 0x36f   : > { %7075 = vmatpush1.bf16.msra.mxu0 %v10498_v58  ;;  %7731 = vmatpush1.bf16.msra.mxu1 %v10501_v45  ;;  %v10594_v58 = vld [vmem:[%s14036_s1 + $0x1d2c] ss:$16 sps:$4 sm:$0xff]   ;;  %v10589_v45 = vld [vmem:[%s14036_s1 + $0x1d20] ss:$16 sps:$4 sm:$0xff]  }
 0x370   : > { %7076 = vmatprep.subr.bf16.mxu0 %v10506_v59  ;;  %7732 = vmatprep.subr.bf16.mxu1 %v10509_v60  ;;  %v10592_v59 = vld [vmem:[%s14036_s1 + $0x1d28] ss:$16 sps:$4 sm:$0xff]   ;;  %v10597_v60 = vld [vmem:[%s14036_s1 + $0x1d44] ss:$16 sps:$4 sm:$0xff]  }
 0x373   : > { %7077 = vmatpush1.bf16.msra.mxu0 %v10504_v62  ;;  %7733 = vmatpush1.bf16.msra.mxu1 %v10507_v63  ;;  %v10600_v62 = vld [vmem:[%s14036_s1 + $0x1d4c] ss:$16 sps:$4 sm:$0xff]   ;;  %v10595_v63 = vld [vmem:[%s14036_s1 + $0x1d40] ss:$16 sps:$4 sm:$0xff]  }
 0x374   : > { %7078 = vmatprep.subr.bf16.mxu0 %v10512_v51  ;;  %7734 = vmatprep.subr.bf16.mxu1 %v10515_v0  ;;  %v10598_v51 = vld [vmem:[%s14036_s1 + $0x1d48] ss:$16 sps:$4 sm:$0xff]   ;;  %v10603_v0 = vld [vmem:[%s14036_s1 + $0x1d64] ss:$16 sps:$4 sm:$0xff]  }
 0x377   : > { %7079 = vmatpush1.bf16.msra.mxu0 %v10510_v1  ;;  %7735 = vmatpush1.bf16.msra.mxu1 %v10513_v57  ;;  %v10606_v1 = vld [vmem:[%s14036_s1 + $0x1d6c] ss:$16 sps:$4 sm:$0xff]   ;;  %v10601_v57 = vld [vmem:[%s14036_s1 + $0x1d60] ss:$16 sps:$4 sm:$0xff]  }
 0x378   : > { %7080 = vmatprep.subr.bf16.mxu0 %v10518_v4  ;;  %7736 = vmatprep.subr.bf16.mxu1 %v10521_v56  ;;  %v10604_v4 = vld [vmem:[%s14036_s1 + $0x1d68] ss:$16 sps:$4 sm:$0xff]   ;;  %v10609_v56 = vld [vmem:[%s14036_s1 + $0x1d84] ss:$16 sps:$4 sm:$0xff]  }
 0x37b   : > { %7081 = vmatpush1.bf16.msra.mxu0 %v10516_v5  ;;  %7737 = vmatpush1.bf16.msra.mxu1 %v10519_v6  ;;  %v10612_v5 = vld [vmem:[%s14036_s1 + $0x1d8c] ss:$16 sps:$4 sm:$0xff]   ;;  %v10607_v6 = vld [vmem:[%s14036_s1 + $0x1d80] ss:$16 sps:$4 sm:$0xff]  }
 0x37c   : > { %7082 = vmatprep.subr.bf16.mxu0 %v10524_v8  ;;  %7738 = vmatprep.subr.bf16.mxu1 %v10527_v9  ;;  %v10610_v8 = vld [vmem:[%s14036_s1 + $0x1d88] ss:$16 sps:$4 sm:$0xff]   ;;  %v10615_v9 = vld [vmem:[%s14036_s1 + $0x1da4] ss:$16 sps:$4 sm:$0xff]  }
 0x37f   : > { %7083 = vmatpush1.bf16.msra.mxu0 %v10522_v61  ;;  %7739 = vmatpush1.bf16.msra.mxu1 %v10525_v10  ;;  %v10618_v61 = vld [vmem:[%s14036_s1 + $0x1dac] ss:$16 sps:$4 sm:$0xff]   ;;  %v10613_v10 = vld [vmem:[%s14036_s1 + $0x1da0] ss:$16 sps:$4 sm:$0xff]  }
 0x380   : > { %7084 = vmatprep.subr.bf16.mxu0 %v10530_v11  ;;  %7740 = vmatprep.subr.bf16.mxu1 %v10533_v3  ;;  %v10616_v11 = vld [vmem:[%s14036_s1 + $0x1da8] ss:$16 sps:$4 sm:$0xff]   ;;  %v10621_v3 = vld [vmem:[%s14036_s1 + $0x1dc4] ss:$16 sps:$4 sm:$0xff]  }
 0x383   : > { %7085 = vmatpush1.bf16.msra.mxu0 %v10528_v15  ;;  %7741 = vmatpush1.bf16.msra.mxu1 %v10531_v2  ;;  %v10624_v15 = vld [vmem:[%s14036_s1 + $0x1dcc] ss:$16 sps:$4 sm:$0xff]   ;;  %v10619_v2 = vld [vmem:[%s14036_s1 + $0x1dc0] ss:$16 sps:$4 sm:$0xff]  }
 0x384   : > { %7095 = vmatprep.subr.bf16.mxu0 %v10537_v16  ;;  %7751 = vmatprep.subr.bf16.mxu1 %v10540_v17  ;;  %v10622_v16 = vld [vmem:[%s14036_s1 + $0x1dc8] ss:$16 sps:$4 sm:$0xff]   ;;  %v10627_v17 = vld [vmem:[%s14036_s1 + $0x1de4] ss:$16 sps:$4 sm:$0xff]  }
 0x386   : > { %7087 = vmatmul.mubr.bf16.vlgmr.msra.gmra.mrb[0].mxu0 %v13413_v13  ;;  %7743 = vmatmul.mubr.bf16.vlgmr.msra.gmra.mrb[0].mxu1 %v13413_v13  ;;  %v10552_v13 = vld [vmem:[%s14036_s1 + $0x1c4c] ss:$16 sps:$4 sm:$0xff]  }
 0x387   : > { %7096 = vmatpush1.bf16.msra.mxu0 %v10535_v20  ;;  %7752 = vmatpush1.bf16.msra.mxu1 %v10538_v21  ;;  %v10630_v20 = vld [vmem:[%s14036_s1 + $0x1dec] ss:$16 sps:$4 sm:$0xff]   ;;  %v1352_v21 = vcombine.high %v13600_v14, %v13600_v14 }
 0x388   : > { %7097 = vmatprep.subr.bf16.mxu0 %v10543_v7  ;;  %7753 = vmatprep.subr.bf16.mxu1 %v10546_v23  ;;  %v10625_v7 = vld [vmem:[%s14036_s1 + $0x1de0] ss:$16 sps:$4 sm:$0xff]   ;;  %v10628_v23 = vld [vmem:[%s14036_s1 + $0x1de8] ss:$16 sps:$4 sm:$0xff]   ;;  %v10636_v14 = vld [vmem:[%s14036_s1 + $0x1e0c] ss:$16 sps:$4 sm:$0xff]  }
 0x389   : > { %7127 = vmatprep.mubr.bf16.mxu0 %v1367_v19  ;;  %7783 = vmatprep.mubr.bf16.mxu1 %v1367_v19  ;;  %v10633_v19 = vld [vmem:[%s14036_s1 + $0x1e04] ss:$16 sps:$4 sm:$0xff]  }
 0x38b   : > { %7098 = vmatpush1.bf16.msra.mxu0 %v10541_v25  ;;  %7754 = vmatpush1.bf16.msra.mxu1 %v10544_v12  ;;  %v13817_v25 = vrot.slane %v1352_v21, %v10920_v49  ;;  %v10631_v12 = vld [vmem:[%s14036_s1 + $0x1e00] ss:$16 sps:$4 sm:$0xff]   ;;  %v10720_v21 = vld [vmem:[%s14036_s1 + $0x1fcc] ss:$16 sps:$4 sm:$0xff]  }
 0x38c   : > { %7099 = vmatprep.subr.bf16.mxu0 %v10549_v27  ;;  %7755 = vmatprep.subr.bf16.mxu1 %v10552_v13  ;;  %v10634_v27 = vld [vmem:[%s14036_s1 + $0x1e08] ss:$16 sps:$4 sm:$0xff]   ;;  %v10639_v13 = vld [vmem:[%s14036_s1 + $0x1e24] ss:$16 sps:$4 sm:$0xff]  }
 0x38f   : > { %7100 = vmatpush1.bf16.msra.mxu0 %v10547_v28  ;;  %7756 = vmatpush1.bf16.msra.mxu1 %v10550_v30  ;;  %v10642_v28 = vld [vmem:[%s14036_s1 + $0x1e2c] ss:$16 sps:$4 sm:$0xff]   ;;  %v1368_v30 = vcombine.high %v13817_v25, %v13817_v25 }
 0x390   : > { %7101 = vmatprep.subr.bf16.mxu0 %v10555_v31  ;;  %7757 = vmatprep.subr.bf16.mxu1 %v10558_v22  ;;  %v10637_v31 = vld [vmem:[%s14036_s1 + $0x1e20] ss:$16 sps:$4 sm:$0xff]   ;;  %v10640_v22 = vld [vmem:[%s14036_s1 + $0x1e28] ss:$16 sps:$4 sm:$0xff]  }
 0x393   : > { %7102 = vmatpush1.bf16.msra.mxu0 %v10553_v32  ;;  %7758 = vmatpush1.bf16.msra.mxu1 %v10556_v33  ;;  %v10645_v32 = vld [vmem:[%s14036_s1 + $0x1e44] ss:$16 sps:$4 sm:$0xff]   ;;  %v10643_v33 = vld [vmem:[%s14036_s1 + $0x1e40] ss:$16 sps:$4 sm:$0xff]  }
 0x394   : > { %7103 = vmatprep.subr.bf16.mxu0 %v10561_v26  ;;  %7759 = vmatprep.subr.bf16.mxu1 %v10564_v36  ;;  %v10646_v26 = vld [vmem:[%s14036_s1 + $0x1e48] ss:$16 sps:$4 sm:$0xff]   ;;  %v10651_v36 = vld [vmem:[%s14036_s1 + $0x1e64] ss:$16 sps:$4 sm:$0xff]  }
 0x397   : > { %7104 = vmatpush1.bf16.msra.mxu0 %v10559_v24  ;;  %7760 = vmatpush1.bf16.msra.mxu1 %v10562_v37  ;;  %v10654_v24 = vld [vmem:[%s14036_s1 + $0x1e6c] ss:$16 sps:$4 sm:$0xff]   ;;  %v10649_v37 = vld [vmem:[%s14036_s1 + $0x1e60] ss:$16 sps:$4 sm:$0xff]  }
 0x398   : > { %7105 = vmatprep.subr.bf16.mxu0 %v10567_v38  ;;  %7761 = vmatprep.subr.bf16.mxu1 %v10570_v40  ;;  %v10652_v38 = vld [vmem:[%s14036_s1 + $0x1e68] ss:$16 sps:$4 sm:$0xff]   ;;  %v10657_v40 = vld [vmem:[%s14036_s1 + $0x1e84] ss:$16 sps:$4 sm:$0xff]  }
 0x39b   : > { %7106 = vmatpush1.bf16.msra.mxu0 %v10565_v41  ;;  %7762 = vmatpush1.bf16.msra.mxu1 %v10568_v29  ;;  %v10660_v41 = vld [vmem:[%s14036_s1 + $0x1e8c] ss:$16 sps:$4 sm:$0xff]   ;;  %v10655_v29 = vld [vmem:[%s14036_s1 + $0x1e80] ss:$16 sps:$4 sm:$0xff]  }
 0x39c   : > { %7107 = vmatprep.subr.bf16.mxu0 %v10573_v43  ;;  %7763 = vmatprep.subr.bf16.mxu1 %v10576_v44  ;;  %v10658_v43 = vld [vmem:[%s14036_s1 + $0x1e88] ss:$16 sps:$4 sm:$0xff]   ;;  %v10663_v44 = vld [vmem:[%s14036_s1 + $0x1ea4] ss:$16 sps:$4 sm:$0xff]  }
 0x39f   : > { %7108 = vmatpush1.bf16.msra.mxu0 %v10571_v35  ;;  %7764 = vmatpush1.bf16.msra.mxu1 %v10574_v47  ;;  %v10666_v35 = vld [vmem:[%s14036_s1 + $0x1eac] ss:$16 sps:$4 sm:$0xff]   ;;  %v10661_v47 = vld [vmem:[%s14036_s1 + $0x1ea0] ss:$16 sps:$4 sm:$0xff]  }
 0x3a0   : > { %7109 = vmatprep.subr.bf16.mxu0 %v10579_v34  ;;  %7765 = vmatprep.subr.bf16.mxu1 %v10582_v48  ;;  %v10664_v34 = vld [vmem:[%s14036_s1 + $0x1ea8] ss:$16 sps:$4 sm:$0xff]   ;;  %v10669_v48 = vld [vmem:[%s14036_s1 + $0x1ec4] ss:$16 sps:$4 sm:$0xff]  }
 0x3a3   : > { %7110 = vmatpush1.bf16.msra.mxu0 %v10577_v50  ;;  %7766 = vmatpush1.bf16.msra.mxu1 %v10580_v52  ;;  %v10672_v50 = vld [vmem:[%s14036_s1 + $0x1ecc] ss:$16 sps:$4 sm:$0xff]   ;;  %v10667_v52 = vld [vmem:[%s14036_s1 + $0x1ec0] ss:$16 sps:$4 sm:$0xff]  }
 0x3a4   : > { %7111 = vmatprep.subr.bf16.mxu0 %v10585_v53  ;;  %7767 = vmatprep.subr.bf16.mxu1 %v10588_v39  ;;  %v10670_v53 = vld [vmem:[%s14036_s1 + $0x1ec8] ss:$16 sps:$4 sm:$0xff]   ;;  %v10675_v39 = vld [vmem:[%s14036_s1 + $0x1ee4] ss:$16 sps:$4 sm:$0xff]  }
 0x3a7   : > { %7112 = vmatpush1.bf16.msra.mxu0 %v10583_v54  ;;  %7768 = vmatpush1.bf16.msra.mxu1 %v10586_v55  ;;  %v10678_v54 = vld [vmem:[%s14036_s1 + $0x1eec] ss:$16 sps:$4 sm:$0xff]   ;;  %v10673_v55 = vld [vmem:[%s14036_s1 + $0x1ee0] ss:$16 sps:$4 sm:$0xff]  }
 0x3a8   : > { %7113 = vmatprep.subr.bf16.mxu0 %v10591_v46  ;;  %7769 = vmatprep.subr.bf16.mxu1 %v10594_v58  ;;  %v10676_v46 = vld [vmem:[%s14036_s1 + $0x1ee8] ss:$16 sps:$4 sm:$0xff]   ;;  %v10681_v58 = vld [vmem:[%s14036_s1 + $0x1f04] ss:$16 sps:$4 sm:$0xff]  }
 0x3ab   : > { %7114 = vmatpush1.bf16.msra.mxu0 %v10589_v45  ;;  %7770 = vmatpush1.bf16.msra.mxu1 %v10592_v59  ;;  %v10684_v45 = vld [vmem:[%s14036_s1 + $0x1f0c] ss:$16 sps:$4 sm:$0xff]   ;;  %v10679_v59 = vld [vmem:[%s14036_s1 + $0x1f00] ss:$16 sps:$4 sm:$0xff]  }
 0x3ac   : > { %7115 = vmatprep.subr.bf16.mxu0 %v10597_v60  ;;  %7771 = vmatprep.subr.bf16.mxu1 %v10600_v62  ;;  %v10682_v60 = vld [vmem:[%s14036_s1 + $0x1f08] ss:$16 sps:$4 sm:$0xff]   ;;  %v10687_v62 = vld [vmem:[%s14036_s1 + $0x1f24] ss:$16 sps:$4 sm:$0xff]  }
 0x3af   : > { %7116 = vmatpush1.bf16.msra.mxu0 %v10595_v63  ;;  %7772 = vmatpush1.bf16.msra.mxu1 %v10598_v51  ;;  %v10690_v63 = vld [vmem:[%s14036_s1 + $0x1f2c] ss:$16 sps:$4 sm:$0xff]   ;;  %v10685_v51 = vld [vmem:[%s14036_s1 + $0x1f20] ss:$16 sps:$4 sm:$0xff]  }
 0x3b0   : > { %7117 = vmatprep.subr.bf16.mxu0 %v10603_v0  ;;  %7773 = vmatprep.subr.bf16.mxu1 %v10606_v1  ;;  %v10688_v0 = vld [vmem:[%s14036_s1 + $0x1f28] ss:$16 sps:$4 sm:$0xff]   ;;  %v10693_v1 = vld [vmem:[%s14036_s1 + $0x1f44] ss:$16 sps:$4 sm:$0xff]  }
 0x3b3   : > { %7118 = vmatpush1.bf16.msra.mxu0 %v10601_v57  ;;  %7774 = vmatpush1.bf16.msra.mxu1 %v10604_v4  ;;  %v10696_v57 = vld [vmem:[%s14036_s1 + $0x1f4c] ss:$16 sps:$4 sm:$0xff]   ;;  %v10691_v4 = vld [vmem:[%s14036_s1 + $0x1f40] ss:$16 sps:$4 sm:$0xff]  }
 0x3b4   : > { %7119 = vmatprep.subr.bf16.mxu0 %v10609_v56  ;;  %7775 = vmatprep.subr.bf16.mxu1 %v10612_v5  ;;  %v10694_v56 = vld [vmem:[%s14036_s1 + $0x1f48] ss:$16 sps:$4 sm:$0xff]   ;;  %v10699_v5 = vld [vmem:[%s14036_s1 + $0x1f64] ss:$16 sps:$4 sm:$0xff]  }
 0x3b7   : > { %7120 = vmatpush1.bf16.msra.mxu0 %v10607_v6  ;;  %7776 = vmatpush1.bf16.msra.mxu1 %v10610_v8  ;;  %v10702_v6 = vld [vmem:[%s14036_s1 + $0x1f6c] ss:$16 sps:$4 sm:$0xff]   ;;  %v10697_v8 = vld [vmem:[%s14036_s1 + $0x1f60] ss:$16 sps:$4 sm:$0xff]  }
 0x3b8   : > { %7121 = vmatprep.subr.bf16.mxu0 %v10615_v9  ;;  %7777 = vmatprep.subr.bf16.mxu1 %v10618_v61  ;;  %v10700_v9 = vld [vmem:[%s14036_s1 + $0x1f68] ss:$16 sps:$4 sm:$0xff]   ;;  %v10705_v61 = vld [vmem:[%s14036_s1 + $0x1f84] ss:$16 sps:$4 sm:$0xff]  }
 0x3bb   : > { %7122 = vmatpush1.bf16.msra.mxu0 %v10613_v10  ;;  %7778 = vmatpush1.bf16.msra.mxu1 %v10616_v11  ;;  %v10708_v10 = vld [vmem:[%s14036_s1 + $0x1f8c] ss:$16 sps:$4 sm:$0xff]   ;;  %v10703_v11 = vld [vmem:[%s14036_s1 + $0x1f80] ss:$16 sps:$4 sm:$0xff]  }
 0x3bc   : > { %7123 = vmatprep.subr.bf16.mxu0 %v10621_v3  ;;  %7779 = vmatprep.subr.bf16.mxu1 %v10624_v15  ;;  %v10706_v3 = vld [vmem:[%s14036_s1 + $0x1f88] ss:$16 sps:$4 sm:$0xff]   ;;  %v10711_v15 = vld [vmem:[%s14036_s1 + $0x1fa4] ss:$16 sps:$4 sm:$0xff]  }
 0x3bf   : > { %7124 = vmatpush1.bf16.msra.mxu0 %v10619_v2  ;;  %7780 = vmatpush1.bf16.msra.mxu1 %v10622_v16  ;;  %v10714_v2 = vld [vmem:[%s14036_s1 + $0x1fac] ss:$16 sps:$4 sm:$0xff]   ;;  %v10709_v16 = vld [vmem:[%s14036_s1 + $0x1fa0] ss:$16 sps:$4 sm:$0xff]  }
 0x3c0   : > { %7125 = vmatprep.subr.bf16.mxu0 %v10627_v17  ;;  %7781 = vmatprep.subr.bf16.mxu1 %v10630_v20  ;;  %v10712_v17 = vld [vmem:[%s14036_s1 + $0x1fa8] ss:$16 sps:$4 sm:$0xff]   ;;  %v10717_v20 = vld [vmem:[%s14036_s1 + $0x1fc4] ss:$16 sps:$4 sm:$0xff]  }
 0x3c3   : > { %7126 = vmatpush1.bf16.msra.mxu0 %v10625_v7  ;;  %7782 = vmatpush1.bf16.msra.mxu1 %v10628_v23  ;;  %v10715_v7 = vld [vmem:[%s14036_s1 + $0x1fc0] ss:$16 sps:$4 sm:$0xff]   ;;  %v10718_v23 = vld [vmem:[%s14036_s1 + $0x1fc8] ss:$16 sps:$4 sm:$0xff]  }
 0x3c4   : > { %7136 = vmatprep.subr.bf16.mxu0 %v10633_v19  ;;  %7792 = vmatprep.subr.bf16.mxu1 %v10636_v14  ;;  %v10723_v19 = vld [vmem:[%s14036_s1 + $0x1fe4] ss:$16 sps:$4 sm:$0xff]   ;;  %v10726_v14 = vld [vmem:[%s14036_s1 + $0x1fec] ss:$16 sps:$4 sm:$0xff]  }
 0x3c6   : > { %7128 = vmatmul.mubr.bf16.vlgmr.msra.gmra.mrb[0].mxu0 %v13616_v18  ;;  %7784 = vmatmul.mubr.bf16.vlgmr.msra.gmra.mrb[0].mxu1 %v13616_v18  ;;  %v10648_v18 = vld [vmem:[%s14036_s1 + $0x1e4c] ss:$16 sps:$4 sm:$0xff]  }
 0x3c7   : > { %7137 = vmatpush1.bf16.msra.mxu0 %v10631_v12  ;;  %7793 = vmatpush1.bf16.msra.mxu1 %v10634_v27  ;;  %v10721_v12 = vld [vmem:[%s14036_s1 + $0x1fe0] ss:$16 sps:$4 sm:$0xff]   ;;  %v10724_v27 = vld [vmem:[%s14036_s1 + $0x1fe8] ss:$16 sps:$4 sm:$0xff]  }
 0x3c8   : > { %7138 = vmatprep.subr.bf16.mxu0 %v10639_v13  ;;  %7794 = vmatprep.subr.bf16.mxu1 %v10642_v28  ;;  %v1207_v13 = vsub.s32 0, %v10896_v42  ;;  %v1215_v28 = vsub.s32 2, %v10896_v42 }
 0x3c9   : > { %7168 = vmatprep.mubr.bf16.mxu0 %v1368_v30  ;;  %7824 = vmatprep.mubr.bf16.mxu1 %v1368_v30  ;;  %v1203_v30 = vld [vmem:[%s14037_s2] sm:$0xf] }
 0x3cb   : > { %7139 = vmatpush1.bf16.msra.mxu0 %v10637_v31  ;;  %7795 = vmatpush1.bf16.msra.mxu1 %v10640_v22  ;;  %v1211_v31 = vsub.s32 1, %v10896_v42  ;;  %v1219_v22 = vsub.s32 3, %v10896_v42 }
 0x3cc   : > { %7140 = vmatprep.subr.bf16.mxu0 %v10645_v32  ;;  %7796 = vmatprep.subr.bf16.mxu1 %v10648_v18  ;;  %v1208_v32 = vrot.slane %v1203_v30, %v1207_v13  ;;  %v1216_v18 = vrot.slane %v1203_v30, %v1215_v28 }
 0x3cf   : > { %7141 = vmatpush1.bf16.msra.mxu0 %v10643_v33  ;;  %7797 = vmatpush1.bf16.msra.mxu1 %v10646_v26  ;;  %v1212_v33 = vrot.slane %v1203_v30, %v1211_v31  ;;  %v1220_v26 = vrot.slane %v1203_v30, %v1219_v22 }
 0x3d0   : > { %7142 = vmatprep.subr.bf16.mxu0 %v10651_v36  ;;  %7798 = vmatprep.subr.bf16.mxu1 %v10654_v24 }
 0x3d3   : > { %7143 = vmatpush1.bf16.msra.mxu0 %v10649_v37  ;;  %7799 = vmatpush1.bf16.msra.mxu1 %v10652_v38 }
 0x3d4   : > { %7144 = vmatprep.subr.bf16.mxu0 %v10657_v40  ;;  %7800 = vmatprep.subr.bf16.mxu1 %v10660_v41 }
 0x3d7   : > { %7145 = vmatpush1.bf16.msra.mxu0 %v10655_v29  ;;  %7801 = vmatpush1.bf16.msra.mxu1 %v10658_v43 }
 0x3d8   : > { %7146 = vmatprep.subr.bf16.mxu0 %v10663_v44  ;;  %7802 = vmatprep.subr.bf16.mxu1 %v10666_v35 }
 0x3db   : > { %7147 = vmatpush1.bf16.msra.mxu0 %v10661_v47  ;;  %7803 = vmatpush1.bf16.msra.mxu1 %v10664_v34 }
 0x3dc   : > { %7148 = vmatprep.subr.bf16.mxu0 %v10669_v48  ;;  %7804 = vmatprep.subr.bf16.mxu1 %v10672_v50 }
 0x3df   : > { %7149 = vmatpush1.bf16.msra.mxu0 %v10667_v52  ;;  %7805 = vmatpush1.bf16.msra.mxu1 %v10670_v53 }
 0x3e0   : > { %7150 = vmatprep.subr.bf16.mxu0 %v10675_v39  ;;  %7806 = vmatprep.subr.bf16.mxu1 %v10678_v54 }
 0x3e3   : > { %7151 = vmatpush1.bf16.msra.mxu0 %v10673_v55  ;;  %7807 = vmatpush1.bf16.msra.mxu1 %v10676_v46 }
 0x3e4   : > { %7152 = vmatprep.subr.bf16.mxu0 %v10681_v58  ;;  %7808 = vmatprep.subr.bf16.mxu1 %v10684_v45 }
 0x3e7   : > { %7153 = vmatpush1.bf16.msra.mxu0 %v10679_v59  ;;  %7809 = vmatpush1.bf16.msra.mxu1 %v10682_v60 }
 0x3e8   : > { %7154 = vmatprep.subr.bf16.mxu0 %v10687_v62  ;;  %7810 = vmatprep.subr.bf16.mxu1 %v10690_v63 }
 0x3eb   : > { %7155 = vmatpush1.bf16.msra.mxu0 %v10685_v51  ;;  %7811 = vmatpush1.bf16.msra.mxu1 %v10688_v0 }
 0x3ec   : > { %7156 = vmatprep.subr.bf16.mxu0 %v10693_v1  ;;  %7812 = vmatprep.subr.bf16.mxu1 %v10696_v57 }
 0x3ef   : > { %7157 = vmatpush1.bf16.msra.mxu0 %v10691_v4  ;;  %7813 = vmatpush1.bf16.msra.mxu1 %v10694_v56 }
 0x3f0   : > { %7158 = vmatprep.subr.bf16.mxu0 %v10699_v5  ;;  %7814 = vmatprep.subr.bf16.mxu1 %v10702_v6 }
 0x3f3   : > { %7159 = vmatpush1.bf16.msra.mxu0 %v10697_v8  ;;  %7815 = vmatpush1.bf16.msra.mxu1 %v10700_v9 }
 0x3f4   : > { %7160 = vmatprep.subr.bf16.mxu0 %v10705_v61  ;;  %7816 = vmatprep.subr.bf16.mxu1 %v10708_v10 }
 0x3f7   : > { %7161 = vmatpush1.bf16.msra.mxu0 %v10703_v11  ;;  %7817 = vmatpush1.bf16.msra.mxu1 %v10706_v3 }
 0x3f8   : > { %7162 = vmatprep.subr.bf16.mxu0 %v10711_v15  ;;  %7818 = vmatprep.subr.bf16.mxu1 %v10714_v2 }
 0x3fb   : > { %7163 = vmatpush1.bf16.msra.mxu0 %v10709_v16  ;;  %7819 = vmatpush1.bf16.msra.mxu1 %v10712_v17 }
 0x3fc   : > { %7164 = vmatprep.subr.bf16.mxu0 %v10717_v20  ;;  %7820 = vmatprep.subr.bf16.mxu1 %v10720_v21 }
 0x3ff   : > { %7165 = vmatpush1.bf16.msra.mxu0 %v10715_v7  ;;  %7821 = vmatpush1.bf16.msra.mxu1 %v10718_v23 }
 0x400   : > { %7166 = vmatprep.subr.bf16.mxu0 %v10723_v19  ;;  %7822 = vmatprep.subr.bf16.mxu1 %v10726_v14 }
 0x403   : > { %7167 = vmatpush1.bf16.msra.mxu0 %v10721_v12  ;;  %7823 = vmatpush1.bf16.msra.mxu1 %v10724_v27 }
 0x406   : > { %7169 = vmatmul.mubr.bf16.vlgmr.msra.gmra.mrb[0].mxu0 %v13817_v25  ;;  %7825 = vmatmul.mubr.bf16.vlgmr.msra.gmra.mrb[0].mxu1 %v13817_v25 }
 0x4d9   : > { %v7170_v36 = vpop.f32.mrb[0].mxu0  ;;  %v7826_v24 = vpop.f32.mrb[0].mxu1 }
 0x4da   : > { %v9051_v25 = vadd.f32 %v7170_v36, %v1208_v32  ;;  %v9053_v37 = vadd.f32 %v7826_v24, %v1216_v18  ;;  %v7172_v38 = vpop.f32.mrb[1].mxu0  ;;  %v7828_v40 = vpop.f32.mrb[1].mxu1 }
 0x4db   : > { %v9052_v41 = vadd.f32 %v7172_v38, %v1212_v33  ;;  %v9054_v29 = vadd.f32 %v7828_v40, %v1220_v26  ;;  %v7174_v43 = vpop.f32.mrb[2].mxu0  ;;  %v7830_v44 = vpop.f32.mrb[2].mxu1 }
 0x4dc   : > { %v7834_v35 = vsel %vm7833_vm0, %v9051_v25, 0.0  ;;  %v7848_v47 = vsel %vm7833_vm0, %v9053_v37, 0.0  ;;  %v7175_v42 = vpop.f32.mrb[3].mxu0  ;;  %v7831_v34 = vpop.f32.mrb[3].mxu1 }
 0x4dd   : > { %v7835_v48 = vrot.slane %v7834_v35, 4  ;;  %v7849_v50 = vrot.slane %v7848_v47, 4  ;;  %v7841_v52 = vsel %vm7833_vm0, %v9052_v41, 0.0  ;;  %v7855_v53 = vsel %vm7833_vm0, %v9054_v29, 0.0 }
 0x4de   : > { %v7842_v39 = vrot.slane %v7841_v52, 4  ;;  %v7856_v54 = vrot.slane %v7855_v53, 4 }
 0x4df   : > { %v7836_v55 = vadd.f32 %v7835_v48, %v7834_v35  ;;  %v7850_v46 = vadd.f32 %v7849_v50, %v7848_v47 }
 0x4e0   : > { %v7843_v58 = vadd.f32 %v7842_v39, %v7841_v52  ;;  %v7857_v45 = vadd.f32 %v7856_v54, %v7855_v53 }
 0x4e1   : > { %v7837_v59 = vrot.slane %v7836_v55, 2  ;;  %v7851_v60 = vrot.slane %v7850_v46, 2 }
 0x4e2   : > { %v7844_v62 = vrot.slane %v7843_v58, 2  ;;  %v7858_v63 = vrot.slane %v7857_v45, 2 }
 0x4e3   : > { %v7838_v51 = vadd.f32 %v7837_v59, %v7836_v55  ;;  %v7852_v0 = vadd.f32 %v7851_v60, %v7850_v46 }
 0x4e4   : > { %v7845_v1 = vadd.f32 %v7844_v62, %v7843_v58  ;;  %v7859_v57 = vadd.f32 %v7858_v63, %v7857_v45 }
 0x4e5   : > { %v7839_v4 = vrot.slane %v7838_v51, 1  ;;  %v7853_v56 = vrot.slane %v7852_v0, 1 }
 0x4e6   : > { %v7846_v5 = vrot.slane %v7845_v1, 1  ;;  %v7860_v6 = vrot.slane %v7859_v57, 1 }
 0x4e7   : > { %v7840_v8 = vadd.f32 %v7839_v4, %v7838_v51  ;;  %v7854_v9 = vadd.f32 %v7853_v56, %v7852_v0 }
 0x4e8   : > { %v7847_v61 = vadd.f32 %v7846_v5, %v7845_v1  ;;  %v7861_v10 = vadd.f32 %v7860_v6, %v7859_v57 }
 0x4e9   : > { %v7862_v11 = vmul.f32 0.25, %v7840_v8  ;;  %v7864_v3 = vmul.f32 0.25, %v7854_v9 }
 0x4ea   : > { %v7863_v15 = vmul.f32 0.25, %v7847_v61  ;;  %v7865_v2 = vmul.f32 0.25, %v7861_v10 }
 0x4eb   : > { %v7866_v16 = vsub.f32 %v9051_v25, %v7862_v11  ;;  %v7868_v17 = vsub.f32 %v9053_v37, %v7864_v3 }
 0x4ec   : > { %v7867_v20 = vsub.f32 %v9052_v41, %v7863_v15  ;;  %v7869_v21 = vsub.f32 %v9054_v29, %v7865_v2 }
 0x4ed   : > { %v7870_v7 = vmul.f32 %v7866_v16, %v7866_v16  ;;  %v7872_v23 = vmul.f32 %v7868_v17, %v7868_v17 }
 0x4ee   : > { %v7871_v19 = vmul.f32 %v7867_v20, %v7867_v20  ;;  %v7873_v14 = vmul.f32 %v7869_v21, %v7869_v21 }
 0x4ef   : > { %v7874_v12 = vsel %vm7833_vm0, %v7870_v7, 0.0  ;;  %v7888_v27 = vsel %vm7833_vm0, %v7872_v23, 0.0 }
 0x4f0   : > { %v7875_v13 = vrot.slane %v7874_v12, 4  ;;  %v7889_v28 = vrot.slane %v7888_v27, 4  ;;  %v7881_v30 = vsel %vm7833_vm0, %v7871_v19, 0.0  ;;  %v7895_v31 = vsel %vm7833_vm0, %v7873_v14, 0.0 }
 0x4f1   : > { %v7882_v22 = vrot.slane %v7881_v30, 4  ;;  %v7896_v32 = vrot.slane %v7895_v31, 4 }
 0x4f2   : > { %v7876_v18 = vadd.f32 %v7875_v13, %v7874_v12  ;;  %v7890_v33 = vadd.f32 %v7889_v28, %v7888_v27 }
 0x4f3   : > { %v7883_v26 = vadd.f32 %v7882_v22, %v7881_v30  ;;  %v7897_v36 = vadd.f32 %v7896_v32, %v7895_v31 }
 0x4f4   : > { %v7877_v24 = vrot.slane %v7876_v18, 2  ;;  %v7891_v25 = vrot.slane %v7890_v33, 2 }
 0x4f5   : > { %v7884_v37 = vrot.slane %v7883_v26, 2  ;;  %v7898_v38 = vrot.slane %v7897_v36, 2 }
 0x4f6   : > { %v7878_v40 = vadd.f32 %v7877_v24, %v7876_v18  ;;  %v7892_v41 = vadd.f32 %v7891_v25, %v7890_v33 }
 0x4f7   : > { %v7885_v29 = vadd.f32 %v7884_v37, %v7883_v26  ;;  %v7899_v43 = vadd.f32 %v7898_v38, %v7897_v36 }
 0x4f8   : > { %v7879_v44 = vrot.slane %v7878_v40, 1  ;;  %v7893_v35 = vrot.slane %v7892_v41, 1 }
 0x4f9   : > { %v7886_v47 = vrot.slane %v7885_v29, 1  ;;  %v7900_v42 = vrot.slane %v7899_v43, 1 }
 0x4fa   : > { %v7880_v34 = vadd.f32 %v7879_v44, %v7878_v40  ;;  %v7894_v48 = vadd.f32 %v7893_v35, %v7892_v41 }
 0x4fb   : > { %v7887_v50 = vadd.f32 %v7886_v47, %v7885_v29  ;;  %v7901_v52 = vadd.f32 %v7900_v42, %v7899_v43 }
 0x4fc   : > { %v7902_v53 = vmul.f32 0.25, %v7880_v34  ;;  %v7904_v39 = vmul.f32 0.25, %v7894_v48 }
 0x4fd   : > { %v7903_v54 = vmul.f32 0.25, %v7887_v50  ;;  %v7905_v55 = vmul.f32 0.25, %v7901_v52 }
 0x4fe   : > { %v7906_v46 = vadd.f32 1e-05, %v7902_v53  ;;  %v7908_v58 = vadd.f32 1e-05, %v7904_v39 }
 0x4ff   : > { %v7907_v45 = vadd.f32 1e-05, %v7903_v54  ;;  %v7909_v59 = vadd.f32 1e-05, %v7905_v55 }
 0x500   : > { %10728 = vrsqrt.f32 %v7906_v46 }
 0x501   : > { %10730 = vrsqrt.f32 %v7908_v58 }
 0x502   : > { %10732 = vrsqrt.f32 %v7907_v45 }
 0x503   : > { %10734 = vrsqrt.f32 %v7909_v59 }
 0x50a   : > { %v10729_v60 = vpop.eup %10728 }
 0x50b   : > { %v10731_v62 = vpop.eup %10730  ;;  %v7914_v63 = vmul.f32 %v10729_v60, %v7866_v16 }
 0x50c   : > { %v10733_v51 = vpop.eup %10732  ;;  %v7916_v0 = vmul.f32 %v10731_v62, %v7868_v17 }
 0x50d   : > { %v10735_v1 = vpop.eup %10734  ;;  %vm7918_vm1 = vcmp.ge.f32.partialorder %v7914_v63, 0.0  ;;  %v7922_v57 = vmul.f32 0.2, %v7914_v63  ;;  %v7915_v4 = vmul.f32 %v10733_v51, %v7867_v20 }
 0x50e   : > { %vm7920_vm2 = vcmp.ge.f32.partialorder %v7916_v0, 0.0  ;;  %v7924_v56 = vmul.f32 0.2, %v7916_v0  ;;  %v7917_v5 = vmul.f32 %v10735_v1, %v7869_v21 }
 0x50f   : > { %v7926_v6 = vsel %vm7918_vm1, %v7914_v63, %v7922_v57  ;;  %vm7919_vm3 = vcmp.ge.f32.partialorder %v7915_v4, 0.0  ;;  %v7923_v8 = vmul.f32 0.2, %v7915_v4 }
 0x510   : > { %v7928_v9 = vsel %vm7920_vm2, %v7916_v0, %v7924_v56  ;;  %vm7921_vm4 = vcmp.ge.f32.partialorder %v7917_v5, 0.0  ;;  %v7925_v61 = vmul.f32 0.2, %v7917_v5 }
 0x511   : > { %v7927_v10 = vsel %vm7919_vm3, %v7915_v4, %v7923_v8 }
 0x512   : > { %v9045_v11 = vpack.c.bf16 %v7927_v10, %v7926_v6  ;;  %v7929_v3 = vsel %vm7921_vm4, %v7917_v5, %v7925_v61 }
 0x513   : > { %v9046_v15 = vpack.c.bf16 %v7929_v3, %v7928_v9 }
 0x514   : > { %v7946_v2 = vrot.slane %v9045_v11, %v10920_v49 }
 0x515   : > { %v7953_v16 = vrot.slane %v9046_v15, %v10920_v49 }
 0x517   : > { %v7954_v17 = vcombine.low %v7946_v2, %v7953_v16 }
 0x519   : > { %7956 = vst [vmem:[%s170_s16] sm:$0xff] %v7954_v17 }
 0x51a PF: > { %s13_s12 = sadd.s32 1, %s10742_s12  }
 0x51b   : > { %p10_p4 = scmp.ge.s32.totalorder %s13_s12, 4  }
 0x51d   :  { %12 = sbr.rel (!%p10_p4) target bundleno = 1 (0x1), region = 62 }

// kernel: forward.11
= control target key start
LH: loop header
LB: loop body
LE: loop exit
PB: predicated region body
PF: predicated region fallthrough
CT: control target
= control target key end

     0   :  { %s7770_s12 = smov 0   ;;  %s9410_s0 = inlined_call_operand.vmem [shape: bf16[2,4,8192], index: 0, kind: input, shape index: {}]   ;;  %s9411_s1 = inlined_call_operand.vmem [shape: bf16[8192,8], index: 1, kind: input, shape index: {}]   ;;  %s9412_s2 = inlined_call_operand.vmem [shape: f32[1,8], index: 2, kind: input, shape index: {}]   ;;  %s9413_s3 = inlined_call_operand.vmem [shape: f32[2,4,8], index: 3, kind: output, shape index: {}]  }
   0x1 LB: > { %s5976_s13 = sadd.s32 4294967295, %s7747_s12   ;;  %p5980_p0 = scmp.ge.s32.totalorder %s7747_s12, 1  ;;  %s7747_s12 = sphi %s7770_s12, %s13_s12  }
   0x2   : > { %p137_p1 = scmp.lt.s32.totalorder %s7747_s12, 3 }
   0x4   : > { %p138_p2 = pnand %p5980_p0, %p137_p1 }
   0x5   : > { %v7213_v0 = vld [vmem:[%s9411_s1 + $0x40] sm:$0xff] (!%p138_p2)   ;;  %v7217_v4 = vld [vmem:[%s9411_s1 + $0x48] sm:$0xff] (!%p138_p2)   ;;  %v7221_v8 = vld [vmem:[%s9411_s1 + $0x50] sm:$0xff] (!%p138_p2)   ;;  %p160_p3 = scmp.lt.s32.totalorder (!%p138_p2), %s5976_s13, 1  ;;  %v1237_v28 = vlaneseq (!%p138_p2)  ;;  %v7749_v36 = vmov (!%p138_p2), 1983009808  }
   0x6   : > { %141 = sbr.rel (%p138_p2) target bundleno = 739 (0x2e3), region = 32  ;;  %v7214_v1 = vld [vmem:[%s9411_s1 + $0xc0] sm:$0xff] (!%p138_p2)   ;;  %6500 = vmatprep.subr.bf16.mxu0 (!%p138_p2), %v7213_v0  ;;  %v7218_v5 = vld [vmem:[%s9411_s1 + $0xc8] sm:$0xff] (!%p138_p2)   ;;  %v7222_v9 = vld [vmem:[%s9411_s1 + $0xd0] sm:$0xff] (!%p138_p2)   ;;  %v1235_v37 = vunpack.c.l.s4 (!%p138_p2), %v7749_v36  ;;  %vm5921_vm0 = vcmask (!%p138_p2), 60416  }
   0x7   : > { %v7215_v2 = vld [vmem:[%s9411_s1] sm:$0xff] (!%p138_p2)   ;;  %6522 = vmatprep.subr.bf16.mxu1 (!%p138_p2), %v7214_v1  ;;  %v7219_v6 = vld [vmem:[%s9411_s1 + $0x8] sm:$0xff] (!%p138_p2)   ;;  %v7223_v10 = vld [vmem:[%s9411_s1 + $0x10] sm:$0xff] (!%p138_p2)   ;;  %v1238_v33 = vshrl.u32 (!%p138_p2), %v1237_v28, 7 }
   0x8   : > { %v7216_v3 = vld [vmem:[%s9411_s1 + $0x80] sm:$0xff] (!%p138_p2)   ;;  %6501 = vmatpush3.bf16.msra.mxu0 (!%p138_p2), %v7215_v2  ;;  %v7220_v7 = vld [vmem:[%s9411_s1 + $0x88] sm:$0xff] (!%p138_p2)   ;;  %v7224_v11 = vld [vmem:[%s9411_s1 + $0x90] sm:$0xff] (!%p138_p2)   ;;  %v1236_v39 = vunpack.c.0.s8 (!%p138_p2), %v1235_v37 }
   0x9   : > { %6523 = vmatpush3.bf16.msra.mxu1 (!%p138_p2), %v7216_v3  ;;  %6502 = vmatprep.subr.bf16.mxu0 (!%p138_p2), %v7217_v4  ;;  %v7225_v12 = vld [vmem:[%s9411_s1 + $0x58] sm:$0xff] (!%p138_p2)   ;;  %v7229_v16 = vld [vmem:[%s9411_s1 + $0x60] sm:$0xff] (!%p138_p2)   ;;  %v7233_v20 = vld [vmem:[%s9411_s1 + $0x68] sm:$0xff] (!%p138_p2)  }
   0xa   : > { %6524 = vmatprep.subr.bf16.mxu1 (!%p138_p2), %v7218_v5  ;;  %v7226_v13 = vld [vmem:[%s9411_s1 + $0xd8] sm:$0xff] (!%p138_p2)   ;;  %v7230_v17 = vld [vmem:[%s9411_s1 + $0xe0] sm:$0xff] (!%p138_p2)   ;;  %v7234_v21 = vld [vmem:[%s9411_s1 + $0xe8] sm:$0xff] (!%p138_p2)   ;;  %v7893_v41 = vsub.s32 (!%p138_p2), %v1236_v39, %v1238_v33 }
   0xb   : > { %v7227_v14 = vld [vmem:[%s9411_s1 + $0x18] sm:$0xff] (!%p138_p2)   ;;  %v7231_v18 = vld [vmem:[%s9411_s1 + $0x20] sm:$0xff] (!%p138_p2)   ;;  %v7235_v22 = vld [vmem:[%s9411_s1 + $0x28] sm:$0xff] (!%p138_p2)  }
   0xc   : > { %6503 = vmatpush3.bf16.msra.mxu0 (!%p138_p2), %v7219_v6  ;;  %v7228_v15 = vld [vmem:[%s9411_s1 + $0x98] sm:$0xff] (!%p138_p2)   ;;  %v7232_v19 = vld [vmem:[%s9411_s1 + $0xa0] sm:$0xff] (!%p138_p2)   ;;  %v7236_v23 = vld [vmem:[%s9411_s1 + $0xa8] sm:$0xff] (!%p138_p2)  }
   0xd   : > { %6525 = vmatpush3.bf16.msra.mxu1 %v7220_v7  ;;  %6504 = vmatprep.subr.bf16.mxu0 %v7221_v8  ;;  %s9415_s13 = smov (!%p160_p3, %s5976_s13), 1  ;;  %v7237_v24 = vld [vmem:[%s9411_s1 + $0x70] sm:$0xff]   ;;  %v7241_v29 = vld [vmem:[%s9411_s1 + $0x78] sm:$0xff]   ;;  %v7246_v35 = vld [vmem:[%s9411_s1 + $0x140] sm:$0xff]  }
   0xe   : > { %6526 = vmatprep.subr.bf16.mxu1 %v7222_v9  ;;  %v7238_v25 = vld [vmem:[%s9411_s1 + $0xf0] sm:$0xff]   ;;  %s6499_s18 = sshll.u32 %s9415_s13, 7  ;;  %v7242_v30 = vld [vmem:[%s9411_s1 + $0xf8] sm:$0xff]   ;;  %v7247_v38 = vld [vmem:[%s9411_s1 + $0x1c0] sm:$0xff]  }
   0xf   : > { %v7239_v26 = vld [vmem:[%s9411_s1 + $0x30] sm:$0xff]   ;;  %s7878_s27 = scalar_lea.vmem %s9410_s0, %s6499_s18  ;;  %v7243_v31 = vld [vmem:[%s9411_s1 + $0x38] sm:$0xff]   ;;  %v7248_v44 = vld [vmem:[%s9411_s1 + $0x100] sm:$0xff]  }
  0x10   : > { %6505 = vmatpush3.bf16.msra.mxu0 %v7223_v10  ;;  %v7240_v27 = vld [vmem:[%s9411_s1 + $0xb0] sm:$0xff]   ;;  %v7244_v32 = vld [vmem:[%s9411_s1 + $0xb8] sm:$0xff]   ;;  %v170_v34 = vld [vmem:[%s7878_s27] sm:$0xff] }
  0x11   : > { %6527 = vmatpush3.bf16.msra.mxu1 %v7224_v11  ;;  %6506 = vmatprep.subr.bf16.mxu0 %v7225_v12  ;;  %v1233_v40 = vcombine.high %v170_v34, %v170_v34  ;;  %v1240_v42 = vrot.slane %v170_v34, %v7893_v41  ;;  %v7249_v45 = vld [vmem:[%s9411_s1 + $0x180] sm:$0xff]   ;;  %v7250_v48 = vld [vmem:[%s9411_s1 + $0x148] sm:$0xff]   ;;  %v7254_v52 = vld [vmem:[%s9411_s1 + $0x150] sm:$0xff]  }
  0x12   : > { %6528 = vmatprep.subr.bf16.mxu1 %v7226_v13  ;;  %v7251_v49 = vld [vmem:[%s9411_s1 + $0x1c8] sm:$0xff]   ;;  %v7255_v53 = vld [vmem:[%s9411_s1 + $0x1d0] sm:$0xff]   ;;  %v7258_v56 = vld [vmem:[%s9411_s1 + $0x158] sm:$0xff]  }
  0x13   : > { %v1247_v43 = vrot.slane %v1233_v40, %v7893_v41  ;;  %v1248_v46 = vcombine.high %v1240_v42, %v1240_v42  ;;  %v7252_v50 = vld [vmem:[%s9411_s1 + $0x108] sm:$0xff]   ;;  %v7256_v54 = vld [vmem:[%s9411_s1 + $0x110] sm:$0xff]   ;;  %v7259_v57 = vld [vmem:[%s9411_s1 + $0x1d8] sm:$0xff]  }
  0x14   : > { %6507 = vmatpush3.bf16.msra.mxu0 %v7227_v14  ;;  %v7253_v51 = vld [vmem:[%s9411_s1 + $0x188] sm:$0xff]   ;;  %v7257_v55 = vld [vmem:[%s9411_s1 + $0x190] sm:$0xff]   ;;  %v7260_v58 = vld [vmem:[%s9411_s1 + $0x118] sm:$0xff]  }
  0x15   : > { %6529 = vmatpush3.bf16.msra.mxu1 %v7228_v15  ;;  %6508 = vmatprep.subr.bf16.mxu0 %v7229_v16  ;;  %v1249_v47 = vcombine.high %v1247_v43, %v1247_v43  ;;  %v7261_v59 = vld [vmem:[%s9411_s1 + $0x198] sm:$0xff]   ;;  %v7262_v60 = vld [vmem:[%s9411_s1 + $0x160] sm:$0xff]   ;;  %v7266_v0 = vld [vmem:[%s9411_s1 + $0x168] sm:$0xff]  }
  0x16   : > { %6530 = vmatprep.subr.bf16.mxu1 %v7230_v17  ;;  %4673 = vmatprep.mubr.bf16.mxu0 %v1248_v46  ;;  %v7263_v61 = vld [vmem:[%s9411_s1 + $0x1e0] sm:$0xff]   ;;  %v7267_v1 = vld [vmem:[%s9411_s1 + $0x1e8] sm:$0xff]   ;;  %v7270_v4 = vld [vmem:[%s9411_s1 + $0x170] sm:$0xff]  }
  0x17   : > { %4713 = vmatprep.mubr.bf16.mxu1 %v1249_v47  ;;  %v7264_v62 = vld [vmem:[%s9411_s1 + $0x120] sm:$0xff]   ;;  %v7268_v2 = vld [vmem:[%s9411_s1 + $0x128] sm:$0xff]   ;;  %v7271_v5 = vld [vmem:[%s9411_s1 + $0x1f0] sm:$0xff]  }
  0x18   : > { %6509 = vmatpush3.bf16.msra.mxu0 %v7231_v18  ;;  %v7265_v63 = vld [vmem:[%s9411_s1 + $0x1a0] sm:$0xff]   ;;  %v7269_v3 = vld [vmem:[%s9411_s1 + $0x1a8] sm:$0xff]   ;;  %v7272_v6 = vld [vmem:[%s9411_s1 + $0x130] sm:$0xff]  }
  0x19   : > { %6531 = vmatpush3.bf16.msra.mxu1 %v7232_v19  ;;  %6510 = vmatprep.subr.bf16.mxu0 %v7233_v20  ;;  %v7273_v7 = vld [vmem:[%s9411_s1 + $0x1b0] sm:$0xff]   ;;  %v171_v8 = vld [vmem:[%s7878_s27 + $0x8] sm:$0xff]  ;;  %v7274_v9 = vld [vmem:[%s9411_s1 + $0x178] sm:$0xff]  }
  0x1a   : > { %6532 = vmatprep.subr.bf16.mxu1 %v7234_v21  ;;  %v1257_v10 = vrot.slane %v171_v8, %v7893_v41  ;;  %v1250_v11 = vcombine.high %v171_v8, %v171_v8  ;;  %v7275_v12 = vld [vmem:[%s9411_s1 + $0x1f8] sm:$0xff]   ;;  %v7279_v18 = vld [vmem:[%s9411_s1 + $0x240] sm:$0xff]   ;;  %v7289_v28 = vld [vmem:[%s9411_s1 + $0x210] sm:$0xff]  }
  0x1b   : > { %v7276_v13 = vld [vmem:[%s9411_s1 + $0x138] sm:$0xff]   ;;  %v7280_v19 = vld [vmem:[%s9411_s1 + $0x2c0] sm:$0xff]   ;;  %v7300_v39 = vld [vmem:[%s9411_s1 + $0x2e8] sm:$0xff]  }
  0x1c   : > { %6511 = vmatpush3.bf16.msra.mxu0 %v7235_v22  ;;  %v1265_v14 = vcombine.high %v1257_v10, %v1257_v10  ;;  %v1264_v15 = vrot.slane %v1250_v11, %v7893_v41  ;;  %v7277_v16 = vld [vmem:[%s9411_s1 + $0x1b8] sm:$0xff]   ;;  %v7281_v20 = vld [vmem:[%s9411_s1 + $0x200] sm:$0xff]   ;;  %v7283_v22 = vld [vmem:[%s9411_s1 + $0x248] sm:$0xff]  }
  0x1d   : > { %6533 = vmatpush3.bf16.msra.mxu1 %v7236_v23  ;;  %6512 = vmatprep.subr.bf16.mxu0 %v7237_v24  ;;  %v7282_v21 = vld [vmem:[%s9411_s1 + $0x280] sm:$0xff]   ;;  %v7284_v23 = vld [vmem:[%s9411_s1 + $0x2c8] sm:$0xff]   ;;  %v7294_v33 = vld [vmem:[%s9411_s1 + $0x298] sm:$0xff]  }
  0x1e   : > { %6534 = vmatprep.subr.bf16.mxu1 %v7238_v25  ;;  %v1266_v17 = vcombine.high %v1264_v15, %v1264_v15  ;;  %v7285_v24 = vld [vmem:[%s9411_s1 + $0x208] sm:$0xff]   ;;  %v7295_v34 = vld [vmem:[%s9411_s1 + $0x260] sm:$0xff]   ;;  %v7306_v46 = vld [vmem:[%s9411_s1 + $0x2b0] sm:$0xff]  }
  0x1f   : > { %v7286_v25 = vld [vmem:[%s9411_s1 + $0x288] sm:$0xff]   ;;  %v7297_v36 = vld [vmem:[%s9411_s1 + $0x220] sm:$0xff]   ;;  %v172_v47 = vld [vmem:[%s7878_s27 + $0x10] sm:$0xff] }
  0x20   : > { %6513 = vmatpush3.bf16.msra.mxu0 %v7239_v26  ;;  %v7287_v26 = vld [vmem:[%s9411_s1 + $0x250] sm:$0xff]   ;;  %v7298_v37 = vld [vmem:[%s9411_s1 + $0x2a0] sm:$0xff]   ;;  %v7301_v40 = vld [vmem:[%s9411_s1 + $0x228] sm:$0xff]  }
  0x21   : > { %6535 = vmatpush3.bf16.msra.mxu1 %v7240_v27  ;;  %6514 = vmatprep.subr.bf16.mxu0 %v7241_v29  ;;  %v7288_v27 = vld [vmem:[%s9411_s1 + $0x2d0] sm:$0xff]   ;;  %v7327_v8 = vld [vmem:[%s9411_s1 + $0x398] sm:$0xff]   ;;  %v7330_v11 = vld [vmem:[%s9411_s1 + $0x320] sm:$0xff]  }
  0x22   : > { %6536 = vmatprep.subr.bf16.mxu1 %v7242_v30  ;;  %v7290_v29 = vld [vmem:[%s9411_s1 + $0x290] sm:$0xff]   ;;  %v7291_v30 = vld [vmem:[%s9411_s1 + $0x258] sm:$0xff]  }
  0x24   : > { %6515 = vmatpush3.bf16.msra.mxu0 %v7243_v31  ;;  %v7292_v31 = vld [vmem:[%s9411_s1 + $0x2d8] sm:$0xff]  }
  0x25   : > { %6537 = vmatpush3.bf16.msra.mxu1 %v7244_v32  ;;  %6544 = vmatprep.subr.bf16.mxu0 %v7246_v35  ;;  %v7293_v32 = vld [vmem:[%s9411_s1 + $0x218] sm:$0xff]   ;;  %v7296_v35 = vld [vmem:[%s9411_s1 + $0x2e0] sm:$0xff]  }
  0x26   : > { %6566 = vmatprep.subr.bf16.mxu1 %v7247_v38  ;;  %v7299_v38 = vld [vmem:[%s9411_s1 + $0x268] sm:$0xff]  }
  0x27   : > { %4674 = vmatmul.mubr.bf16.vlgmr.msra.gmra.mrb[0].mxu0 %v1240_v42  ;;  %v7302_v42 = vld [vmem:[%s9411_s1 + $0x2a8] sm:$0xff]  }
  0x28   : > { %4714 = vmatmul.mubr.bf16.vlgmr.msra.gmra.mrb[0].mxu1 %v1247_v43  ;;  %6545 = vmatpush3.bf16.msra.mxu0 %v7248_v44  ;;  %v7303_v43 = vld [vmem:[%s9411_s1 + $0x270] sm:$0xff]  }
  0x29   : > { %6567 = vmatpush3.bf16.msra.mxu1 %v7249_v45  ;;  %6546 = vmatprep.subr.bf16.mxu0 %v7250_v48  ;;  %v7304_v44 = vld [vmem:[%s9411_s1 + $0x2f0] sm:$0xff]   ;;  %v7307_v48 = vld [vmem:[%s9411_s1 + $0x278] sm:$0xff]  }
  0x2a   : > { %6568 = vmatprep.subr.bf16.mxu1 %v7251_v49  ;;  %4753 = vmatprep.mubr.bf16.mxu0 %v1265_v14  ;;  %v7305_v45 = vld [vmem:[%s9411_s1 + $0x230] sm:$0xff]   ;;  %v1274_v49 = vrot.slane %v172_v47, %v7893_v41  ;;  %v7333_v14 = vld [vmem:[%s9411_s1 + $0x3e8] sm:$0xff]  }
  0x2b   : > { %4793 = vmatprep.mubr.bf16.mxu1 %v1266_v17  ;;  %v7336_v17 = vld [vmem:[%s9411_s1 + $0x370] sm:$0xff]  }
  0x2c   : > { %6547 = vmatpush3.bf16.msra.mxu0 %v7252_v50  ;;  %v1267_v50 = vcombine.high %v172_v47, %v172_v47  ;;  %v7360_v47 = vld [vmem:[%s9411_s1 + $0x498] sm:$0xff]  }
  0x2d   : > { %6569 = vmatpush3.bf16.msra.mxu1 %v7253_v51  ;;  %6548 = vmatprep.subr.bf16.mxu0 %v7254_v52  ;;  %v7308_v51 = vld [vmem:[%s9411_s1 + $0x2f8] sm:$0xff]  }
  0x2e   : > { %6570 = vmatprep.subr.bf16.mxu1 %v7255_v53  ;;  %v7309_v52 = vld [vmem:[%s9411_s1 + $0x238] sm:$0xff]   ;;  %v1282_v53 = vcombine.high %v1274_v49, %v1274_v49 }
  0x30   : > { %6549 = vmatpush3.bf16.msra.mxu0 %v7256_v54  ;;  %v1281_v54 = vrot.slane %v1267_v50, %v7893_v41  ;;  %v7363_v50 = vld [vmem:[%s9411_s1 + $0x420] sm:$0xff]  }
  0x31   : > { %6571 = vmatpush3.bf16.msra.mxu1 %v7257_v55  ;;  %6550 = vmatprep.subr.bf16.mxu0 %v7258_v56  ;;  %v7310_v55 = vld [vmem:[%s9411_s1 + $0x2b8] sm:$0xff]  }
  0x32   : > { %6572 = vmatprep.subr.bf16.mxu1 %v7259_v57  ;;  %v1283_v56 = vcombine.high %v1281_v54, %v1281_v54  ;;  %v7312_v57 = vld [vmem:[%s9411_s1 + $0x340] sm:$0xff]  }
  0x34   : > { %6551 = vmatpush3.bf16.msra.mxu0 %v7260_v58  ;;  %v7313_v58 = vld [vmem:[%s9411_s1 + $0x3c0] sm:$0xff]  }
  0x35   : > { %6573 = vmatpush3.bf16.msra.mxu1 %v7261_v59  ;;  %6552 = vmatprep.subr.bf16.mxu0 %v7262_v60  ;;  %v7314_v59 = vld [vmem:[%s9411_s1 + $0x300] sm:$0xff]  }
  0x36   : > { %6574 = vmatprep.subr.bf16.mxu1 %v7263_v61  ;;  %v7315_v60 = vld [vmem:[%s9411_s1 + $0x380] sm:$0xff]   ;;  %v7316_v61 = vld [vmem:[%s9411_s1 + $0x348] sm:$0xff]  }
  0x38   : > { %6553 = vmatpush3.bf16.msra.mxu0 %v7264_v62  ;;  %v7317_v62 = vld [vmem:[%s9411_s1 + $0x3c8] sm:$0xff]  }
  0x39   : > { %6575 = vmatpush3.bf16.msra.mxu1 %v7265_v63  ;;  %6554 = vmatprep.subr.bf16.mxu0 %v7266_v0  ;;  %v7318_v63 = vld [vmem:[%s9411_s1 + $0x308] sm:$0xff]  }
  0x3a   : > { %6576 = vmatprep.subr.bf16.mxu1 %v7267_v1  ;;  %v7319_v0 = vld [vmem:[%s9411_s1 + $0x388] sm:$0xff]   ;;  %v7320_v1 = vld [vmem:[%s9411_s1 + $0x350] sm:$0xff]  }
  0x3c   : > { %6555 = vmatpush3.bf16.msra.mxu0 %v7268_v2  ;;  %v7321_v2 = vld [vmem:[%s9411_s1 + $0x3d0] sm:$0xff]  }
  0x3d   : > { %6577 = vmatpush3.bf16.msra.mxu1 %v7269_v3  ;;  %6556 = vmatprep.subr.bf16.mxu0 %v7270_v4  ;;  %v7322_v3 = vld [vmem:[%s9411_s1 + $0x310] sm:$0xff]  }
  0x3e   : > { %6578 = vmatprep.subr.bf16.mxu1 %v7271_v5  ;;  %v7323_v4 = vld [vmem:[%s9411_s1 + $0x390] sm:$0xff]   ;;  %v7324_v5 = vld [vmem:[%s9411_s1 + $0x358] sm:$0xff]  }
  0x40   : > { %6557 = vmatpush3.bf16.msra.mxu0 %v7272_v6  ;;  %v7325_v6 = vld [vmem:[%s9411_s1 + $0x3d8] sm:$0xff]  }
  0x41   : > { %6579 = vmatpush3.bf16.msra.mxu1 %v7273_v7  ;;  %6558 = vmatprep.subr.bf16.mxu0 %v7274_v9  ;;  %v7326_v7 = vld [vmem:[%s9411_s1 + $0x318] sm:$0xff]   ;;  %v7328_v9 = vld [vmem:[%s9411_s1 + $0x360] sm:$0xff]  }
  0x42   : > { %6580 = vmatprep.subr.bf16.mxu1 %v7275_v12  ;;  %v7331_v12 = vld [vmem:[%s9411_s1 + $0x3a0] sm:$0xff]  }
  0x44   : > { %6559 = vmatpush3.bf16.msra.mxu0 %v7276_v13  ;;  %v7332_v13 = vld [vmem:[%s9411_s1 + $0x368] sm:$0xff]  }
  0x45   : > { %6581 = vmatpush3.bf16.msra.mxu1 %v7277_v16  ;;  %6588 = vmatprep.subr.bf16.mxu0 %v7279_v18  ;;  %v7335_v16 = vld [vmem:[%s9411_s1 + $0x3a8] sm:$0xff]   ;;  %v7337_v18 = vld [vmem:[%s9411_s1 + $0x3f0] sm:$0xff]  }
  0x46   : > { %6610 = vmatprep.subr.bf16.mxu1 %v7280_v19  ;;  %v7338_v19 = vld [vmem:[%s9411_s1 + $0x330] sm:$0xff]  }
  0x47   : > { %4754 = vmatmul.mubr.bf16.vlgmr.msra.gmra.mrb[4].mxu0 %v1257_v10  ;;  %v7329_v10 = vld [vmem:[%s9411_s1 + $0x3e0] sm:$0xff]  }
  0x48   : > { %4794 = vmatmul.mubr.bf16.vlgmr.msra.gmra.mrb[4].mxu1 %v1264_v15  ;;  %6589 = vmatpush3.bf16.msra.mxu0 %v7281_v20  ;;  %v7334_v15 = vld [vmem:[%s9411_s1 + $0x328] sm:$0xff]   ;;  %v7339_v20 = vld [vmem:[%s9411_s1 + $0x3b0] sm:$0xff]  }
  0x49   : > { %6611 = vmatpush3.bf16.msra.mxu1 %v7282_v21  ;;  %6590 = vmatprep.subr.bf16.mxu0 %v7283_v22  ;;  %v7340_v21 = vld [vmem:[%s9411_s1 + $0x378] sm:$0xff]  }
  0x4a   : > { %6612 = vmatprep.subr.bf16.mxu1 %v7284_v23  ;;  %4833 = vmatprep.mubr.bf16.mxu0 %v1282_v53  ;;  %v173_v22 = vld [vmem:[%s7878_s27 + $0x18] sm:$0xff]  ;;  %v7366_v53 = vld [vmem:[%s9411_s1 + $0x4e8] sm:$0xff]  }
  0x4b   : > { %4873 = vmatprep.mubr.bf16.mxu1 %v1283_v56  ;;  %v7341_v23 = vld [vmem:[%s9411_s1 + $0x3f8] sm:$0xff]   ;;  %v7369_v56 = vld [vmem:[%s9411_s1 + $0x470] sm:$0xff]  }
  0x4c   : > { %6591 = vmatpush3.bf16.msra.mxu0 %v7285_v24  ;;  %v1291_v24 = vrot.slane %v173_v22, %v7893_v41 }
  0x4d   : > { %6613 = vmatpush3.bf16.msra.mxu1 %v7286_v25  ;;  %6592 = vmatprep.subr.bf16.mxu0 %v7287_v26  ;;  %v1284_v25 = vcombine.high %v173_v22, %v173_v22  ;;  %v7342_v26 = vld [vmem:[%s9411_s1 + $0x338] sm:$0xff]   ;;  %v7394_v22 = vld [vmem:[%s9411_s1 + $0x560] sm:$0xff]  }
  0x4e   : > { %6614 = vmatprep.subr.bf16.mxu1 %v7288_v27  ;;  %v7343_v27 = vld [vmem:[%s9411_s1 + $0x3b8] sm:$0xff]  }
  0x50   : > { %6593 = vmatpush3.bf16.msra.mxu0 %v7289_v28  ;;  %v1299_v28 = vcombine.high %v1291_v24, %v1291_v24 }
  0x51   : > { %6615 = vmatpush3.bf16.msra.mxu1 %v7290_v29  ;;  %6594 = vmatprep.subr.bf16.mxu0 %v7291_v30  ;;  %v1298_v29 = vrot.slane %v1284_v25, %v7893_v41  ;;  %v7345_v30 = vld [vmem:[%s9411_s1 + $0x440] sm:$0xff]  }
  0x52   : > { %6616 = vmatprep.subr.bf16.mxu1 %v7292_v31  ;;  %v7397_v25 = vld [vmem:[%s9411_s1 + $0x5a0] sm:$0xff]  }
  0x53   : > { %v1300_v31 = vcombine.high %v1298_v29, %v1298_v29 }
  0x54   : > { %6595 = vmatpush3.bf16.msra.mxu0 %v7293_v32  ;;  %v7346_v32 = vld [vmem:[%s9411_s1 + $0x4c0] sm:$0xff]  }
  0x55   : > { %6617 = vmatpush3.bf16.msra.mxu1 %v7294_v33  ;;  %6596 = vmatprep.subr.bf16.mxu0 %v7295_v34  ;;  %v7347_v33 = vld [vmem:[%s9411_s1 + $0x400] sm:$0xff]  }
  0x56   : > { %6618 = vmatprep.subr.bf16.mxu1 %v7296_v35  ;;  %v7348_v34 = vld [vmem:[%s9411_s1 + $0x480] sm:$0xff]   ;;  %v7349_v35 = vld [vmem:[%s9411_s1 + $0x448] sm:$0xff]  }
  0x58   : > { %6597 = vmatpush3.bf16.msra.mxu0 %v7297_v36  ;;  %v7350_v36 = vld [vmem:[%s9411_s1 + $0x4c8] sm:$0xff]  }
  0x59   : > { %6619 = vmatpush3.bf16.msra.mxu1 %v7298_v37  ;;  %6598 = vmatprep.subr.bf16.mxu0 %v7299_v38  ;;  %v7351_v37 = vld [vmem:[%s9411_s1 + $0x408] sm:$0xff]  }
  0x5a   : > { %6620 = vmatprep.subr.bf16.mxu1 %v7300_v39  ;;  %v7352_v38 = vld [vmem:[%s9411_s1 + $0x488] sm:$0xff]   ;;  %v7353_v39 = vld [vmem:[%s9411_s1 + $0x450] sm:$0xff]  }
  0x5c   : > { %6599 = vmatpush3.bf16.msra.mxu0 %v7301_v40  ;;  %v7354_v40 = vld [vmem:[%s9411_s1 + $0x4d0] sm:$0xff]  }
  0x5d   : > { %6621 = vmatpush3.bf16.msra.mxu1 %v7302_v42  ;;  %6600 = vmatprep.subr.bf16.mxu0 %v7303_v43  ;;  %v7355_v42 = vld [vmem:[%s9411_s1 + $0x410] sm:$0xff]  }
  0x5e   : > { %6622 = vmatprep.subr.bf16.mxu1 %v7304_v44  ;;  %v7356_v43 = vld [vmem:[%s9411_s1 + $0x490] sm:$0xff]   ;;  %v7357_v44 = vld [vmem:[%s9411_s1 + $0x458] sm:$0xff]  }
  0x60   : > { %6601 = vmatpush3.bf16.msra.mxu0 %v7305_v45  ;;  %v7358_v45 = vld [vmem:[%s9411_s1 + $0x4d8] sm:$0xff]  }
  0x61   : > { %6623 = vmatpush3.bf16.msra.mxu1 %v7306_v46  ;;  %6602 = vmatprep.subr.bf16.mxu0 %v7307_v48  ;;  %v7359_v46 = vld [vmem:[%s9411_s1 + $0x418] sm:$0xff]   ;;  %v7361_v48 = vld [vmem:[%s9411_s1 + $0x460] sm:$0xff]  }
  0x62   : > { %6624 = vmatprep.subr.bf16.mxu1 %v7308_v51  ;;  %v7364_v51 = vld [vmem:[%s9411_s1 + $0x4a0] sm:$0xff]  }
  0x64   : > { %6603 = vmatpush3.bf16.msra.mxu0 %v7309_v52  ;;  %v7365_v52 = vld [vmem:[%s9411_s1 + $0x468] sm:$0xff]  }
  0x65   : > { %6625 = vmatpush3.bf16.msra.mxu1 %v7310_v55  ;;  %6632 = vmatprep.subr.bf16.mxu0 %v7312_v57  ;;  %v7368_v55 = vld [vmem:[%s9411_s1 + $0x4a8] sm:$0xff]   ;;  %v7370_v57 = vld [vmem:[%s9411_s1 + $0x4f0] sm:$0xff]  }
  0x66   : > { %6654 = vmatprep.subr.bf16.mxu1 %v7313_v58  ;;  %v7371_v58 = vld [vmem:[%s9411_s1 + $0x430] sm:$0xff]  }
  0x67   : > { %4834 = vmatmul.mubr.bf16.vlgmr.msra.gmra.mrb[8].mxu0 %v1274_v49  ;;  %v7362_v49 = vld [vmem:[%s9411_s1 + $0x4e0] sm:$0xff]  }
  0x68   : > { %4874 = vmatmul.mubr.bf16.vlgmr.msra.gmra.mrb[8].mxu1 %v1281_v54  ;;  %6633 = vmatpush3.bf16.msra.mxu0 %v7314_v59  ;;  %v7367_v54 = vld [vmem:[%s9411_s1 + $0x428] sm:$0xff]   ;;  %v7372_v59 = vld [vmem:[%s9411_s1 + $0x4b0] sm:$0xff]  }
  0x69   : > { %6655 = vmatpush3.bf16.msra.mxu1 %v7315_v60  ;;  %6634 = vmatprep.subr.bf16.mxu0 %v7316_v61  ;;  %v7373_v60 = vld [vmem:[%s9411_s1 + $0x478] sm:$0xff]   ;;  %v174_v61 = vld [vmem:[%s7878_s27 + $0x20] sm:$0xff] }
  0x6a   : > { %6656 = vmatprep.subr.bf16.mxu1 %v7317_v62  ;;  %4913 = vmatprep.mubr.bf16.mxu0 %v1299_v28  ;;  %v7374_v62 = vld [vmem:[%s9411_s1 + $0x4f8] sm:$0xff]   ;;  %v7400_v28 = vld [vmem:[%s9411_s1 + $0x528] sm:$0xff]  }
  0x6b   : > { %4953 = vmatprep.mubr.bf16.mxu1 %v1300_v31  ;;  %v7403_v31 = vld [vmem:[%s9411_s1 + $0x5f0] sm:$0xff]  }
  0x6c   : > { %6635 = vmatpush3.bf16.msra.mxu0 %v7318_v63  ;;  %v1308_v63 = vrot.slane %v174_v61, %v7893_v41 }
  0x6d   : > { %6657 = vmatpush3.bf16.msra.mxu1 %v7319_v0  ;;  %6636 = vmatprep.subr.bf16.mxu0 %v7320_v1  ;;  %v1301_v0 = vcombine.high %v174_v61, %v174_v61  ;;  %v7375_v1 = vld [vmem:[%s9411_s1 + $0x438] sm:$0xff]   ;;  %v7427_v61 = vld [vmem:[%s9411_s1 + $0x660] sm:$0xff]  }
  0x6e   : > { %6658 = vmatprep.subr.bf16.mxu1 %v7321_v2  ;;  %v7376_v2 = vld [vmem:[%s9411_s1 + $0x4b8] sm:$0xff]  }
  0x70   : > { %6637 = vmatpush3.bf16.msra.mxu0 %v7322_v3  ;;  %v1316_v3 = vcombine.high %v1308_v63, %v1308_v63 }
  0x71   : > { %6659 = vmatpush3.bf16.msra.mxu1 %v7323_v4  ;;  %6638 = vmatprep.subr.bf16.mxu0 %v7324_v5  ;;  %v1315_v4 = vrot.slane %v1301_v0, %v7893_v41  ;;  %v7378_v5 = vld [vmem:[%s9411_s1 + $0x540] sm:$0xff]  }
  0x72   : > { %6660 = vmatprep.subr.bf16.mxu1 %v7325_v6  ;;  %v7430_v0 = vld [vmem:[%s9411_s1 + $0x6a0] sm:$0xff]  }
  0x73   : > { %v1317_v6 = vcombine.high %v1315_v4, %v1315_v4 }
  0x74   : > { %6639 = vmatpush3.bf16.msra.mxu0 %v7326_v7  ;;  %v7379_v7 = vld [vmem:[%s9411_s1 + $0x5c0] sm:$0xff]  }
  0x75   : > { %6661 = vmatpush3.bf16.msra.mxu1 %v7327_v8  ;;  %6640 = vmatprep.subr.bf16.mxu0 %v7328_v9  ;;  %v7380_v8 = vld [vmem:[%s9411_s1 + $0x500] sm:$0xff]  }
  0x76   : > { %6662 = vmatprep.subr.bf16.mxu1 %v7329_v10  ;;  %v7381_v9 = vld [vmem:[%s9411_s1 + $0x580] sm:$0xff]   ;;  %v7382_v10 = vld [vmem:[%s9411_s1 + $0x548] sm:$0xff]  }
  0x78   : > { %6641 = vmatpush3.bf16.msra.mxu0 %v7330_v11  ;;  %v7383_v11 = vld [vmem:[%s9411_s1 + $0x5c8] sm:$0xff]  }
  0x79   : > { %6663 = vmatpush3.bf16.msra.mxu1 %v7331_v12  ;;  %6642 = vmatprep.subr.bf16.mxu0 %v7332_v13  ;;  %v7384_v12 = vld [vmem:[%s9411_s1 + $0x508] sm:$0xff]  }
  0x7a   : > { %6664 = vmatprep.subr.bf16.mxu1 %v7333_v14  ;;  %v7385_v13 = vld [vmem:[%s9411_s1 + $0x588] sm:$0xff]   ;;  %v7386_v14 = vld [vmem:[%s9411_s1 + $0x550] sm:$0xff]  }
  0x7c   : > { %6643 = vmatpush3.bf16.msra.mxu0 %v7334_v15  ;;  %v7387_v15 = vld [vmem:[%s9411_s1 + $0x5d0] sm:$0xff]  }
  0x7d   : > { %6665 = vmatpush3.bf16.msra.mxu1 %v7335_v16  ;;  %6644 = vmatprep.subr.bf16.mxu0 %v7336_v17  ;;  %v7388_v16 = vld [vmem:[%s9411_s1 + $0x510] sm:$0xff]  }
  0x7e   : > { %6666 = vmatprep.subr.bf16.mxu1 %v7337_v18  ;;  %v7389_v17 = vld [vmem:[%s9411_s1 + $0x590] sm:$0xff]   ;;  %v7390_v18 = vld [vmem:[%s9411_s1 + $0x558] sm:$0xff]  }
  0x80   : > { %6645 = vmatpush3.bf16.msra.mxu0 %v7338_v19  ;;  %v7391_v19 = vld [vmem:[%s9411_s1 + $0x5d8] sm:$0xff]  }
  0x81   : > { %6667 = vmatpush3.bf16.msra.mxu1 %v7339_v20  ;;  %6646 = vmatprep.subr.bf16.mxu0 %v7340_v21  ;;  %v7392_v20 = vld [vmem:[%s9411_s1 + $0x518] sm:$0xff]  }
  0x82   : > { %6668 = vmatprep.subr.bf16.mxu1 %v7341_v23  ;;  %v7393_v21 = vld [vmem:[%s9411_s1 + $0x598] sm:$0xff]   ;;  %v7395_v23 = vld [vmem:[%s9411_s1 + $0x5e0] sm:$0xff]  }
  0x84   : > { %6647 = vmatpush3.bf16.msra.mxu0 %v7342_v26  ;;  %v7398_v26 = vld [vmem:[%s9411_s1 + $0x568] sm:$0xff]  }
  0x85   : > { %6669 = vmatpush3.bf16.msra.mxu1 %v7343_v27  ;;  %6676 = vmatprep.subr.bf16.mxu0 %v7345_v30  ;;  %v7399_v27 = vld [vmem:[%s9411_s1 + $0x5e8] sm:$0xff]   ;;  %v7402_v30 = vld [vmem:[%s9411_s1 + $0x570] sm:$0xff]  }
  0x86   : > { %6698 = vmatprep.subr.bf16.mxu1 %v7346_v32  ;;  %v7404_v32 = vld [vmem:[%s9411_s1 + $0x530] sm:$0xff]  }
  0x87   : > { %4914 = vmatmul.mubr.bf16.vlgmr.msra.gmra.mrb[12].mxu0 %v1291_v24  ;;  %v7396_v24 = vld [vmem:[%s9411_s1 + $0x520] sm:$0xff]  }
  0x88   : > { %4954 = vmatmul.mubr.bf16.vlgmr.msra.gmra.mrb[12].mxu1 %v1298_v29  ;;  %6677 = vmatpush3.bf16.msra.mxu0 %v7347_v33  ;;  %v7401_v29 = vld [vmem:[%s9411_s1 + $0x5a8] sm:$0xff]   ;;  %v7405_v33 = vld [vmem:[%s9411_s1 + $0x5b0] sm:$0xff]  }
  0x89   : > { %6699 = vmatpush3.bf16.msra.mxu1 %v7348_v34  ;;  %6678 = vmatprep.subr.bf16.mxu0 %v7349_v35  ;;  %v7406_v34 = vld [vmem:[%s9411_s1 + $0x578] sm:$0xff]   ;;  %v175_v35 = vld [vmem:[%s7878_s27 + $0x28] sm:$0xff] }
  0x8a   : > { %6700 = vmatprep.subr.bf16.mxu1 %v7350_v36  ;;  %4993 = vmatprep.mubr.bf16.mxu0 %v1316_v3  ;;  %v7407_v36 = vld [vmem:[%s9411_s1 + $0x5f8] sm:$0xff]   ;;  %v7433_v3 = vld [vmem:[%s9411_s1 + $0x628] sm:$0xff]  }
  0x8b   : > { %5033 = vmatprep.mubr.bf16.mxu1 %v1317_v6  ;;  %v7436_v6 = vld [vmem:[%s9411_s1 + $0x6f0] sm:$0xff]  }
  0x8c   : > { %6679 = vmatpush3.bf16.msra.mxu0 %v7351_v37  ;;  %v1325_v37 = vrot.slane %v175_v35, %v7893_v41 }
  0x8d   : > { %6701 = vmatpush3.bf16.msra.mxu1 %v7352_v38  ;;  %6680 = vmatprep.subr.bf16.mxu0 %v7353_v39  ;;  %v1318_v38 = vcombine.high %v175_v35, %v175_v35  ;;  %v7408_v39 = vld [vmem:[%s9411_s1 + $0x538] sm:$0xff]   ;;  %v7460_v35 = vld [vmem:[%s9411_s1 + $0x760] sm:$0xff]  }
  0x8e   : > { %6702 = vmatprep.subr.bf16.mxu1 %v7354_v40  ;;  %v7409_v40 = vld [vmem:[%s9411_s1 + $0x5b8] sm:$0xff]  }
  0x90   : > { %6681 = vmatpush3.bf16.msra.mxu0 %v7355_v42  ;;  %v1333_v42 = vcombine.high %v1325_v37, %v1325_v37 }
  0x91   : > { %6703 = vmatpush3.bf16.msra.mxu1 %v7356_v43  ;;  %6682 = vmatprep.subr.bf16.mxu0 %v7357_v44  ;;  %v1332_v43 = vrot.slane %v1318_v38, %v7893_v41  ;;  %v7411_v44 = vld [vmem:[%s9411_s1 + $0x640] sm:$0xff]  }
  0x92   : > { %6704 = vmatprep.subr.bf16.mxu1 %v7358_v45  ;;  %v7463_v38 = vld [vmem:[%s9411_s1 + $0x7a0] sm:$0xff]  }
  0x93   : > { %v1334_v45 = vcombine.high %v1332_v43, %v1332_v43 }
  0x94   : > { %6683 = vmatpush3.bf16.msra.mxu0 %v7359_v46  ;;  %v7412_v46 = vld [vmem:[%s9411_s1 + $0x6c0] sm:$0xff]  }
  0x95   : > { %6705 = vmatpush3.bf16.msra.mxu1 %v7360_v47  ;;  %6684 = vmatprep.subr.bf16.mxu0 %v7361_v48  ;;  %v7413_v47 = vld [vmem:[%s9411_s1 + $0x600] sm:$0xff]  }
  0x96   : > { %6706 = vmatprep.subr.bf16.mxu1 %v7362_v49  ;;  %v7414_v48 = vld [vmem:[%s9411_s1 + $0x680] sm:$0xff]   ;;  %v7415_v49 = vld [vmem:[%s9411_s1 + $0x648] sm:$0xff]  }
  0x98   : > { %6685 = vmatpush3.bf16.msra.mxu0 %v7363_v50  ;;  %v7416_v50 = vld [vmem:[%s9411_s1 + $0x6c8] sm:$0xff]  }
  0x99   : > { %6707 = vmatpush3.bf16.msra.mxu1 %v7364_v51  ;;  %6686 = vmatprep.subr.bf16.mxu0 %v7365_v52  ;;  %v7417_v51 = vld [vmem:[%s9411_s1 + $0x608] sm:$0xff]  }
  0x9a   : > { %6708 = vmatprep.subr.bf16.mxu1 %v7366_v53  ;;  %v7418_v52 = vld [vmem:[%s9411_s1 + $0x688] sm:$0xff]   ;;  %v7419_v53 = vld [vmem:[%s9411_s1 + $0x650] sm:$0xff]  }
  0x9c   : > { %6687 = vmatpush3.bf16.msra.mxu0 %v7367_v54  ;;  %v7420_v54 = vld [vmem:[%s9411_s1 + $0x6d0] sm:$0xff]  }
  0x9d   : > { %6709 = vmatpush3.bf16.msra.mxu1 %v7368_v55  ;;  %6688 = vmatprep.subr.bf16.mxu0 %v7369_v56  ;;  %v7421_v55 = vld [vmem:[%s9411_s1 + $0x610] sm:$0xff]  }
  0x9e   : > { %6710 = vmatprep.subr.bf16.mxu1 %v7370_v57  ;;  %v7422_v56 = vld [vmem:[%s9411_s1 + $0x690] sm:$0xff]   ;;  %v7423_v57 = vld [vmem:[%s9411_s1 + $0x658] sm:$0xff]  }
  0xa0   : > { %6689 = vmatpush3.bf16.msra.mxu0 %v7371_v58  ;;  %v7424_v58 = vld [vmem:[%s9411_s1 + $0x6d8] sm:$0xff]  }
  0xa1   : > { %6711 = vmatpush3.bf16.msra.mxu1 %v7372_v59  ;;  %6690 = vmatprep.subr.bf16.mxu0 %v7373_v60  ;;  %v7425_v59 = vld [vmem:[%s9411_s1 + $0x618] sm:$0xff]  }
  0xa2   : > { %6712 = vmatprep.subr.bf16.mxu1 %v7374_v62  ;;  %v7426_v60 = vld [vmem:[%s9411_s1 + $0x698] sm:$0xff]   ;;  %v7428_v62 = vld [vmem:[%s9411_s1 + $0x6e0] sm:$0xff]  }
  0xa4   : > { %6691 = vmatpush3.bf16.msra.mxu0 %v7375_v1  ;;  %v7431_v1 = vld [vmem:[%s9411_s1 + $0x668] sm:$0xff]  }
  0xa5   : > { %6713 = vmatpush3.bf16.msra.mxu1 %v7376_v2  ;;  %6720 = vmatprep.subr.bf16.mxu0 %v7378_v5  ;;  %v7432_v2 = vld [vmem:[%s9411_s1 + $0x6e8] sm:$0xff]   ;;  %v7435_v5 = vld [vmem:[%s9411_s1 + $0x670] sm:$0xff]  }
  0xa6   : > { %6742 = vmatprep.subr.bf16.mxu1 %v7379_v7  ;;  %v7437_v7 = vld [vmem:[%s9411_s1 + $0x630] sm:$0xff]  }
  0xa7   : > { %4994 = vmatmul.mubr.bf16.vlgmr.msra.gmra.mrb[16].mxu0 %v1308_v63  ;;  %v7429_v63 = vld [vmem:[%s9411_s1 + $0x620] sm:$0xff]  }
  0xa8   : > { %5034 = vmatmul.mubr.bf16.vlgmr.msra.gmra.mrb[16].mxu1 %v1315_v4  ;;  %6721 = vmatpush3.bf16.msra.mxu0 %v7380_v8  ;;  %v7434_v4 = vld [vmem:[%s9411_s1 + $0x6a8] sm:$0xff]   ;;  %v7438_v8 = vld [vmem:[%s9411_s1 + $0x6b0] sm:$0xff]  }
  0xa9   : > { %6743 = vmatpush3.bf16.msra.mxu1 %v7381_v9  ;;  %6722 = vmatprep.subr.bf16.mxu0 %v7382_v10  ;;  %v7439_v9 = vld [vmem:[%s9411_s1 + $0x678] sm:$0xff]  }
  0xaa   : > { %6744 = vmatprep.subr.bf16.mxu1 %v7383_v11  ;;  %5073 = vmatprep.mubr.bf16.mxu0 %v1333_v42  ;;  %v7440_v10 = vld [vmem:[%s9411_s1 + $0x6f8] sm:$0xff]   ;;  %v176_v11 = vld [vmem:[%s7878_s27 + $0x30] sm:$0xff]  ;;  %v7466_v42 = vld [vmem:[%s9411_s1 + $0x728] sm:$0xff]  }
  0xab   : > { %5113 = vmatprep.mubr.bf16.mxu1 %v1334_v45  ;;  %v5984_v45 = vld [vmem:[%s9412_s2] ss:$0 sm:$0xff] }
  0xac   : > { %6723 = vmatpush3.bf16.msra.mxu0 %v7384_v12  ;;  %v7441_v12 = vld [vmem:[%s9411_s1 + $0x638] sm:$0xff]  }
  0xad   : > { %6745 = vmatpush3.bf16.msra.mxu1 %v7385_v13  ;;  %6724 = vmatprep.subr.bf16.mxu0 %v7386_v14  ;;  %v1342_v13 = vrot.slane %v176_v11, %v7893_v41  ;;  %v1335_v14 = vcombine.high %v176_v11, %v176_v11  ;;  %v7481_v11 = vld [vmem:[%s9411_s1 + $0x848] sm:$0xff]  }
  0xae   : > { %6746 = vmatprep.subr.bf16.mxu1 %v7387_v15  ;;  %v7442_v15 = vld [vmem:[%s9411_s1 + $0x6b8] sm:$0xff]  }
  0xb0   : > { %6725 = vmatpush3.bf16.msra.mxu0 %v7388_v16  ;;  %v1350_v16 = vcombine.high %v1342_v13, %v1342_v13 }
  0xb1   : > { %6747 = vmatpush3.bf16.msra.mxu1 %v7389_v17  ;;  %6726 = vmatprep.subr.bf16.mxu0 %v7390_v18  ;;  %v1349_v17 = vrot.slane %v1335_v14, %v7893_v41  ;;  %v7444_v18 = vld [vmem:[%s9411_s1 + $0x740] sm:$0xff]   ;;  %v7484_v14 = vld [vmem:[%s9411_s1 + $0x888] sm:$0xff]  }
  0xb2   : > { %6748 = vmatprep.subr.bf16.mxu1 %v7391_v19  ;;  %v7445_v19 = vld [vmem:[%s9411_s1 + $0x7c0] sm:$0xff]  }
  0xb4   : > { %6727 = vmatpush3.bf16.msra.mxu0 %v7392_v20  ;;  %v1351_v20 = vcombine.high %v1349_v17, %v1349_v17 }
  0xb5   : > { %6749 = vmatpush3.bf16.msra.mxu1 %v7393_v21  ;;  %6728 = vmatprep.subr.bf16.mxu0 %v7394_v22  ;;  %v7446_v21 = vld [vmem:[%s9411_s1 + $0x700] sm:$0xff]  }
  0xb6   : > { %6750 = vmatprep.subr.bf16.mxu1 %v7395_v23  ;;  %v7447_v22 = vld [vmem:[%s9411_s1 + $0x780] sm:$0xff]   ;;  %v7448_v23 = vld [vmem:[%s9411_s1 + $0x748] sm:$0xff]  }
  0xb8   : > { %6729 = vmatpush3.bf16.msra.mxu0 %v7396_v24  ;;  %v7449_v24 = vld [vmem:[%s9411_s1 + $0x7c8] sm:$0xff]  }
  0xb9   : > { %6751 = vmatpush3.bf16.msra.mxu1 %v7397_v25  ;;  %6730 = vmatprep.subr.bf16.mxu0 %v7398_v26  ;;  %v7450_v25 = vld [vmem:[%s9411_s1 + $0x708] sm:$0xff]  }
  0xba   : > { %6752 = vmatprep.subr.bf16.mxu1 %v7399_v27  ;;  %v7451_v26 = vld [vmem:[%s9411_s1 + $0x788] sm:$0xff]   ;;  %v7452_v27 = vld [vmem:[%s9411_s1 + $0x750] sm:$0xff]  }
  0xbc   : > { %6731 = vmatpush3.bf16.msra.mxu0 %v7400_v28  ;;  %v7453_v28 = vld [vmem:[%s9411_s1 + $0x7d0] sm:$0xff]  }
  0xbd   : > { %6753 = vmatpush3.bf16.msra.mxu1 %v7401_v29  ;;  %6732 = vmatprep.subr.bf16.mxu0 %v7402_v30  ;;  %v7454_v29 = vld [vmem:[%s9411_s1 + $0x710] sm:$0xff]  }
  0xbe   : > { %6754 = vmatprep.subr.bf16.mxu1 %v7403_v31  ;;  %v7455_v30 = vld [vmem:[%s9411_s1 + $0x790] sm:$0xff]   ;;  %v7456_v31 = vld [vmem:[%s9411_s1 + $0x758] sm:$0xff]  }
  0xc0   : > { %6733 = vmatpush3.bf16.msra.mxu0 %v7404_v32  ;;  %v7457_v32 = vld [vmem:[%s9411_s1 + $0x7d8] sm:$0xff]  }
  0xc1   : > { %6755 = vmatpush3.bf16.msra.mxu1 %v7405_v33  ;;  %6734 = vmatprep.subr.bf16.mxu0 %v7406_v34  ;;  %v7458_v33 = vld [vmem:[%s9411_s1 + $0x718] sm:$0xff]  }
  0xc2   : > { %6756 = vmatprep.subr.bf16.mxu1 %v7407_v36  ;;  %v7459_v34 = vld [vmem:[%s9411_s1 + $0x798] sm:$0xff]   ;;  %v7461_v36 = vld [vmem:[%s9411_s1 + $0x7e0] sm:$0xff]  }
  0xc4   : > { %6735 = vmatpush3.bf16.msra.mxu0 %v7408_v39  ;;  %v7464_v39 = vld [vmem:[%s9411_s1 + $0x768] sm:$0xff]  }
  0xc5   : > { %6757 = vmatpush3.bf16.msra.mxu1 %v7409_v40  ;;  %6764 = vmatprep.subr.bf16.mxu0 %v7411_v44  ;;  %v7465_v40 = vld [vmem:[%s9411_s1 + $0x7e8] sm:$0xff]   ;;  %v7468_v44 = vld [vmem:[%s9411_s1 + $0x770] sm:$0xff]  }
  0xc6   : > { %6786 = vmatprep.subr.bf16.mxu1 %v7412_v46  ;;  %v7469_v46 = vld [vmem:[%s9411_s1 + $0x7f0] sm:$0xff]  }
  0xc7   : > { %5074 = vmatmul.mubr.bf16.vlgmr.msra.gmra.mrb[20].mxu0 %v1325_v37  ;;  %v7462_v37 = vld [vmem:[%s9411_s1 + $0x720] sm:$0xff]  }
  0xc8   : > { %5114 = vmatmul.mubr.bf16.vlgmr.msra.gmra.mrb[20].mxu1 %v1332_v43  ;;  %6765 = vmatpush3.bf16.msra.mxu0 %v7413_v47  ;;  %v7467_v43 = vld [vmem:[%s9411_s1 + $0x7a8] sm:$0xff]  }
  0xc9   : > { %6787 = vmatpush3.bf16.msra.mxu1 %v7414_v48  ;;  %6766 = vmatprep.subr.bf16.mxu0 %v7415_v49  ;;  %v7470_v49 = vld [vmem:[%s9411_s1 + $0x730] sm:$0xff]  }
  0xca   : > { %6788 = vmatprep.subr.bf16.mxu1 %v7416_v50  ;;  %5153 = vmatprep.mubr.bf16.mxu0 %v1350_v16  ;;  %v7471_v50 = vld [vmem:[%s9411_s1 + $0x7b0] sm:$0xff]  }
  0xcb   : > { %5193 = vmatprep.mubr.bf16.mxu1 %v1351_v20  ;;  %v7486_v16 = vld [vmem:[%s9411_s1 + $0x8d0] sm:$0xff]   ;;  %v7490_v20 = vld [vmem:[%s9411_s1 + $0x8d8] sm:$0xff]  }
  0xcc   : > { %6767 = vmatpush3.bf16.msra.mxu0 %v7417_v51 }
  0xcd   : > { %6789 = vmatpush3.bf16.msra.mxu1 %v7418_v52  ;;  %6768 = vmatprep.subr.bf16.mxu0 %v7419_v53 }
  0xce   : > { %6790 = vmatprep.subr.bf16.mxu1 %v7420_v54 }
  0xd0   : > { %6769 = vmatpush3.bf16.msra.mxu0 %v7421_v55 }
  0xd1   : > { %6791 = vmatpush3.bf16.msra.mxu1 %v7422_v56  ;;  %6770 = vmatprep.subr.bf16.mxu0 %v7423_v57 }
  0xd2   : > { %6792 = vmatprep.subr.bf16.mxu1 %v7424_v58 }
  0xd4   : > { %6771 = vmatpush3.bf16.msra.mxu0 %v7425_v59  ;;  %v7472_v59 = vld [vmem:[%s9411_s1 + $0x778] sm:$0xff]  }
  0xd5   : > { %6793 = vmatpush3.bf16.msra.mxu1 %v7426_v60  ;;  %6772 = vmatprep.subr.bf16.mxu0 %v7427_v61  ;;  %v7473_v60 = vld [vmem:[%s9411_s1 + $0x7f8] sm:$0xff]  }
  0xd6   : > { %6794 = vmatprep.subr.bf16.mxu1 %v7428_v62  ;;  %v7474_v62 = vld [vmem:[%s9411_s1 + $0x738] sm:$0xff]  }
  0xd8   : > { %6773 = vmatpush3.bf16.msra.mxu0 %v7429_v63  ;;  %v177_v63 = vld [vmem:[%s7878_s27 + $0x38] sm:$0xff] }
  0xd9   : > { %6795 = vmatpush3.bf16.msra.mxu1 %v7430_v0  ;;  %6774 = vmatprep.subr.bf16.mxu0 %v7431_v1  ;;  %v7475_v0 = vld [vmem:[%s9411_s1 + $0x7b8] sm:$0xff]   ;;  %v1359_v1 = vrot.slane %v177_v63, %v7893_v41 }
  0xda   : > { %6796 = vmatprep.subr.bf16.mxu1 %v7432_v2  ;;  %v1352_v2 = vcombine.high %v177_v63, %v177_v63  ;;  %v7515_v63 = vld [vmem:[%s9411_s1 + $0x9c8] sm:$0xff]  }
  0xdc   : > { %6775 = vmatpush3.bf16.msra.mxu0 %v7433_v3 }
  0xdd   : > { %6797 = vmatpush3.bf16.msra.mxu1 %v7434_v4  ;;  %6776 = vmatprep.subr.bf16.mxu0 %v7435_v5  ;;  %v7477_v4 = vld [vmem:[%s9411_s1 + $0x840] sm:$0xff]   ;;  %v1367_v5 = vcombine.high %v1359_v1, %v1359_v1 }
  0xde   : > { %6798 = vmatprep.subr.bf16.mxu1 %v7436_v6  ;;  %v1366_v6 = vrot.slane %v1352_v2, %v7893_v41  ;;  %v7518_v2 = vld [vmem:[%s9411_s1 + $0x950] sm:$0xff]  }
  0xe0   : > { %6777 = vmatpush3.bf16.msra.mxu0 %v7437_v7  ;;  %v7478_v7 = vld [vmem:[%s9411_s1 + $0x8c0] sm:$0xff]  }
  0xe1   : > { %6799 = vmatpush3.bf16.msra.mxu1 %v7438_v8  ;;  %6778 = vmatprep.subr.bf16.mxu0 %v7439_v9  ;;  %v7479_v8 = vld [vmem:[%s9411_s1 + $0x800] sm:$0xff]   ;;  %v1368_v9 = vcombine.high %v1366_v6, %v1366_v6 }
  0xe2   : > { %6800 = vmatprep.subr.bf16.mxu1 %v7440_v10  ;;  %v7480_v10 = vld [vmem:[%s9411_s1 + $0x880] sm:$0xff]  }
  0xe4   : > { %6779 = vmatpush3.bf16.msra.mxu0 %v7441_v12  ;;  %v7482_v12 = vld [vmem:[%s9411_s1 + $0x8c8] sm:$0xff]  }
  0xe5   : > { %6801 = vmatpush3.bf16.msra.mxu1 %v7442_v15  ;;  %6808 = vmatprep.subr.bf16.mxu0 %v7444_v18  ;;  %v7485_v15 = vld [vmem:[%s9411_s1 + $0x850] sm:$0xff]  }
  0xe6   : > { %6830 = vmatprep.subr.bf16.mxu1 %v7445_v19  ;;  %v7488_v18 = vld [vmem:[%s9411_s1 + $0x890] sm:$0xff]   ;;  %v7489_v19 = vld [vmem:[%s9411_s1 + $0x858] sm:$0xff]  }
  0xe7   : > { %5154 = vmatmul.mubr.bf16.vlgmr.msra.gmra.mrb[24].mxu0 %v1342_v13  ;;  %v7483_v13 = vld [vmem:[%s9411_s1 + $0x808] sm:$0xff]  }
  0xe8   : > { %5194 = vmatmul.mubr.bf16.vlgmr.msra.gmra.mrb[24].mxu1 %v1349_v17  ;;  %6809 = vmatpush3.bf16.msra.mxu0 %v7446_v21  ;;  %v7487_v17 = vld [vmem:[%s9411_s1 + $0x810] sm:$0xff]   ;;  %v7491_v21 = vld [vmem:[%s9411_s1 + $0x818] sm:$0xff]  }
  0xe9   : > { %6831 = vmatpush3.bf16.msra.mxu1 %v7447_v22  ;;  %6810 = vmatprep.subr.bf16.mxu0 %v7448_v23  ;;  %v7492_v22 = vld [vmem:[%s9411_s1 + $0x898] sm:$0xff]   ;;  %v7493_v23 = vld [vmem:[%s9411_s1 + $0x860] sm:$0xff]  }
  0xea   : > { %6832 = vmatprep.subr.bf16.mxu1 %v7449_v24  ;;  %5233 = vmatprep.mubr.bf16.mxu0 %v1367_v5  ;;  %v7494_v24 = vld [vmem:[%s9411_s1 + $0x8e0] sm:$0xff]   ;;  %v7521_v5 = vld [vmem:[%s9411_s1 + $0x990] sm:$0xff]  }
  0xeb   : > { %5273 = vmatprep.mubr.bf16.mxu1 %v1368_v9  ;;  %v7525_v9 = vld [vmem:[%s9411_s1 + $0x998] sm:$0xff]  }
  0xec   : > { %6811 = vmatpush3.bf16.msra.mxu0 %v7450_v25  ;;  %v7495_v25 = vld [vmem:[%s9411_s1 + $0x820] sm:$0xff]  }
  0xed   : > { %6833 = vmatpush3.bf16.msra.mxu1 %v7451_v26  ;;  %6812 = vmatprep.subr.bf16.mxu0 %v7452_v27  ;;  %v7496_v26 = vld [vmem:[%s9411_s1 + $0x8a0] sm:$0xff]   ;;  %v7497_v27 = vld [vmem:[%s9411_s1 + $0x868] sm:$0xff]  }
  0xee   : > { %6834 = vmatprep.subr.bf16.mxu1 %v7453_v28  ;;  %v7498_v28 = vld [vmem:[%s9411_s1 + $0x8e8] sm:$0xff]  }
  0xf0   : > { %6813 = vmatpush3.bf16.msra.mxu0 %v7454_v29  ;;  %v7499_v29 = vld [vmem:[%s9411_s1 + $0x828] sm:$0xff]  }
  0xf1   : > { %6835 = vmatpush3.bf16.msra.mxu1 %v7455_v30  ;;  %6814 = vmatprep.subr.bf16.mxu0 %v7456_v31  ;;  %v7500_v30 = vld [vmem:[%s9411_s1 + $0x8a8] sm:$0xff]   ;;  %v7501_v31 = vld [vmem:[%s9411_s1 + $0x870] sm:$0xff]  }
  0xf2   : > { %6836 = vmatprep.subr.bf16.mxu1 %v7457_v32  ;;  %v7502_v32 = vld [vmem:[%s9411_s1 + $0x8f0] sm:$0xff]  }
  0xf4   : > { %6815 = vmatpush3.bf16.msra.mxu0 %v7458_v33 }
  0xf5   : > { %6837 = vmatpush3.bf16.msra.mxu1 %v7459_v34  ;;  %6816 = vmatprep.subr.bf16.mxu0 %v7460_v35  ;;  %v7503_v35 = vld [vmem:[%s9411_s1 + $0x830] sm:$0xff]  }
  0xf6   : > { %6838 = vmatprep.subr.bf16.mxu1 %v7461_v36  ;;  %v7504_v36 = vld [vmem:[%s9411_s1 + $0x8b0] sm:$0xff]  }
  0xf8   : > { %6817 = vmatpush3.bf16.msra.mxu0 %v7462_v37 }
  0xf9   : > { %6839 = vmatpush3.bf16.msra.mxu1 %v7463_v38  ;;  %6818 = vmatprep.subr.bf16.mxu0 %v7464_v39 }
  0xfa   : > { %6840 = vmatprep.subr.bf16.mxu1 %v7465_v40  ;;  %v6516_v47 = vpop.f32.mrb[0].mxu0 }
  0xfb   : > { %v6538_v48 = vpop.f32.mrb[0].mxu1  ;;  %v6517_v51 = vpop.f32.mrb[1].mxu0 }
  0xfc   : > { %v6539_v52 = vpop.f32.mrb[1].mxu1  ;;  %v6518_v53 = vadd.f32 %v6517_v51, %v6516_v47  ;;  %v6519_v55 = vpop.f32.mrb[2].mxu0  ;;  %6819 = vmatpush3.bf16.msra.mxu0 %v7466_v42  ;;  %v7506_v47 = vld [vmem:[%s9411_s1 + $0x8f8] sm:$0xff]   ;;  %v178_v51 = vld [vmem:[%s7878_s27 + $0x40] sm:$0xff] }
  0xfd   : > { %v6540_v54 = vadd.f32 %v6539_v52, %v6538_v48  ;;  %v6541_v56 = vpop.f32.mrb[2].mxu1  ;;  %6841 = vmatpush3.bf16.msra.mxu1 %v7467_v43  ;;  %v6520_v57 = vpop.f32.mrb[3].mxu0  ;;  %6820 = vmatprep.subr.bf16.mxu0 %v7468_v44  ;;  %v7510_v55 = vld [vmem:[%s9411_s1 + $0x940] sm:$0xff]  }
  0xfe   : > { %v6542_v58 = vpop.f32.mrb[3].mxu1  ;;  %6842 = vmatprep.subr.bf16.mxu1 %v7469_v46  ;;  %v4676_v61 = vadd.f32 %v6518_v53, %v5984_v45  ;;  %v7505_v46 = vld [vmem:[%s9411_s1 + $0x878] sm:$0xff]   ;;  %v1376_v53 = vrot.slane %v178_v51, %v7893_v41  ;;  %v7511_v56 = vld [vmem:[%s9411_s1 + $0x9c0] sm:$0xff]  }
 0x100   : > { %v8586_v3 = vadd.f32 %v6540_v54, %v4676_v61  ;;  %6821 = vmatpush3.bf16.msra.mxu0 %v7470_v49  ;;  %v7507_v49 = vld [vmem:[%s9411_s1 + $0x838] sm:$0xff]   ;;  %v1369_v54 = vcombine.high %v178_v51, %v178_v51  ;;  %v1384_v57 = vcombine.high %v1376_v53, %v1376_v53  ;;  %v7549_v51 = vld [vmem:[%s9411_s1 + $0xa08] sm:$0xff]  }
 0x101   : > { %6843 = vmatpush3.bf16.msra.mxu1 %v7471_v50  ;;  %6822 = vmatprep.subr.bf16.mxu0 %v7472_v59  ;;  %v7508_v50 = vld [vmem:[%s9411_s1 + $0x8b8] sm:$0xff]   ;;  %v7512_v59 = vld [vmem:[%s9411_s1 + $0x900] sm:$0xff]  }
 0x102   : > { %6844 = vmatprep.subr.bf16.mxu1 %v7473_v60  ;;  %v1383_v58 = vrot.slane %v1369_v54, %v7893_v41  ;;  %v7513_v60 = vld [vmem:[%s9411_s1 + $0x980] sm:$0xff]   ;;  %v7552_v54 = vld [vmem:[%s9411_s1 + $0xad0] sm:$0xff]  }
 0x104   : > { %6823 = vmatpush3.bf16.msra.mxu0 %v7474_v62  ;;  %v1385_v61 = vcombine.high %v1383_v58, %v1383_v58  ;;  %v7514_v62 = vld [vmem:[%s9411_s1 + $0x948] sm:$0xff]  }
 0x105   : > { %6845 = vmatpush3.bf16.msra.mxu1 %v7475_v0  ;;  %6852 = vmatprep.subr.bf16.mxu0 %v7477_v4  ;;  %v7516_v0 = vld [vmem:[%s9411_s1 + $0x908] sm:$0xff]   ;;  %v7520_v4 = vld [vmem:[%s9411_s1 + $0x910] sm:$0xff]  }
 0x106   : > { %6874 = vmatprep.subr.bf16.mxu1 %v7478_v7  ;;  %v7523_v7 = vld [vmem:[%s9411_s1 + $0x9d8] sm:$0xff]  }
 0x107   : > { %5234 = vmatmul.mubr.bf16.vlgmr.msra.gmra.mrb[28].mxu0 %v1359_v1  ;;  %v7517_v1 = vld [vmem:[%s9411_s1 + $0x988] sm:$0xff]  }
 0x108   : > { %5274 = vmatmul.mubr.bf16.vlgmr.msra.gmra.mrb[28].mxu1 %v1366_v6  ;;  %6853 = vmatpush3.bf16.msra.mxu0 %v7479_v8  ;;  %v7522_v6 = vld [vmem:[%s9411_s1 + $0x958] sm:$0xff]  }
 0x109   : > { %6875 = vmatpush3.bf16.msra.mxu1 %v7480_v10  ;;  %6854 = vmatprep.subr.bf16.mxu0 %v7481_v11  ;;  %v7524_v8 = vld [vmem:[%s9411_s1 + $0x918] sm:$0xff]   ;;  %v7526_v10 = vld [vmem:[%s9411_s1 + $0x960] sm:$0xff]  }
 0x10a   : > { %6876 = vmatprep.subr.bf16.mxu1 %v7482_v12  ;;  %5313 = vmatprep.mubr.bf16.mxu0 %v1384_v57  ;;  %v7527_v11 = vld [vmem:[%s9411_s1 + $0x9e0] sm:$0xff]   ;;  %v7555_v57 = vld [vmem:[%s9411_s1 + $0xa58] sm:$0xff]  }
 0x10b   : > { %5353 = vmatprep.mubr.bf16.mxu1 %v1385_v61  ;;  %v7528_v12 = vld [vmem:[%s9411_s1 + $0x920] sm:$0xff]  }
 0x10c   : > { %6855 = vmatpush3.bf16.msra.mxu0 %v7483_v13  ;;  %v7529_v13 = vld [vmem:[%s9411_s1 + $0x9a0] sm:$0xff]  }
 0x10d   : > { %6877 = vmatpush3.bf16.msra.mxu1 %v7484_v14  ;;  %6856 = vmatprep.subr.bf16.mxu0 %v7485_v15  ;;  %v7530_v14 = vld [vmem:[%s9411_s1 + $0x968] sm:$0xff]   ;;  %v7559_v61 = vld [vmem:[%s9411_s1 + $0xa60] sm:$0xff]  }
 0x10e   : > { %6878 = vmatprep.subr.bf16.mxu1 %v7486_v16  ;;  %v7531_v15 = vld [vmem:[%s9411_s1 + $0x9e8] sm:$0xff]  }
 0x10f   : > { %v7532_v16 = vld [vmem:[%s9411_s1 + $0x928] sm:$0xff]  }
 0x110   : > { %6857 = vmatpush3.bf16.msra.mxu0 %v7487_v17  ;;  %v7533_v17 = vld [vmem:[%s9411_s1 + $0x9a8] sm:$0xff]  }
 0x111   : > { %6879 = vmatpush3.bf16.msra.mxu1 %v7488_v18  ;;  %6858 = vmatprep.subr.bf16.mxu0 %v7489_v19  ;;  %v7534_v18 = vld [vmem:[%s9411_s1 + $0x970] sm:$0xff]  }
 0x112   : > { %6880 = vmatprep.subr.bf16.mxu1 %v7490_v20  ;;  %v7535_v19 = vld [vmem:[%s9411_s1 + $0x9f0] sm:$0xff]  }
 0x114   : > { %6859 = vmatpush3.bf16.msra.mxu0 %v7491_v21 }
 0x115   : > { %6881 = vmatpush3.bf16.msra.mxu1 %v7492_v22  ;;  %6860 = vmatprep.subr.bf16.mxu0 %v7493_v23  ;;  %v7536_v22 = vld [vmem:[%s9411_s1 + $0x930] sm:$0xff]  }
 0x116   : > { %6882 = vmatprep.subr.bf16.mxu1 %v7494_v24  ;;  %v7537_v23 = vld [vmem:[%s9411_s1 + $0x9b0] sm:$0xff]  }
 0x118   : > { %6861 = vmatpush3.bf16.msra.mxu0 %v7495_v25 }
 0x119   : > { %6883 = vmatpush3.bf16.msra.mxu1 %v7496_v26  ;;  %6862 = vmatprep.subr.bf16.mxu0 %v7497_v27 }
 0x11a   : > { %6884 = vmatprep.subr.bf16.mxu1 %v7498_v28  ;;  %v6560_v33 = vpop.f32.mrb[4].mxu0 }
 0x11b   : > { %v6582_v34 = vpop.f32.mrb[4].mxu1  ;;  %v6561_v37 = vpop.f32.mrb[5].mxu0 }
 0x11c   : > { %v6583_v38 = vpop.f32.mrb[5].mxu1  ;;  %v6562_v39 = vadd.f32 %v6561_v37, %v6560_v33  ;;  %v6563_v42 = vpop.f32.mrb[6].mxu0  ;;  %6863 = vmatpush3.bf16.msra.mxu0 %v7499_v29  ;;  %v7539_v33 = vld [vmem:[%s9411_s1 + $0x9f8] sm:$0xff]  }
 0x11d   : > { %v6584_v40 = vadd.f32 %v6583_v38, %v6582_v34  ;;  %v6585_v43 = vpop.f32.mrb[6].mxu1  ;;  %6885 = vmatpush3.bf16.msra.mxu1 %v7500_v30  ;;  %v6564_v44 = vpop.f32.mrb[7].mxu0  ;;  %6864 = vmatprep.subr.bf16.mxu0 %v7501_v31  ;;  %v7541_v37 = vld [vmem:[%s9411_s1 + $0x9b8] sm:$0xff]   ;;  %v179_v38 = vld [vmem:[%s7878_s27 + $0x48] sm:$0xff]  ;;  %v7543_v42 = vld [vmem:[%s9411_s1 + $0xa40] sm:$0xff]  }
 0x11e   : > { %v6586_v45 = vpop.f32.mrb[7].mxu1  ;;  %6886 = vmatprep.subr.bf16.mxu1 %v7502_v32  ;;  %v4756_v48 = vadd.f32 %v6562_v39, %v8586_v3  ;;  %v7519_v3 = vld [vmem:[%s9411_s1 + $0x9d0] sm:$0xff]   ;;  %v7538_v32 = vld [vmem:[%s9411_s1 + $0x978] sm:$0xff]   ;;  %v1393_v39 = vrot.slane %v179_v38, %v7893_v41  ;;  %v7544_v43 = vld [vmem:[%s9411_s1 + $0xac0] sm:$0xff]  }
 0x120   : > { %v8687_v52 = vadd.f32 %v6584_v40, %v4756_v48  ;;  %6865 = vmatpush3.bf16.msra.mxu0 %v7503_v35  ;;  %v7540_v35 = vld [vmem:[%s9411_s1 + $0x938] sm:$0xff]   ;;  %v1386_v40 = vcombine.high %v179_v38, %v179_v38  ;;  %v1401_v44 = vcombine.high %v1393_v39, %v1393_v39  ;;  %v7583_v38 = vld [vmem:[%s9411_s1 + $0xb88] sm:$0xff]  }
 0x121   : > { %6887 = vmatpush3.bf16.msra.mxu1 %v7504_v36  ;;  %6866 = vmatprep.subr.bf16.mxu0 %v7505_v46  ;;  %v7545_v46 = vld [vmem:[%s9411_s1 + $0xa00] sm:$0xff]  }
 0x122   : > { %6888 = vmatprep.subr.bf16.mxu1 %v7506_v47  ;;  %v1400_v45 = vrot.slane %v1386_v40, %v7893_v41  ;;  %v7546_v47 = vld [vmem:[%s9411_s1 + $0xa80] sm:$0xff]   ;;  %v7585_v40 = vld [vmem:[%s9411_s1 + $0xbd0] sm:$0xff]  }
 0x124   : > { %6867 = vmatpush3.bf16.msra.mxu0 %v7507_v49  ;;  %v1402_v48 = vcombine.high %v1400_v45, %v1400_v45  ;;  %v7547_v49 = vld [vmem:[%s9411_s1 + $0xa48] sm:$0xff]  }
 0x125   : > { %6889 = vmatpush3.bf16.msra.mxu1 %v7508_v50  ;;  %6896 = vmatprep.subr.bf16.mxu0 %v7510_v55  ;;  %v7548_v50 = vld [vmem:[%s9411_s1 + $0xac8] sm:$0xff]   ;;  %v7553_v55 = vld [vmem:[%s9411_s1 + $0xa10] sm:$0xff]  }
 0x126   : > { %6918 = vmatprep.subr.bf16.mxu1 %v7511_v56  ;;  %v7554_v56 = vld [vmem:[%s9411_s1 + $0xa90] sm:$0xff]  }
 0x127   : > { %5314 = vmatmul.mubr.bf16.vlgmr.msra.gmra.mrb[32].mxu0 %v1376_v53  ;;  %v7551_v53 = vld [vmem:[%s9411_s1 + $0xa50] sm:$0xff]  }
 0x128   : > { %5354 = vmatmul.mubr.bf16.vlgmr.msra.gmra.mrb[32].mxu1 %v1383_v58  ;;  %6897 = vmatpush3.bf16.msra.mxu0 %v7512_v59  ;;  %v7556_v58 = vld [vmem:[%s9411_s1 + $0xad8] sm:$0xff]  }
 0x129   : > { %6919 = vmatpush3.bf16.msra.mxu1 %v7513_v60  ;;  %6898 = vmatprep.subr.bf16.mxu0 %v7514_v62  ;;  %v7557_v59 = vld [vmem:[%s9411_s1 + $0xa18] sm:$0xff]   ;;  %v7560_v62 = vld [vmem:[%s9411_s1 + $0xae0] sm:$0xff]  }
 0x12a   : > { %6920 = vmatprep.subr.bf16.mxu1 %v7515_v63  ;;  %5393 = vmatprep.mubr.bf16.mxu0 %v1401_v44  ;;  %v7558_v60 = vld [vmem:[%s9411_s1 + $0xa98] sm:$0xff]   ;;  %v7561_v63 = vld [vmem:[%s9411_s1 + $0xa20] sm:$0xff]  }
 0x12b   : > { %5433 = vmatprep.mubr.bf16.mxu1 %v1402_v48  ;;  %v7588_v44 = vld [vmem:[%s9411_s1 + $0xb58] sm:$0xff]   ;;  %v7592_v48 = vld [vmem:[%s9411_s1 + $0xb60] sm:$0xff]  }
 0x12c   : > { %6899 = vmatpush3.bf16.msra.mxu0 %v7516_v0  ;;  %v7562_v0 = vld [vmem:[%s9411_s1 + $0xaa0] sm:$0xff]  }
 0x12d   : > { %6921 = vmatpush3.bf16.msra.mxu1 %v7517_v1  ;;  %6900 = vmatprep.subr.bf16.mxu0 %v7518_v2  ;;  %v7563_v1 = vld [vmem:[%s9411_s1 + $0xa68] sm:$0xff]  }
 0x12e   : > { %6922 = vmatprep.subr.bf16.mxu1 %v7519_v3  ;;  %v7564_v2 = vld [vmem:[%s9411_s1 + $0xae8] sm:$0xff]  }
 0x12f   : > { %v7565_v3 = vld [vmem:[%s9411_s1 + $0xa28] sm:$0xff]  }
 0x130   : > { %6901 = vmatpush3.bf16.msra.mxu0 %v7520_v4  ;;  %v7566_v4 = vld [vmem:[%s9411_s1 + $0xaa8] sm:$0xff]  }
 0x131   : > { %6923 = vmatpush3.bf16.msra.mxu1 %v7521_v5  ;;  %6902 = vmatprep.subr.bf16.mxu0 %v7522_v6  ;;  %v7567_v5 = vld [vmem:[%s9411_s1 + $0xa70] sm:$0xff]  }
 0x132   : > { %6924 = vmatprep.subr.bf16.mxu1 %v7523_v7 }
 0x134   : > { %6903 = vmatpush3.bf16.msra.mxu0 %v7524_v8  ;;  %v7568_v8 = vld [vmem:[%s9411_s1 + $0xaf0] sm:$0xff]  }
 0x135   : > { %6925 = vmatpush3.bf16.msra.mxu1 %v7525_v9  ;;  %6904 = vmatprep.subr.bf16.mxu0 %v7526_v10  ;;  %v7569_v9 = vld [vmem:[%s9411_s1 + $0xa30] sm:$0xff]  }
 0x136   : > { %6926 = vmatprep.subr.bf16.mxu1 %v7527_v11 }
 0x138   : > { %6905 = vmatpush3.bf16.msra.mxu0 %v7528_v12 }
 0x139   : > { %6927 = vmatpush3.bf16.msra.mxu1 %v7529_v13  ;;  %6906 = vmatprep.subr.bf16.mxu0 %v7530_v14 }
 0x13a   : > { %6928 = vmatprep.subr.bf16.mxu1 %v7531_v15  ;;  %v6604_v20 = vpop.f32.mrb[8].mxu0 }
 0x13b   : > { %v6626_v21 = vpop.f32.mrb[8].mxu1  ;;  %v6605_v24 = vpop.f32.mrb[9].mxu0 }
 0x13c   : > { %v6627_v25 = vpop.f32.mrb[9].mxu1  ;;  %v6606_v26 = vadd.f32 %v6605_v24, %v6604_v20  ;;  %v6607_v28 = vpop.f32.mrb[10].mxu0  ;;  %6907 = vmatpush3.bf16.msra.mxu0 %v7532_v16  ;;  %v7574_v24 = vld [vmem:[%s9411_s1 + $0xab8] sm:$0xff]  }
 0x13d   : > { %v6628_v27 = vadd.f32 %v6627_v25, %v6626_v21  ;;  %v6629_v29 = vpop.f32.mrb[10].mxu1  ;;  %6929 = vmatpush3.bf16.msra.mxu1 %v7533_v17  ;;  %v6608_v30 = vpop.f32.mrb[11].mxu0  ;;  %6908 = vmatprep.subr.bf16.mxu0 %v7534_v18  ;;  %v7570_v18 = vld [vmem:[%s9411_s1 + $0xab0] sm:$0xff]   ;;  %v7572_v21 = vld [vmem:[%s9411_s1 + $0xaf8] sm:$0xff]   ;;  %v7576_v28 = vld [vmem:[%s9411_s1 + $0xb40] sm:$0xff]  }
 0x13e   : > { %v6630_v31 = vpop.f32.mrb[11].mxu1  ;;  %6930 = vmatprep.subr.bf16.mxu1 %v7535_v19  ;;  %v4836_v34 = vadd.f32 %v6606_v26, %v8687_v52  ;;  %v7550_v52 = vld [vmem:[%s9411_s1 + $0xa88] sm:$0xff]   ;;  %v7571_v19 = vld [vmem:[%s9411_s1 + $0xa78] sm:$0xff]   ;;  %v180_v25 = vld [vmem:[%s7878_s27 + $0x50] sm:$0xff] }
 0x13f   : > { %v1410_v26 = vrot.slane %v180_v25, %v7893_v41  ;;  %v7577_v29 = vld [vmem:[%s9411_s1 + $0xbc0] sm:$0xff]  }
 0x140   : > { %v8785_v36 = vadd.f32 %v6628_v27, %v4836_v34  ;;  %6909 = vmatpush3.bf16.msra.mxu0 %v7536_v22  ;;  %v1403_v27 = vcombine.high %v180_v25, %v180_v25  ;;  %v7616_v25 = vld [vmem:[%s9411_s1 + $0xc88] sm:$0xff]  }
 0x141   : > { %6931 = vmatpush3.bf16.msra.mxu1 %v7537_v23  ;;  %6910 = vmatprep.subr.bf16.mxu0 %v7538_v32  ;;  %v7573_v23 = vld [vmem:[%s9411_s1 + $0xa38] sm:$0xff]   ;;  %v1418_v30 = vcombine.high %v1410_v26, %v1410_v26  ;;  %v7578_v32 = vld [vmem:[%s9411_s1 + $0xb00] sm:$0xff]  }
 0x142   : > { %6932 = vmatprep.subr.bf16.mxu1 %v7539_v33  ;;  %v1417_v31 = vrot.slane %v1403_v27, %v7893_v41  ;;  %v7579_v33 = vld [vmem:[%s9411_s1 + $0xb80] sm:$0xff]   ;;  %v7618_v27 = vld [vmem:[%s9411_s1 + $0xcd0] sm:$0xff]  }
 0x144   : > { %6911 = vmatpush3.bf16.msra.mxu0 %v7540_v35  ;;  %v1419_v34 = vcombine.high %v1417_v31, %v1417_v31  ;;  %v7580_v35 = vld [vmem:[%s9411_s1 + $0xb48] sm:$0xff]  }
 0x145   : > { %6933 = vmatpush3.bf16.msra.mxu1 %v7541_v37  ;;  %6940 = vmatprep.subr.bf16.mxu0 %v7543_v42  ;;  %v7582_v37 = vld [vmem:[%s9411_s1 + $0xb08] sm:$0xff]   ;;  %v7586_v42 = vld [vmem:[%s9411_s1 + $0xb10] sm:$0xff]  }
 0x146   : > { %6962 = vmatprep.subr.bf16.mxu1 %v7544_v43  ;;  %v7587_v43 = vld [vmem:[%s9411_s1 + $0xb90] sm:$0xff]  }
 0x147   : > { %5394 = vmatmul.mubr.bf16.vlgmr.msra.gmra.mrb[36].mxu0 %v1393_v39  ;;  %v7584_v39 = vld [vmem:[%s9411_s1 + $0xb50] sm:$0xff]  }
 0x148   : > { %5434 = vmatmul.mubr.bf16.vlgmr.msra.gmra.mrb[36].mxu1 %v1400_v45  ;;  %6941 = vmatpush3.bf16.msra.mxu0 %v7545_v46  ;;  %v7589_v45 = vld [vmem:[%s9411_s1 + $0xbd8] sm:$0xff]  }
 0x149   : > { %6963 = vmatpush3.bf16.msra.mxu1 %v7546_v47  ;;  %6942 = vmatprep.subr.bf16.mxu0 %v7547_v49  ;;  %v7590_v46 = vld [vmem:[%s9411_s1 + $0xb18] sm:$0xff]   ;;  %v7593_v49 = vld [vmem:[%s9411_s1 + $0xbe0] sm:$0xff]  }
 0x14a   : > { %6964 = vmatprep.subr.bf16.mxu1 %v7548_v50  ;;  %5473 = vmatprep.mubr.bf16.mxu0 %v1418_v30  ;;  %v7591_v47 = vld [vmem:[%s9411_s1 + $0xb98] sm:$0xff]   ;;  %v7594_v50 = vld [vmem:[%s9411_s1 + $0xb20] sm:$0xff]  }
 0x14b   : > { %5513 = vmatprep.mubr.bf16.mxu1 %v1419_v34  ;;  %v7621_v30 = vld [vmem:[%s9411_s1 + $0xc58] sm:$0xff]   ;;  %v7625_v34 = vld [vmem:[%s9411_s1 + $0xc60] sm:$0xff]  }
 0x14c   : > { %6943 = vmatpush3.bf16.msra.mxu0 %v7549_v51  ;;  %v7595_v51 = vld [vmem:[%s9411_s1 + $0xba0] sm:$0xff]  }
 0x14d   : > { %6965 = vmatpush3.bf16.msra.mxu1 %v7550_v52  ;;  %6944 = vmatprep.subr.bf16.mxu0 %v7551_v53  ;;  %v7596_v52 = vld [vmem:[%s9411_s1 + $0xb68] sm:$0xff]  }
 0x14e   : > { %6966 = vmatprep.subr.bf16.mxu1 %v7552_v54  ;;  %v7597_v53 = vld [vmem:[%s9411_s1 + $0xbe8] sm:$0xff]  }
 0x14f   : > { %v7598_v54 = vld [vmem:[%s9411_s1 + $0xb28] sm:$0xff]  }
 0x150   : > { %6945 = vmatpush3.bf16.msra.mxu0 %v7553_v55  ;;  %v7599_v55 = vld [vmem:[%s9411_s1 + $0xba8] sm:$0xff]  }
 0x151   : > { %6967 = vmatpush3.bf16.msra.mxu1 %v7554_v56  ;;  %6946 = vmatprep.subr.bf16.mxu0 %v7555_v57 }
 0x152   : > { %6968 = vmatprep.subr.bf16.mxu1 %v7556_v58  ;;  %v7600_v58 = vld [vmem:[%s9411_s1 + $0xb70] sm:$0xff]  }
 0x154   : > { %6947 = vmatpush3.bf16.msra.mxu0 %v7557_v59  ;;  %v7601_v59 = vld [vmem:[%s9411_s1 + $0xbf0] sm:$0xff]  }
 0x155   : > { %6969 = vmatpush3.bf16.msra.mxu1 %v7558_v60  ;;  %6948 = vmatprep.subr.bf16.mxu0 %v7559_v61 }
 0x156   : > { %6970 = vmatprep.subr.bf16.mxu1 %v7560_v62 }
 0x158   : > { %6949 = vmatpush3.bf16.msra.mxu0 %v7561_v63 }
 0x159   : > { %6971 = vmatpush3.bf16.msra.mxu1 %v7562_v0  ;;  %6950 = vmatprep.subr.bf16.mxu0 %v7563_v1 }
 0x15a   : > { %v6648_v6 = vpop.f32.mrb[12].mxu0  ;;  %6972 = vmatprep.subr.bf16.mxu1 %v7564_v2 }
 0x15b   : > { %v6670_v7 = vpop.f32.mrb[12].mxu1  ;;  %v6649_v10 = vpop.f32.mrb[13].mxu0 }
 0x15c   : > { %v6671_v11 = vpop.f32.mrb[13].mxu1  ;;  %v6650_v12 = vadd.f32 %v6649_v10, %v6648_v6  ;;  %v6651_v14 = vpop.f32.mrb[14].mxu0  ;;  %6951 = vmatpush3.bf16.msra.mxu0 %v7565_v3  ;;  %v7606_v10 = vld [vmem:[%s9411_s1 + $0xb38] sm:$0xff]  }
 0x15d   : > { %v6672_v13 = vadd.f32 %v6671_v11, %v6670_v7  ;;  %v6673_v15 = vpop.f32.mrb[14].mxu1  ;;  %6973 = vmatpush3.bf16.msra.mxu1 %v7566_v4  ;;  %v6652_v16 = vpop.f32.mrb[15].mxu0  ;;  %6952 = vmatprep.subr.bf16.mxu0 %v7567_v5  ;;  %v7602_v4 = vld [vmem:[%s9411_s1 + $0xb30] sm:$0xff]   ;;  %v7604_v7 = vld [vmem:[%s9411_s1 + $0xb78] sm:$0xff]  }
 0x15e   : > { %v6674_v17 = vpop.f32.mrb[15].mxu1  ;;  %v4916_v20 = vadd.f32 %v6650_v12, %v8785_v36  ;;  %6974 = vmatprep.subr.bf16.mxu1 %v7568_v8  ;;  %v7581_v36 = vld [vmem:[%s9411_s1 + $0xbc8] sm:$0xff]   ;;  %v7603_v5 = vld [vmem:[%s9411_s1 + $0xbb0] sm:$0xff]   ;;  %v7607_v11 = vld [vmem:[%s9411_s1 + $0xbb8] sm:$0xff]  }
 0x15f   : > { %v181_v12 = vld [vmem:[%s7878_s27 + $0x58] sm:$0xff]  ;;  %v7609_v15 = vld [vmem:[%s9411_s1 + $0xc40] sm:$0xff]  }
 0x160   : > { %v8884_v22 = vadd.f32 %v6672_v13, %v4916_v20  ;;  %6953 = vmatpush3.bf16.msra.mxu0 %v7569_v9  ;;  %v7605_v9 = vld [vmem:[%s9411_s1 + $0xbf8] sm:$0xff]   ;;  %v1427_v13 = vrot.slane %v181_v12, %v7893_v41  ;;  %v1420_v14 = vcombine.high %v181_v12, %v181_v12  ;;  %v7610_v16 = vld [vmem:[%s9411_s1 + $0xcc0] sm:$0xff]   ;;  %v7649_v12 = vld [vmem:[%s9411_s1 + $0xd88] sm:$0xff]  }
 0x161   : > { %6975 = vmatpush3.bf16.msra.mxu1 %v7570_v18  ;;  %6954 = vmatprep.subr.bf16.mxu0 %v7571_v19  ;;  %v7611_v19 = vld [vmem:[%s9411_s1 + $0xc00] sm:$0xff]  }
 0x162   : > { %6976 = vmatprep.subr.bf16.mxu1 %v7572_v21  ;;  %v1435_v17 = vcombine.high %v1427_v13, %v1427_v13  ;;  %v1434_v18 = vrot.slane %v1420_v14, %v7893_v41  ;;  %v7612_v20 = vld [vmem:[%s9411_s1 + $0xc80] sm:$0xff]   ;;  %v7651_v14 = vld [vmem:[%s9411_s1 + $0xdd0] sm:$0xff]  }
 0x164   : > { %6955 = vmatpush3.bf16.msra.mxu0 %v7573_v23  ;;  %v1436_v21 = vcombine.high %v1434_v18, %v1434_v18  ;;  %v7614_v23 = vld [vmem:[%s9411_s1 + $0xcc8] sm:$0xff]  }
 0x165   : > { %6977 = vmatpush3.bf16.msra.mxu1 %v7574_v24  ;;  %6984 = vmatprep.subr.bf16.mxu0 %v7576_v28  ;;  %v7615_v24 = vld [vmem:[%s9411_s1 + $0xc08] sm:$0xff]   ;;  %v7619_v28 = vld [vmem:[%s9411_s1 + $0xc10] sm:$0xff]  }
 0x166   : > { %7006 = vmatprep.subr.bf16.mxu1 %v7577_v29  ;;  %v7620_v29 = vld [vmem:[%s9411_s1 + $0xc90] sm:$0xff]  }
 0x167   : > { %5474 = vmatmul.mubr.bf16.vlgmr.msra.gmra.mrb[40].mxu0 %v1410_v26  ;;  %v7617_v26 = vld [vmem:[%s9411_s1 + $0xc50] sm:$0xff]  }
 0x168   : > { %6985 = vmatpush3.bf16.msra.mxu0 %v7578_v32  ;;  %5514 = vmatmul.mubr.bf16.vlgmr.msra.gmra.mrb[40].mxu1 %v1417_v31  ;;  %v7622_v31 = vld [vmem:[%s9411_s1 + $0xcd8] sm:$0xff]  }
 0x169   : > { %6986 = vmatprep.subr.bf16.mxu0 %v7580_v35  ;;  %7007 = vmatpush3.bf16.msra.mxu1 %v7579_v33  ;;  %v7623_v32 = vld [vmem:[%s9411_s1 + $0xc18] sm:$0xff]   ;;  %v7626_v35 = vld [vmem:[%s9411_s1 + $0xce0] sm:$0xff]  }
 0x16a   : > { %7008 = vmatprep.subr.bf16.mxu1 %v7581_v36  ;;  %5553 = vmatprep.mubr.bf16.mxu0 %v1435_v17  ;;  %v7624_v33 = vld [vmem:[%s9411_s1 + $0xc98] sm:$0xff]   ;;  %v7627_v36 = vld [vmem:[%s9411_s1 + $0xc20] sm:$0xff]  }
 0x16b   : > { %5593 = vmatprep.mubr.bf16.mxu1 %v1436_v21  ;;  %v7654_v17 = vld [vmem:[%s9411_s1 + $0xd58] sm:$0xff]   ;;  %v7658_v21 = vld [vmem:[%s9411_s1 + $0xd60] sm:$0xff]  }
 0x16c   : > { %6987 = vmatpush3.bf16.msra.mxu0 %v7582_v37  ;;  %v7628_v37 = vld [vmem:[%s9411_s1 + $0xca0] sm:$0xff]  }
 0x16d   : > { %6988 = vmatprep.subr.bf16.mxu0 %v7584_v39  ;;  %7009 = vmatpush3.bf16.msra.mxu1 %v7583_v38  ;;  %v7629_v38 = vld [vmem:[%s9411_s1 + $0xc68] sm:$0xff]  }
 0x16e   : > { %7010 = vmatprep.subr.bf16.mxu1 %v7585_v40  ;;  %v7630_v39 = vld [vmem:[%s9411_s1 + $0xce8] sm:$0xff]  }
 0x16f   : > { %v7631_v40 = vld [vmem:[%s9411_s1 + $0xc28] sm:$0xff]  }
 0x170   : > { %6989 = vmatpush3.bf16.msra.mxu0 %v7586_v42 }
 0x171   : > { %6990 = vmatprep.subr.bf16.mxu0 %v7588_v44  ;;  %7011 = vmatpush3.bf16.msra.mxu1 %v7587_v43  ;;  %v7632_v44 = vld [vmem:[%s9411_s1 + $0xca8] sm:$0xff]  }
 0x172   : > { %7012 = vmatprep.subr.bf16.mxu1 %v7589_v45  ;;  %v7633_v45 = vld [vmem:[%s9411_s1 + $0xc70] sm:$0xff]  }
 0x174   : > { %6991 = vmatpush3.bf16.msra.mxu0 %v7590_v46 }
 0x175   : > { %6992 = vmatprep.subr.bf16.mxu0 %v7592_v48  ;;  %7013 = vmatpush3.bf16.msra.mxu1 %v7591_v47 }
 0x176   : > { %7014 = vmatprep.subr.bf16.mxu1 %v7593_v49 }
 0x178   : > { %6993 = vmatpush3.bf16.msra.mxu0 %v7594_v50 }
 0x179   : > { %6994 = vmatprep.subr.bf16.mxu0 %v7596_v52  ;;  %7015 = vmatpush3.bf16.msra.mxu1 %v7595_v51 }
 0x17a   : > { %v6692_v56 = vpop.f32.mrb[16].mxu0  ;;  %7016 = vmatprep.subr.bf16.mxu1 %v7597_v53 }
 0x17b   : > { %v6714_v57 = vpop.f32.mrb[16].mxu1  ;;  %v6693_v60 = vpop.f32.mrb[17].mxu0 }
 0x17c   : > { %v6715_v61 = vpop.f32.mrb[17].mxu1  ;;  %v6694_v62 = vadd.f32 %v6693_v60, %v6692_v56  ;;  %v6695_v0 = vpop.f32.mrb[18].mxu0  ;;  %6995 = vmatpush3.bf16.msra.mxu0 %v7598_v54  ;;  %v7634_v54 = vld [vmem:[%s9411_s1 + $0xcf0] sm:$0xff]   ;;  %v7638_v60 = vld [vmem:[%s9411_s1 + $0xcf8] sm:$0xff]  }
 0x17d   : > { %v6716_v63 = vadd.f32 %v6715_v61, %v6714_v57  ;;  %v6717_v1 = vpop.f32.mrb[18].mxu1  ;;  %v6696_v2 = vpop.f32.mrb[19].mxu0  ;;  %6996 = vmatprep.subr.bf16.mxu0 %v7600_v58  ;;  %7017 = vmatpush3.bf16.msra.mxu1 %v7599_v55  ;;  %v7635_v55 = vld [vmem:[%s9411_s1 + $0xc30] sm:$0xff]   ;;  %v7639_v61 = vld [vmem:[%s9411_s1 + $0xc38] sm:$0xff]  }
 0x17e   : > { %v6718_v3 = vpop.f32.mrb[19].mxu1  ;;  %v4996_v6 = vadd.f32 %v6694_v62, %v8884_v22  ;;  %7018 = vmatprep.subr.bf16.mxu1 %v7601_v59  ;;  %v7613_v22 = vld [vmem:[%s9411_s1 + $0xc48] sm:$0xff]   ;;  %v7636_v57 = vld [vmem:[%s9411_s1 + $0xcb0] sm:$0xff]   ;;  %v7637_v59 = vld [vmem:[%s9411_s1 + $0xc78] sm:$0xff]  }
 0x17f   : > { %v7640_v62 = vld [vmem:[%s9411_s1 + $0xcb8] sm:$0xff]   ;;  %v7642_v2 = vld [vmem:[%s9411_s1 + $0xd40] sm:$0xff]  }
 0x180   : > { %v8983_v8 = vadd.f32 %v6716_v63, %v4996_v6  ;;  %6997 = vmatpush3.bf16.msra.mxu0 %v7602_v4  ;;  %v182_v63 = vld [vmem:[%s7878_s27 + $0x60] sm:$0xff] }
 0x181   : > { %6998 = vmatprep.subr.bf16.mxu0 %v7604_v7  ;;  %7019 = vmatpush3.bf16.msra.mxu1 %v7603_v5  ;;  %v1444_v0 = vrot.slane %v182_v63, %v7893_v41  ;;  %v1437_v1 = vcombine.high %v182_v63, %v182_v63  ;;  %v7643_v3 = vld [vmem:[%s9411_s1 + $0xdc0] sm:$0xff]   ;;  %v7682_v63 = vld [vmem:[%s9411_s1 + $0xe88] sm:$0xff]  }
 0x182   : > { %7020 = vmatprep.subr.bf16.mxu1 %v7605_v9  ;;  %v7644_v6 = vld [vmem:[%s9411_s1 + $0xd00] sm:$0xff]   ;;  %v7646_v9 = vld [vmem:[%s9411_s1 + $0xd48] sm:$0xff]  }
 0x183   : > { %v1452_v4 = vcombine.high %v1444_v0, %v1444_v0  ;;  %v1451_v5 = vrot.slane %v1437_v1, %v7893_v41  ;;  %v7645_v7 = vld [vmem:[%s9411_s1 + $0xd80] sm:$0xff]   ;;  %v7684_v1 = vld [vmem:[%s9411_s1 + $0xed0] sm:$0xff]  }
 0x184   : > { %6999 = vmatpush3.bf16.msra.mxu0 %v7606_v10  ;;  %v7647_v10 = vld [vmem:[%s9411_s1 + $0xdc8] sm:$0xff]  }
 0x185   : > { %7028 = vmatprep.subr.bf16.mxu0 %v7609_v15  ;;  %7021 = vmatpush3.bf16.msra.mxu1 %v7607_v11  ;;  %v7648_v11 = vld [vmem:[%s9411_s1 + $0xd08] sm:$0xff]   ;;  %v7652_v15 = vld [vmem:[%s9411_s1 + $0xd10] sm:$0xff]  }
 0x186   : > { %7050 = vmatprep.subr.bf16.mxu1 %v7610_v16  ;;  %v7653_v16 = vld [vmem:[%s9411_s1 + $0xd90] sm:$0xff]  }
 0x187   : > { %5554 = vmatmul.mubr.bf16.vlgmr.msra.gmra.mrb[44].mxu0 %v1427_v13  ;;  %v7650_v13 = vld [vmem:[%s9411_s1 + $0xd50] sm:$0xff]  }
 0x188   : > { %7029 = vmatpush3.bf16.msra.mxu0 %v7611_v19  ;;  %5594 = vmatmul.mubr.bf16.vlgmr.msra.gmra.mrb[44].mxu1 %v1434_v18  ;;  %v7655_v18 = vld [vmem:[%s9411_s1 + $0xdd8] sm:$0xff]  }
 0x189   : > { %7030 = vmatprep.subr.bf16.mxu0 %v7613_v22  ;;  %7051 = vmatpush3.bf16.msra.mxu1 %v7612_v20  ;;  %v7656_v19 = vld [vmem:[%s9411_s1 + $0xd18] sm:$0xff]   ;;  %v7659_v22 = vld [vmem:[%s9411_s1 + $0xde0] sm:$0xff]  }
 0x18a   : > { %7052 = vmatprep.subr.bf16.mxu1 %v7614_v23  ;;  %5633 = vmatprep.mubr.bf16.mxu0 %v1452_v4  ;;  %v7657_v20 = vld [vmem:[%s9411_s1 + $0xd98] sm:$0xff]   ;;  %v7660_v23 = vld [vmem:[%s9411_s1 + $0xd20] sm:$0xff]  }
 0x18b   : > { %v7687_v4 = vld [vmem:[%s9411_s1 + $0xe58] sm:$0xff]  }
 0x18c   : > { %7031 = vmatpush3.bf16.msra.mxu0 %v7615_v24  ;;  %v7661_v24 = vld [vmem:[%s9411_s1 + $0xda0] sm:$0xff]  }
 0x18d   : > { %7032 = vmatprep.subr.bf16.mxu0 %v7617_v26  ;;  %7053 = vmatpush3.bf16.msra.mxu1 %v7616_v25  ;;  %v7662_v25 = vld [vmem:[%s9411_s1 + $0xd68] sm:$0xff]  }
 0x18e   : > { %7054 = vmatprep.subr.bf16.mxu1 %v7618_v27  ;;  %v7663_v26 = vld [vmem:[%s9411_s1 + $0xde8] sm:$0xff]  }
 0x190   : > { %7033 = vmatpush3.bf16.msra.mxu0 %v7619_v28 }
 0x191   : > { %7034 = vmatprep.subr.bf16.mxu0 %v7621_v30  ;;  %7055 = vmatpush3.bf16.msra.mxu1 %v7620_v29  ;;  %v7664_v29 = vld [vmem:[%s9411_s1 + $0xd28] sm:$0xff]  }
 0x192   : > { %7056 = vmatprep.subr.bf16.mxu1 %v7622_v31  ;;  %v7665_v30 = vld [vmem:[%s9411_s1 + $0xda8] sm:$0xff]  }
 0x194   : > { %7035 = vmatpush3.bf16.msra.mxu0 %v7623_v32 }
 0x195   : > { %7036 = vmatprep.subr.bf16.mxu0 %v7625_v34  ;;  %7057 = vmatpush3.bf16.msra.mxu1 %v7624_v33 }
 0x196   : > { %7058 = vmatprep.subr.bf16.mxu1 %v7626_v35 }
 0x198   : > { %7037 = vmatpush3.bf16.msra.mxu0 %v7627_v36 }
 0x199   : > { %7038 = vmatprep.subr.bf16.mxu0 %v7629_v38  ;;  %7059 = vmatpush3.bf16.msra.mxu1 %v7628_v37 }
 0x19a   : > { %v6736_v42 = vpop.f32.mrb[20].mxu0  ;;  %7060 = vmatprep.subr.bf16.mxu1 %v7630_v39  ;;  %v7666_v39 = vld [vmem:[%s9411_s1 + $0xd70] sm:$0xff]  }
 0x19b   : > { %v6758_v43 = vpop.f32.mrb[20].mxu1  ;;  %v6737_v46 = vpop.f32.mrb[21].mxu0 }
 0x19c   : > { %v6759_v47 = vpop.f32.mrb[21].mxu1  ;;  %v6738_v48 = vadd.f32 %v6737_v46, %v6736_v42  ;;  %v6739_v50 = vpop.f32.mrb[22].mxu0  ;;  %7039 = vmatpush3.bf16.msra.mxu0 %v7631_v40  ;;  %v7667_v40 = vld [vmem:[%s9411_s1 + $0xdf0] sm:$0xff]   ;;  %v7670_v46 = vld [vmem:[%s9411_s1 + $0xd78] sm:$0xff]  }
 0x19d   : > { %v6760_v49 = vadd.f32 %v6759_v47, %v6758_v43  ;;  %v6761_v51 = vpop.f32.mrb[22].mxu1  ;;  %v6740_v52 = vpop.f32.mrb[23].mxu0  ;;  %7040 = vmatprep.subr.bf16.mxu0 %v7633_v45  ;;  %7061 = vmatpush3.bf16.msra.mxu1 %v7632_v44  ;;  %v7668_v43 = vld [vmem:[%s9411_s1 + $0xd30] sm:$0xff]   ;;  %v7671_v47 = vld [vmem:[%s9411_s1 + $0xdf8] sm:$0xff]   ;;  %v183_v50 = vld [vmem:[%s7878_s27 + $0x68] sm:$0xff] }
 0x19e   : > { %v6762_v53 = vpop.f32.mrb[23].mxu1  ;;  %v5076_v56 = vadd.f32 %v6738_v48, %v8983_v8  ;;  %7062 = vmatprep.subr.bf16.mxu1 %v7634_v54  ;;  %v1453_v8 = vcombine.high %v1451_v5, %v1451_v5  ;;  %v7669_v45 = vld [vmem:[%s9411_s1 + $0xdb0] sm:$0xff]   ;;  %v7672_v48 = vld [vmem:[%s9411_s1 + $0xd38] sm:$0xff]   ;;  %v1461_v51 = vrot.slane %v183_v50, %v7893_v41  ;;  %v1454_v52 = vcombine.high %v183_v50, %v183_v50  ;;  %v7676_v54 = vld [vmem:[%s9411_s1 + $0xec0] sm:$0xff]  }
 0x19f   : > { %v7675_v53 = vld [vmem:[%s9411_s1 + $0xe40] sm:$0xff]   ;;  %v7715_v50 = vld [vmem:[%s9411_s1 + $0xf88] sm:$0xff]  }
 0x1a0   : > { %v9082_v58 = vadd.f32 %v6760_v49, %v5076_v56  ;;  %7041 = vmatpush3.bf16.msra.mxu0 %v7635_v55  ;;  %5673 = vmatprep.mubr.bf16.mxu1 %v1453_v8  ;;  %v7673_v49 = vld [vmem:[%s9411_s1 + $0xdb8] sm:$0xff]   ;;  %v1469_v55 = vcombine.high %v1461_v51, %v1461_v51  ;;  %v1468_v56 = vrot.slane %v1454_v52, %v7893_v41  ;;  %v7691_v8 = vld [vmem:[%s9411_s1 + $0xe60] sm:$0xff]   ;;  %v7717_v52 = vld [vmem:[%s9411_s1 + $0xfd0] sm:$0xff]  }
 0x1a1   : > { %7042 = vmatprep.subr.bf16.mxu0 %v7637_v59  ;;  %7063 = vmatpush3.bf16.msra.mxu1 %v7636_v57  ;;  %v7677_v57 = vld [vmem:[%s9411_s1 + $0xe00] sm:$0xff]  }
 0x1a2   : > { %7064 = vmatprep.subr.bf16.mxu1 %v7638_v60  ;;  %v1470_v59 = vcombine.high %v1468_v56, %v1468_v56  ;;  %v7679_v60 = vld [vmem:[%s9411_s1 + $0xe48] sm:$0xff]  }
 0x1a4   : > { %7043 = vmatpush3.bf16.msra.mxu0 %v7639_v61  ;;  %v7680_v61 = vld [vmem:[%s9411_s1 + $0xec8] sm:$0xff]  }
 0x1a5   : > { %7072 = vmatprep.subr.bf16.mxu0 %v7642_v2  ;;  %7065 = vmatpush3.bf16.msra.mxu1 %v7640_v62  ;;  %v7681_v62 = vld [vmem:[%s9411_s1 + $0xe08] sm:$0xff]   ;;  %v7685_v2 = vld [vmem:[%s9411_s1 + $0xe10] sm:$0xff]  }
 0x1a6   : > { %7094 = vmatprep.subr.bf16.mxu1 %v7643_v3  ;;  %v7686_v3 = vld [vmem:[%s9411_s1 + $0xe90] sm:$0xff]  }
 0x1a7   : > { %5634 = vmatmul.mubr.bf16.vlgmr.msra.gmra.mrb[48].mxu0 %v1444_v0  ;;  %v7683_v0 = vld [vmem:[%s9411_s1 + $0xe50] sm:$0xff]  }
 0x1a8   : > { %7073 = vmatpush3.bf16.msra.mxu0 %v7644_v6  ;;  %5674 = vmatmul.mubr.bf16.vlgmr.msra.gmra.mrb[48].mxu1 %v1451_v5  ;;  %v7688_v5 = vld [vmem:[%s9411_s1 + $0xed8] sm:$0xff]  }
 0x1a9   : > { %7074 = vmatprep.subr.bf16.mxu0 %v7646_v9  ;;  %7095 = vmatpush3.bf16.msra.mxu1 %v7645_v7  ;;  %v7689_v6 = vld [vmem:[%s9411_s1 + $0xe18] sm:$0xff]   ;;  %v7692_v9 = vld [vmem:[%s9411_s1 + $0xee0] sm:$0xff]  }
 0x1aa   : > { %7096 = vmatprep.subr.bf16.mxu1 %v7647_v10  ;;  %5713 = vmatprep.mubr.bf16.mxu0 %v1469_v55  ;;  %v7690_v7 = vld [vmem:[%s9411_s1 + $0xe98] sm:$0xff]   ;;  %v7693_v10 = vld [vmem:[%s9411_s1 + $0xe20] sm:$0xff]  }
 0x1ab   : > { %5753 = vmatprep.mubr.bf16.mxu1 %v1470_v59  ;;  %v7720_v55 = vld [vmem:[%s9411_s1 + $0xf58] sm:$0xff]   ;;  %v7724_v59 = vld [vmem:[%s9411_s1 + $0xf60] sm:$0xff]  }
 0x1ac   : > { %7075 = vmatpush3.bf16.msra.mxu0 %v7648_v11  ;;  %v7694_v11 = vld [vmem:[%s9411_s1 + $0xea0] sm:$0xff]  }
 0x1ad   : > { %7076 = vmatprep.subr.bf16.mxu0 %v7650_v13  ;;  %7097 = vmatpush3.bf16.msra.mxu1 %v7649_v12  ;;  %v7695_v12 = vld [vmem:[%s9411_s1 + $0xe68] sm:$0xff]  }
 0x1ae   : > { %7098 = vmatprep.subr.bf16.mxu1 %v7651_v14 }
 0x1b0   : > { %7077 = vmatpush3.bf16.msra.mxu0 %v7652_v15  ;;  %v7696_v15 = vld [vmem:[%s9411_s1 + $0xee8] sm:$0xff]  }
 0x1b1   : > { %7078 = vmatprep.subr.bf16.mxu0 %v7654_v17  ;;  %7099 = vmatpush3.bf16.msra.mxu1 %v7653_v16  ;;  %v7697_v16 = vld [vmem:[%s9411_s1 + $0xe28] sm:$0xff]  }
 0x1b2   : > { %7100 = vmatprep.subr.bf16.mxu1 %v7655_v18 }
 0x1b4   : > { %7079 = vmatpush3.bf16.msra.mxu0 %v7656_v19 }
 0x1b5   : > { %7080 = vmatprep.subr.bf16.mxu0 %v7658_v21  ;;  %7101 = vmatpush3.bf16.msra.mxu1 %v7657_v20 }
 0x1b6   : > { %7102 = vmatprep.subr.bf16.mxu1 %v7659_v22 }
 0x1b8   : > { %7081 = vmatpush3.bf16.msra.mxu0 %v7660_v23  ;;  %v7698_v23 = vld [vmem:[%s9411_s1 + $0xea8] sm:$0xff]  }
 0x1b9   : > { %7082 = vmatprep.subr.bf16.mxu0 %v7662_v25  ;;  %7103 = vmatpush3.bf16.msra.mxu1 %v7661_v24 }
 0x1ba   : > { %v6780_v27 = vpop.f32.mrb[24].mxu0  ;;  %7104 = vmatprep.subr.bf16.mxu1 %v7663_v26  ;;  %v7699_v26 = vld [vmem:[%s9411_s1 + $0xe70] sm:$0xff]  }
 0x1bb   : > { %v6802_v28 = vpop.f32.mrb[24].mxu1  ;;  %v6781_v31 = vpop.f32.mrb[25].mxu0 }
 0x1bc   : > { %v6803_v32 = vpop.f32.mrb[25].mxu1  ;;  %v6782_v33 = vadd.f32 %v6781_v31, %v6780_v27  ;;  %v6783_v35 = vpop.f32.mrb[26].mxu0  ;;  %7083 = vmatpush3.bf16.msra.mxu0 %v7664_v29  ;;  %v7702_v31 = vld [vmem:[%s9411_s1 + $0xeb0] sm:$0xff]  }
 0x1bd   : > { %v6804_v34 = vadd.f32 %v6803_v32, %v6802_v28  ;;  %v6805_v36 = vpop.f32.mrb[26].mxu1  ;;  %v6784_v37 = vpop.f32.mrb[27].mxu0  ;;  %7084 = vmatprep.subr.bf16.mxu0 %v7666_v39  ;;  %7105 = vmatpush3.bf16.msra.mxu1 %v7665_v30  ;;  %v7700_v28 = vld [vmem:[%s9411_s1 + $0xef0] sm:$0xff]   ;;  %v7703_v32 = vld [vmem:[%s9411_s1 + $0xe78] sm:$0xff]   ;;  %v7708_v39 = vld [vmem:[%s9411_s1 + $0xf40] sm:$0xff]  }
 0x1be   : > { %v6806_v38 = vpop.f32.mrb[27].mxu1  ;;  %v5156_v42 = vadd.f32 %v6782_v33, %v9082_v58  ;;  %7106 = vmatprep.subr.bf16.mxu1 %v7667_v40  ;;  %v7678_v58 = vld [vmem:[%s9411_s1 + $0xe80] sm:$0xff]   ;;  %v7701_v30 = vld [vmem:[%s9411_s1 + $0xe30] sm:$0xff]   ;;  %v7704_v33 = vld [vmem:[%s9411_s1 + $0xef8] sm:$0xff]  }
 0x1bf   : > { %v7706_v35 = vld [vmem:[%s9411_s1 + $0xeb8] sm:$0xff]   ;;  %v184_v36 = vld [vmem:[%s7878_s27 + $0x70] sm:$0xff]  ;;  %v7709_v40 = vld [vmem:[%s9411_s1 + $0xfc0] sm:$0xff]  }
 0x1c0   : > { %v9181_v44 = vadd.f32 %v6804_v34, %v5156_v42  ;;  %7085 = vmatpush3.bf16.msra.mxu0 %v7668_v43  ;;  %v7705_v34 = vld [vmem:[%s9411_s1 + $0xe38] sm:$0xff]   ;;  %v1478_v37 = vrot.slane %v184_v36, %v7893_v41  ;;  %v1471_v38 = vcombine.high %v184_v36, %v184_v36 }
 0x1c1   : > { %7086 = vmatprep.subr.bf16.mxu0 %v7670_v46  ;;  %7107 = vmatpush3.bf16.msra.mxu1 %v7669_v45  ;;  %v7711_v45 = vld [vmem:[%s9411_s1 + $0xf80] sm:$0xff]  }
 0x1c2   : > { %7108 = vmatprep.subr.bf16.mxu1 %v7671_v47  ;;  %v1486_v42 = vcombine.high %v1478_v37, %v1478_v37  ;;  %v1485_v43 = vrot.slane %v1471_v38, %v7893_v41  ;;  %v7712_v47 = vld [vmem:[%s9411_s1 + $0xf48] sm:$0xff]  }
 0x1c4   : > { %7087 = vmatpush3.bf16.msra.mxu0 %v7672_v48  ;;  %v1487_v46 = vcombine.high %v1485_v43, %v1485_v43  ;;  %v7713_v48 = vld [vmem:[%s9411_s1 + $0xfc8] sm:$0xff]  }
 0x1c5   : > { %7116 = vmatprep.subr.bf16.mxu0 %v7675_v53  ;;  %7109 = vmatpush3.bf16.msra.mxu1 %v7673_v49  ;;  %v7714_v49 = vld [vmem:[%s9411_s1 + $0xf08] sm:$0xff]   ;;  %v7718_v53 = vld [vmem:[%s9411_s1 + $0xf10] sm:$0xff]  }
 0x1c6   : > { %7138 = vmatprep.subr.bf16.mxu1 %v7676_v54  ;;  %v7719_v54 = vld [vmem:[%s9411_s1 + $0xf90] sm:$0xff]  }
 0x1c7   : > { %5714 = vmatmul.mubr.bf16.vlgmr.msra.gmra.mrb[52].mxu0 %v1461_v51  ;;  %v7716_v51 = vld [vmem:[%s9411_s1 + $0xf50] sm:$0xff]  }
 0x1c8   : > { %7117 = vmatpush3.bf16.msra.mxu0 %v7677_v57  ;;  %5754 = vmatmul.mubr.bf16.vlgmr.msra.gmra.mrb[52].mxu1 %v1468_v56  ;;  %v7721_v56 = vld [vmem:[%s9411_s1 + $0xfd8] sm:$0xff]  }
 0x1c9   : > { %7118 = vmatprep.subr.bf16.mxu0 %v7679_v60  ;;  %7139 = vmatpush3.bf16.msra.mxu1 %v7678_v58  ;;  %v7722_v57 = vld [vmem:[%s9411_s1 + $0xf18] sm:$0xff]   ;;  %v7725_v60 = vld [vmem:[%s9411_s1 + $0xfe0] sm:$0xff]  }
 0x1ca   : > { %7140 = vmatprep.subr.bf16.mxu1 %v7680_v61  ;;  %5793 = vmatprep.mubr.bf16.mxu0 %v1486_v42  ;;  %v7723_v58 = vld [vmem:[%s9411_s1 + $0xf98] sm:$0xff]   ;;  %v7726_v61 = vld [vmem:[%s9411_s1 + $0xf20] sm:$0xff]  }
 0x1cb   : > { %5833 = vmatprep.mubr.bf16.mxu1 %v1487_v46 }
 0x1cc   : > { %7119 = vmatpush3.bf16.msra.mxu0 %v7681_v62  ;;  %v7727_v62 = vld [vmem:[%s9411_s1 + $0xfa0] sm:$0xff]  }
 0x1cd   : > { %7120 = vmatprep.subr.bf16.mxu0 %v7683_v0  ;;  %7141 = vmatpush3.bf16.msra.mxu1 %v7682_v63 }
 0x1ce   : > { %7142 = vmatprep.subr.bf16.mxu1 %v7684_v1  ;;  %v7728_v1 = vld [vmem:[%s9411_s1 + $0xf68] sm:$0xff]  }
 0x1d0   : > { %7121 = vmatpush3.bf16.msra.mxu0 %v7685_v2  ;;  %v7729_v2 = vld [vmem:[%s9411_s1 + $0xfe8] sm:$0xff]  }
 0x1d1   : > { %7122 = vmatprep.subr.bf16.mxu0 %v7687_v4  ;;  %7143 = vmatpush3.bf16.msra.mxu1 %v7686_v3 }
 0x1d2   : > { %7144 = vmatprep.subr.bf16.mxu1 %v7688_v5 }
 0x1d4   : > { %7123 = vmatpush3.bf16.msra.mxu0 %v7689_v6 }
 0x1d5   : > { %7124 = vmatprep.subr.bf16.mxu0 %v7691_v8  ;;  %7145 = vmatpush3.bf16.msra.mxu1 %v7690_v7 }
 0x1d6   : > { %7146 = vmatprep.subr.bf16.mxu1 %v7692_v9  ;;  %v7730_v9 = vld [vmem:[%s9411_s1 + $0xf28] sm:$0xff]  }
 0x1d8   : > { %7125 = vmatpush3.bf16.msra.mxu0 %v7693_v10 }
 0x1d9   : > { %7126 = vmatprep.subr.bf16.mxu0 %v7695_v12  ;;  %7147 = vmatpush3.bf16.msra.mxu1 %v7694_v11  ;;  %v7731_v12 = vld [vmem:[%s9411_s1 + $0xfa8] sm:$0xff]  }
 0x1da   : > { %v6824_v13 = vpop.f32.mrb[28].mxu0  ;;  %7148 = vmatprep.subr.bf16.mxu1 %v7696_v15 }
 0x1db   : > { %v6846_v14 = vpop.f32.mrb[28].mxu1  ;;  %v6825_v17 = vpop.f32.mrb[29].mxu0 }
 0x1dc   : > { %v6847_v18 = vpop.f32.mrb[29].mxu1  ;;  %v6826_v19 = vadd.f32 %v6825_v17, %v6824_v13  ;;  %v6827_v21 = vpop.f32.mrb[30].mxu0  ;;  %7127 = vmatpush3.bf16.msra.mxu0 %v7697_v16  ;;  %v7733_v16 = vld [vmem:[%s9411_s1 + $0xff0] sm:$0xff]  }
 0x1dd   : > { %v6848_v20 = vadd.f32 %v6847_v18, %v6846_v14  ;;  %v6849_v22 = vpop.f32.mrb[30].mxu1  ;;  %v6828_v24 = vpop.f32.mrb[31].mxu0  ;;  %7128 = vmatprep.subr.bf16.mxu0 %v7699_v26  ;;  %7149 = vmatpush3.bf16.msra.mxu1 %v7698_v23  ;;  %v7732_v14 = vld [vmem:[%s9411_s1 + $0xf70] sm:$0xff]   ;;  %v7738_v21 = vld [vmem:[%s9411_s1 + $0xf38] sm:$0xff]  }
 0x1de   : > { %v6850_v25 = vpop.f32.mrb[31].mxu1  ;;  %v5236_v27 = vadd.f32 %v6826_v19, %v9181_v44  ;;  %7150 = vmatprep.subr.bf16.mxu1 %v7700_v28  ;;  %v7710_v44 = vld [vmem:[%s9411_s1 + $0xf00] sm:$0xff]   ;;  %v7734_v17 = vld [vmem:[%s9411_s1 + $0xf30] sm:$0xff]   ;;  %v7736_v19 = vld [vmem:[%s9411_s1 + $0xf78] sm:$0xff]  }
 0x1df   : > { %v7735_v18 = vld [vmem:[%s9411_s1 + $0xfb0] sm:$0xff]   ;;  %v7739_v22 = vld [vmem:[%s9411_s1 + $0xfb8] sm:$0xff]  }
 0x1e0   : > { %v9280_v29 = vadd.f32 %v6848_v20, %v5236_v27  ;;  %7129 = vmatpush3.bf16.msra.mxu0 %v7701_v30  ;;  %v7737_v20 = vld [vmem:[%s9411_s1 + $0xff8] sm:$0xff]  }
 0x1e1   : > { %7130 = vmatprep.subr.bf16.mxu0 %v7703_v32  ;;  %7151 = vmatpush3.bf16.msra.mxu1 %v7702_v31  ;;  %v185_v23 = vld [vmem:[%s7878_s27 + $0x78] sm:$0xff]  ;;  %s5983_s27 = sshll.u32 %s9415_s13, 2 }
 0x1e2   : > { %7152 = vmatprep.subr.bf16.mxu1 %v7704_v33  ;;  %v1495_v24 = vrot.slane %v185_v23, %v7893_v41  ;;  %v1488_v25 = vcombine.high %v185_v23, %v185_v23  ;;  %s168_s9 = scalar_lea.vmem %s9413_s3, %s5983_s27 }
 0x1e4   : > { %7131 = vmatpush3.bf16.msra.mxu0 %v7705_v34  ;;  %v1503_v26 = vcombine.high %v1495_v24, %v1495_v24  ;;  %v1502_v27 = vrot.slane %v1488_v25, %v7893_v41 }
 0x1e5   : > { %7160 = vmatprep.subr.bf16.mxu0 %v7708_v39  ;;  %7153 = vmatpush3.bf16.msra.mxu1 %v7706_v35 }
 0x1e6   : > { %7182 = vmatprep.subr.bf16.mxu1 %v7709_v40  ;;  %v1504_v28 = vcombine.high %v1502_v27, %v1502_v27 }
 0x1e7   : > { %5794 = vmatmul.mubr.bf16.vlgmr.msra.gmra.mrb[56].mxu0 %v1478_v37 }
 0x1e8   : > { %7161 = vmatpush3.bf16.msra.mxu0 %v7710_v44  ;;  %5834 = vmatmul.mubr.bf16.vlgmr.msra.gmra.mrb[56].mxu1 %v1485_v43 }
 0x1e9   : > { %7162 = vmatprep.subr.bf16.mxu0 %v7712_v47  ;;  %7183 = vmatpush3.bf16.msra.mxu1 %v7711_v45 }
 0x1ea   : > { %7184 = vmatprep.subr.bf16.mxu1 %v7713_v48  ;;  %5873 = vmatprep.mubr.bf16.mxu0 %v1503_v26 }
 0x1eb   : > { %5913 = vmatprep.mubr.bf16.mxu1 %v1504_v28 }
 0x1ec   : > { %7163 = vmatpush3.bf16.msra.mxu0 %v7714_v49 }
 0x1ed   : > { %7164 = vmatprep.subr.bf16.mxu0 %v7716_v51  ;;  %7185 = vmatpush3.bf16.msra.mxu1 %v7715_v50 }
 0x1ee   : > { %7186 = vmatprep.subr.bf16.mxu1 %v7717_v52 }
 0x1f0   : > { %7165 = vmatpush3.bf16.msra.mxu0 %v7718_v53 }
 0x1f1   : > { %7166 = vmatprep.subr.bf16.mxu0 %v7720_v55  ;;  %7187 = vmatpush3.bf16.msra.mxu1 %v7719_v54 }
 0x1f2   : > { %7188 = vmatprep.subr.bf16.mxu1 %v7721_v56 }
 0x1f4   : > { %7167 = vmatpush3.bf16.msra.mxu0 %v7722_v57 }
 0x1f5   : > { %7168 = vmatprep.subr.bf16.mxu0 %v7724_v59  ;;  %7189 = vmatpush3.bf16.msra.mxu1 %v7723_v58 }
 0x1f6   : > { %7190 = vmatprep.subr.bf16.mxu1 %v7725_v60 }
 0x1f8   : > { %7169 = vmatpush3.bf16.msra.mxu0 %v7726_v61 }
 0x1f9   : > { %7170 = vmatprep.subr.bf16.mxu0 %v7728_v1  ;;  %7191 = vmatpush3.bf16.msra.mxu1 %v7727_v62 }
 0x1fa   : > { %v6868_v63 = vpop.f32.mrb[32].mxu0  ;;  %7192 = vmatprep.subr.bf16.mxu1 %v7729_v2 }
 0x1fb   : > { %v6890_v0 = vpop.f32.mrb[32].mxu1  ;;  %v6869_v3 = vpop.f32.mrb[33].mxu0 }
 0x1fc   : > { %v6891_v4 = vpop.f32.mrb[33].mxu1  ;;  %v6870_v5 = vadd.f32 %v6869_v3, %v6868_v63  ;;  %v6871_v7 = vpop.f32.mrb[34].mxu0  ;;  %7171 = vmatpush3.bf16.msra.mxu0 %v7730_v9 }
 0x1fd   : > { %v6892_v6 = vadd.f32 %v6891_v4, %v6890_v0  ;;  %v6893_v8 = vpop.f32.mrb[34].mxu1  ;;  %v6872_v10 = vpop.f32.mrb[35].mxu0  ;;  %7172 = vmatprep.subr.bf16.mxu0 %v7732_v14  ;;  %7193 = vmatpush3.bf16.msra.mxu1 %v7731_v12 }
 0x1fe   : > { %v5316_v11 = vadd.f32 %v6870_v5, %v9280_v29  ;;  %v6894_v13 = vpop.f32.mrb[35].mxu1  ;;  %7194 = vmatprep.subr.bf16.mxu1 %v7733_v16 }
 0x200   : > { %v5356_v15 = vadd.f32 %v6892_v6, %v5316_v11  ;;  %7173 = vmatpush3.bf16.msra.mxu0 %v7734_v17 }
 0x201   : > { %7174 = vmatprep.subr.bf16.mxu0 %v7736_v19  ;;  %7195 = vmatpush3.bf16.msra.mxu1 %v7735_v18 }
 0x202   : > { %7196 = vmatprep.subr.bf16.mxu1 %v7737_v20 }
 0x204   : > { %7175 = vmatpush3.bf16.msra.mxu0 %v7738_v21 }
 0x205   : > { %7197 = vmatpush3.bf16.msra.mxu1 %v7739_v22 }
 0x207   : > { %5874 = vmatmul.mubr.bf16.vlgmr.msra.gmra.mrb[60].mxu0 %v1495_v24 }
 0x208   : > { %5914 = vmatmul.mubr.bf16.vlgmr.msra.gmra.mrb[60].mxu1 %v1502_v27 }
 0x21a   : > { %v6912_v29 = vpop.f32.mrb[36].mxu0 }
 0x21b   : > { %v6934_v30 = vpop.f32.mrb[36].mxu1  ;;  %v6913_v31 = vpop.f32.mrb[37].mxu0 }
 0x21c   : > { %v6914_v32 = vadd.f32 %v6913_v31, %v6912_v29  ;;  %v6935_v33 = vpop.f32.mrb[37].mxu1  ;;  %v6915_v34 = vpop.f32.mrb[38].mxu0 }
 0x21d   : > { %v6936_v35 = vadd.f32 %v6935_v33, %v6934_v30  ;;  %v6937_v36 = vpop.f32.mrb[38].mxu1  ;;  %v6916_v37 = vpop.f32.mrb[39].mxu0 }
 0x21e   : > { %v5396_v38 = vadd.f32 %v6914_v32, %v5356_v15  ;;  %v6938_v39 = vpop.f32.mrb[39].mxu1 }
 0x220   : > { %v5436_v40 = vadd.f32 %v6936_v35, %v5396_v38 }
 0x23a   : > { %v6956_v42 = vpop.f32.mrb[40].mxu0 }
 0x23b   : > { %v6957_v41 = vpop.f32.mrb[41].mxu0  ;;  %v6978_v43 = vpop.f32.mrb[40].mxu1 }
 0x23c   : > { %v6958_v44 = vadd.f32 %v6957_v41, %v6956_v42  ;;  %v6959_v45 = vpop.f32.mrb[42].mxu0  ;;  %v6979_v46 = vpop.f32.mrb[41].mxu1 }
 0x23d   : > { %v6960_v47 = vpop.f32.mrb[43].mxu0  ;;  %v6980_v49 = vadd.f32 %v6979_v46, %v6978_v43  ;;  %v6981_v50 = vpop.f32.mrb[42].mxu1 }
 0x23e   : > { %v5476_v48 = vadd.f32 %v6958_v44, %v5436_v40  ;;  %v6982_v51 = vpop.f32.mrb[43].mxu1 }
 0x240   : > { %v5516_v52 = vadd.f32 %v6980_v49, %v5476_v48 }
 0x25a   : > { %v7000_v53 = vpop.f32.mrb[44].mxu0 }
 0x25b   : > { %v7001_v54 = vpop.f32.mrb[45].mxu0  ;;  %v7022_v55 = vpop.f32.mrb[44].mxu1 }
 0x25c   : > { %v7002_v56 = vadd.f32 %v7001_v54, %v7000_v53  ;;  %v7003_v57 = vpop.f32.mrb[46].mxu0  ;;  %v7023_v58 = vpop.f32.mrb[45].mxu1 }
 0x25d   : > { %v7004_v59 = vpop.f32.mrb[47].mxu0  ;;  %v7024_v61 = vadd.f32 %v7023_v58, %v7022_v55  ;;  %v7025_v62 = vpop.f32.mrb[46].mxu1 }
 0x25e   : > { %v5556_v60 = vadd.f32 %v7002_v56, %v5516_v52  ;;  %v7026_v63 = vpop.f32.mrb[47].mxu1 }
 0x260   : > { %v5596_v0 = vadd.f32 %v7024_v61, %v5556_v60 }
 0x27a   : > { %v7044_v1 = vpop.f32.mrb[48].mxu0 }
 0x27b   : > { %v7045_v2 = vpop.f32.mrb[49].mxu0  ;;  %v7066_v3 = vpop.f32.mrb[48].mxu1 }
 0x27c   : > { %v7046_v4 = vadd.f32 %v7045_v2, %v7044_v1  ;;  %v7047_v5 = vpop.f32.mrb[50].mxu0  ;;  %v7067_v6 = vpop.f32.mrb[49].mxu1 }
 0x27d   : > { %v7048_v7 = vpop.f32.mrb[51].mxu0  ;;  %v7068_v9 = vadd.f32 %v7067_v6, %v7066_v3  ;;  %v7069_v10 = vpop.f32.mrb[50].mxu1 }
 0x27e   : > { %v5636_v8 = vadd.f32 %v7046_v4, %v5596_v0  ;;  %v7070_v11 = vpop.f32.mrb[51].mxu1 }
 0x280   : > { %v5676_v12 = vadd.f32 %v7068_v9, %v5636_v8 }
 0x29a   : > { %v7088_v13 = vpop.f32.mrb[52].mxu0 }
 0x29b   : > { %v7089_v14 = vpop.f32.mrb[53].mxu0  ;;  %v7110_v15 = vpop.f32.mrb[52].mxu1 }
 0x29c   : > { %v7090_v16 = vadd.f32 %v7089_v14, %v7088_v13  ;;  %v7091_v17 = vpop.f32.mrb[54].mxu0  ;;  %v7111_v18 = vpop.f32.mrb[53].mxu1 }
 0x29d   : > { %v7092_v19 = vpop.f32.mrb[55].mxu0  ;;  %v7112_v21 = vadd.f32 %v7111_v18, %v7110_v15  ;;  %v7113_v22 = vpop.f32.mrb[54].mxu1 }
 0x29e   : > { %v5716_v20 = vadd.f32 %v7090_v16, %v5676_v12  ;;  %v7114_v23 = vpop.f32.mrb[55].mxu1 }
 0x2a0   : > { %v5756_v24 = vadd.f32 %v7112_v21, %v5716_v20 }
 0x2ba   : > { %v7132_v25 = vpop.f32.mrb[56].mxu0 }
 0x2bb   : > { %v7133_v26 = vpop.f32.mrb[57].mxu0  ;;  %v7154_v27 = vpop.f32.mrb[56].mxu1 }
 0x2bc   : > { %v7134_v28 = vadd.f32 %v7133_v26, %v7132_v25  ;;  %v7135_v29 = vpop.f32.mrb[58].mxu0  ;;  %v7155_v30 = vpop.f32.mrb[57].mxu1 }
 0x2bd   : > { %v7136_v31 = vpop.f32.mrb[59].mxu0  ;;  %v7156_v33 = vadd.f32 %v7155_v30, %v7154_v27  ;;  %v7157_v34 = vpop.f32.mrb[58].mxu1 }
 0x2be   : > { %v5796_v32 = vadd.f32 %v7134_v28, %v5756_v24  ;;  %v7158_v35 = vpop.f32.mrb[59].mxu1 }
 0x2c0   : > { %v5836_v36 = vadd.f32 %v7156_v33, %v5796_v32 }
 0x2da   : > { %v7176_v37 = vpop.f32.mrb[60].mxu0 }
 0x2db   : > { %v7177_v38 = vpop.f32.mrb[61].mxu0  ;;  %v7198_v39 = vpop.f32.mrb[60].mxu1 }
 0x2dc   : > { %v7178_v40 = vadd.f32 %v7177_v38, %v7176_v37  ;;  %v7179_v42 = vpop.f32.mrb[62].mxu0  ;;  %v7199_v41 = vpop.f32.mrb[61].mxu1 }
 0x2dd   : > { %v7180_v43 = vpop.f32.mrb[63].mxu0  ;;  %v7200_v45 = vadd.f32 %v7199_v41, %v7198_v39  ;;  %v7201_v46 = vpop.f32.mrb[62].mxu1 }
 0x2de   : > { %v5876_v44 = vadd.f32 %v7178_v40, %v5836_v36  ;;  %v7202_v47 = vpop.f32.mrb[63].mxu1 }
 0x2e0   : > { %v5916_v48 = vadd.f32 %v7200_v45, %v5876_v44 }
 0x2e2   : > { %5922 = vst.msk [vmem:[%s168_s9] sm:$0xf] %vm5921_vm0, %v5916_v48 }
 0x2e3 PF: > { %s13_s12 = sadd.s32 1, %s7747_s12  }
 0x2e4   : > { %p10_p4 = scmp.ge.s32.totalorder %s13_s12, 4  }
 0x2e6   :  { %12 = sbr.rel (!%p10_p4) target bundleno = 1 (0x1), region = 62 }

</bundles_post_ra>
